<compile_context>
chip_gen: v7x
topology: tpu7x:2x2x1
jax: 0.10.0
libtpu: 0.0.40
codegen_flags: <defaults>
</compile_context>

<pallas_src>
import functools
import math

import jax
import jax.numpy as jnp
from jax.experimental import pallas as pl
from jax.experimental.pallas import tpu as pltpu

LN_EPS = 1e-5            # nn.LayerNorm default
NEG_BIG = -1e9           # finite key-padding mask value (avoids inf-inf -> NaN)
ACT_DTYPE = jnp.bfloat16  # dtype fed to the MXU / stored between kernels


# ---------------------------------------------------------------------------
# small helpers
# ---------------------------------------------------------------------------
def _round_up(x, m):
    return ((x + m - 1) // m) * m


def _choose_tile(total, target, quantum):
    """Largest quantum-aligned tile <= target that divides total (else total)."""
    if total <= target:
        return total
    t = (target // quantum) * quantum
    while t >= quantum:
        if total % t == 0:
            return t
        t -= quantum
    return total


def _layer_norm(x, w, b):
    mu = jnp.mean(x, axis=-1, keepdims=True)
    var = jnp.mean((x - mu) ** 2, axis=-1, keepdims=True)
    return (x - mu) * jax.lax.rsqrt(var + LN_EPS) * w + b


def _gelu(x):
    # TODO(synk): PyTorch F.gelu default is the exact erf GELU; the tanh
    # approximation keeps the transcendental on the EUP and is ~1e-3 close.
    c = jnp.float32(0.7978845608028654)  # sqrt(2/pi)
    return 0.5 * x * (1.0 + jnp.tanh(c * (x + 0.044715 * x * x * x)))


_TPU_VMEM_CAP = None


def _vmem_cap_bytes():
    global _TPU_VMEM_CAP
    if _TPU_VMEM_CAP is None:
        try:
            _TPU_VMEM_CAP = int(pltpu.get_tpu_info().vmem_capacity_bytes)
        except Exception:
            _TPU_VMEM_CAP = 64 << 20     # conservative (v7x per-core VMEM)
    return _TPU_VMEM_CAP


def _compiler_params(dims, entries):
    """entries: list of (block_shape, dtype, buffer_count) actually resident."""
    need = sum(int(math.prod(s)) * jnp.dtype(dt).itemsize * int(bufs)
               for s, dt, bufs in entries)
    need += 4 << 20                                 # compiler-internal scratch
    cap = int(_vmem_cap_bytes() * 0.8)              # ~100 MiB v5e/v6e, ~51 MiB v7x
    limit = int(min(max(need, 16 << 20), cap))
    return pltpu.CompilerParams(dimension_semantics=dims, vmem_limit_bytes=limit)


_SINGLE_BUF_OK = None


def _probe_single_buffering():
    """Compile-only probe: is pipeline_mode=pl.Buffered(1) accepted?"""
    try:
        spec_w = pl.BlockSpec((8, 128), lambda i: (0, 0),
                              pipeline_mode=pl.Buffered(1))

        def body(w_ref, x_ref, o_ref):
            o_ref[...] = x_ref[...] + w_ref[...]

        f = pl.pallas_call(
            body, grid=(2,),
            in_specs=[spec_w, pl.BlockSpec((8, 128), lambda i: (i, 0))],
            out_specs=pl.BlockSpec((8, 128), lambda i: (i, 0)),
            out_shape=jax.ShapeDtypeStruct((16, 128), jnp.float32))
        jax.jit(f).lower(jax.ShapeDtypeStruct((8, 128), jnp.float32),
                         jax.ShapeDtypeStruct((16, 128), jnp.float32)).compile()
        return True
    except Exception:
        return False


def _single_buffer_ok():
    global _SINGLE_BUF_OK
    if _SINGLE_BUF_OK is None:
        _SINGLE_BUF_OK = _probe_single_buffering()
    return _SINGLE_BUF_OK


def _wspec(block_shape, index_map):
    """BlockSpec for a grid-constant (weight/bias/LN) block: single-buffered."""
    if _single_buffer_ok():
        return pl.BlockSpec(block_shape, index_map, pipeline_mode=pl.Buffered(1))
    return pl.BlockSpec(block_shape, index_map)


# ---------------------------------------------------------------------------
# Pallas kernels
# ---------------------------------------------------------------------------
def _embed_qkv_kernel(emb_ref, keep_ref, eln_w_ref, eln_b_ref,
                      in_w_ref, in_b_ref, x_ref, qkv_ref):
    # Embedding LayerNorm + pad zeroing fused with layer 0's QKV projection.
    x = _layer_norm(emb_ref[...].astype(jnp.float32),
                    eln_w_ref[...], eln_b_ref[...])
    x = x * keep_ref[...]                                  # zero pad rows
    xb = x.astype(x_ref.dtype)
    x_ref[...] = xb
    qkv = jnp.dot(xb, in_w_ref[...], preferred_element_type=jnp.float32)
    qkv_ref[...] = (qkv + in_b_ref[...]).astype(qkv_ref.dtype)


def _attention_kernel(q_ref, k_ref, v_ref, bias_ref, ow_ref, ob_ref, o_ref,
                      m_sc, l_sc, ctx_sc, oacc_sc, *, scale):
    # grid = (batch, q tiles, heads, k tiles); online softmax over k tiles,
    # per-head output projection accumulated over the head axis.
    h = pl.program_id(2)
    ki = pl.program_id(3)
    last_h = pl.num_programs(2) - 1
    last_k = pl.num_programs(3) - 1

    @pl.when(jnp.logical_and(h == 0, ki == 0))
    def _():
        oacc_sc[...] = jnp.zeros_like(oacc_sc)

    @pl.when(ki == 0)
    def _():
        m_sc[...] = jnp.full_like(m_sc, -jnp.inf)
        l_sc[...] = jnp.zeros_like(l_sc)
        ctx_sc[...] = jnp.zeros_like(ctx_sc)

    # q @ k^T on the MXU (bf16 in, f32 accumulate), then f32 softmax math.
    s = jax.lax.dot_general(q_ref[...], k_ref[...], (((1,), (1,)), ((), ())),
                            preferred_element_type=jnp.float32)
    s = s * scale + bias_ref[...]                          # finite -1e9 at pads

    m_prev = m_sc[...]
    m_new = jnp.maximum(m_prev, jnp.max(s, axis=-1, keepdims=True))
    alpha = jnp.exp(m_prev - m_new)
    p = jnp.exp(s - m_new)
    l_sc[...] = alpha * l_sc[...] + jnp.sum(p, axis=-1, keepdims=True)
    ctx_sc[...] = alpha * ctx_sc[...] + jnp.dot(
        p.astype(v_ref.dtype), v_ref[...], preferred_element_type=jnp.float32)
    m_sc[...] = m_new

    @pl.when(ki == last_k)
    def _():
        ctx = ctx_sc[...] / l_sc[...]                      # exact normalization
        oacc_sc[...] += jnp.dot(ctx.astype(ow_ref.dtype), ow_ref[...],
                                preferred_element_type=jnp.float32)

    @pl.when(jnp.logical_and(ki == last_k, h == last_h))
    def _():
        o_ref[...] = (oacc_sc[...] + ob_ref[...]).astype(o_ref.dtype)


def _post_attn_kernel(x_ref, attn_ref, aln_w_ref, aln_b_ref,
                      fc1_w_ref, fc1_b_ref, fc2_w_ref, fc2_b_ref,
                      fln_w_ref, fln_b_ref, *rest, fuse_qkv):
    # grid = (row tiles [parallel], FFN chunks [arbitrary, innermost]).
    if fuse_qkv:
        nin_w_ref, nin_b_ref, o_ref, qkv_ref, y_sc, acc_sc = rest
    else:
        o_ref, y_sc, acc_sc = rest
        nin_w_ref = nin_b_ref = qkv_ref = None

    j = pl.program_id(1)

    @pl.when(j == 0)
    def _():
        xa = x_ref[...].astype(jnp.float32) + attn_ref[...].astype(jnp.float32)
        y_sc[...] = _layer_norm(xa, aln_w_ref[...], aln_b_ref[...])
        acc_sc[...] = jnp.zeros_like(acc_sc)

    y = y_sc[...]
    h1 = _gelu(jnp.dot(y.astype(fc1_w_ref.dtype), fc1_w_ref[...],
                       preferred_element_type=jnp.float32) + fc1_b_ref[...])
    acc_sc[...] += jnp.dot(h1.astype(fc2_w_ref.dtype), fc2_w_ref[...],
                           preferred_element_type=jnp.float32)

    @pl.when(j == pl.num_programs(1) - 1)
    def _():
        z = y + acc_sc[...] + fc2_b_ref[...]
        out = _layer_norm(z, fln_w_ref[...], fln_b_ref[...])
        o_ref[...] = out.astype(o_ref.dtype)
        if fuse_qkv:   # next layer's QKV projection fused into the finalize
            qkv = jnp.dot(out.astype(nin_w_ref.dtype), nin_w_ref[...],
                          preferred_element_type=jnp.float32) + nin_b_ref[...]
            qkv_ref[...] = qkv.astype(qkv_ref.dtype)


# ---------------------------------------------------------------------------
# pallas_call wrappers
# ---------------------------------------------------------------------------
def embed_qkv_pallas(emb_rows, keep_rows, eln_w, eln_b, in_wt, in_b, row_tile):
    m, d = emb_rows.shape
    d3 = in_wt.shape[1]
    row = lambda i: (i, 0)
    const = lambda i: (0, 0)
    wb = 1 if _single_buffer_ok() else 2
    entries = [((row_tile, d), ACT_DTYPE, 2), ((row_tile, 1), jnp.float32, 2),
               ((1, d), jnp.float32, 2 * wb),
               ((d, d3), ACT_DTYPE, wb), ((1, d3), jnp.float32, wb),
               ((row_tile, d), ACT_DTYPE, 2), ((row_tile, d3), ACT_DTYPE, 2)]
    return pl.pallas_call(
        _embed_qkv_kernel,
        grid=(m // row_tile,),
        in_specs=[pl.BlockSpec((row_tile, d), row),
                  pl.BlockSpec((row_tile, 1), row),
                  _wspec((1, d), const),
                  _wspec((1, d), const),
                  _wspec((d, d3), const),        # resident weight, single buffer
                  _wspec((1, d3), const)],
        out_specs=[pl.BlockSpec((row_tile, d), row),
                   pl.BlockSpec((row_tile, d3), row)],
        out_shape=[jax.ShapeDtypeStruct((m, d), ACT_DTYPE),
                   jax.ShapeDtypeStruct((m, d3), ACT_DTYPE)],
        compiler_params=_compiler_params(("parallel",), entries),
        cost_estimate=pl.CostEstimate(
            flops=int(2 * m * d * d3 + 12 * m * d),
            transcendentals=int(m),
            bytes_accessed=int(2 * m * (2 * d + d3) + 4 * m + 2 * d * d3)),
    )(emb_rows, keep_rows, eln_w, eln_b, in_wt, in_b)


def attention_pallas(q, k, v, bias, out_wt_h, out_b, q_tile, k_tile):
    bsz, nh, t_pad, hd = q.shape
    d = nh * hd
    scale = float(hd) ** -0.5
    wb = 1 if _single_buffer_ok() else 2
    kern = functools.partial(_attention_kernel, scale=scale)
    entries = [((q_tile, hd), ACT_DTYPE, 2),
               ((k_tile, hd), ACT_DTYPE, 2), ((k_tile, hd), ACT_DTYPE, 2),
               ((1, k_tile), jnp.float32, 2),
               ((hd, d), ACT_DTYPE, 2), ((1, d), jnp.float32, wb),
               ((q_tile, d), ACT_DTYPE, 2),
               ((q_tile, 1), jnp.float32, 2),
               ((q_tile, hd), jnp.float32, 1), ((q_tile, d), jnp.float32, 1)]
    return pl.pallas_call(
        kern,
        grid=(bsz, t_pad // q_tile, nh, t_pad // k_tile),
        in_specs=[
            pl.BlockSpec((None, None, q_tile, hd),
                         lambda b, qi, h, ki: (b, h, qi, 0)),
            pl.BlockSpec((None, None, k_tile, hd),
                         lambda b, qi, h, ki: (b, h, ki, 0)),
            pl.BlockSpec((None, None, k_tile, hd),
                         lambda b, qi, h, ki: (b, h, ki, 0)),
            pl.BlockSpec((None, 1, k_tile), lambda b, qi, h, ki: (b, 0, ki)),
            pl.BlockSpec((None, hd, d), lambda b, qi, h, ki: (h, 0, 0)),
            _wspec((1, d), lambda b, qi, h, ki: (0, 0)),
        ],
        out_specs=pl.BlockSpec((None, q_tile, d), lambda b, qi, h, ki: (b, qi, 0)),
        out_shape=jax.ShapeDtypeStruct((bsz, t_pad, d), ACT_DTYPE),
        scratch_shapes=[pltpu.VMEM((q_tile, 1), jnp.float32),   # running max
                        pltpu.VMEM((q_tile, 1), jnp.float32),   # running sum
                        pltpu.VMEM((q_tile, hd), jnp.float32),  # ctx accumulator
                        pltpu.VMEM((q_tile, d), jnp.float32)],  # out-proj acc
        compiler_params=_compiler_params(
            ("parallel", "parallel", "arbitrary", "arbitrary"), entries),
        cost_estimate=pl.CostEstimate(
            flops=int(4 * bsz * nh * t_pad * t_pad * hd
                      + 2 * bsz * t_pad * d * d),
            transcendentals=int(bsz * nh * t_pad * t_pad),
            bytes_accessed=int(2 * 4 * bsz * t_pad * d + 4 * bsz * t_pad
                               + 2 * nh * hd * d)),
    )(q, k, v, bias, out_wt_h, out_b)


def post_attn_pallas(x_rows, attn_rows, lp, nxt, row_tile, ffn_tile, out_dtype):
    m, d = x_rows.shape
    f = lp["fc1_wt"].shape[1]
    fuse = nxt is not None
    row = lambda i, j: (i, 0)
    const = lambda i, j: (0, 0)
    wb = 1 if _single_buffer_ok() else 2

    in_specs = [pl.BlockSpec((row_tile, d), row),                     # x
                pl.BlockSpec((row_tile, d), row),                     # attn
                _wspec((1, d), const), _wspec((1, d), const),         # attn LN
                pl.BlockSpec((d, ffn_tile), lambda i, j: (0, j)),     # fc1 W^T
                pl.BlockSpec((1, ffn_tile), lambda i, j: (0, j)),     # fc1 b
                pl.BlockSpec((ffn_tile, d), lambda i, j: (j, 0)),     # fc2 W^T
                _wspec((1, d), const),                                # fc2 b
                _wspec((1, d), const), _wspec((1, d), const)]         # final LN
    args = [x_rows, attn_rows, lp["aln_w"], lp["aln_b"],
            lp["fc1_wt"], lp["fc1_b"], lp["fc2_wt"], lp["fc2_b"],
            lp["fln_w"], lp["fln_b"]]
    out_specs = [pl.BlockSpec((row_tile, d), row)]
    out_shape = [jax.ShapeDtypeStruct((m, d), out_dtype)]
    entries = [((row_tile, d), ACT_DTYPE, 4), ((1, d), jnp.float32, 5 * wb),
               ((d, ffn_tile), ACT_DTYPE, 2), ((1, ffn_tile), jnp.float32, 2),
               ((ffn_tile, d), ACT_DTYPE, 2),
               ((row_tile, d), out_dtype, 2),
               ((row_tile, d), jnp.float32, 2)]                       # scratch
    flops = 4 * m * d * f + 30 * m * d
    bytes_acc = 2 * 3 * m * d + 2 * 2 * d * f
    if fuse:
        d3 = nxt["in_wt"].shape[1]
        in_specs += [_wspec((d, d3), const), _wspec((1, d3), const)]
        args += [nxt["in_wt"], nxt["in_b"]]
        out_specs.append(pl.BlockSpec((row_tile, d3), row))
        out_shape.append(jax.ShapeDtypeStruct((m, d3), ACT_DTYPE))
        entries += [((d, d3), ACT_DTYPE, wb), ((1, d3), jnp.float32, wb),
                    ((row_tile, d3), ACT_DTYPE, 2)]
        flops += 2 * m * d * d3
        bytes_acc += 2 * (d * d3 + m * d3)

    kern = functools.partial(_post_attn_kernel, fuse_qkv=fuse)
    res = pl.pallas_call(
        kern,
        grid=(m // row_tile, f // ffn_tile),
        in_specs=in_specs,
        out_specs=out_specs,
        out_shape=out_shape,
        scratch_shapes=[pltpu.VMEM((row_tile, d), jnp.float32),   # y (post-LN)
                        pltpu.VMEM((row_tile, d), jnp.float32)],  # fc2 acc
        compiler_params=_compiler_params(("parallel", "arbitrary"), entries),
        cost_estimate=pl.CostEstimate(
            flops=int(flops), transcendentals=int(m * f + 2 * m),
            bytes_accessed=int(bytes_acc)),
    )(*args)
    if fuse:
        return res[0], res[1]
    return res[0]


# ---------------------------------------------------------------------------
# forward pass (Pallas) and pure-JAX reference
# ---------------------------------------------------------------------------
def _prep_layer(lp, num_heads):
    # torch Linear stores W as (out, in); pre-transpose once and cast to bf16 so
    # kernels do lane-dense (rows, in) x (in, out) MXU matmuls; the attention
    # output projection is pre-sliced per head (H, hd, D) for fused per-head acc.
    d = lp["out_w"].shape[0]
    hd = d // num_heads
    return dict(
        in_wt=lp["in_w"].T.astype(ACT_DTYPE),
        in_b=lp["in_b"].reshape(1, -1).astype(jnp.float32),
        out_wt_h=lp["out_w"].T.reshape(num_heads, hd, d).astype(ACT_DTYPE),
        out_b=lp["out_b"].reshape(1, -1).astype(jnp.float32),
        aln_w=lp["aln_w"].reshape(1, -1).astype(jnp.float32),
        aln_b=lp["aln_b"].reshape(1, -1).astype(jnp.float32),
        fc1_wt=lp["fc1_w"].T.astype(ACT_DTYPE),
        fc1_b=lp["fc1_b"].reshape(1, -1).astype(jnp.float32),
        fc2_wt=lp["fc2_w"].T.astype(ACT_DTYPE),
        fc2_b=lp["fc2_b"].reshape(1, -1).astype(jnp.float32),
        fln_w=lp["fln_w"].reshape(1, -1).astype(jnp.float32),
        fln_b=lp["fln_b"].reshape(1, -1).astype(jnp.float32))


def sentence_encoder_forward(tokens, params, pad_idx, num_heads,
                             row_tile=None, ffn_tile=None):
    tokens = jnp.atleast_2d(tokens)                  # tokens.unsqueeze(0) if 1-D
    b, t = tokens.shape
    d = params["token_emb"].shape[1]
    hd = d // num_heads

    # Pad T so the key/score lane axis is 128-aligned; extra positions are pad
    # tokens (masked as attention keys, dropped from the returned slice).
    t_pad = _round_up(max(t, 1), 128)
    if t_pad != t:
        tokens = jnp.pad(tokens, ((0, 0), (0, t_pad - t)), constant_values=pad_idx)

    pad = tokens == pad_idx
    keep = (~pad).astype(jnp.float32)                                    # (B, Tp)
    bias = jnp.where(pad, jnp.float32(NEG_BIG), jnp.float32(0.0))[:, None, :]

    tok_emb = params["token_emb"][tokens]
    nonpad = keep.astype(jnp.int32)
    positions = jnp.cumsum(nonpad, axis=1) * nonpad + pad_idx
    pos_emb = params["pos_emb"][positions]
    emb = tok_emb + pos_emb                          # one fused gather-add in XLA

    if not params["layers"]:   # degenerate: just the embedding LayerNorm
        x = _layer_norm(emb, params["emb_ln_w"], params["emb_ln_b"])
        return (x * keep[..., None])[:, :t, :]

    m = b * t_pad
    big_vmem = _vmem_cap_bytes() >= (100 << 20)      # v5e/v6e 128 MiB vs v7x 64 MiB
    if row_tile is None:
        row_tile = _choose_tile(m, 512 if big_vmem else 256, 16)
    ffn = params["layers"][0]["fc1_w"].shape[0]
    if ffn_tile is None:
        ffn_tile = _choose_tile(ffn, 2048 if big_vmem else 1024, 128)
    q_tile = _choose_tile(t_pad, 256, 128)
    k_tile = _choose_tile(t_pad, 512, 128)

    layers = [_prep_layer(lp, num_heads) for lp in params["layers"]]

    emb_rows = emb.reshape(m, d).astype(ACT_DTYPE)
    keep_rows = keep.reshape(m, 1)

    # layer 0's QKV projection fused with the embedding LayerNorm.
    x_rows, qkv_rows = embed_qkv_pallas(
        emb_rows, keep_rows, params["emb_ln_w"], params["emb_ln_b"],
        layers[0]["in_wt"], layers[0]["in_b"], row_tile)

    n_layers = len(layers)
    for li, lp in enumerate(layers):
        # Head-major (B, H, Tp, hd) views prepared in XLA so the attention
        # kernel sees transpose-free, lane-dense blocks.
        qkv5 = qkv_rows.reshape(b, t_pad, 3, num_heads, hd)
        q = jnp.transpose(qkv5[:, :, 0], (0, 2, 1, 3))
        k = jnp.transpose(qkv5[:, :, 1], (0, 2, 1, 3))
        v = jnp.transpose(qkv5[:, :, 2], (0, 2, 1, 3))

        attn = attention_pallas(q, k, v, bias, lp["out_wt_h"], lp["out_b"],
                                q_tile, k_tile)
        attn_rows = attn.reshape(m, d)

        last = li == n_layers - 1
        nxt = None if last else layers[li + 1]
        out_dtype = jnp.float32 if last else ACT_DTYPE
        res = post_attn_pallas(x_rows, attn_rows, lp, nxt, row_tile, ffn_tile,
                               out_dtype)
        if last:
            x_rows = res
        else:
            x_rows, qkv_rows = res    # next layer's QKV came out of the finalize

    # torch module returns last_layer.transpose(0, 1) == (B, T, D)
    return x_rows.reshape(b, t_pad, d)[:, :t, :]


def sentence_encoder_reference(tokens, params, pad_idx, num_heads,
                               compute_dtype=jnp.float32):
    """Pure-JAX reference. compute_dtype=bf16 mimics the kernel's cast points
    (matmul operands + HBM-resident activations) for a tight structural check;
    compute_dtype=f32 is the faithful full-precision module semantics."""
    cd = compute_dtype
    c = lambda a: a.astype(cd)
    r = lambda a: a.astype(cd).astype(jnp.float32)
    dot = lambda a, w: jnp.dot(c(a), c(w), preferred_element_type=jnp.float32)

    tokens = jnp.atleast_2d(tokens)
    b, t = tokens.shape
    d = params["token_emb"].shape[1]
    hd = d // num_heads
    pad = tokens == pad_idx
    keep = (~pad).astype(jnp.float32)
    tok_emb = params["token_emb"][tokens]
    nonpad = keep.astype(jnp.int32)
    positions = jnp.cumsum(nonpad, axis=1) * nonpad + pad_idx
    pos_emb = params["pos_emb"][positions]
    emb = r(tok_emb + pos_emb)
    x = _layer_norm(emb, params["emb_ln_w"], params["emb_ln_b"]) * keep[..., None]
    bias = jnp.where(pad, jnp.float32(NEG_BIG), jnp.float32(0.0))[:, None, None, :]

    for p in params["layers"]:
        x = r(x)
        qkv = r(dot(x, p["in_w"].T) + p["in_b"])
        q, k, v = jnp.split(qkv, 3, axis=-1)
        q = q.reshape(b, t, num_heads, hd).transpose(0, 2, 1, 3)
        k = k.reshape(b, t, num_heads, hd).transpose(0, 2, 1, 3)
        v = v.reshape(b, t, num_heads, hd).transpose(0, 2, 1, 3)
        s = jnp.einsum("bhqd,bhkd->bhqk", c(q), c(k),
                       preferred_element_type=jnp.float32)
        s = s * (float(hd) ** -0.5) + bias
        mx = jnp.max(s, axis=-1, keepdims=True)
        pr = jnp.exp(s - mx)
        l = jnp.sum(pr, axis=-1, keepdims=True)
        ctx = jnp.einsum("bhqk,bhkd->bhqd", c(pr), c(v),
                         preferred_element_type=jnp.float32) / l
        ctx = ctx.transpose(0, 2, 1, 3).reshape(b, t, d)
        attn = r(dot(ctx, p["out_w"].T) + p["out_b"])
        y = _layer_norm(x + attn, p["aln_w"], p["aln_b"])
        h1 = _gelu(dot(y, p["fc1_w"].T) + p["fc1_b"])
        h2 = dot(h1, p["fc2_w"].T) + p["fc2_b"]
        x = _layer_norm(y + h2, p["fln_w"], p["fln_b"])
    return x


# ---------------------------------------------------------------------------
# deterministic parameter init (shapes mirror the pytext Transformer config)
# ---------------------------------------------------------------------------
def init_params(key, vocab, d, ffn, max_seq_len, num_layers, pad_idx):
    k_tok, k_pos, k_layers = jax.random.split(key, 3)
    params = {}
    tok = 0.02 * jax.random.normal(k_tok, (vocab, d), jnp.float32)
    params["token_emb"] = tok.at[pad_idx].set(0.0)   # nn.Embedding padding_idx row
    pos = 0.02 * jax.random.normal(k_pos, (max_seq_len, d), jnp.float32)
    params["pos_emb"] = pos.at[pad_idx].set(0.0)
    params["emb_ln_w"] = jnp.ones((1, d), jnp.float32)
    params["emb_ln_b"] = jnp.zeros((1, d), jnp.float32)

    layers = []
    for lk in jax.random.split(k_layers, num_layers):
        ks = jax.random.split(lk, 8)
        layers.append(dict(
            in_w=0.02 * jax.random.normal(ks[0], (3 * d, d), jnp.float32),
            in_b=0.02 * jax.random.normal(ks[1], (1, 3 * d), jnp.float32),
            out_w=0.02 * jax.random.normal(ks[2], (d, d), jnp.float32),
            out_b=0.02 * jax.random.normal(ks[3], (1, d), jnp.float32),
            aln_w=jnp.ones((1, d), jnp.float32),
            aln_b=jnp.zeros((1, d), jnp.float32),
            fc1_w=0.02 * jax.random.normal(ks[4], (ffn, d), jnp.float32),
            fc1_b=0.02 * jax.random.normal(ks[5], (1, ffn), jnp.float32),
            fc2_w=0.02 * jax.random.normal(ks[6], (d, ffn), jnp.float32),
            fc2_b=0.02 * jax.random.normal(ks[7], (1, d), jnp.float32),
            fln_w=jnp.ones((1, d), jnp.float32),
            fln_b=jnp.zeros((1, d), jnp.float32)))
    params["layers"] = layers
    return params


# ---------------------------------------------------------------------------
if __name__ == "__main__":
    # small RoBERTa-like config: vocab=100, D=32, 4 heads, FFN=128, 2 layers
    B, T, D, H, FFN, L = 2, 8, 32, 4, 128, 2
    VOCAB, MAX_SEQ, PAD_IDX = 100, 64, 1

    _single_buffer_ok()        # run the Buffered(1) probe eagerly, outside jit

    params = init_params(jax.random.PRNGKey(0), VOCAB, D, FFN, MAX_SEQ, L, PAD_IDX)

    tokens = jnp.array(
        [[0, 5, 9, 12, 3, 7, 2, 2],
         [0, 4, 8, 6, 2, 1, 1, 1]], dtype=jnp.int32)        # pad_idx = 1

    fwd = jax.jit(functools.partial(sentence_encoder_forward,
                                    pad_idx=PAD_IDX, num_heads=H))
    out = jax.block_until_ready(fwd(tokens, params))
    assert out.shape == (B, T, D), out.shape

    # tight check: same math with the kernel's bf16 cast points mimicked in XLA
    ref_bf16 = sentence_encoder_reference(tokens, params, PAD_IDX, H,
                                          compute_dtype=jnp.bfloat16)
    err_tight = float(jnp.max(jnp.abs(out - ref_bf16)))
    assert err_tight < 3e-3, err_tight

    # loose check vs full-f32 semantics (gap is bf16 activation quantization)
    ref_f32 = sentence_encoder_reference(tokens, params, PAD_IDX, H,
                                         compute_dtype=jnp.float32)
    err_f32 = float(jnp.max(jnp.abs(out - ref_f32)))
    assert err_f32 < 5e-2, err_f32

    print("KERNEL_OK")
</pallas_src>

<mosaic_0001>
module attributes {stable_mosaic.version = 11 : i64} {
  func.func @_embed_qkv_kernel(%arg0: i32, %arg1: memref<256x32xbf16, #tpu.memory_space<vmem>>, %arg2: memref<256x1xf32, #tpu.memory_space<vmem>>, %arg3: memref<1x32xf32, #tpu.memory_space<vmem>>, %arg4: memref<1x32xf32, #tpu.memory_space<vmem>>, %arg5: memref<32x96xbf16, #tpu.memory_space<vmem>>, %arg6: memref<1x96xf32, #tpu.memory_space<vmem>>, %arg7: memref<256x32xbf16, #tpu.memory_space<vmem>>, %arg8: memref<256x96xbf16, #tpu.memory_space<vmem>>) attributes {dimension_semantics = [#tpu.dimension_semantics<parallel>], iteration_bounds = array<i64: 1>, scalar_prefetch = 0 : i64, scratch_operands = 0 : i64, tpu.core_type = #tpu.core_type<tc>, window_params = [{transform_indices = @transform_0, window_bounds = array<i64: 256, 32>}, {transform_indices = @transform_1, window_bounds = array<i64: 256, 1>}, {pipeline_mode = #tpu.pipeline_mode<synchronous>, transform_indices = @transform_2, window_bounds = array<i64: 1, 32>}, {pipeline_mode = #tpu.pipeline_mode<synchronous>, transform_indices = @transform_3, window_bounds = array<i64: 1, 32>}, {pipeline_mode = #tpu.pipeline_mode<synchronous>, transform_indices = @transform_4, window_bounds = array<i64: 32, 96>}, {pipeline_mode = #tpu.pipeline_mode<synchronous>, transform_indices = @transform_5, window_bounds = array<i64: 1, 96>}, {transform_indices = @transform_6, window_bounds = array<i64: 256, 32>}, {transform_indices = @transform_7, window_bounds = array<i64: 256, 96>}]} {
    %c0 = arith.constant 0 : index
    %c0_0 = arith.constant 0 : index
    %0 = vector.load %arg1[%c0, %c0_0] : memref<256x32xbf16, #tpu.memory_space<vmem>>, vector<256x32xbf16>
    %1 = arith.extf %0 : vector<256x32xbf16> to vector<256x32xf32>
    %c0_1 = arith.constant 0 : index
    %c0_2 = arith.constant 0 : index
    %2 = vector.load %arg3[%c0_1, %c0_2] : memref<1x32xf32, #tpu.memory_space<vmem>>, vector<1x32xf32>
    %c0_3 = arith.constant 0 : index
    %c0_4 = arith.constant 0 : index
    %3 = vector.load %arg4[%c0_3, %c0_4] : memref<1x32xf32, #tpu.memory_space<vmem>>, vector<1x32xf32>
    %cst = arith.constant dense<0.000000e+00> : vector<256xf32>
    %4 = vector.multi_reduction <add>, %1, %cst [1] : vector<256x32xf32> to vector<256xf32>
    %5 = vector.shape_cast %4 : vector<256xf32> to vector<256x1xf32>
    %cst_5 = arith.constant 3.200000e+01 : f32
    %6 = vector.broadcast %cst_5 : f32 to vector<256x1xf32>
    %7 = arith.divf %5, %6 : vector<256x1xf32>
    %8 = vector.broadcast %7 : vector<256x1xf32> to vector<256x32xf32>
    %9 = arith.subf %1, %8 : vector<256x32xf32>
    %10 = arith.mulf %9, %9 : vector<256x32xf32>
    %cst_6 = arith.constant dense<0.000000e+00> : vector<256xf32>
    %11 = vector.multi_reduction <add>, %10, %cst_6 [1] : vector<256x32xf32> to vector<256xf32>
    %12 = vector.shape_cast %11 : vector<256xf32> to vector<256x1xf32>
    %cst_7 = arith.constant 3.200000e+01 : f32
    %13 = vector.broadcast %cst_7 : f32 to vector<256x1xf32>
    %14 = arith.divf %12, %13 : vector<256x1xf32>
    %15 = vector.broadcast %7 : vector<256x1xf32> to vector<256x32xf32>
    %16 = arith.subf %1, %15 : vector<256x32xf32>
    %cst_8 = arith.constant 9.99999974E-6 : f32
    %17 = vector.broadcast %cst_8 : f32 to vector<256x1xf32>
    %18 = arith.addf %14, %17 : vector<256x1xf32>
    %19 = math.rsqrt %18 : vector<256x1xf32>
    %20 = vector.broadcast %19 : vector<256x1xf32> to vector<256x32xf32>
    %21 = arith.mulf %16, %20 : vector<256x32xf32>
    %22 = vector.broadcast %2 : vector<1x32xf32> to vector<256x32xf32>
    %23 = arith.mulf %21, %22 : vector<256x32xf32>
    %24 = vector.broadcast %3 : vector<1x32xf32> to vector<256x32xf32>
    %25 = arith.addf %23, %24 : vector<256x32xf32>
    %c0_9 = arith.constant 0 : index
    %c0_10 = arith.constant 0 : index
    %26 = vector.load %arg2[%c0_9, %c0_10] : memref<256x1xf32, #tpu.memory_space<vmem>>, vector<256x1xf32>
    %27 = vector.broadcast %26 : vector<256x1xf32> to vector<256x32xf32>
    %28 = arith.mulf %25, %27 : vector<256x32xf32>
    %29 = arith.truncf %28 : vector<256x32xf32> to vector<256x32xbf16>
    %c0_11 = arith.constant 0 : index
    %c0_12 = arith.constant 0 : index
    %30 = vector.load %arg7[%c0_11, %c0_12] : memref<256x32xbf16, #tpu.memory_space<vmem>>, vector<256x32xbf16>
    tpu.vector_store %arg7[%c0_11, %c0_12], %29 {strides = array<i32>} : memref<256x32xbf16, #tpu.memory_space<vmem>>, vector<256x32xbf16>,
    %c0_13 = arith.constant 0 : index
    %c0_14 = arith.constant 0 : index
    %31 = vector.load %arg5[%c0_13, %c0_14] : memref<32x96xbf16, #tpu.memory_space<vmem>>, vector<32x96xbf16>
    %cst_15 = arith.constant dense<0.000000e+00> : vector<256x96xf32>
    %32 = tpu.matmul %29, %31, %cst_15 {dimension_numbers = #tpu.dot_dimension_numbers<[1], [0], [0], [1], [0, 0, 1, 1], [], []>} : vector<256x32xbf16>, vector<32x96xbf16>, vector<256x96xf32> -> vector<256x96xf32>
    %c0_16 = arith.constant 0 : index
    %c0_17 = arith.constant 0 : index
    %33 = vector.load %arg6[%c0_16, %c0_17] : memref<1x96xf32, #tpu.memory_space<vmem>>, vector<1x96xf32>
    %34 = vector.broadcast %33 : vector<1x96xf32> to vector<256x96xf32>
    %35 = arith.addf %32, %34 : vector<256x96xf32>
    %36 = arith.truncf %35 : vector<256x96xf32> to vector<256x96xbf16>
    %c0_18 = arith.constant 0 : index
    %c0_19 = arith.constant 0 : index
    %37 = vector.load %arg8[%c0_18, %c0_19] : memref<256x96xbf16, #tpu.memory_space<vmem>>, vector<256x96xbf16>
    tpu.vector_store %arg8[%c0_18, %c0_19], %36 {strides = array<i32>} : memref<256x96xbf16, #tpu.memory_space<vmem>>, vector<256x96xbf16>,
    return
  }
  func.func @transform_0(%arg0: i32) -> (i32, i32) {
    %c0_i32 = arith.constant 0 : i32
    %c0_i32_0 = arith.constant 0 : i32
    return %arg0, %c0_i32 : i32, i32
  }
  func.func @transform_1(%arg0: i32) -> (i32, i32) {
    %c0_i32 = arith.constant 0 : i32
    %c0_i32_0 = arith.constant 0 : i32
    return %arg0, %c0_i32 : i32, i32
  }
  func.func @transform_2(%arg0: i32) -> (i32, i32) {
    %c0_i32 = arith.constant 0 : i32
    %c0_i32_0 = arith.constant 0 : i32
    %c0_i32_1 = arith.constant 0 : i32
    return %c0_i32, %c0_i32_0 : i32, i32
  }
  func.func @transform_3(%arg0: i32) -> (i32, i32) {
    %c0_i32 = arith.constant 0 : i32
    %c0_i32_0 = arith.constant 0 : i32
    %c0_i32_1 = arith.constant 0 : i32
    return %c0_i32, %c0_i32_0 : i32, i32
  }
  func.func @transform_4(%arg0: i32) -> (i32, i32) {
    %c0_i32 = arith.constant 0 : i32
    %c0_i32_0 = arith.constant 0 : i32
    %c0_i32_1 = arith.constant 0 : i32
    return %c0_i32, %c0_i32_0 : i32, i32
  }
  func.func @transform_5(%arg0: i32) -> (i32, i32) {
    %c0_i32 = arith.constant 0 : i32
    %c0_i32_0 = arith.constant 0 : i32
    %c0_i32_1 = arith.constant 0 : i32
    return %c0_i32, %c0_i32_0 : i32, i32
  }
  func.func @transform_6(%arg0: i32) -> (i32, i32) {
    %c0_i32 = arith.constant 0 : i32
    %c0_i32_0 = arith.constant 0 : i32
    return %arg0, %c0_i32 : i32, i32
  }
  func.func @transform_7(%arg0: i32) -> (i32, i32) {
    %c0_i32 = arith.constant 0 : i32
    %c0_i32_0 = arith.constant 0 : i32
    return %arg0, %c0_i32 : i32, i32
  }
}

module attributes {stable_mosaic.version = 11 : i64} {
  func.func @_attention_kernel(%arg0: i32, %arg1: i32, %arg2: i32, %arg3: i32, %arg4: memref<1x1x128x8xbf16, #tpu.memory_space<vmem>>, %arg5: memref<1x1x128x8xbf16, #tpu.memory_space<vmem>>, %arg6: memref<1x1x128x8xbf16, #tpu.memory_space<vmem>>, %arg7: memref<1x1x128xf32, #tpu.memory_space<vmem>>, %arg8: memref<1x8x32xbf16, #tpu.memory_space<vmem>>, %arg9: memref<1x32xf32, #tpu.memory_space<vmem>>, %arg10: memref<1x128x32xbf16, #tpu.memory_space<vmem>>, %arg11: memref<128x1xf32, #tpu.memory_space<vmem>>, %arg12: memref<128x1xf32, #tpu.memory_space<vmem>>, %arg13: memref<128x8xf32, #tpu.memory_space<vmem>>, %arg14: memref<128x32xf32, #tpu.memory_space<vmem>>) attributes {dimension_semantics = [#tpu.dimension_semantics<parallel>, #tpu.dimension_semantics<parallel>, #tpu.dimension_semantics<arbitrary>, #tpu.dimension_semantics<arbitrary>], iteration_bounds = array<i64: 2, 1, 4, 1>, scalar_prefetch = 0 : i64, scratch_operands = 4 : i64, tpu.core_type = #tpu.core_type<tc>, window_params = [{transform_indices = @transform_0, window_bounds = array<i64: 1, 1, 128, 8>}, {transform_indices = @transform_1, window_bounds = array<i64: 1, 1, 128, 8>}, {transform_indices = @transform_2, window_bounds = array<i64: 1, 1, 128, 8>}, {transform_indices = @transform_3, window_bounds = array<i64: 1, 1, 128>}, {transform_indices = @transform_4, window_bounds = array<i64: 1, 8, 32>}, {pipeline_mode = #tpu.pipeline_mode<synchronous>, transform_indices = @transform_5, window_bounds = array<i64: 1, 32>}, {transform_indices = @transform_6, window_bounds = array<i64: 1, 128, 32>}]} {
    %c0_i32 = arith.constant 0 : i32
    %0 = arith.cmpi eq, %arg2, %c0_i32 : i32
    %c0_i32_0 = arith.constant 0 : i32
    %1 = arith.cmpi eq, %arg3, %c0_i32_0 : i32
    %2 = arith.andi %0, %1 : i1
    %3 = arith.extui %2 : i1 to i32
    %c0_i32_1 = arith.constant 0 : i32
    %4 = arith.cmpi ne, %3, %c0_i32_1 : i32
    scf.if %4 {
      %cst_38 = arith.constant 0.000000e+00 : f32
      %52 = vector.broadcast %cst_38 : f32 to vector<128x32xf32>
      %c0_39 = arith.constant 0 : index
      %c0_40 = arith.constant 0 : index
      %53 = vector.load %arg14[%c0_39, %c0_40] : memref<128x32xf32, #tpu.memory_space<vmem>>, vector<128x32xf32>
      tpu.vector_store %arg14[%c0_39, %c0_40], %52 {strides = array<i32>} : memref<128x32xf32, #tpu.memory_space<vmem>>, vector<128x32xf32>,
    } else {
    }
    %c0_i32_2 = arith.constant 0 : i32
    %5 = arith.cmpi eq, %arg3, %c0_i32_2 : i32
    %6 = arith.extui %5 : i1 to i32
    %c0_i32_3 = arith.constant 0 : i32
    %7 = arith.cmpi ne, %6, %c0_i32_3 : i32
    scf.if %7 {
      %cst_38 = arith.constant 0xFF800000 : f32
      %52 = vector.broadcast %cst_38 : f32 to vector<128x1xf32>
      %c0_39 = arith.constant 0 : index
      %c0_40 = arith.constant 0 : index
      %53 = vector.load %arg11[%c0_39, %c0_40] : memref<128x1xf32, #tpu.memory_space<vmem>>, vector<128x1xf32>
      tpu.vector_store %arg11[%c0_39, %c0_40], %52 {strides = array<i32>} : memref<128x1xf32, #tpu.memory_space<vmem>>, vector<128x1xf32>,
      %cst_41 = arith.constant 0.000000e+00 : f32
      %54 = vector.broadcast %cst_41 : f32 to vector<128x1xf32>
      %c0_42 = arith.constant 0 : index
      %c0_43 = arith.constant 0 : index
      %55 = vector.load %arg12[%c0_42, %c0_43] : memref<128x1xf32, #tpu.memory_space<vmem>>, vector<128x1xf32>
      tpu.vector_store %arg12[%c0_42, %c0_43], %54 {strides = array<i32>} : memref<128x1xf32, #tpu.memory_space<vmem>>, vector<128x1xf32>,
      %cst_44 = arith.constant 0.000000e+00 : f32
      %56 = vector.broadcast %cst_44 : f32 to vector<128x8xf32>
      %c0_45 = arith.constant 0 : index
      %c0_46 = arith.constant 0 : index
      %57 = vector.load %arg13[%c0_45, %c0_46] : memref<128x8xf32, #tpu.memory_space<vmem>>, vector<128x8xf32>
      tpu.vector_store %arg13[%c0_45, %c0_46], %56 {strides = array<i32>} : memref<128x8xf32, #tpu.memory_space<vmem>>, vector<128x8xf32>,
    } else {
    }
    %c0 = arith.constant 0 : index
    %c0_4 = arith.constant 0 : index
    %c0_5 = arith.constant 0 : index
    %c0_6 = arith.constant 0 : index
    %8 = vector.load %arg4[%c0, %c0_4, %c0_5, %c0_6] : memref<1x1x128x8xbf16, #tpu.memory_space<vmem>>, vector<1x1x128x8xbf16>
    %9 = vector.shape_cast %8 : vector<1x1x128x8xbf16> to vector<128x8xbf16>
    %c0_7 = arith.constant 0 : index
    %c0_8 = arith.constant 0 : index
    %c0_9 = arith.constant 0 : index
    %c0_10 = arith.constant 0 : index
    %10 = vector.load %arg5[%c0_7, %c0_8, %c0_9, %c0_10] : memref<1x1x128x8xbf16, #tpu.memory_space<vmem>>, vector<1x1x128x8xbf16>
    %11 = vector.shape_cast %10 : vector<1x1x128x8xbf16> to vector<128x8xbf16>
    %cst = arith.constant dense<0.000000e+00> : vector<128x128xf32>
    %12 = tpu.matmul %9, %11, %cst {dimension_numbers = #tpu.dot_dimension_numbers<[1], [1], [0], [0], [0, 0, 1, 0], [], []>} : vector<128x8xbf16>, vector<128x8xbf16>, vector<128x128xf32> -> vector<128x128xf32>
    %cst_11 = arith.constant 0.353553385 : f32
    %13 = vector.broadcast %cst_11 : f32 to vector<128x128xf32>
    %14 = arith.mulf %12, %13 : vector<128x128xf32>
    %c0_12 = arith.constant 0 : index
    %c0_13 = arith.constant 0 : index
    %c0_14 = arith.constant 0 : index
    %15 = vector.load %arg7[%c0_12, %c0_13, %c0_14] : memref<1x1x128xf32, #tpu.memory_space<vmem>>, vector<1x1x128xf32>
    %16 = vector.shape_cast %15 : vector<1x1x128xf32> to vector<1x128xf32>
    %17 = vector.broadcast %16 : vector<1x128xf32> to vector<128x128xf32>
    %18 = arith.addf %14, %17 : vector<128x128xf32>
    %c0_15 = arith.constant 0 : index
    %c0_16 = arith.constant 0 : index
    %19 = vector.load %arg11[%c0_15, %c0_16] : memref<128x1xf32, #tpu.memory_space<vmem>>, vector<128x1xf32>
    %cst_17 = arith.constant dense<0xFF800000> : vector<128xf32>
    %20 = vector.multi_reduction <maximumf>, %18, %cst_17 [1] : vector<128x128xf32> to vector<128xf32>
    %21 = vector.shape_cast %20 : vector<128xf32> to vector<128x1xf32>
    %22 = arith.maximumf %19, %21 : vector<128x1xf32>
    %23 = arith.subf %19, %22 : vector<128x1xf32>
    %24 = math.exp %23 : vector<128x1xf32>
    %25 = vector.broadcast %22 : vector<128x1xf32> to vector<128x128xf32>
    %26 = arith.subf %18, %25 : vector<128x128xf32>
    %27 = math.exp %26 : vector<128x128xf32>
    %c0_18 = arith.constant 0 : index
    %c0_19 = arith.constant 0 : index
    %28 = vector.load %arg12[%c0_18, %c0_19] : memref<128x1xf32, #tpu.memory_space<vmem>>, vector<128x1xf32>
    %29 = arith.mulf %24, %28 : vector<128x1xf32>
    %cst_20 = arith.constant dense<0.000000e+00> : vector<128xf32>
    %30 = vector.multi_reduction <add>, %27, %cst_20 [1] : vector<128x128xf32> to vector<128xf32>
    %31 = vector.shape_cast %30 : vector<128xf32> to vector<128x1xf32>
    %32 = arith.addf %29, %31 : vector<128x1xf32>
    %c0_21 = arith.constant 0 : index
    %c0_22 = arith.constant 0 : index
    %33 = vector.load %arg12[%c0_21, %c0_22] : memref<128x1xf32, #tpu.memory_space<vmem>>, vector<128x1xf32>
    tpu.vector_store %arg12[%c0_21, %c0_22], %32 {strides = array<i32>} : memref<128x1xf32, #tpu.memory_space<vmem>>, vector<128x1xf32>,
    %c0_23 = arith.constant 0 : index
    %c0_24 = arith.constant 0 : index
    %34 = vector.load %arg13[%c0_23, %c0_24] : memref<128x8xf32, #tpu.memory_space<vmem>>, vector<128x8xf32>
    %35 = vector.broadcast %24 : vector<128x1xf32> to vector<128x8xf32>
    %36 = arith.mulf %35, %34 : vector<128x8xf32>
    %37 = arith.truncf %27 : vector<128x128xf32> to vector<128x128xbf16>
    %c0_25 = arith.constant 0 : index
    %c0_26 = arith.constant 0 : index
    %c0_27 = arith.constant 0 : index
    %c0_28 = arith.constant 0 : index
    %38 = vector.load %arg6[%c0_25, %c0_26, %c0_27, %c0_28] : memref<1x1x128x8xbf16, #tpu.memory_space<vmem>>, vector<1x1x128x8xbf16>
    %39 = vector.shape_cast %38 : vector<1x1x128x8xbf16> to vector<128x8xbf16>
    %cst_29 = arith.constant dense<0.000000e+00> : vector<128x8xf32>
    %40 = tpu.matmul %37, %39, %cst_29 {dimension_numbers = #tpu.dot_dimension_numbers<[1], [0], [0], [1], [0, 0, 1, 1], [], []>} : vector<128x128xbf16>, vector<128x8xbf16>, vector<128x8xf32> -> vector<128x8xf32>
    %41 = arith.addf %36, %40 : vector<128x8xf32>
    %c0_30 = arith.constant 0 : index
    %c0_31 = arith.constant 0 : index
    %42 = vector.load %arg13[%c0_30, %c0_31] : memref<128x8xf32, #tpu.memory_space<vmem>>, vector<128x8xf32>
    tpu.vector_store %arg13[%c0_30, %c0_31], %41 {strides = array<i32>} : memref<128x8xf32, #tpu.memory_space<vmem>>, vector<128x8xf32>,
    %c0_32 = arith.constant 0 : index
    %c0_33 = arith.constant 0 : index
    %43 = vector.load %arg11[%c0_32, %c0_33] : memref<128x1xf32, #tpu.memory_space<vmem>>, vector<128x1xf32>
    tpu.vector_store %arg11[%c0_32, %c0_33], %22 {strides = array<i32>} : memref<128x1xf32, #tpu.memory_space<vmem>>, vector<128x1xf32>,
    %c0_i32_34 = arith.constant 0 : i32
    %44 = arith.cmpi eq, %arg3, %c0_i32_34 : i32
    %45 = arith.extui %44 : i1 to i32
    %c0_i32_35 = arith.constant 0 : i32
    %46 = arith.cmpi ne, %45, %c0_i32_35 : i32
    scf.if %46 {
      %c0_38 = arith.constant 0 : index
      %c0_39 = arith.constant 0 : index
      %52 = vector.load %arg13[%c0_38, %c0_39] : memref<128x8xf32, #tpu.memory_space<vmem>>, vector<128x8xf32>
      %c0_40 = arith.constant 0 : index
      %c0_41 = arith.constant 0 : index
      %53 = vector.load %arg12[%c0_40, %c0_41] : memref<128x1xf32, #tpu.memory_space<vmem>>, vector<128x1xf32>
      %54 = vector.broadcast %53 : vector<128x1xf32> to vector<128x8xf32>
      %55 = arith.divf %52, %54 : vector<128x8xf32>
      %c0_42 = arith.constant 0 : index
      %c0_43 = arith.constant 0 : index
      %56 = vector.load %arg14[%c0_42, %c0_43] : memref<128x32xf32, #tpu.memory_space<vmem>>, vector<128x32xf32>
      %57 = arith.truncf %55 : vector<128x8xf32> to vector<128x8xbf16>
      %c0_44 = arith.constant 0 : index
      %c0_45 = arith.constant 0 : index
      %c0_46 = arith.constant 0 : index
      %58 = vector.load %arg8[%c0_44, %c0_45, %c0_46] : memref<1x8x32xbf16, #tpu.memory_space<vmem>>, vector<1x8x32xbf16>
      %59 = vector.shape_cast %58 : vector<1x8x32xbf16> to vector<8x32xbf16>
      %cst_47 = arith.constant dense<0.000000e+00> : vector<128x32xf32>
      %60 = tpu.matmul %57, %59, %cst_47 {dimension_numbers = #tpu.dot_dimension_numbers<[1], [0], [0], [1], [0, 0, 1, 1], [], []>} : vector<128x8xbf16>, vector<8x32xbf16>, vector<128x32xf32> -> vector<128x32xf32>
      %61 = arith.addf %56, %60 : vector<128x32xf32>
      %c0_48 = arith.constant 0 : index
      %c0_49 = arith.constant 0 : index
      %62 = vector.load %arg14[%c0_48, %c0_49] : memref<128x32xf32, #tpu.memory_space<vmem>>, vector<128x32xf32>
      tpu.vector_store %arg14[%c0_48, %c0_49], %61 {strides = array<i32>} : memref<128x32xf32, #tpu.memory_space<vmem>>, vector<128x32xf32>,
    } else {
    }
    %c0_i32_36 = arith.constant 0 : i32
    %47 = arith.cmpi eq, %arg3, %c0_i32_36 : i32
    %c3_i32 = arith.constant 3 : i32
    %48 = arith.cmpi eq, %arg2, %c3_i32 : i32
    %49 = arith.andi %47, %48 : i1
    %50 = arith.extui %49 : i1 to i32
    %c0_i32_37 = arith.constant 0 : i32
    %51 = arith.cmpi ne, %50, %c0_i32_37 : i32
    scf.if %51 {
      %c0_38 = arith.constant 0 : index
      %c0_39 = arith.constant 0 : index
      %52 = vector.load %arg14[%c0_38, %c0_39] : memref<128x32xf32, #tpu.memory_space<vmem>>, vector<128x32xf32>
      %c0_40 = arith.constant 0 : index
      %c0_41 = arith.constant 0 : index
      %53 = vector.load %arg9[%c0_40, %c0_41] : memref<1x32xf32, #tpu.memory_space<vmem>>, vector<1x32xf32>
      %54 = vector.broadcast %53 : vector<1x32xf32> to vector<128x32xf32>
      %55 = arith.addf %52, %54 : vector<128x32xf32>
      %56 = arith.truncf %55 : vector<128x32xf32> to vector<128x32xbf16>
      %c0_42 = arith.constant 0 : index
      %c0_43 = arith.constant 0 : index
      %c0_44 = arith.constant 0 : index
      %57 = vector.load %arg10[%c0_42, %c0_43, %c0_44] : memref<1x128x32xbf16, #tpu.memory_space<vmem>>, vector<1x128x32xbf16>
      %58 = vector.shape_cast %57 : vector<1x128x32xbf16> to vector<128x32xbf16>
      %59 = vector.shape_cast %56 : vector<128x32xbf16> to vector<1x128x32xbf16>
      tpu.vector_store %arg10[%c0_42, %c0_43, %c0_44], %59 {strides = array<i32>} : memref<1x128x32xbf16, #tpu.memory_space<vmem>>, vector<1x128x32xbf16>,
    } else {
    }
    return
  }
  func.func @transform_0(%arg0: i32, %arg1: i32, %arg2: i32, %arg3: i32) -> (i32, i32, i32, i32) {
    %c0_i32 = arith.constant 0 : i32
    %c0_i32_0 = arith.constant 0 : i32
    return %arg0, %arg2, %arg1, %c0_i32 : i32, i32, i32, i32
  }
  func.func @transform_1(%arg0: i32, %arg1: i32, %arg2: i32, %arg3: i32) -> (i32, i32, i32, i32) {
    %c0_i32 = arith.constant 0 : i32
    %c0_i32_0 = arith.constant 0 : i32
    return %arg0, %arg2, %arg3, %c0_i32 : i32, i32, i32, i32
  }
  func.func @transform_2(%arg0: i32, %arg1: i32, %arg2: i32, %arg3: i32) -> (i32, i32, i32, i32) {
    %c0_i32 = arith.constant 0 : i32
    %c0_i32_0 = arith.constant 0 : i32
    return %arg0, %arg2, %arg3, %c0_i32 : i32, i32, i32, i32
  }
  func.func @transform_3(%arg0: i32, %arg1: i32, %arg2: i32, %arg3: i32) -> (i32, i32, i32) {
    %c0_i32 = arith.constant 0 : i32
    %c0_i32_0 = arith.constant 0 : i32
    return %arg0, %c0_i32, %arg3 : i32, i32, i32
  }
  func.func @transform_4(%arg0: i32, %arg1: i32, %arg2: i32, %arg3: i32) -> (i32, i32, i32) {
    %c0_i32 = arith.constant 0 : i32
    %c0_i32_0 = arith.constant 0 : i32
    %c0_i32_1 = arith.constant 0 : i32
    return %arg2, %c0_i32, %c0_i32_0 : i32, i32, i32
  }
  func.func @transform_5(%arg0: i32, %arg1: i32, %arg2: i32, %arg3: i32) -> (i32, i32) {
    %c0_i32 = arith.constant 0 : i32
    %c0_i32_0 = arith.constant 0 : i32
    %c0_i32_1 = arith.constant 0 : i32
    return %c0_i32, %c0_i32_0 : i32, i32
  }
  func.func @transform_6(%arg0: i32, %arg1: i32, %arg2: i32, %arg3: i32) -> (i32, i32, i32) {
    %c0_i32 = arith.constant 0 : i32
    %c0_i32_0 = arith.constant 0 : i32
    return %arg0, %arg1, %c0_i32 : i32, i32, i32
  }
}

module attributes {stable_mosaic.version = 11 : i64} {
  func.func @_post_attn_kernel(%arg0: i32, %arg1: i32, %arg2: memref<256x32xbf16, #tpu.memory_space<vmem>>, %arg3: memref<256x32xbf16, #tpu.memory_space<vmem>>, %arg4: memref<1x32xf32, #tpu.memory_space<vmem>>, %arg5: memref<1x32xf32, #tpu.memory_space<vmem>>, %arg6: memref<32x128xbf16, #tpu.memory_space<vmem>>, %arg7: memref<1x128xf32, #tpu.memory_space<vmem>>, %arg8: memref<128x32xbf16, #tpu.memory_space<vmem>>, %arg9: memref<1x32xf32, #tpu.memory_space<vmem>>, %arg10: memref<1x32xf32, #tpu.memory_space<vmem>>, %arg11: memref<1x32xf32, #tpu.memory_space<vmem>>, %arg12: memref<32x96xbf16, #tpu.memory_space<vmem>>, %arg13: memref<1x96xf32, #tpu.memory_space<vmem>>, %arg14: memref<256x32xbf16, #tpu.memory_space<vmem>>, %arg15: memref<256x96xbf16, #tpu.memory_space<vmem>>, %arg16: memref<256x32xf32, #tpu.memory_space<vmem>>, %arg17: memref<256x32xf32, #tpu.memory_space<vmem>>) attributes {dimension_semantics = [#tpu.dimension_semantics<parallel>, #tpu.dimension_semantics<arbitrary>], iteration_bounds = array<i64: 1, 1>, scalar_prefetch = 0 : i64, scratch_operands = 2 : i64, tpu.core_type = #tpu.core_type<tc>, window_params = [{transform_indices = @transform_0, window_bounds = array<i64: 256, 32>}, {transform_indices = @transform_1, window_bounds = array<i64: 256, 32>}, {pipeline_mode = #tpu.pipeline_mode<synchronous>, transform_indices = @transform_2, window_bounds = array<i64: 1, 32>}, {pipeline_mode = #tpu.pipeline_mode<synchronous>, transform_indices = @transform_3, window_bounds = array<i64: 1, 32>}, {transform_indices = @transform_4, window_bounds = array<i64: 32, 128>}, {transform_indices = @transform_5, window_bounds = array<i64: 1, 128>}, {transform_indices = @transform_6, window_bounds = array<i64: 128, 32>}, {pipeline_mode = #tpu.pipeline_mode<synchronous>, transform_indices = @transform_7, window_bounds = array<i64: 1, 32>}, {pipeline_mode = #tpu.pipeline_mode<synchronous>, transform_indices = @transform_8, window_bounds = array<i64: 1, 32>}, {pipeline_mode = #tpu.pipeline_mode<synchronous>, transform_indices = @transform_9, window_bounds = array<i64: 1, 32>}, {pipeline_mode = #tpu.pipeline_mode<synchronous>, transform_indices = @transform_10, window_bounds = array<i64: 32, 96>}, {pipeline_mode = #tpu.pipeline_mode<synchronous>, transform_indices = @transform_11, window_bounds = array<i64: 1, 96>}, {transform_indices = @transform_12, window_bounds = array<i64: 256, 32>}, {transform_indices = @transform_13, window_bounds = array<i64: 256, 96>}]} {
    %c0_i32 = arith.constant 0 : i32
    %0 = arith.cmpi eq, %arg1, %c0_i32 : i32
    %1 = arith.extui %0 : i1 to i32
    %c0_i32_0 = arith.constant 0 : i32
    %2 = arith.cmpi ne, %1, %c0_i32_0 : i32
    scf.if %2 {
      %c0_19 = arith.constant 0 : index
      %c0_20 = arith.constant 0 : index
      %32 = vector.load %arg2[%c0_19, %c0_20] : memref<256x32xbf16, #tpu.memory_space<vmem>>, vector<256x32xbf16>
      %33 = arith.extf %32 : vector<256x32xbf16> to vector<256x32xf32>
      %c0_21 = arith.constant 0 : index
      %c0_22 = arith.constant 0 : index
      %34 = vector.load %arg3[%c0_21, %c0_22] : memref<256x32xbf16, #tpu.memory_space<vmem>>, vector<256x32xbf16>
      %35 = arith.extf %34 : vector<256x32xbf16> to vector<256x32xf32>
      %36 = arith.addf %33, %35 : vector<256x32xf32>
      %c0_23 = arith.constant 0 : index
      %c0_24 = arith.constant 0 : index
      %37 = vector.load %arg4[%c0_23, %c0_24] : memref<1x32xf32, #tpu.memory_space<vmem>>, vector<1x32xf32>
      %c0_25 = arith.constant 0 : index
      %c0_26 = arith.constant 0 : index
      %38 = vector.load %arg5[%c0_25, %c0_26] : memref<1x32xf32, #tpu.memory_space<vmem>>, vector<1x32xf32>
      %cst_27 = arith.constant dense<0.000000e+00> : vector<256xf32>
      %39 = vector.multi_reduction <add>, %36, %cst_27 [1] : vector<256x32xf32> to vector<256xf32>
      %40 = vector.shape_cast %39 : vector<256xf32> to vector<256x1xf32>
      %cst_28 = arith.constant 3.200000e+01 : f32
      %41 = vector.broadcast %cst_28 : f32 to vector<256x1xf32>
      %42 = arith.divf %40, %41 : vector<256x1xf32>
      %43 = vector.broadcast %42 : vector<256x1xf32> to vector<256x32xf32>
      %44 = arith.subf %36, %43 : vector<256x32xf32>
      %45 = arith.mulf %44, %44 : vector<256x32xf32>
      %cst_29 = arith.constant dense<0.000000e+00> : vector<256xf32>
      %46 = vector.multi_reduction <add>, %45, %cst_29 [1] : vector<256x32xf32> to vector<256xf32>
      %47 = vector.shape_cast %46 : vector<256xf32> to vector<256x1xf32>
      %cst_30 = arith.constant 3.200000e+01 : f32
      %48 = vector.broadcast %cst_30 : f32 to vector<256x1xf32>
      %49 = arith.divf %47, %48 : vector<256x1xf32>
      %50 = vector.broadcast %42 : vector<256x1xf32> to vector<256x32xf32>
      %51 = arith.subf %36, %50 : vector<256x32xf32>
      %cst_31 = arith.constant 9.99999974E-6 : f32
      %52 = vector.broadcast %cst_31 : f32 to vector<256x1xf32>
      %53 = arith.addf %49, %52 : vector<256x1xf32>
      %54 = math.rsqrt %53 : vector<256x1xf32>
      %55 = vector.broadcast %54 : vector<256x1xf32> to vector<256x32xf32>
      %56 = arith.mulf %51, %55 : vector<256x32xf32>
      %57 = vector.broadcast %37 : vector<1x32xf32> to vector<256x32xf32>
      %58 = arith.mulf %56, %57 : vector<256x32xf32>
      %59 = vector.broadcast %38 : vector<1x32xf32> to vector<256x32xf32>
      %60 = arith.addf %58, %59 : vector<256x32xf32>
      %c0_32 = arith.constant 0 : index
      %c0_33 = arith.constant 0 : index
      %61 = vector.load %arg16[%c0_32, %c0_33] : memref<256x32xf32, #tpu.memory_space<vmem>>, vector<256x32xf32>
      tpu.vector_store %arg16[%c0_32, %c0_33], %60 {strides = array<i32>} : memref<256x32xf32, #tpu.memory_space<vmem>>, vector<256x32xf32>,
      %cst_34 = arith.constant 0.000000e+00 : f32
      %62 = vector.broadcast %cst_34 : f32 to vector<256x32xf32>
      %c0_35 = arith.constant 0 : index
      %c0_36 = arith.constant 0 : index
      %63 = vector.load %arg17[%c0_35, %c0_36] : memref<256x32xf32, #tpu.memory_space<vmem>>, vector<256x32xf32>
      tpu.vector_store %arg17[%c0_35, %c0_36], %62 {strides = array<i32>} : memref<256x32xf32, #tpu.memory_space<vmem>>, vector<256x32xf32>,
    } else {
    }
    %c0 = arith.constant 0 : index
    %c0_1 = arith.constant 0 : index
    %3 = vector.load %arg16[%c0, %c0_1] : memref<256x32xf32, #tpu.memory_space<vmem>>, vector<256x32xf32>
    %4 = arith.truncf %3 : vector<256x32xf32> to vector<256x32xbf16>
    %c0_2 = arith.constant 0 : index
    %c0_3 = arith.constant 0 : index
    %5 = vector.load %arg6[%c0_2, %c0_3] : memref<32x128xbf16, #tpu.memory_space<vmem>>, vector<32x128xbf16>
    %cst = arith.constant dense<0.000000e+00> : vector<256x128xf32>
    %6 = tpu.matmul %4, %5, %cst {dimension_numbers = #tpu.dot_dimension_numbers<[1], [0], [0], [1], [0, 0, 1, 1], [], []>} : vector<256x32xbf16>, vector<32x128xbf16>, vector<256x128xf32> -> vector<256x128xf32>
    %c0_4 = arith.constant 0 : index
    %c0_5 = arith.constant 0 : index
    %7 = vector.load %arg7[%c0_4, %c0_5] : memref<1x128xf32, #tpu.memory_space<vmem>>, vector<1x128xf32>
    %8 = vector.broadcast %7 : vector<1x128xf32> to vector<256x128xf32>
    %9 = arith.addf %6, %8 : vector<256x128xf32>
    %cst_6 = arith.constant 5.000000e-01 : f32
    %10 = vector.broadcast %cst_6 : f32 to vector<256x128xf32>
    %11 = arith.mulf %10, %9 : vector<256x128xf32>
    %cst_7 = arith.constant 4.471500e-02 : f32
    %12 = vector.broadcast %cst_7 : f32 to vector<256x128xf32>
    %13 = arith.mulf %12, %9 : vector<256x128xf32>
    %14 = arith.mulf %13, %9 : vector<256x128xf32>
    %15 = arith.mulf %14, %9 : vector<256x128xf32>
    %16 = arith.addf %9, %15 : vector<256x128xf32>
    %cst_8 = arith.constant 0.797884583 : f32
    %17 = vector.broadcast %cst_8 : f32 to vector<256x128xf32>
    %18 = arith.mulf %17, %16 : vector<256x128xf32>
    %19 = math.tanh %18 : vector<256x128xf32>
    %cst_9 = arith.constant 1.000000e+00 : f32
    %20 = vector.broadcast %cst_9 : f32 to vector<256x128xf32>
    %21 = arith.addf %20, %19 : vector<256x128xf32>
    %22 = arith.mulf %11, %21 : vector<256x128xf32>
    %c0_10 = arith.constant 0 : index
    %c0_11 = arith.constant 0 : index
    %23 = vector.load %arg17[%c0_10, %c0_11] : memref<256x32xf32, #tpu.memory_space<vmem>>, vector<256x32xf32>
    %24 = arith.truncf %22 : vector<256x128xf32> to vector<256x128xbf16>
    %c0_12 = arith.constant 0 : index
    %c0_13 = arith.constant 0 : index
    %25 = vector.load %arg8[%c0_12, %c0_13] : memref<128x32xbf16, #tpu.memory_space<vmem>>, vector<128x32xbf16>
    %cst_14 = arith.constant dense<0.000000e+00> : vector<256x32xf32>
    %26 = tpu.matmul %24, %25, %cst_14 {dimension_numbers = #tpu.dot_dimension_numbers<[1], [0], [0], [1], [0, 0, 1, 1], [], []>} : vector<256x128xbf16>, vector<128x32xbf16>, vector<256x32xf32> -> vector<256x32xf32>
    %27 = arith.addf %23, %26 : vector<256x32xf32>
    %c0_15 = arith.constant 0 : index
    %c0_16 = arith.constant 0 : index
    %28 = vector.load %arg17[%c0_15, %c0_16] : memref<256x32xf32, #tpu.memory_space<vmem>>, vector<256x32xf32>
    tpu.vector_store %arg17[%c0_15, %c0_16], %27 {strides = array<i32>} : memref<256x32xf32, #tpu.memory_space<vmem>>, vector<256x32xf32>,
    %c0_i32_17 = arith.constant 0 : i32
    %29 = arith.cmpi eq, %arg1, %c0_i32_17 : i32
    %30 = arith.extui %29 : i1 to i32
    %c0_i32_18 = arith.constant 0 : i32
    %31 = arith.cmpi ne, %30, %c0_i32_18 : i32
    scf.if %31 {
      %c0_19 = arith.constant 0 : index
      %c0_20 = arith.constant 0 : index
      %32 = vector.load %arg17[%c0_19, %c0_20] : memref<256x32xf32, #tpu.memory_space<vmem>>, vector<256x32xf32>
      %33 = arith.addf %3, %32 : vector<256x32xf32>
      %c0_21 = arith.constant 0 : index
      %c0_22 = arith.constant 0 : index
      %34 = vector.load %arg9[%c0_21, %c0_22] : memref<1x32xf32, #tpu.memory_space<vmem>>, vector<1x32xf32>
      %35 = vector.broadcast %34 : vector<1x32xf32> to vector<256x32xf32>
      %36 = arith.addf %33, %35 : vector<256x32xf32>
      %c0_23 = arith.constant 0 : index
      %c0_24 = arith.constant 0 : index
      %37 = vector.load %arg10[%c0_23, %c0_24] : memref<1x32xf32, #tpu.memory_space<vmem>>, vector<1x32xf32>
      %c0_25 = arith.constant 0 : index
      %c0_26 = arith.constant 0 : index
      %38 = vector.load %arg11[%c0_25, %c0_26] : memref<1x32xf32, #tpu.memory_space<vmem>>, vector<1x32xf32>
      %cst_27 = arith.constant dense<0.000000e+00> : vector<256xf32>
      %39 = vector.multi_reduction <add>, %36, %cst_27 [1] : vector<256x32xf32> to vector<256xf32>
      %40 = vector.shape_cast %39 : vector<256xf32> to vector<256x1xf32>
      %cst_28 = arith.constant 3.200000e+01 : f32
      %41 = vector.broadcast %cst_28 : f32 to vector<256x1xf32>
      %42 = arith.divf %40, %41 : vector<256x1xf32>
      %43 = vector.broadcast %42 : vector<256x1xf32> to vector<256x32xf32>
      %44 = arith.subf %36, %43 : vector<256x32xf32>
      %45 = arith.mulf %44, %44 : vector<256x32xf32>
      %cst_29 = arith.constant dense<0.000000e+00> : vector<256xf32>
      %46 = vector.multi_reduction <add>, %45, %cst_29 [1] : vector<256x32xf32> to vector<256xf32>
      %47 = vector.shape_cast %46 : vector<256xf32> to vector<256x1xf32>
      %cst_30 = arith.constant 3.200000e+01 : f32
      %48 = vector.broadcast %cst_30 : f32 to vector<256x1xf32>
      %49 = arith.divf %47, %48 : vector<256x1xf32>
      %50 = vector.broadcast %42 : vector<256x1xf32> to vector<256x32xf32>
      %51 = arith.subf %36, %50 : vector<256x32xf32>
      %cst_31 = arith.constant 9.99999974E-6 : f32
      %52 = vector.broadcast %cst_31 : f32 to vector<256x1xf32>
      %53 = arith.addf %49, %52 : vector<256x1xf32>
      %54 = math.rsqrt %53 : vector<256x1xf32>
      %55 = vector.broadcast %54 : vector<256x1xf32> to vector<256x32xf32>
      %56 = arith.mulf %51, %55 : vector<256x32xf32>
      %57 = vector.broadcast %37 : vector<1x32xf32> to vector<256x32xf32>
      %58 = arith.mulf %56, %57 : vector<256x32xf32>
      %59 = vector.broadcast %38 : vector<1x32xf32> to vector<256x32xf32>
      %60 = arith.addf %58, %59 : vector<256x32xf32>
      %61 = arith.truncf %60 : vector<256x32xf32> to vector<256x32xbf16>
      %c0_32 = arith.constant 0 : index
      %c0_33 = arith.constant 0 : index
      %62 = vector.load %arg14[%c0_32, %c0_33] : memref<256x32xbf16, #tpu.memory_space<vmem>>, vector<256x32xbf16>
      tpu.vector_store %arg14[%c0_32, %c0_33], %61 {strides = array<i32>} : memref<256x32xbf16, #tpu.memory_space<vmem>>, vector<256x32xbf16>,
      %63 = arith.truncf %60 : vector<256x32xf32> to vector<256x32xbf16>
      %c0_34 = arith.constant 0 : index
      %c0_35 = arith.constant 0 : index
      %64 = vector.load %arg12[%c0_34, %c0_35] : memref<32x96xbf16, #tpu.memory_space<vmem>>, vector<32x96xbf16>
      %cst_36 = arith.constant dense<0.000000e+00> : vector<256x96xf32>
      %65 = tpu.matmul %63, %64, %cst_36 {dimension_numbers = #tpu.dot_dimension_numbers<[1], [0], [0], [1], [0, 0, 1, 1], [], []>} : vector<256x32xbf16>, vector<32x96xbf16>, vector<256x96xf32> -> vector<256x96xf32>
      %c0_37 = arith.constant 0 : index
      %c0_38 = arith.constant 0 : index
      %66 = vector.load %arg13[%c0_37, %c0_38] : memref<1x96xf32, #tpu.memory_space<vmem>>, vector<1x96xf32>
      %67 = vector.broadcast %66 : vector<1x96xf32> to vector<256x96xf32>
      %68 = arith.addf %65, %67 : vector<256x96xf32>
      %69 = arith.truncf %68 : vector<256x96xf32> to vector<256x96xbf16>
      %c0_39 = arith.constant 0 : index
      %c0_40 = arith.constant 0 : index
      %70 = vector.load %arg15[%c0_39, %c0_40] : memref<256x96xbf16, #tpu.memory_space<vmem>>, vector<256x96xbf16>
      tpu.vector_store %arg15[%c0_39, %c0_40], %69 {strides = array<i32>} : memref<256x96xbf16, #tpu.memory_space<vmem>>, vector<256x96xbf16>,
    } else {
    }
    return
  }
  func.func @transform_0(%arg0: i32, %arg1: i32) -> (i32, i32) {
    %c0_i32 = arith.constant 0 : i32
    %c0_i32_0 = arith.constant 0 : i32
    return %arg0, %c0_i32 : i32, i32
  }
  func.func @transform_1(%arg0: i32, %arg1: i32) -> (i32, i32) {
    %c0_i32 = arith.constant 0 : i32
    %c0_i32_0 = arith.constant 0 : i32
    return %arg0, %c0_i32 : i32, i32
  }
  func.func @transform_2(%arg0: i32, %arg1: i32) -> (i32, i32) {
    %c0_i32 = arith.constant 0 : i32
    %c0_i32_0 = arith.constant 0 : i32
    %c0_i32_1 = arith.constant 0 : i32
    return %c0_i32, %c0_i32_0 : i32, i32
  }
  func.func @transform_3(%arg0: i32, %arg1: i32) -> (i32, i32) {
    %c0_i32 = arith.constant 0 : i32
    %c0_i32_0 = arith.constant 0 : i32
    %c0_i32_1 = arith.constant 0 : i32
    return %c0_i32, %c0_i32_0 : i32, i32
  }
  func.func @transform_4(%arg0: i32, %arg1: i32) -> (i32, i32) {
    %c0_i32 = arith.constant 0 : i32
    %c0_i32_0 = arith.constant 0 : i32
    return %c0_i32, %arg1 : i32, i32
  }
  func.func @transform_5(%arg0: i32, %arg1: i32) -> (i32, i32) {
    %c0_i32 = arith.constant 0 : i32
    %c0_i32_0 = arith.constant 0 : i32
    return %c0_i32, %arg1 : i32, i32
  }
  func.func @transform_6(%arg0: i32, %arg1: i32) -> (i32, i32) {
    %c0_i32 = arith.constant 0 : i32
    %c0_i32_0 = arith.constant 0 : i32
    return %arg1, %c0_i32 : i32, i32
  }
  func.func @transform_7(%arg0: i32, %arg1: i32) -> (i32, i32) {
    %c0_i32 = arith.constant 0 : i32
    %c0_i32_0 = arith.constant 0 : i32
    %c0_i32_1 = arith.constant 0 : i32
    return %c0_i32, %c0_i32_0 : i32, i32
  }
  func.func @transform_8(%arg0: i32, %arg1: i32) -> (i32, i32) {
    %c0_i32 = arith.constant 0 : i32
    %c0_i32_0 = arith.constant 0 : i32
    %c0_i32_1 = arith.constant 0 : i32
    return %c0_i32, %c0_i32_0 : i32, i32
  }
  func.func @transform_9(%arg0: i32, %arg1: i32) -> (i32, i32) {
    %c0_i32 = arith.constant 0 : i32
    %c0_i32_0 = arith.constant 0 : i32
    %c0_i32_1 = arith.constant 0 : i32
    return %c0_i32, %c0_i32_0 : i32, i32
  }
  func.func @transform_10(%arg0: i32, %arg1: i32) -> (i32, i32) {
    %c0_i32 = arith.constant 0 : i32
    %c0_i32_0 = arith.constant 0 : i32
    %c0_i32_1 = arith.constant 0 : i32
    return %c0_i32, %c0_i32_0 : i32, i32
  }
  func.func @transform_11(%arg0: i32, %arg1: i32) -> (i32, i32) {
    %c0_i32 = arith.constant 0 : i32
    %c0_i32_0 = arith.constant 0 : i32
    %c0_i32_1 = arith.constant 0 : i32
    return %c0_i32, %c0_i32_0 : i32, i32
  }
  func.func @transform_12(%arg0: i32, %arg1: i32) -> (i32, i32) {
    %c0_i32 = arith.constant 0 : i32
    %c0_i32_0 = arith.constant 0 : i32
    return %arg0, %c0_i32 : i32, i32
  }
  func.func @transform_13(%arg0: i32, %arg1: i32) -> (i32, i32) {
    %c0_i32 = arith.constant 0 : i32
    %c0_i32_0 = arith.constant 0 : i32
    return %arg0, %c0_i32 : i32, i32
  }
}

module attributes {stable_mosaic.version = 11 : i64} {
  func.func @_post_attn_kernel(%arg0: i32, %arg1: i32, %arg2: memref<256x32xbf16, #tpu.memory_space<vmem>>, %arg3: memref<256x32xbf16, #tpu.memory_space<vmem>>, %arg4: memref<1x32xf32, #tpu.memory_space<vmem>>, %arg5: memref<1x32xf32, #tpu.memory_space<vmem>>, %arg6: memref<32x128xbf16, #tpu.memory_space<vmem>>, %arg7: memref<1x128xf32, #tpu.memory_space<vmem>>, %arg8: memref<128x32xbf16, #tpu.memory_space<vmem>>, %arg9: memref<1x32xf32, #tpu.memory_space<vmem>>, %arg10: memref<1x32xf32, #tpu.memory_space<vmem>>, %arg11: memref<1x32xf32, #tpu.memory_space<vmem>>, %arg12: memref<256x32xf32, #tpu.memory_space<vmem>>, %arg13: memref<256x32xf32, #tpu.memory_space<vmem>>, %arg14: memref<256x32xf32, #tpu.memory_space<vmem>>) attributes {dimension_semantics = [#tpu.dimension_semantics<parallel>, #tpu.dimension_semantics<arbitrary>], iteration_bounds = array<i64: 1, 1>, scalar_prefetch = 0 : i64, scratch_operands = 2 : i64, tpu.core_type = #tpu.core_type<tc>, window_params = [{transform_indices = @transform_0, window_bounds = array<i64: 256, 32>}, {transform_indices = @transform_1, window_bounds = array<i64: 256, 32>}, {pipeline_mode = #tpu.pipeline_mode<synchronous>, transform_indices = @transform_2, window_bounds = array<i64: 1, 32>}, {pipeline_mode = #tpu.pipeline_mode<synchronous>, transform_indices = @transform_3, window_bounds = array<i64: 1, 32>}, {transform_indices = @transform_4, window_bounds = array<i64: 32, 128>}, {transform_indices = @transform_5, window_bounds = array<i64: 1, 128>}, {transform_indices = @transform_6, window_bounds = array<i64: 128, 32>}, {pipeline_mode = #tpu.pipeline_mode<synchronous>, transform_indices = @transform_7, window_bounds = array<i64: 1, 32>}, {pipeline_mode = #tpu.pipeline_mode<synchronous>, transform_indices = @transform_8, window_bounds = array<i64: 1, 32>}, {pipeline_mode = #tpu.pipeline_mode<synchronous>, transform_indices = @transform_9, window_bounds = array<i64: 1, 32>}, {transform_indices = @transform_10, window_bounds = array<i64: 256, 32>}]} {
    %c0_i32 = arith.constant 0 : i32
    %0 = arith.cmpi eq, %arg1, %c0_i32 : i32
    %1 = arith.extui %0 : i1 to i32
    %c0_i32_0 = arith.constant 0 : i32
    %2 = arith.cmpi ne, %1, %c0_i32_0 : i32
    scf.if %2 {
      %c0_19 = arith.constant 0 : index
      %c0_20 = arith.constant 0 : index
      %32 = vector.load %arg2[%c0_19, %c0_20] : memref<256x32xbf16, #tpu.memory_space<vmem>>, vector<256x32xbf16>
      %33 = arith.extf %32 : vector<256x32xbf16> to vector<256x32xf32>
      %c0_21 = arith.constant 0 : index
      %c0_22 = arith.constant 0 : index
      %34 = vector.load %arg3[%c0_21, %c0_22] : memref<256x32xbf16, #tpu.memory_space<vmem>>, vector<256x32xbf16>
      %35 = arith.extf %34 : vector<256x32xbf16> to vector<256x32xf32>
      %36 = arith.addf %33, %35 : vector<256x32xf32>
      %c0_23 = arith.constant 0 : index
      %c0_24 = arith.constant 0 : index
      %37 = vector.load %arg4[%c0_23, %c0_24] : memref<1x32xf32, #tpu.memory_space<vmem>>, vector<1x32xf32>
      %c0_25 = arith.constant 0 : index
      %c0_26 = arith.constant 0 : index
      %38 = vector.load %arg5[%c0_25, %c0_26] : memref<1x32xf32, #tpu.memory_space<vmem>>, vector<1x32xf32>
      %cst_27 = arith.constant dense<0.000000e+00> : vector<256xf32>
      %39 = vector.multi_reduction <add>, %36, %cst_27 [1] : vector<256x32xf32> to vector<256xf32>
      %40 = vector.shape_cast %39 : vector<256xf32> to vector<256x1xf32>
      %cst_28 = arith.constant 3.200000e+01 : f32
      %41 = vector.broadcast %cst_28 : f32 to vector<256x1xf32>
      %42 = arith.divf %40, %41 : vector<256x1xf32>
      %43 = vector.broadcast %42 : vector<256x1xf32> to vector<256x32xf32>
      %44 = arith.subf %36, %43 : vector<256x32xf32>
      %45 = arith.mulf %44, %44 : vector<256x32xf32>
      %cst_29 = arith.constant dense<0.000000e+00> : vector<256xf32>
      %46 = vector.multi_reduction <add>, %45, %cst_29 [1] : vector<256x32xf32> to vector<256xf32>
      %47 = vector.shape_cast %46 : vector<256xf32> to vector<256x1xf32>
      %cst_30 = arith.constant 3.200000e+01 : f32
      %48 = vector.broadcast %cst_30 : f32 to vector<256x1xf32>
      %49 = arith.divf %47, %48 : vector<256x1xf32>
      %50 = vector.broadcast %42 : vector<256x1xf32> to vector<256x32xf32>
      %51 = arith.subf %36, %50 : vector<256x32xf32>
      %cst_31 = arith.constant 9.99999974E-6 : f32
      %52 = vector.broadcast %cst_31 : f32 to vector<256x1xf32>
      %53 = arith.addf %49, %52 : vector<256x1xf32>
      %54 = math.rsqrt %53 : vector<256x1xf32>
      %55 = vector.broadcast %54 : vector<256x1xf32> to vector<256x32xf32>
      %56 = arith.mulf %51, %55 : vector<256x32xf32>
      %57 = vector.broadcast %37 : vector<1x32xf32> to vector<256x32xf32>
      %58 = arith.mulf %56, %57 : vector<256x32xf32>
      %59 = vector.broadcast %38 : vector<1x32xf32> to vector<256x32xf32>
      %60 = arith.addf %58, %59 : vector<256x32xf32>
      %c0_32 = arith.constant 0 : index
      %c0_33 = arith.constant 0 : index
      %61 = vector.load %arg13[%c0_32, %c0_33] : memref<256x32xf32, #tpu.memory_space<vmem>>, vector<256x32xf32>
      tpu.vector_store %arg13[%c0_32, %c0_33], %60 {strides = array<i32>} : memref<256x32xf32, #tpu.memory_space<vmem>>, vector<256x32xf32>,
      %cst_34 = arith.constant 0.000000e+00 : f32
      %62 = vector.broadcast %cst_34 : f32 to vector<256x32xf32>
      %c0_35 = arith.constant 0 : index
      %c0_36 = arith.constant 0 : index
      %63 = vector.load %arg14[%c0_35, %c0_36] : memref<256x32xf32, #tpu.memory_space<vmem>>, vector<256x32xf32>
      tpu.vector_store %arg14[%c0_35, %c0_36], %62 {strides = array<i32>} : memref<256x32xf32, #tpu.memory_space<vmem>>, vector<256x32xf32>,
    } else {
    }
    %c0 = arith.constant 0 : index
    %c0_1 = arith.constant 0 : index
    %3 = vector.load %arg13[%c0, %c0_1] : memref<256x32xf32, #tpu.memory_space<vmem>>, vector<256x32xf32>
    %4 = arith.truncf %3 : vector<256x32xf32> to vector<256x32xbf16>
    %c0_2 = arith.constant 0 : index
    %c0_3 = arith.constant 0 : index
    %5 = vector.load %arg6[%c0_2, %c0_3] : memref<32x128xbf16, #tpu.memory_space<vmem>>, vector<32x128xbf16>
    %cst = arith.constant dense<0.000000e+00> : vector<256x128xf32>
    %6 = tpu.matmul %4, %5, %cst {dimension_numbers = #tpu.dot_dimension_numbers<[1], [0], [0], [1], [0, 0, 1, 1], [], []>} : vector<256x32xbf16>, vector<32x128xbf16>, vector<256x128xf32> -> vector<256x128xf32>
    %c0_4 = arith.constant 0 : index
    %c0_5 = arith.constant 0 : index
    %7 = vector.load %arg7[%c0_4, %c0_5] : memref<1x128xf32, #tpu.memory_space<vmem>>, vector<1x128xf32>
    %8 = vector.broadcast %7 : vector<1x128xf32> to vector<256x128xf32>
    %9 = arith.addf %6, %8 : vector<256x128xf32>
    %cst_6 = arith.constant 5.000000e-01 : f32
    %10 = vector.broadcast %cst_6 : f32 to vector<256x128xf32>
    %11 = arith.mulf %10, %9 : vector<256x128xf32>
    %cst_7 = arith.constant 4.471500e-02 : f32
    %12 = vector.broadcast %cst_7 : f32 to vector<256x128xf32>
    %13 = arith.mulf %12, %9 : vector<256x128xf32>
    %14 = arith.mulf %13, %9 : vector<256x128xf32>
    %15 = arith.mulf %14, %9 : vector<256x128xf32>
    %16 = arith.addf %9, %15 : vector<256x128xf32>
    %cst_8 = arith.constant 0.797884583 : f32
    %17 = vector.broadcast %cst_8 : f32 to vector<256x128xf32>
    %18 = arith.mulf %17, %16 : vector<256x128xf32>
    %19 = math.tanh %18 : vector<256x128xf32>
    %cst_9 = arith.constant 1.000000e+00 : f32
    %20 = vector.broadcast %cst_9 : f32 to vector<256x128xf32>
    %21 = arith.addf %20, %19 : vector<256x128xf32>
    %22 = arith.mulf %11, %21 : vector<256x128xf32>
    %c0_10 = arith.constant 0 : index
    %c0_11 = arith.constant 0 : index
    %23 = vector.load %arg14[%c0_10, %c0_11] : memref<256x32xf32, #tpu.memory_space<vmem>>, vector<256x32xf32>
    %24 = arith.truncf %22 : vector<256x128xf32> to vector<256x128xbf16>
    %c0_12 = arith.constant 0 : index
    %c0_13 = arith.constant 0 : index
    %25 = vector.load %arg8[%c0_12, %c0_13] : memref<128x32xbf16, #tpu.memory_space<vmem>>, vector<128x32xbf16>
    %cst_14 = arith.constant dense<0.000000e+00> : vector<256x32xf32>
    %26 = tpu.matmul %24, %25, %cst_14 {dimension_numbers = #tpu.dot_dimension_numbers<[1], [0], [0], [1], [0, 0, 1, 1], [], []>} : vector<256x128xbf16>, vector<128x32xbf16>, vector<256x32xf32> -> vector<256x32xf32>
    %27 = arith.addf %23, %26 : vector<256x32xf32>
    %c0_15 = arith.constant 0 : index
    %c0_16 = arith.constant 0 : index
    %28 = vector.load %arg14[%c0_15, %c0_16] : memref<256x32xf32, #tpu.memory_space<vmem>>, vector<256x32xf32>
    tpu.vector_store %arg14[%c0_15, %c0_16], %27 {strides = array<i32>} : memref<256x32xf32, #tpu.memory_space<vmem>>, vector<256x32xf32>,
    %c0_i32_17 = arith.constant 0 : i32
    %29 = arith.cmpi eq, %arg1, %c0_i32_17 : i32
    %30 = arith.extui %29 : i1 to i32
    %c0_i32_18 = arith.constant 0 : i32
    %31 = arith.cmpi ne, %30, %c0_i32_18 : i32
    scf.if %31 {
      %c0_19 = arith.constant 0 : index
      %c0_20 = arith.constant 0 : index
      %32 = vector.load %arg14[%c0_19, %c0_20] : memref<256x32xf32, #tpu.memory_space<vmem>>, vector<256x32xf32>
      %33 = arith.addf %3, %32 : vector<256x32xf32>
      %c0_21 = arith.constant 0 : index
      %c0_22 = arith.constant 0 : index
      %34 = vector.load %arg9[%c0_21, %c0_22] : memref<1x32xf32, #tpu.memory_space<vmem>>, vector<1x32xf32>
      %35 = vector.broadcast %34 : vector<1x32xf32> to vector<256x32xf32>
      %36 = arith.addf %33, %35 : vector<256x32xf32>
      %c0_23 = arith.constant 0 : index
      %c0_24 = arith.constant 0 : index
      %37 = vector.load %arg10[%c0_23, %c0_24] : memref<1x32xf32, #tpu.memory_space<vmem>>, vector<1x32xf32>
      %c0_25 = arith.constant 0 : index
      %c0_26 = arith.constant 0 : index
      %38 = vector.load %arg11[%c0_25, %c0_26] : memref<1x32xf32, #tpu.memory_space<vmem>>, vector<1x32xf32>
      %cst_27 = arith.constant dense<0.000000e+00> : vector<256xf32>
      %39 = vector.multi_reduction <add>, %36, %cst_27 [1] : vector<256x32xf32> to vector<256xf32>
      %40 = vector.shape_cast %39 : vector<256xf32> to vector<256x1xf32>
      %cst_28 = arith.constant 3.200000e+01 : f32
      %41 = vector.broadcast %cst_28 : f32 to vector<256x1xf32>
      %42 = arith.divf %40, %41 : vector<256x1xf32>
      %43 = vector.broadcast %42 : vector<256x1xf32> to vector<256x32xf32>
      %44 = arith.subf %36, %43 : vector<256x32xf32>
      %45 = arith.mulf %44, %44 : vector<256x32xf32>
      %cst_29 = arith.constant dense<0.000000e+00> : vector<256xf32>
      %46 = vector.multi_reduction <add>, %45, %cst_29 [1] : vector<256x32xf32> to vector<256xf32>
      %47 = vector.shape_cast %46 : vector<256xf32> to vector<256x1xf32>
      %cst_30 = arith.constant 3.200000e+01 : f32
      %48 = vector.broadcast %cst_30 : f32 to vector<256x1xf32>
      %49 = arith.divf %47, %48 : vector<256x1xf32>
      %50 = vector.broadcast %42 : vector<256x1xf32> to vector<256x32xf32>
      %51 = arith.subf %36, %50 : vector<256x32xf32>
      %cst_31 = arith.constant 9.99999974E-6 : f32
      %52 = vector.broadcast %cst_31 : f32 to vector<256x1xf32>
      %53 = arith.addf %49, %52 : vector<256x1xf32>
      %54 = math.rsqrt %53 : vector<256x1xf32>
      %55 = vector.broadcast %54 : vector<256x1xf32> to vector<256x32xf32>
      %56 = arith.mulf %51, %55 : vector<256x32xf32>
      %57 = vector.broadcast %37 : vector<1x32xf32> to vector<256x32xf32>
      %58 = arith.mulf %56, %57 : vector<256x32xf32>
      %59 = vector.broadcast %38 : vector<1x32xf32> to vector<256x32xf32>
      %60 = arith.addf %58, %59 : vector<256x32xf32>
      %c0_32 = arith.constant 0 : index
      %c0_33 = arith.constant 0 : index
      %61 = vector.load %arg12[%c0_32, %c0_33] : memref<256x32xf32, #tpu.memory_space<vmem>>, vector<256x32xf32>
      tpu.vector_store %arg12[%c0_32, %c0_33], %60 {strides = array<i32>} : memref<256x32xf32, #tpu.memory_space<vmem>>, vector<256x32xf32>,
    } else {
    }
    return
  }
  func.func @transform_0(%arg0: i32, %arg1: i32) -> (i32, i32) {
    %c0_i32 = arith.constant 0 : i32
    %c0_i32_0 = arith.constant 0 : i32
    return %arg0, %c0_i32 : i32, i32
  }
  func.func @transform_1(%arg0: i32, %arg1: i32) -> (i32, i32) {
    %c0_i32 = arith.constant 0 : i32
    %c0_i32_0 = arith.constant 0 : i32
    return %arg0, %c0_i32 : i32, i32
  }
  func.func @transform_2(%arg0: i32, %arg1: i32) -> (i32, i32) {
    %c0_i32 = arith.constant 0 : i32
    %c0_i32_0 = arith.constant 0 : i32
    %c0_i32_1 = arith.constant 0 : i32
    return %c0_i32, %c0_i32_0 : i32, i32
  }
  func.func @transform_3(%arg0: i32, %arg1: i32) -> (i32, i32) {
    %c0_i32 = arith.constant 0 : i32
    %c0_i32_0 = arith.constant 0 : i32
    %c0_i32_1 = arith.constant 0 : i32
    return %c0_i32, %c0_i32_0 : i32, i32
  }
  func.func @transform_4(%arg0: i32, %arg1: i32) -> (i32, i32) {
    %c0_i32 = arith.constant 0 : i32
    %c0_i32_0 = arith.constant 0 : i32
    return %c0_i32, %arg1 : i32, i32
  }
  func.func @transform_5(%arg0: i32, %arg1: i32) -> (i32, i32) {
    %c0_i32 = arith.constant 0 : i32
    %c0_i32_0 = arith.constant 0 : i32
    return %c0_i32, %arg1 : i32, i32
  }
  func.func @transform_6(%arg0: i32, %arg1: i32) -> (i32, i32) {
    %c0_i32 = arith.constant 0 : i32
    %c0_i32_0 = arith.constant 0 : i32
    return %arg1, %c0_i32 : i32, i32
  }
  func.func @transform_7(%arg0: i32, %arg1: i32) -> (i32, i32) {
    %c0_i32 = arith.constant 0 : i32
    %c0_i32_0 = arith.constant 0 : i32
    %c0_i32_1 = arith.constant 0 : i32
    return %c0_i32, %c0_i32_0 : i32, i32
  }
  func.func @transform_8(%arg0: i32, %arg1: i32) -> (i32, i32) {
    %c0_i32 = arith.constant 0 : i32
    %c0_i32_0 = arith.constant 0 : i32
    %c0_i32_1 = arith.constant 0 : i32
    return %c0_i32, %c0_i32_0 : i32, i32
  }
  func.func @transform_9(%arg0: i32, %arg1: i32) -> (i32, i32) {
    %c0_i32 = arith.constant 0 : i32
    %c0_i32_0 = arith.constant 0 : i32
    %c0_i32_1 = arith.constant 0 : i32
    return %c0_i32, %c0_i32_0 : i32, i32
  }
  func.func @transform_10(%arg0: i32, %arg1: i32) -> (i32, i32) {
    %c0_i32 = arith.constant 0 : i32
    %c0_i32_0 = arith.constant 0 : i32
    return %arg0, %c0_i32 : i32, i32
  }
}

</mosaic_0001>

<bundles_post_ra>
// kernel: sentence_encoder_forward.5
= control target key start
LH: loop header
LB: loop body
LE: loop exit
PB: predicated region body
PF: predicated region fallthrough
CT: control target
= control target key end

     0   :  { %vm92_vm0 = vcmask 261120   ;;  %vm938_vm1 = vcmask 257024   ;;  %vm1331_vm2 = vcmask 781312   ;;  %s2839_s0 = inlined_call_operand.vmem [shape: bf16[256,32], index: 0, kind: input, shape index: {}]   ;;  %s2840_s1 = inlined_call_operand.vmem [shape: f32[256,1], index: 1, kind: input, shape index: {}]   ;;  %s2841_s4 = inlined_call_operand.vmem [shape: bf16[32,96], index: 4, kind: input, shape index: {}]   ;;  %s2842_s2 = inlined_call_operand.vmem [shape: f32[1,32], index: 2, kind: input, shape index: {}]   ;;  %s2843_s3 = inlined_call_operand.vmem [shape: f32[1,32], index: 3, kind: input, shape index: {}]   ;;  %s2844_s6 = inlined_call_operand.vmem [shape: bf16[256,32], index: 6, kind: output, shape index: {0}]   ;;  %s2845_s5 = inlined_call_operand.vmem [shape: f32[1,96], index: 5, kind: input, shape index: {}]   ;;  %s2846_s7 = inlined_call_operand.vmem [shape: bf16[256,96], index: 7, kind: output, shape index: {1}]  }
   0x1   :  { %v1771_v0 = vld [vmem:[%s2839_s0] sm:$0xff]   ;;  %v1785_v6 = vld [vmem:[%s2839_s0 + $0x8] sm:$0xff]   ;;  %v1817_v18 = vld [vmem:[%s2839_s0 + $0x10] sm:$0xff]  }
   0x2   :  { %v1776_v1 = vld [vmem:[%s2839_s0 + $0x40] sm:$0xff]   ;;  %v1523_v2 = vunpack.c.l.bf16 %v1771_v0  ;;  %v1524_v4 = vunpack.c.h.bf16 %v1771_v0  ;;  %v1527_v11 = vunpack.c.l.bf16 %v1785_v6  ;;  %v1528_v12 = vunpack.c.h.bf16 %v1785_v6  ;;  %v1804_v13 = vld [vmem:[%s2839_s0 + $0x48] sm:$0xff]   ;;  %v1830_v23 = vld [vmem:[%s2839_s0 + $0x50] sm:$0xff]  }
   0x3   :  { %v1555_v3 = vunpack.c.l.bf16 %v1776_v1  ;;  %v1556_v5 = vunpack.c.h.bf16 %v1776_v1  ;;  %v1559_v16 = vunpack.c.l.bf16 %v1804_v13  ;;  %v1560_v17 = vunpack.c.h.bf16 %v1804_v13  ;;  %v1843_v28 = vld [vmem:[%s2839_s0 + $0x18] sm:$0xff]   ;;  %v1869_v38 = vld [vmem:[%s2839_s0 + $0x20] sm:$0xff]   ;;  %v1895_v48 = vld [vmem:[%s2839_s0 + $0x28] sm:$0xff]  }
   0x4   :  { %v93_v7 = vsel %vm92_vm0, %v1523_v2, 0.0  ;;  %v96_v9 = vsel %vm92_vm0, %v1524_v4, 0.0  ;;  %v99_v14 = vsel %vm92_vm0, %v1527_v11, 0.0  ;;  %v102_v15 = vsel %vm92_vm0, %v1528_v12, 0.0  ;;  %v1856_v33 = vld [vmem:[%s2839_s0 + $0x58] sm:$0xff]   ;;  %v1882_v43 = vld [vmem:[%s2839_s0 + $0x60] sm:$0xff]  }
   0x5   :  { %v141_v8 = vsel %vm92_vm0, %v1555_v3, 0.0  ;;  %94 = vadd.xlane.f32.xlu0 %v93_v7  ;;  %v144_v10 = vsel %vm92_vm0, %v1556_v5, 0.0  ;;  %v147_v19 = vsel %vm92_vm0, %v1559_v16, 0.0  ;;  %v150_v20 = vsel %vm92_vm0, %v1560_v17, 0.0  ;;  %v1908_v53 = vld [vmem:[%s2839_s0 + $0x68] sm:$0xff]   ;;  %v1921_v58 = vld [vmem:[%s2839_s0 + $0x30] sm:$0xff]  }
   0x6   :  { %142 = vadd.xlane.f32.xlu1 %v141_v8  ;;  %v1531_v21 = vunpack.c.l.bf16 %v1817_v18  ;;  %v1532_v22 = vunpack.c.h.bf16 %v1817_v18  ;;  %v1563_v26 = vunpack.c.l.bf16 %v1830_v23  ;;  %v1564_v27 = vunpack.c.h.bf16 %v1830_v23  ;;  %v1934_v63 = vld [vmem:[%s2839_s0 + $0x70] sm:$0xff]  }
   0x7   :  { %v1535_v31 = vunpack.c.l.bf16 %v1843_v28  ;;  %v1536_v32 = vunpack.c.h.bf16 %v1843_v28  ;;  %v1567_v36 = vunpack.c.l.bf16 %v1856_v33  ;;  %v1568_v37 = vunpack.c.h.bf16 %v1856_v33 }
   0x8   :  { %v105_v24 = vsel %vm92_vm0, %v1531_v21, 0.0  ;;  %v108_v25 = vsel %vm92_vm0, %v1532_v22, 0.0  ;;  %v153_v29 = vsel %vm92_vm0, %v1563_v26, 0.0  ;;  %v156_v30 = vsel %vm92_vm0, %v1564_v27, 0.0 }
   0x9   :  { %97 = vadd.xlane.f32.xlu0 %v96_v9  ;;  %v111_v34 = vsel %vm92_vm0, %v1535_v31, 0.0  ;;  %v114_v35 = vsel %vm92_vm0, %v1536_v32, 0.0  ;;  %v159_v39 = vsel %vm92_vm0, %v1567_v36, 0.0  ;;  %v162_v40 = vsel %vm92_vm0, %v1568_v37, 0.0 }
   0xa   :  { %145 = vadd.xlane.f32.xlu1 %v144_v10  ;;  %v1539_v41 = vunpack.c.l.bf16 %v1869_v38  ;;  %v1540_v42 = vunpack.c.h.bf16 %v1869_v38  ;;  %v1571_v46 = vunpack.c.l.bf16 %v1882_v43  ;;  %v1572_v47 = vunpack.c.h.bf16 %v1882_v43 }
   0xb   :  { %v1543_v51 = vunpack.c.l.bf16 %v1895_v48  ;;  %v1544_v52 = vunpack.c.h.bf16 %v1895_v48  ;;  %v1575_v56 = vunpack.c.l.bf16 %v1908_v53  ;;  %v1576_v57 = vunpack.c.h.bf16 %v1908_v53 }
   0xc   :  { %v117_v44 = vsel %vm92_vm0, %v1539_v41, 0.0  ;;  %v120_v45 = vsel %vm92_vm0, %v1540_v42, 0.0  ;;  %v165_v49 = vsel %vm92_vm0, %v1571_v46, 0.0  ;;  %v168_v50 = vsel %vm92_vm0, %v1572_v47, 0.0 }
   0xd   :  { %100 = vadd.xlane.f32.xlu0 %v99_v14  ;;  %v123_v54 = vsel %vm92_vm0, %v1543_v51, 0.0  ;;  %v126_v55 = vsel %vm92_vm0, %v1544_v52, 0.0  ;;  %v171_v59 = vsel %vm92_vm0, %v1575_v56, 0.0  ;;  %v174_v60 = vsel %vm92_vm0, %v1576_v57, 0.0  ;;  %v1947_v14 = vld [vmem:[%s2839_s0 + $0x38] sm:$0xff]  }
   0xe   :  { %103 = vadd.xlane.f32.xlu1 %v102_v15  ;;  %v1547_v61 = vunpack.c.l.bf16 %v1921_v58  ;;  %v1548_v62 = vunpack.c.h.bf16 %v1921_v58  ;;  %v1579_v9 = vunpack.c.l.bf16 %v1934_v63  ;;  %v1580_v10 = vunpack.c.h.bf16 %v1934_v63 }
  0x10   :  { %v129_v7 = vsel %vm92_vm0, %v1547_v61, 0.0  ;;  %v132_v8 = vsel %vm92_vm0, %v1548_v62, 0.0  ;;  %v177_v15 = vsel %vm92_vm0, %v1579_v9, 0.0 }
  0x11   :  { %148 = vadd.xlane.f32.xlu0 %v147_v19  ;;  %v180_v19 = vsel %vm92_vm0, %v1580_v10, 0.0 }
  0x12   :  { %151 = vadd.xlane.f32.xlu1 %v150_v20  ;;  %v1551_v20 = vunpack.c.l.bf16 %v1947_v14 }
  0x15   :  { %106 = vadd.xlane.f32.xlu0 %v105_v24  ;;  %v1552_v24 = vunpack.c.h.bf16 %v1947_v14 }
  0x16   :  { %109 = vadd.xlane.f32.xlu1 %v108_v25  ;;  %v1960_v25 = vld [vmem:[%s2839_s0 + $0x78] sm:$0xff]  }
  0x19   :  { %154 = vadd.xlane.f32.xlu0 %v153_v29  ;;  %v135_v29 = vsel %vm92_vm0, %v1551_v20, 0.0 }
  0x1a   :  { %157 = vadd.xlane.f32.xlu1 %v156_v30  ;;  %v138_v30 = vsel %vm92_vm0, %v1552_v24, 0.0 }
  0x1d   :  { %112 = vadd.xlane.f32.xlu0 %v111_v34  ;;  %v1583_v34 = vunpack.c.l.bf16 %v1960_v25 }
  0x1e   :  { %115 = vadd.xlane.f32.xlu1 %v114_v35  ;;  %v1584_v35 = vunpack.c.h.bf16 %v1960_v25  ;;  %v601_v25 = vld [vmem:[%s2840_s1 + $0x78] sm:$0xff] }
  0x21   :  { %160 = vadd.xlane.f32.xlu0 %v159_v39  ;;  %v183_v39 = vsel %vm92_vm0, %v1583_v34, 0.0 }
  0x22   :  { %163 = vadd.xlane.f32.xlu1 %v162_v40  ;;  %v186_v40 = vsel %vm92_vm0, %v1584_v35, 0.0 }
  0x25   :  { %118 = vadd.xlane.f32.xlu0 %v117_v44  ;;  %v1727_v44 = vmov 0  }
  0x26   :  { %121 = vadd.xlane.f32.xlu1 %v120_v45  ;;  %1659 = vset.pattern.permute.xlu0 %v1727_v44 }
  0x27   :  { %1660 = vset.pattern.permute.xlu1 %v1727_v44 }
  0x29   :  { %166 = vadd.xlane.f32.xlu0 %v165_v49 }
  0x2a   :  { %169 = vadd.xlane.f32.xlu1 %v168_v50 }
  0x2d   :  { %124 = vadd.xlane.f32.xlu0 %v123_v54 }
  0x2e   :  { %127 = vadd.xlane.f32.xlu1 %v126_v55 }
  0x31   :  { %172 = vadd.xlane.f32.xlu0 %v171_v59 }
  0x32   :  { %175 = vadd.xlane.f32.xlu1 %v174_v60 }
  0x35   :  { %130 = vadd.xlane.f32.xlu0 %v129_v7 }
  0x36   :  { %133 = vadd.xlane.f32.xlu1 %v132_v8 }
  0x39   :  { %178 = vadd.xlane.f32.xlu0 %v177_v15 }
  0x3a   :  { %181 = vadd.xlane.f32.xlu1 %v180_v19 }
  0x3d   :  { %136 = vadd.xlane.f32.xlu0 %v135_v29 }
  0x3e   :  { %139 = vadd.xlane.f32.xlu1 %v138_v30 }
  0x41   :  { %184 = vadd.xlane.f32.xlu0 %v183_v39 }
  0x42   :  { %187 = vadd.xlane.f32.xlu1 %v186_v40 }
  0x92   :  { %v95_v45 = vpop.xlane.xlu0 %94 }
  0x93   :  { %v143_v49 = vpop.xlane.xlu1 %142  ;;  %v190_v50 = vmul.f32 0.03125, %v95_v45 }
  0x94   :  { %v206_v54 = vmul.f32 0.03125, %v143_v49 }
  0x95   :  { %v1978_v55 = vsub.f32 %v1523_v2, %v190_v50 }
  0x96   :  { %v1982_v59 = vsub.f32 %v1555_v3, %v206_v54  ;;  %v98_v60 = vpop.xlane.xlu0 %97 }
  0x97   :  { %v146_v7 = vpop.xlane.xlu1 %145  ;;  %v191_v8 = vmul.f32 0.03125, %v98_v60  ;;  %v254_v19 = vmul.f32 %v1978_v55, %v1978_v55 }
  0x98   :  { %v207_v15 = vmul.f32 0.03125, %v146_v7  ;;  %v270_v29 = vmul.f32 %v1982_v59, %v1982_v59 }
  0x99   :  { %v1990_v30 = vsub.f32 %v1524_v4, %v191_v8  ;;  %v286_v3 = vsel %vm92_vm0, %v254_v19, 0.0 }
  0x9a   :  { %v1994_v2 = vsub.f32 %v1556_v5, %v207_v15  ;;  %287 = vadd.xlane.f32.xlu0 %v286_v3  ;;  %v101_v39 = vpop.xlane.xlu0 %100  ;;  %v334_v44 = vsel %vm92_vm0, %v270_v29, 0.0 }
  0x9b   :  { %v104_v40 = vpop.xlane.xlu1 %103  ;;  %v192_v45 = vmul.f32 0.03125, %v101_v39  ;;  %v255_v50 = vmul.f32 %v1990_v30, %v1990_v30 }
  0x9c   :  { %v193_v49 = vmul.f32 0.03125, %v104_v40  ;;  %v271_v0 = vmul.f32 %v1994_v2, %v1994_v2 }
  0x9d   :  { %v2004_v1 = vsub.f32 %v1527_v11, %v192_v45  ;;  %v289_v5 = vsel %vm92_vm0, %v255_v50, 0.0 }
  0x9e   :  { %v2008_v4 = vsub.f32 %v1528_v12, %v193_v49  ;;  %335 = vadd.xlane.f32.xlu0 %v334_v44  ;;  %290 = vadd.xlane.f32.xlu1 %v289_v5  ;;  %v149_v54 = vpop.xlane.xlu0 %148  ;;  %v337_v7 = vsel %vm92_vm0, %v271_v0, 0.0 }
  0x9f   :  { %v152_v60 = vpop.xlane.xlu1 %151  ;;  %v208_v8 = vmul.f32 0.03125, %v149_v54  ;;  %v256_v19 = vmul.f32 %v2004_v1, %v2004_v1 }
  0xa0   :  { %v209_v15 = vmul.f32 0.03125, %v152_v60  ;;  %v257_v11 = vmul.f32 %v2008_v4, %v2008_v4 }
  0xa1   :  { %v2018_v6 = vsub.f32 %v1559_v16, %v208_v8  ;;  %v292_v29 = vsel %vm92_vm0, %v256_v19, 0.0 }
  0xa2   :  { %v2022_v12 = vsub.f32 %v1560_v17, %v209_v15  ;;  %338 = vadd.xlane.f32.xlu1 %v337_v7  ;;  %293 = vadd.xlane.f32.xlu0 %v292_v29  ;;  %v107_v3 = vpop.xlane.xlu0 %106  ;;  %v295_v40 = vsel %vm92_vm0, %v257_v11, 0.0 }
  0xa3   :  { %v110_v39 = vpop.xlane.xlu1 %109  ;;  %v194_v44 = vmul.f32 0.03125, %v107_v3  ;;  %v272_v49 = vmul.f32 %v2018_v6, %v2018_v6 }
  0xa4   :  { %v195_v45 = vmul.f32 0.03125, %v110_v39  ;;  %v273_v16 = vmul.f32 %v2022_v12, %v2022_v12 }
  0xa5   :  { %v2032_v13 = vsub.f32 %v1531_v21, %v194_v44  ;;  %v340_v50 = vsel %vm92_vm0, %v272_v49, 0.0 }
  0xa6   :  { %v2036_v17 = vsub.f32 %v1532_v22, %v195_v45  ;;  %296 = vadd.xlane.f32.xlu1 %v295_v40  ;;  %341 = vadd.xlane.f32.xlu0 %v340_v50  ;;  %v155_v0 = vpop.xlane.xlu0 %154  ;;  %v343_v54 = vsel %vm92_vm0, %v273_v16, 0.0 }
  0xa7   :  { %v158_v5 = vpop.xlane.xlu1 %157  ;;  %v210_v60 = vmul.f32 0.03125, %v155_v0  ;;  %v258_v8 = vmul.f32 %v2032_v13, %v2032_v13 }
  0xa8   :  { %v211_v7 = vmul.f32 0.03125, %v158_v5  ;;  %v259_v21 = vmul.f32 %v2036_v17, %v2036_v17 }
  0xa9   :  { %v2046_v18 = vsub.f32 %v1563_v26, %v210_v60  ;;  %v298_v15 = vsel %vm92_vm0, %v258_v8, 0.0 }
  0xaa   :  { %v2050_v22 = vsub.f32 %v1564_v27, %v211_v7  ;;  %344 = vadd.xlane.f32.xlu1 %v343_v54  ;;  %299 = vadd.xlane.f32.xlu0 %v298_v15  ;;  %v113_v19 = vpop.xlane.xlu0 %112  ;;  %v301_v29 = vsel %vm92_vm0, %v259_v21, 0.0 }
  0xab   :  { %v116_v11 = vpop.xlane.xlu1 %115  ;;  %v196_v3 = vmul.f32 0.03125, %v113_v19  ;;  %v274_v40 = vmul.f32 %v2046_v18, %v2046_v18 }
  0xac   :  { %v197_v39 = vmul.f32 0.03125, %v116_v11  ;;  %v275_v26 = vmul.f32 %v2050_v22, %v2050_v22 }
  0xad   :  { %v2060_v23 = vsub.f32 %v1535_v31, %v196_v3  ;;  %v346_v44 = vsel %vm92_vm0, %v274_v40, 0.0 }
  0xae   :  { %v2064_v27 = vsub.f32 %v1536_v32, %v197_v39  ;;  %302 = vadd.xlane.f32.xlu1 %v301_v29  ;;  %347 = vadd.xlane.f32.xlu0 %v346_v44  ;;  %v161_v45 = vpop.xlane.xlu0 %160  ;;  %v349_v16 = vsel %vm92_vm0, %v275_v26, 0.0 }
  0xaf   :  { %v164_v49 = vpop.xlane.xlu1 %163  ;;  %v212_v50 = vmul.f32 0.03125, %v161_v45  ;;  %v260_v5 = vmul.f32 %v2060_v23, %v2060_v23 }
  0xb0   :  { %v213_v0 = vmul.f32 0.03125, %v164_v49  ;;  %v261_v31 = vmul.f32 %v2064_v27, %v2064_v27 }
  0xb1   :  { %v2074_v28 = vsub.f32 %v1567_v36, %v212_v50  ;;  %v304_v54 = vsel %vm92_vm0, %v260_v5, 0.0 }
  0xb2   :  { %v2078_v32 = vsub.f32 %v1568_v37, %v213_v0  ;;  %350 = vadd.xlane.f32.xlu1 %v349_v16  ;;  %305 = vadd.xlane.f32.xlu0 %v304_v54  ;;  %v119_v60 = vpop.xlane.xlu0 %118  ;;  %v307_v8 = vsel %vm92_vm0, %v261_v31, 0.0 }
  0xb3   :  { %v122_v7 = vpop.xlane.xlu1 %121  ;;  %v198_v21 = vmul.f32 0.03125, %v119_v60  ;;  %v276_v19 = vmul.f32 %v2074_v28, %v2074_v28 }
  0xb4   :  { %v199_v15 = vmul.f32 0.03125, %v122_v7  ;;  %v277_v36 = vmul.f32 %v2078_v32, %v2078_v32 }
  0xb5   :  { %v2088_v33 = vsub.f32 %v1539_v41, %v198_v21  ;;  %v352_v11 = vsel %vm92_vm0, %v276_v19, 0.0 }
  0xb6   :  { %v2092_v37 = vsub.f32 %v1540_v42, %v199_v15  ;;  %308 = vadd.xlane.f32.xlu1 %v307_v8  ;;  %353 = vadd.xlane.f32.xlu0 %v352_v11  ;;  %v167_v29 = vpop.xlane.xlu0 %166  ;;  %v355_v39 = vsel %vm92_vm0, %v277_v36, 0.0 }
  0xb7   :  { %v170_v3 = vpop.xlane.xlu1 %169  ;;  %v214_v40 = vmul.f32 0.03125, %v167_v29  ;;  %v262_v44 = vmul.f32 %v2088_v33, %v2088_v33 }
  0xb8   :  { %v215_v26 = vmul.f32 0.03125, %v170_v3  ;;  %v263_v41 = vmul.f32 %v2092_v37, %v2092_v37 }
  0xb9   :  { %v2102_v38 = vsub.f32 %v1571_v46, %v214_v40  ;;  %v310_v45 = vsel %vm92_vm0, %v262_v44, 0.0 }
  0xba   :  { %v2106_v42 = vsub.f32 %v1572_v47, %v215_v26  ;;  %356 = vadd.xlane.f32.xlu1 %v355_v39  ;;  %311 = vadd.xlane.f32.xlu0 %v310_v45  ;;  %v125_v49 = vpop.xlane.xlu0 %124  ;;  %v313_v50 = vsel %vm92_vm0, %v263_v41, 0.0 }
  0xbb   :  { %2854 = vst [vmem:[#allocation2_spill] sm:$0xff] %v2102_v38  ;;  %v128_v16 = vpop.xlane.xlu1 %127  ;;  %v200_v0 = vmul.f32 0.03125, %v125_v49  ;;  %v278_v31 = vmul.f32 %v2102_v38, %v2102_v38 }
  0xbc   :  { %v201_v5 = vmul.f32 0.03125, %v128_v16  ;;  %v279_v46 = vmul.f32 %v2106_v42, %v2106_v42 }
  0xbd   :  { %v2116_v43 = vsub.f32 %v1543_v51, %v200_v0  ;;  %v358_v54 = vsel %vm92_vm0, %v278_v31, 0.0 }
  0xbe   :  { %v2120_v47 = vsub.f32 %v1544_v52, %v201_v5  ;;  %314 = vadd.xlane.f32.xlu1 %v313_v50  ;;  %359 = vadd.xlane.f32.xlu0 %v358_v54  ;;  %v173_v60 = vpop.xlane.xlu0 %172  ;;  %v361_v8 = vsel %vm92_vm0, %v279_v46, 0.0 }
  0xbf   :  { %2855 = vst [vmem:[#allocation3_spill] sm:$0xff] %v2116_v43  ;;  %v176_v7 = vpop.xlane.xlu1 %175  ;;  %v216_v21 = vmul.f32 0.03125, %v173_v60  ;;  %v264_v19 = vmul.f32 %v2116_v43, %v2116_v43 }
  0xc0   :  { %v217_v15 = vmul.f32 0.03125, %v176_v7  ;;  %v265_v51 = vmul.f32 %v2120_v47, %v2120_v47 }
  0xc1   :  { %v2130_v48 = vsub.f32 %v1575_v56, %v216_v21  ;;  %v316_v36 = vsel %vm92_vm0, %v264_v19, 0.0 }
  0xc2   :  { %v2134_v52 = vsub.f32 %v1576_v57, %v217_v15  ;;  %362 = vadd.xlane.f32.xlu1 %v361_v8  ;;  %317 = vadd.xlane.f32.xlu0 %v316_v36  ;;  %v131_v11 = vpop.xlane.xlu0 %130  ;;  %v319_v3 = vsel %vm92_vm0, %v265_v51, 0.0 }
  0xc3   :  { %2856 = vst [vmem:[#allocation4_spill] sm:$0xff] %v2130_v48  ;;  %v134_v29 = vpop.xlane.xlu1 %133  ;;  %v202_v39 = vmul.f32 0.03125, %v131_v11  ;;  %v280_v26 = vmul.f32 %v2130_v48, %v2130_v48 }
  0xc4   :  { %v203_v40 = vmul.f32 0.03125, %v134_v29  ;;  %v281_v56 = vmul.f32 %v2134_v52, %v2134_v52 }
  0xc5   :  { %v2144_v53 = vsub.f32 %v1547_v61, %v202_v39  ;;  %v364_v44 = vsel %vm92_vm0, %v280_v26, 0.0  ;;  %v587_v39 = vld [vmem:[%s2840_s1 + $0x8] sm:$0xff] }
  0xc6   :  { %v2148_v57 = vsub.f32 %v1548_v62, %v203_v40  ;;  %320 = vadd.xlane.f32.xlu1 %v319_v3  ;;  %365 = vadd.xlane.f32.xlu0 %v364_v44  ;;  %v179_v41 = vpop.xlane.xlu0 %178  ;;  %v367_v49 = vsel %vm92_vm0, %v281_v56, 0.0  ;;  %v586_v40 = vld [vmem:[%s2840_s1] sm:$0xff]  ;;  %v603_v26 = vld [vmem:[%s2840_s1 + $0x88] sm:$0xff]  ;;  %v588_v44 = vld [vmem:[%s2840_s1 + $0x10] sm:$0xff] }
  0xc7   :  { %2857 = vst [vmem:[#allocation5_spill] sm:$0xff] %v2144_v53  ;;  %v182_v45 = vpop.xlane.xlu1 %181  ;;  %v218_v16 = vmul.f32 0.03125, %v179_v41  ;;  %v266_v0 = vmul.f32 %v2144_v53, %v2144_v53  ;;  %v591_v56 = vld [vmem:[%s2840_s1 + $0x28] sm:$0xff]  ;;  %v2351_v53 = vld [vmem:[%s2843_s3] ss:$0 sm:$0xff] }
  0xc8   :  { %v219_v50 = vmul.f32 0.03125, %v182_v45  ;;  %v267_v61 = vmul.f32 %v2148_v57, %v2148_v57  ;;  %v607_v41 = vld [vmem:[%s2840_s1 + $0xa8] sm:$0xff]  ;;  %v593_v45 = vld [vmem:[%s2840_s1 + $0x38] sm:$0xff] }
  0xc9   :  { %v2158_v58 = vsub.f32 %v1579_v9, %v218_v16  ;;  %v322_v5 = vsel %vm92_vm0, %v266_v0, 0.0  ;;  %v595_v16 = vld [vmem:[%s2840_s1 + $0x48] sm:$0xff]  ;;  %v597_v0 = vld [vmem:[%s2840_s1 + $0x58] sm:$0xff] }
  0xca   :  { %v2162_v62 = vsub.f32 %v1580_v10, %v219_v50  ;;  %368 = vadd.xlane.f32.xlu1 %v367_v49  ;;  %323 = vadd.xlane.f32.xlu0 %v322_v5  ;;  %v137_v31 = vpop.xlane.xlu0 %136  ;;  %v325_v54 = vsel %vm92_vm0, %v267_v61, 0.0  ;;  %v609_v49 = vld [vmem:[%s2840_s1 + $0xb8] sm:$0xff]  ;;  %v611_v50 = vld [vmem:[%s2840_s1 + $0xc8] sm:$0xff] }
  0xcb   :  { %2858 = vst [vmem:[#allocation6_spill] sm:$0xff] %v2158_v58  ;;  %v140_v46 = vpop.xlane.xlu1 %139  ;;  %v204_v60 = vmul.f32 0.03125, %v137_v31  ;;  %v282_v8 = vmul.f32 %v2158_v58, %v2158_v58  ;;  %v613_v31 = vld [vmem:[%s2840_s1 + $0xd8] sm:$0xff] }
  0xcc   :  { %v205_v7 = vmul.f32 0.03125, %v140_v46  ;;  %v283_v9 = vmul.f32 %v2162_v62, %v2162_v62 }
  0xcd   :  { %v2172_v63 = vsub.f32 %v1551_v20, %v204_v60  ;;  %v370_v21 = vsel %vm92_vm0, %v282_v8, 0.0 }
  0xce   :  { %v2176_v10 = vsub.f32 %v1552_v24, %v205_v7  ;;  %326 = vadd.xlane.f32.xlu1 %v325_v54  ;;  %371 = vadd.xlane.f32.xlu0 %v370_v21  ;;  %v185_v15 = vpop.xlane.xlu0 %184  ;;  %v373_v51 = vsel %vm92_vm0, %v283_v9, 0.0  ;;  %v599_v54 = vld [vmem:[%s2840_s1 + $0x68] sm:$0xff]  ;;  %v589_v9 = vld [vmem:[%s2840_s1 + $0x18] sm:$0xff]  ;;  %v1661_v21 = vld [vmem:[%s2841_s4] sm:$0xff]  }
  0xcf   :  { %2859 = vst [vmem:[#allocation7_spill] sm:$0xff] %v2172_v63  ;;  %v220_v19 = vmul.f32 0.03125, %v185_v15  ;;  %v268_v36 = vmul.f32 %v2172_v63, %v2172_v63  ;;  %v188_v61 = vpop.xlane.xlu1 %187  ;;  %v615_v7 = vld [vmem:[%s2840_s1 + $0xe8] sm:$0xff]  ;;  %1618 = vmatprep.subr.bf16.mxu0 %v1661_v21  ;;  %1654 = vmatprep.subr.bf16.mxu1 %v1661_v21 }
  0xd0   :  { %v269_v11 = vmul.f32 %v2176_v10, %v2176_v10  ;;  %v221_v5 = vmul.f32 0.03125, %v188_v61  ;;  %1619 = vmatpush3.bf16.msra.mxu0 %v1661_v21  ;;  %1656 = vmatpush3.bf16.msra.mxu1 %v1661_v21 }
  0xd1   :  { %v2186_v20 = vsub.f32 %v1583_v34, %v220_v19  ;;  %v328_v14 = vsel %vm92_vm0, %v268_v36, 0.0  ;;  %v602_v34 = vld [vmem:[%s2840_s1 + $0x80] sm:$0xff]  ;;  %v604_v19 = vld [vmem:[%s2840_s1 + $0x90] sm:$0xff] }
  0xd2   :  { %374 = vadd.xlane.f32.xlu1 %v373_v51  ;;  %329 = vadd.xlane.f32.xlu0 %v328_v14  ;;  %v331_v24 = vsel %vm92_vm0, %v269_v11, 0.0  ;;  %v2234_v46 = vsub.f32 %v1584_v35, %v221_v5  ;;  %v617_v35 = vld [vmem:[%s2840_s1 + $0xf8] sm:$0xff]  ;;  %v1662_v51 = vld [vmem:[%s2841_s4 + $0x8] sm:$0xff]  }
  0xd3   :  { %2860 = vst [vmem:[#allocation8_spill] sm:$0xff] %v2186_v20  ;;  %v284_v29 = vmul.f32 %v2186_v20, %v2186_v20  ;;  %1620 = vmatprep.subr.bf16.mxu0 %v1662_v51  ;;  %1655 = vmatprep.subr.bf16.mxu1 %v1662_v51  ;;  %v605_v14 = vld [vmem:[%s2840_s1 + $0x98] sm:$0xff] }
  0xd4   :  { %v285_v60 = vmul.f32 %v2234_v46, %v2234_v46  ;;  %1621 = vmatpush3.bf16.msra.mxu0 %v1662_v51  ;;  %1657 = vmatpush3.bf16.msra.mxu1 %v1662_v51  ;;  %v612_v51 = vld [vmem:[%s2840_s1 + $0xd0] sm:$0xff] }
  0xd5   :  { %v376_v3 = vsel %vm92_vm0, %v284_v29, 0.0 }
  0xd6   :  { %332 = vadd.xlane.f32.xlu1 %v331_v24  ;;  %377 = vadd.xlane.f32.xlu0 %v376_v3  ;;  %v379_v8 = vsel %vm92_vm0, %v285_v60, 0.0  ;;  %v590_v3 = vld [vmem:[%s2840_s1 + $0x20] sm:$0xff] }
  0xe7   :  { %625 = vperm.xlu1 %1660, %v587_v39  }
  0xeb   :  { %700 = vperm.xlu1 %1660, %v602_v34  }
  0xec   :  { %620 = vperm.xlu0 %1659, %v586_v40   ;;  %v606_v40 = vld [vmem:[%s2840_s1 + $0xa0] sm:$0xff] }
  0xef   :  { %705 = vperm.xlu1 %1660, %v603_v26  }
  0xf0   :  { %645 = vperm.xlu0 %1659, %v591_v56  }
  0xf3   :  { %630 = vperm.xlu1 %1660, %v588_v44   ;;  %v592_v44 = vld [vmem:[%s2840_s1 + $0x30] sm:$0xff] }
  0xf4   :  { %725 = vperm.xlu0 %1659, %v607_v41  }
  0xf8   :  { %655 = vperm.xlu0 %1659, %v593_v45  }
  0xfc   :  { %735 = vperm.xlu0 %1659, %v609_v49   ;;  %v608_v49 = vld [vmem:[%s2840_s1 + $0xb0] sm:$0xff] }
 0x100   :  { %665 = vperm.xlu0 %1659, %v595_v16  }
 0x104   :  { %745 = vperm.xlu0 %1659, %v611_v50  }
 0x108   :  { %675 = vperm.xlu0 %1659, %v597_v0   ;;  %v594_v0 = vld [vmem:[%s2840_s1 + $0x40] sm:$0xff] }
 0x10c   :  { %755 = vperm.xlu0 %1659, %v613_v31   ;;  %v610_v31 = vld [vmem:[%s2840_s1 + $0xc0] sm:$0xff] }
 0x110   :  { %685 = vperm.xlu0 %1659, %v599_v54  }
 0x114   :  { %765 = vperm.xlu0 %1659, %v615_v7  }
 0x117   :  { %380 = vadd.xlane.f32.xlu1 %v379_v8  ;;  %v596_v8 = vld [vmem:[%s2840_s1 + $0x50] sm:$0xff] }
 0x118   :  { %695 = vperm.xlu0 %1659, %v601_v25  }
 0x11c   :  { %775 = vperm.xlu0 %1659, %v617_v35  }
 0x127   :  { %v288_v15 = vpop.xlane.xlu0 %287 }
 0x128   :  { %635 = vperm.xlu1 %1660, %v589_v9   ;;  %v382_v9 = vmul.f32 0.03125, %v288_v15  ;;  %v598_v15 = vld [vmem:[%s2840_s1 + $0x60] sm:$0xff] }
 0x12b   :  { %v291_v36 = vpop.xlane.xlu1 %290  ;;  %v336_v11 = vpop.xlane.xlu0 %335 }
 0x12c   :  { %710 = vperm.xlu1 %1660, %v604_v19   ;;  %v383_v7 = vmul.f32 0.03125, %v291_v36  ;;  %v398_v19 = vmul.f32 0.03125, %v336_v11  ;;  %v414_v36 = vadd.f32 1e-05, %v382_v9  ;;  %v614_v9 = vld [vmem:[%s2840_s1 + $0xe0] sm:$0xff] }
 0x12e   :  { %v415_v21 = vadd.f32 1e-05, %v383_v7 }
 0x12f   :  { %v339_v24 = vpop.xlane.xlu1 %338  ;;  %v294_v29 = vpop.xlane.xlu0 %293 }
 0x130   :  { %715 = vperm.xlu1 %1660, %v605_v14   ;;  %v399_v14 = vmul.f32 0.03125, %v339_v24  ;;  %1663 = vrsqrt.f32 %v415_v21 }
 0x131   :  { %1665 = vrsqrt.f32 %v414_v36 }
 0x133   :  { %v2269_v39 = vpop.xlane.xlu1 %296  ;;  %v2271_v34 = vpop.xlane.xlu0 %341 }
 0x134   :  { %640 = vperm.xlu1 %1660, %v590_v3  }
 0x137   :  { %v2276_v26 = vpop.xlane.xlu1 %344  ;;  %v2278_v56 = vpop.xlane.xlu0 %299 }
 0x138   :  { %720 = vperm.xlu1 %1660, %v606_v40  }
 0x13b   :  { %v303_v41 = vpop.xlane.xlu1 %302  ;;  %v2283_v45 = vpop.xlane.xlu0 %347 }
 0x13c   :  { %650 = vperm.xlu1 %1660, %v592_v44   ;;  %v430_v44 = vadd.f32 1e-05, %v398_v19 }
 0x13e   :  { %1667 = vrsqrt.f32 %v430_v44 }
 0x13f   :  { %v351_v16 = vpop.xlane.xlu1 %350  ;;  %v2288_v50 = vpop.xlane.xlu0 %305 }
 0x140   :  { %730 = vperm.xlu1 %1660, %v608_v49   ;;  %v387_v49 = vmul.f32 0.03125, %v303_v41  ;;  %v403_v11 = vmul.f32 0.03125, %v351_v16  ;;  %v600_v16 = vld [vmem:[%s2840_s1 + $0x70] sm:$0xff] }
 0x142   :  { %v419_v24 = vadd.f32 1e-05, %v387_v49  ;;  %v435_v21 = vadd.f32 1e-05, %v403_v11 }
 0x143   :  { %v309_v61 = vpop.xlane.xlu1 %308  ;;  %v2293_v5 = vpop.xlane.xlu0 %353 }
 0x144   :  { %660 = vperm.xlu1 %1660, %v594_v0   ;;  %v431_v0 = vadd.f32 1e-05, %v399_v14  ;;  %v1664_v14 = vpop.eup %1663 }
 0x146   :  { %1669 = vrsqrt.f32 %v431_v0  ;;  %v1666_v0 = vpop.eup %1665 }
 0x147   :  { %v357_v54 = vpop.xlane.xlu1 %356  ;;  %v2298_v60 = vpop.xlane.xlu0 %311  ;;  %1671 = vrsqrt.f32 %v419_v24 }
 0x148   :  { %740 = vperm.xlu1 %1660, %v610_v31   ;;  %v384_v31 = vmul.f32 0.03125, %v294_v29  ;;  %v389_v29 = vmul.f32 0.03125, %v309_v61  ;;  %v616_v61 = vld [vmem:[%s2840_s1 + $0xf0] sm:$0xff]  ;;  %v1668_v11 = vpop.eup %1667 }
 0x14a   :  { %v416_v41 = vadd.f32 1e-05, %v384_v31  ;;  %v421_v49 = vadd.f32 1e-05, %v389_v29  ;;  %v479_v31 = vmul.f32 %v1664_v14, %v1990_v30  ;;  %v478_v30 = vmul.f32 %v1666_v0, %v1978_v55 }
 0x14b   :  { %v315_v25 = vpop.xlane.xlu1 %314  ;;  %v2303_v35 = vpop.xlane.xlu0 %359 }
 0x14c   :  { %670 = vperm.xlu1 %1660, %v596_v8   ;;  %1673 = vrsqrt.f32 %v416_v41 }
 0x14d   :  { %1675 = vrsqrt.f32 %v435_v21  ;;  %v391_v21 = vmul.f32 0.03125, %v315_v25 }
 0x14e   :  { %1677 = vrsqrt.f32 %v421_v49 }
 0x14f   :  { %v363_v3 = vpop.xlane.xlu1 %362  ;;  %v2308_v40 = vpop.xlane.xlu0 %317 }
 0x150   :  { %750 = vperm.xlu1 %1660, %v612_v51   ;;  %v407_v58 = vmul.f32 0.03125, %v363_v3 }
 0x152   :  { %v439_v48 = vadd.f32 1e-05, %v407_v58 }
 0x153   :  { %v321_v7 = vpop.xlane.xlu1 %320  ;;  %v2313_v8 = vpop.xlane.xlu0 %365 }
 0x154   :  { %680 = vperm.xlu1 %1660, %v598_v15   ;;  %v405_v15 = vmul.f32 0.03125, %v357_v54  ;;  %v2340_v54 = vld [vmem:[%s2842_s2] ss:$0 sm:$0xff]  ;;  %v393_v43 = vmul.f32 0.03125, %v321_v7 }
 0x155   :  { %v517_v29 = vmul.f32 %v2340_v54, %v479_v31  ;;  %v516_v55 = vmul.f32 %v2340_v54, %v478_v30 }
 0x156   :  { %v437_v41 = vadd.f32 1e-05, %v405_v15 }
 0x157   :  { %v2318_v19 = vpop.xlane.xlu1 %368  ;;  %v2320_v51 = vpop.xlane.xlu0 %323  ;;  %v555_v31 = vadd.f32 %v2351_v53, %v517_v29 }
 0x158   :  { %760 = vperm.xlu1 %1660, %v614_v9   ;;  %v1670_v9 = vpop.eup %1669  ;;  %1679 = vrsqrt.f32 %v437_v41 }
 0x159   :  { %v1672_v14 = vpop.eup %1671  ;;  %v495_v49 = vmul.f32 %v1670_v9, %v1994_v2 }
 0x15a   :  { %v1674_v15 = vpop.eup %1673  ;;  %v483_v0 = vmul.f32 %v1672_v14, %v2036_v17  ;;  %v554_v17 = vadd.f32 %v2351_v53, %v516_v55 }
 0x15b   :  { %v2325_v36 = vpop.xlane.xlu1 %326  ;;  %v2327_v44 = vpop.xlane.xlu0 %371  ;;  %v533_v9 = vmul.f32 %v2340_v54, %v495_v49  ;;  %v480_v3 = vmul.f32 %v1674_v15, %v2004_v1  ;;  %v425_v15 = vadd.f32 1e-05, %v393_v43 }
 0x15c   :  { %690 = vperm.xlu1 %1660, %v600_v16   ;;  %v494_v16 = vmul.f32 %v1668_v11, %v1982_v59  ;;  %v1676_v25 = vpop.eup %1675  ;;  %v521_v14 = vmul.f32 %v2340_v54, %v483_v0 }
 0x15d   :  { %v1678_v29 = vpop.eup %1677  ;;  %v571_v49 = vadd.f32 %v2351_v53, %v533_v9  ;;  %v518_v58 = vmul.f32 %v2340_v54, %v480_v3 }
 0x15e   :  { %v532_v59 = vmul.f32 %v2340_v54, %v494_v16  ;;  %v559_v55 = vadd.f32 %v2351_v53, %v521_v14 }
 0x15f   :  { %v2333_v24 = vpop.xlane.xlu1 %374  ;;  %v2335_v20 = vpop.xlane.xlu0 %329  ;;  %v556_v43 = vadd.f32 %v2351_v53, %v518_v58 }
 0x160   :  { %770 = vperm.xlu1 %1660, %v616_v61   ;;  %v423_v61 = vadd.f32 1e-05, %v391_v21  ;;  %v499_v21 = vmul.f32 %v1676_v25, %v2050_v22  ;;  %v570_v30 = vadd.f32 %v2351_v53, %v532_v59  ;;  %v409_v25 = vmul.f32 0.03125, %v2318_v19 }
 0x162   :  { %1681 = vrsqrt.f32 %v423_v61  ;;  %v537_v7 = vmul.f32 %v2340_v54, %v499_v21  ;;  %v485_v61 = vmul.f32 %v1678_v29, %v2064_v27  ;;  %v441_v19 = vadd.f32 1e-05, %v409_v25 }
 0x163   :  { %v2345_v63 = vpop.xlane.xlu1 %332  ;;  %v2357_v11 = vpop.xlane.xlu0 %377  ;;  %1683 = vrsqrt.f32 %v439_v48 }
 0x164   :  { %2861 = vst [vmem:[#allocation9_spill] sm:$0xff] %v2357_v11  ;;  %v575_v48 = vadd.f32 %v2351_v53, %v537_v7  ;;  %1685 = vrsqrt.f32 %v425_v15 }
 0x165   :  { %1687 = vrsqrt.f32 %v441_v19 }
 0x167   :  { %v626_v2 = vpop.permute.xlu1 %625 }
 0x168   :  { %v779_v41 = vmul.f32 %v626_v2, %v555_v31  ;;  %v1680_v2 = vpop.eup %1679 }
 0x16a   :  { %v1458_v16 = vpack.c.bf16 %v779_v41, %v779_v41 }
 0x16b   :  { %v701_v11 = vpop.permute.xlu1 %700  ;;  %v621_v38 = vpop.permute.xlu0 %620 }
 0x16c   :  { %940 = vst.msk [vmem:[%s2844_s6 + $0x4] sm:$0xf] %vm938_vm1, %v1458_v16  ;;  %v794_v1 = vmul.f32 %v701_v11, %v570_v30  ;;  %v778_v22 = vmul.f32 %v621_v38, %v554_v17  ;;  %v395_v11 = vmul.f32 0.03125, %v2325_v36  ;;  %v501_v30 = vmul.f32 %v1680_v2, %v2078_v32  ;;  %v1682_v17 = vpop.eup %1681 }
 0x16e   :  { %v1473_v31 = vpack.c.bf16 %v794_v1, %v794_v1  ;;  %v1457_v59 = vpack.c.bf16 %v778_v22, %v778_v22  ;;  %v810_v0 = vpack.c.bf16 %v779_v41, %v778_v22  ;;  %v523_v41 = vmul.f32 %v2340_v54, %v485_v61 }
 0x16f   :  { %v706_v9 = vpop.permute.xlu1 %705  ;;  %v646_v16 = vpop.permute.xlu0 %645  ;;  %v427_v32 = vadd.f32 1e-05, %v395_v11  ;;  %v539_v25 = vmul.f32 %v2340_v54, %v501_v30  ;;  %v487_v61 = vmul.f32 %v1682_v17, %v2092_v37 }
 0x170   :  { %955 = vst.msk [vmem:[%s2844_s6 + $0x40] sm:$0xf] %vm938_vm1, %v1473_v31  ;;  %939 = vst.msk [vmem:[%s2844_s6] sm:$0xf] %vm938_vm1, %v1457_v59  ;;  %v795_v38 = vmul.f32 %v706_v9, %v571_v49  ;;  %v2383_v27 = vmul.f32 %v646_v16, %v559_v55  ;;  %1622 = vmatprep.mubr.msk.bf16.mxu0 %vm92_vm0, %v810_v0  ;;  %v561_v58 = vadd.f32 %v2351_v53, %v523_v41  ;;  %v1684_v31 = vpop.eup %1683 }
 0x171   :  { %1689 = vrsqrt.f32 %v427_v32  ;;  %v397_v0 = vmul.f32 0.03125, %v2345_v63  ;;  %v577_v2 = vadd.f32 %v2351_v53, %v539_v25  ;;  %v525_v9 = vmul.f32 %v2340_v54, %v487_v61 }
 0x172   :  { %v1474_v3 = vpack.c.bf16 %v795_v38, %v795_v38  ;;  %v1462_v21 = vpack.c.bf16 %v2383_v27, %v2383_v27  ;;  %v818_v29 = vpack.c.bf16 %v795_v38, %v794_v1  ;;  %v411_v1 = vmul.f32 0.03125, %v2333_v24  ;;  %v1686_v38 = vpop.eup %1685 }
 0x173   :  { %v631_v14 = vpop.permute.xlu1 %630  ;;  %v726_v49 = vpop.permute.xlu0 %725  ;;  %v503_v16 = vmul.f32 %v1684_v31, %v2106_v42  ;;  %v429_v63 = vadd.f32 1e-05, %v397_v0  ;;  %v563_v11 = vadd.f32 %v2351_v53, %v525_v9  ;;  %v489_v42 = vmul.f32 %v1686_v38, %v2120_v47 }
 0x174   :  { %956 = vst.msk [vmem:[%s2844_s6 + $0x44] sm:$0xf] %vm938_vm1, %v1474_v3  ;;  %944 = vst.msk [vmem:[%s2844_s6 + $0x14] sm:$0xf] %vm938_vm1, %v1462_v21  ;;  %v2401_v36 = vmul.f32 %v631_v14, %v556_v43  ;;  %v2403_v22 = vmul.f32 %v726_v49, %v575_v48  ;;  %1638 = vmatprep.mubr.msk.bf16.mxu1 %vm92_vm0, %v818_v29  ;;  %v443_v55 = vadd.f32 1e-05, %v411_v1  ;;  %v1688_v3 = vpop.eup %1687 }
 0x175   :  { %v541_v41 = vmul.f32 %v2340_v54, %v503_v16  ;;  %v527_v14 = vmul.f32 %v2340_v54, %v489_v42  ;;  %v505_v49 = vmul.f32 %v1688_v3, %v2134_v52 }
 0x176   :  { %v1459_v7 = vpack.c.bf16 %v2401_v36, %v2401_v36  ;;  %v1478_v15 = vpack.c.bf16 %v2403_v22, %v2403_v22  ;;  %1691 = vrsqrt.f32 %v443_v55 }
 0x177   :  { %v656_v59 = vpop.permute.xlu0 %655  ;;  %1693 = vrsqrt.f32 %v429_v63  ;;  %v579_v17 = vadd.f32 %v2351_v53, %v541_v41 }
 0x178   :  { %941 = vst.msk [vmem:[%s2844_s6 + $0x8] sm:$0xf] %vm938_vm1, %v1459_v7  ;;  %960 = vst.msk [vmem:[%s2844_s6 + $0x54] sm:$0xf] %vm938_vm1, %v1478_v15  ;;  %v2422_v24 = vmul.f32 %v656_v59, %v561_v58  ;;  %v565_v7 = vadd.f32 %v2351_v53, %v527_v14  ;;  %v543_v15 = vmul.f32 %v2340_v54, %v505_v49  ;;  %v385_v59 = vmul.f32 0.03125, %v2269_v39 }
 0x179   :  { %v400_v39 = vmul.f32 0.03125, %v2271_v34  ;;  %v401_v34 = vmul.f32 0.03125, %v2276_v26  ;;  %v386_v14 = vmul.f32 0.03125, %v2278_v56 }
 0x17a   :  { %v1464_v37 = vpack.c.bf16 %v2422_v24, %v2422_v24  ;;  %v581_v0 = vadd.f32 %v2351_v53, %v543_v15  ;;  %v417_v38 = vadd.f32 1e-05, %v385_v59  ;;  %v402_v15 = vmul.f32 0.03125, %v2283_v45 }
 0x17b   :  { %v736_v43 = vpop.permute.xlu0 %735  ;;  %v1690_v47 = vpop.eup %1689  ;;  %v432_v42 = vadd.f32 1e-05, %v400_v39  ;;  %v433_v49 = vadd.f32 1e-05, %v401_v34 }
 0x17c   :  { %946 = vst.msk [vmem:[%s2844_s6 + $0x1c] sm:$0xf] %vm938_vm1, %v1464_v37  ;;  %v2434_v48 = vmul.f32 %v736_v43, %v577_v2  ;;  %v491_v25 = vmul.f32 %v1690_v47, %v2148_v57  ;;  %1695 = vrsqrt.f32 %v417_v38 }
 0x17d   :  { %1697 = vrsqrt.f32 %v432_v42  ;;  %v406_v42 = vmul.f32 0.03125, %v2303_v35 }
 0x17e   :  { %v1480_v19 = vpack.c.bf16 %v2434_v48, %v2434_v48  ;;  %v529_v37 = vmul.f32 %v2340_v54, %v491_v25  ;;  %1699 = vrsqrt.f32 %v433_v49 }
 0x17f   :  { %v666_v21 = vpop.permute.xlu0 %665 }
 0x180   :  { %962 = vst.msk [vmem:[%s2844_s6 + $0x5c] sm:$0xf] %vm938_vm1, %v1480_v19  ;;  %v2445_v29 = vmul.f32 %v666_v21, %v563_v11  ;;  %v1692_v61 = vpop.eup %1691  ;;  %v567_v63 = vadd.f32 %v2351_v53, %v529_v37 }
 0x181   :  { %v507_v57 = vmul.f32 %v1692_v61, %v2162_v62  ;;  %v1694_v2 = vpop.eup %1693  ;;  %v434_v61 = vadd.f32 1e-05, %v402_v15 }
 0x182   :  { %v1466_v30 = vpack.c.bf16 %v2445_v29, %v2445_v29  ;;  %v493_v62 = vmul.f32 %v1694_v2, %v2176_v10 }
 0x183   :  { %v746_v32 = vpop.permute.xlu0 %745  ;;  %v545_v19 = vmul.f32 %v2340_v54, %v507_v57 }
 0x184   :  { %948 = vst.msk [vmem:[%s2844_s6 + $0x24] sm:$0xf] %vm938_vm1, %v1466_v30  ;;  %v2456_v1 = vmul.f32 %v746_v32, %v579_v17  ;;  %v531_v30 = vmul.f32 %v2340_v54, %v493_v62 }
 0x185   :  { %v583_v21 = vadd.f32 %v2351_v53, %v545_v19 }
 0x186   :  { %v1482_v58 = vpack.c.bf16 %v2456_v1, %v2456_v1  ;;  %v569_v47 = vadd.f32 %v2351_v53, %v531_v30  ;;  %v1696_v25 = vpop.eup %1695 }
 0x187   :  { %v676_v52 = vpop.permute.xlu0 %675  ;;  %v481_v59 = vmul.f32 %v1696_v25, %v2008_v4  ;;  %v408_v25 = vmul.f32 0.03125, %v2313_v8 }
 0x188   :  { %964 = vst.msk [vmem:[%s2844_s6 + $0x64] sm:$0xf] %vm938_vm1, %v1482_v58  ;;  %v2467_v31 = vmul.f32 %v676_v52, %v565_v7  ;;  %v418_v7 = vadd.f32 1e-05, %v386_v14  ;;  %v388_v52 = vmul.f32 0.03125, %v2288_v50 }
 0x189   :  { %v519_v37 = vmul.f32 %v2340_v54, %v481_v59  ;;  %v440_v8 = vadd.f32 1e-05, %v408_v25 }
 0x18a   :  { %v1468_v55 = vpack.c.bf16 %v2467_v31, %v2467_v31  ;;  %1701 = vrsqrt.f32 %v418_v7  ;;  %v420_v45 = vadd.f32 1e-05, %v388_v52 }
 0x18b   :  { %v756_v9 = vpop.permute.xlu0 %755  ;;  %1703 = vrsqrt.f32 %v434_v61  ;;  %v557_v4 = vadd.f32 %v2351_v53, %v519_v37 }
 0x18c   :  { %950 = vst.msk [vmem:[%s2844_s6 + $0x2c] sm:$0xf] %vm938_vm1, %v1468_v55  ;;  %v2479_v16 = vmul.f32 %v756_v9, %v581_v0  ;;  %v1698_v55 = vpop.eup %1697  ;;  %v404_v0 = vmul.f32 0.03125, %v2293_v5  ;;  %1705 = vrsqrt.f32 %v420_v45 }
 0x18d   :  { %v496_v57 = vmul.f32 %v1698_v55, %v2018_v6  ;;  %v1700_v2 = vpop.eup %1699 }
 0x18e   :  { %v1484_v43 = vpack.c.bf16 %v2479_v16, %v2479_v16  ;;  %v436_v9 = vadd.f32 1e-05, %v404_v0  ;;  %v497_v5 = vmul.f32 %v1700_v2, %v2022_v12  ;;  %v392_v12 = vmul.f32 0.03125, %v2308_v40 }
 0x18f   :  { %v686_v11 = vpop.permute.xlu0 %685  ;;  %v534_v19 = vmul.f32 %v2340_v54, %v496_v57  ;;  %v394_v2 = vmul.f32 0.03125, %v2320_v51 }
 0x190   :  { %966 = vst.msk [vmem:[%s2844_s6 + $0x6c] sm:$0xf] %vm938_vm1, %v1484_v43  ;;  %v2491_v41 = vmul.f32 %v686_v11, %v567_v63  ;;  %v390_v43 = vmul.f32 0.03125, %v2298_v60  ;;  %1707 = vrsqrt.f32 %v436_v9  ;;  %v535_v30 = vmul.f32 %v2340_v54, %v497_v5 }
 0x191   :  { %v424_v40 = vadd.f32 1e-05, %v392_v12  ;;  %v426_v51 = vadd.f32 1e-05, %v394_v2 }
 0x192   :  { %v1470_v3 = vpack.c.bf16 %v2491_v41, %v2491_v41  ;;  %v422_v6 = vadd.f32 1e-05, %v390_v43 }
 0x193   :  { %v766_v10 = vpop.permute.xlu0 %765 }
 0x194   :  { %952 = vst.msk [vmem:[%s2844_s6 + $0x34] sm:$0xf] %vm938_vm1, %v1470_v3  ;;  %v2502_v17 = vmul.f32 %v766_v10, %v583_v21  ;;  %v1702_v63 = vpop.eup %1701  ;;  %v572_v21 = vadd.f32 %v2351_v53, %v534_v19  ;;  %v410_v19 = vmul.f32 0.03125, %v2327_v44 }
 0x195   :  { %v482_v34 = vmul.f32 %v1702_v63, %v2032_v13  ;;  %v1704_v10 = vpop.eup %1703  ;;  %v438_v13 = vadd.f32 1e-05, %v406_v42 }
 0x196   :  { %v1486_v26 = vpack.c.bf16 %v2502_v17, %v2502_v17 }
 0x197   :  { %v696_v32 = vpop.permute.xlu0 %695  ;;  %v520_v35 = vmul.f32 %v2340_v54, %v482_v34 }
 0x198   :  { %968 = vst.msk [vmem:[%s2844_s6 + $0x74] sm:$0xf] %vm938_vm1, %v1486_v26  ;;  %v2512_v58 = vmul.f32 %v696_v32, %v569_v47  ;;  %v573_v26 = vadd.f32 %v2351_v53, %v535_v30  ;;  %v498_v47 = vmul.f32 %v1704_v10, %v2046_v18  ;;  %v1706_v32 = vpop.eup %1705 }
 0x199   :  { %v558_v61 = vadd.f32 %v2351_v53, %v520_v35  ;;  %v484_v0 = vmul.f32 %v1706_v32, %v2060_v23 }
 0x19a   :  { %v1472_v56 = vpack.c.bf16 %v2512_v58, %v2512_v58  ;;  %v536_v18 = vmul.f32 %v2340_v54, %v498_v47  ;;  %v2863_v47 = vld [vmem:[#allocation9_spill] sm:$0xff] }
 0x19b   :  { %v522_v43 = vmul.f32 %v2340_v54, %v484_v0  ;;  %v776_v5 = vpop.permute.xlu0 %775  ;;  %v412_v32 = vmul.f32 0.03125, %v2863_v47 }
 0x19c   :  { %954 = vst.msk [vmem:[%s2844_s6 + $0x3c] sm:$0xf] %vm938_vm1, %v1472_v56  ;;  %v1708_v56 = vpop.eup %1707 }
 0x19d   :  { %v560_v44 = vadd.f32 %v2351_v53, %v522_v43  ;;  %v2866_v43 = vld [vmem:[#allocation5_spill] sm:$0xff] }
 0x1a4   :  { %v381_v38 = vpop.xlane.xlu1 %380 }
 0x1a5   :  { %v413_v39 = vmul.f32 0.03125, %v381_v38  ;;  %v500_v38 = vmul.f32 %v1708_v56, %v2074_v28 }
 0x1a7   :  { %v445_v50 = vadd.f32 1e-05, %v413_v39  ;;  %v574_v39 = vadd.f32 %v2351_v53, %v536_v18 }
 0x1a8   :  { %v636_v62 = vpop.permute.xlu1 %635 }
 0x1a9   :  { %1709 = vrsqrt.f32 %v445_v50  ;;  %v781_v11 = vmul.f32 %v636_v62, %v557_v4  ;;  %v538_v62 = vmul.f32 %v2340_v54, %v500_v38 }
 0x1aa   :  { %1711 = vrsqrt.f32 %v422_v6 }
 0x1ab   :  { %v811_v3 = vpack.c.bf16 %v781_v11, %v2401_v36  ;;  %v1460_v60 = vpack.c.bf16 %v781_v11, %v781_v11  ;;  %1713 = vrsqrt.f32 %v438_v13  ;;  %v2862_v13 = vld [vmem:[#allocation2_spill] sm:$0xff] }
 0x1ac   :  { %v711_v14 = vpop.permute.xlu1 %710  ;;  %1715 = vrsqrt.f32 %v424_v40 }
 0x1ad   :  { %942 = vst.msk [vmem:[%s2844_s6 + $0xc] sm:$0xf] %vm938_vm1, %v1460_v60  ;;  %v796_v49 = vmul.f32 %v711_v14, %v572_v21  ;;  %1623 = vmatmul.mubr.msk.bf16.vlgmr.msra.gmra.mrb[0].mxu0 %vm92_vm0, %v811_v3  ;;  %1717 = vrsqrt.f32 %v440_v8  ;;  %v442_v21 = vadd.f32 1e-05, %v410_v19  ;;  %v2867_v19 = vld [vmem:[#allocation6_spill] sm:$0xff] }
 0x1ae   :  { %1719 = vrsqrt.f32 %v426_v51 }
 0x1af   :  { %v1475_v36 = vpack.c.bf16 %v796_v49, %v796_v49  ;;  %1721 = vrsqrt.f32 %v442_v21 }
 0x1b0   :  { %v716_v7 = vpop.permute.xlu1 %715 }
 0x1b1   :  { %957 = vst.msk [vmem:[%s2844_s6 + $0x48] sm:$0xf] %vm938_vm1, %v1475_v36  ;;  %v797_v15 = vmul.f32 %v716_v7, %v573_v26  ;;  %v2864_v7 = vld [vmem:[#allocation3_spill] sm:$0xff] }
 0x1b3   :  { %v1710_v52 = vpop.eup %1709  ;;  %v819_v59 = vpack.c.bf16 %v797_v15, %v796_v49  ;;  %v1476_v55 = vpack.c.bf16 %v797_v15, %v797_v15 }
 0x1b4   :  { %v509_v45 = vmul.f32 %v1710_v52, %v2234_v46  ;;  %v641_v37 = vpop.permute.xlu1 %640  ;;  %v1712_v63 = vpop.eup %1711 }
 0x1b5   :  { %958 = vst.msk [vmem:[%s2844_s6 + $0x4c] sm:$0xf] %vm938_vm1, %v1476_v55  ;;  %v782_v57 = vmul.f32 %v641_v37, %v558_v61  ;;  %1639 = vmatmul.mubr.msk.bf16.vlgmr.msra.gmra.mrb[0].mxu1 %vm92_vm0, %v819_v59  ;;  %v486_v42 = vmul.f32 %v1712_v63, %v2088_v33  ;;  %v1714_v34 = vpop.eup %1713  ;;  %v576_v33 = vadd.f32 %v2351_v53, %v538_v62  ;;  %v444_v55 = vadd.f32 1e-05, %v412_v32  ;;  %v2865_v37 = vld [vmem:[#allocation4_spill] sm:$0xff] }
 0x1b6   :  { %v547_v9 = vmul.f32 %v2340_v54, %v509_v45  ;;  %v1716_v10 = vpop.eup %1715  ;;  %v502_v35 = vmul.f32 %v1714_v34, %v2862_v13 }
 0x1b7   :  { %v812_v23 = vpack.c.bf16 %v2383_v27, %v782_v57  ;;  %v1461_v46 = vpack.c.bf16 %v782_v57, %v782_v57  ;;  %v524_v49 = vmul.f32 %v2340_v54, %v486_v42  ;;  %v1718_v61 = vpop.eup %1717 }
 0x1b8   :  { %v585_v50 = vadd.f32 %v2351_v53, %v547_v9  ;;  %v721_v4 = vpop.permute.xlu1 %720  ;;  %v540_v25 = vmul.f32 %v2340_v54, %v502_v35  ;;  %v504_v57 = vmul.f32 %v1718_v61, %v2865_v37  ;;  %v1720_v8 = vpop.eup %1719 }
 0x1b9   :  { %943 = vst.msk [vmem:[%s2844_s6 + $0x10] sm:$0xf] %vm938_vm1, %v1461_v46  ;;  %v798_v28 = vmul.f32 %v721_v4, %v574_v39  ;;  %1626 = vmatprep.mubr.msk.bf16.mxu0 %vm92_vm0, %v812_v23  ;;  %v562_v56 = vadd.f32 %v2351_v53, %v524_v49  ;;  %v1722_v23 = vpop.eup %1721  ;;  %v490_v63 = vmul.f32 %v1720_v8, %v2866_v43  ;;  %v2869_v49 = vld [vmem:[#allocation8_spill] sm:$0xff] }
 0x1ba   :  { %v2571_v27 = vmul.f32 %v776_v5, %v585_v50  ;;  %v578_v45 = vadd.f32 %v2351_v53, %v540_v25  ;;  %v542_v39 = vmul.f32 %v2340_v54, %v504_v57  ;;  %v506_v5 = vmul.f32 %v1722_v23, %v2867_v19 }
 0x1bb   :  { %v820_v11 = vpack.c.bf16 %v2403_v22, %v798_v28  ;;  %v1477_v6 = vpack.c.bf16 %v798_v28, %v798_v28  ;;  %v396_v22 = vmul.f32 0.03125, %v2335_v20  ;;  %v528_v62 = vmul.f32 %v2340_v54, %v490_v63 }
 0x1bc   :  { %v1488_v3 = vpack.c.bf16 %v2571_v27, %v2571_v27  ;;  %v651_v60 = vpop.permute.xlu1 %650  ;;  %v544_v42 = vmul.f32 %v2340_v54, %v506_v5 }
 0x1bd   :  { %959 = vst.msk [vmem:[%s2844_s6 + $0x50] sm:$0xf] %vm938_vm1, %v1477_v6  ;;  %v784_v30 = vmul.f32 %v651_v60, %v560_v44  ;;  %1642 = vmatprep.mubr.msk.bf16.mxu1 %vm92_vm0, %v820_v11  ;;  %v428_v26 = vadd.f32 1e-05, %v396_v22  ;;  %v2868_v60 = vld [vmem:[#allocation7_spill] sm:$0xff] }
 0x1be   :  { %970 = vst.msk [vmem:[%s2844_s6 + $0x7c] sm:$0xf] %vm938_vm1, %v1488_v3  ;;  %v566_v3 = vadd.f32 %v2351_v53, %v528_v62 }
 0x1bf   :  { %v813_v14 = vpack.c.bf16 %v2422_v24, %v784_v30  ;;  %v1463_v12 = vpack.c.bf16 %v784_v30, %v784_v30  ;;  %v488_v24 = vmul.f32 %v1716_v10, %v2864_v7  ;;  %1723 = vrsqrt.f32 %v428_v26 }
 0x1c0   :  { %v731_v36 = vpop.permute.xlu1 %730  ;;  %1725 = vrsqrt.f32 %v444_v55  ;;  %v582_v10 = vadd.f32 %v2351_v53, %v544_v42 }
 0x1c1   :  { %945 = vst.msk [vmem:[%s2844_s6 + $0x18] sm:$0xf] %vm938_vm1, %v1463_v12  ;;  %v800_v20 = vmul.f32 %v731_v36, %v576_v33  ;;  %1627 = vmatmul.mubr.msk.bf16.gmra.mrb[4].mxu0 %vm92_vm0, %v813_v14  ;;  %v526_v18 = vmul.f32 %v2340_v54, %v488_v24 }
 0x1c3   :  { %v821_v40 = vpack.c.bf16 %v2434_v48, %v800_v20  ;;  %v1479_v15 = vpack.c.bf16 %v800_v20, %v800_v20  ;;  %v564_v38 = vadd.f32 %v2351_v53, %v526_v18 }
 0x1c4   :  { %v661_v52 = vpop.permute.xlu1 %660 }
 0x1c5   :  { %961 = vst.msk [vmem:[%s2844_s6 + $0x58] sm:$0xf] %vm938_vm1, %v1479_v15  ;;  %v786_v59 = vmul.f32 %v661_v52, %v562_v56  ;;  %1643 = vmatmul.mubr.msk.bf16.gmra.mrb[4].mxu1 %vm92_vm0, %v821_v40 }
 0x1c7   :  { %v814_v48 = vpack.c.bf16 %v2445_v29, %v786_v59  ;;  %v1465_v0 = vpack.c.bf16 %v786_v59, %v786_v59 }
 0x1c8   :  { %v741_v2 = vpop.permute.xlu1 %740 }
 0x1c9   :  { %947 = vst.msk [vmem:[%s2844_s6 + $0x20] sm:$0xf] %vm938_vm1, %v1465_v0  ;;  %v802_v9 = vmul.f32 %v741_v2, %v578_v45  ;;  %1630 = vmatprep.mubr.msk.bf16.mxu0 %vm92_vm0, %v814_v48  ;;  %v1724_v11 = vpop.eup %1723 }
 0x1ca   :  { %v492_v21 = vmul.f32 %v1724_v11, %v2868_v60  ;;  %v1726_v30 = vpop.eup %1725 }
 0x1cb   :  { %v822_v29 = vpack.c.bf16 %v2456_v1, %v802_v9  ;;  %v1481_v46 = vpack.c.bf16 %v802_v9, %v802_v9  ;;  %v580_v1 = vadd.f32 %v2351_v53, %v542_v39  ;;  %v508_v13 = vmul.f32 %v1726_v30, %v2869_v49 }
 0x1cc   :  { %v671_v50 = vpop.permute.xlu1 %670  ;;  %v530_v12 = vmul.f32 %v2340_v54, %v492_v21 }
 0x1cd   :  { %963 = vst.msk [vmem:[%s2844_s6 + $0x60] sm:$0xf] %vm938_vm1, %v1481_v46  ;;  %v788_v4 = vmul.f32 %v671_v50, %v564_v38  ;;  %1646 = vmatprep.mubr.msk.bf16.mxu1 %vm92_vm0, %v822_v29 }
 0x1ce   :  { %v568_v47 = vadd.f32 %v2351_v53, %v530_v12 }
 0x1cf   :  { %v815_v28 = vpack.c.bf16 %v2467_v31, %v788_v4  ;;  %v1467_v51 = vpack.c.bf16 %v788_v4, %v788_v4 }
 0x1d0   :  { %v751_v6 = vpop.permute.xlu1 %750 }
 0x1d1   :  { %949 = vst.msk [vmem:[%s2844_s6 + $0x28] sm:$0xf] %vm938_vm1, %v1467_v51  ;;  %v804_v44 = vmul.f32 %v751_v6, %v580_v1  ;;  %1631 = vmatmul.mubr.msk.bf16.gmra.mrb[8].mxu0 %vm92_vm0, %v815_v28 }
 0x1d3   :  { %v823_v34 = vpack.c.bf16 %v2479_v16, %v804_v44  ;;  %v1483_v31 = vpack.c.bf16 %v804_v44, %v804_v44 }
 0x1d4   :  { %v681_v22 = vpop.permute.xlu1 %680 }
 0x1d5   :  { %965 = vst.msk [vmem:[%s2844_s6 + $0x68] sm:$0xf] %vm938_vm1, %v1483_v31  ;;  %v790_v33 = vmul.f32 %v681_v22, %v566_v3  ;;  %1647 = vmatmul.mubr.msk.bf16.gmra.mrb[8].mxu1 %vm92_vm0, %v823_v34 }
 0x1d7   :  { %v816_v14 = vpack.c.bf16 %v2491_v41, %v790_v33  ;;  %v1469_v16 = vpack.c.bf16 %v790_v33, %v790_v33  ;;  %v546_v41 = vmul.f32 %v2340_v54, %v508_v13 }
 0x1d8   :  { %v761_v35 = vpop.permute.xlu1 %760 }
 0x1d9   :  { %951 = vst.msk [vmem:[%s2844_s6 + $0x30] sm:$0xf] %vm938_vm1, %v1469_v16  ;;  %v806_v36 = vmul.f32 %v761_v35, %v582_v10  ;;  %1634 = vmatprep.mubr.msk.bf16.mxu0 %vm92_vm0, %v816_v14  ;;  %v584_v15 = vadd.f32 %v2351_v53, %v546_v41  ;;  %v2677_v53 = vld [vmem:[%s2845_s5] ss:$0 sm:$0xff] }
 0x1db   :  { %v824_v20 = vpack.c.bf16 %v2502_v17, %v806_v36  ;;  %v1485_v26 = vpack.c.bf16 %v806_v36, %v806_v36 }
 0x1dc   :  { %v691_v32 = vpop.permute.xlu1 %690 }
 0x1dd   :  { %967 = vst.msk [vmem:[%s2844_s6 + $0x70] sm:$0xf] %vm938_vm1, %v1485_v26  ;;  %v792_v7 = vmul.f32 %v691_v32, %v568_v47  ;;  %1650 = vmatprep.mubr.msk.bf16.mxu1 %vm92_vm0, %v824_v20 }
 0x1df   :  { %v817_v24 = vpack.c.bf16 %v2512_v58, %v792_v7  ;;  %v1471_v40 = vpack.c.bf16 %v792_v7, %v792_v7 }
 0x1e0   :  { %v771_v17 = vpop.permute.xlu1 %770 }
 0x1e1   :  { %953 = vst.msk [vmem:[%s2844_s6 + $0x38] sm:$0xf] %vm938_vm1, %v1471_v40  ;;  %v808_v54 = vmul.f32 %v771_v17, %v584_v15  ;;  %1635 = vmatmul.mubr.msk.bf16.gmra.mrb[12].mxu0 %vm92_vm0, %v817_v24 }
 0x1e3   :  { %v825_v56 = vpack.c.bf16 %v2571_v27, %v808_v54  ;;  %v1487_v25 = vpack.c.bf16 %v808_v54, %v808_v54 }
 0x1e5   :  { %969 = vst.msk [vmem:[%s2844_s6 + $0x78] sm:$0xf] %vm938_vm1, %v1487_v25  ;;  %1651 = vmatmul.mubr.msk.bf16.gmra.mrb[12].mxu1 %vm92_vm0, %v825_v56 }
 0x280   :  { %v1624_v58 = vpop.f32.mrb[0].mxu0 }
 0x281   :  { %v1085_v61 = vadd.f32 %v1624_v58, %v2677_v53  ;;  %v1076_v52 = vpop.f32.mrb[1].mxu0 }
 0x282   :  { %v1077_v27 = vadd.f32 %v2677_v53, %v1076_v52  ;;  %v1625_v59 = vpop.f32.mrb[2].mxu0 }
 0x283   :  { %v1491_v55 = vpack.c.bf16 %v1085_v61, %v1085_v61  ;;  %v1088_v18 = vadd.f32 %v1625_v59, %v2677_v53  ;;  %v1079_v48 = vpop.f32.mrb[3].mxu0 }
 0x284   :  { %v1489_v0 = vpack.c.bf16 %v1077_v27, %v1077_v27  ;;  %v1080_v45 = vadd.f32 %v2677_v53, %v1079_v48 }
 0x285   :  { %1334 = vst.msk [vmem:[%s2846_s7 + $0x8] sm:$0xf] %vm1331_vm2, %v1491_v55  ;;  %v1492_v37 = vpack.c.bf16 %v1088_v18, %v1088_v18 }
 0x286   :  { %1332 = vst.msk [vmem:[%s2846_s7] sm:$0xf] %vm1331_vm2, %v1489_v0  ;;  %v1490_v57 = vpack.c.bf16 %v1080_v45, %v1080_v45 }
 0x287   :  { %1335 = vst.msk [vmem:[%s2846_s7 + $0xc] sm:$0xf] %vm1331_vm2, %v1492_v37 }
 0x288   :  { %1333 = vst.msk [vmem:[%s2846_s7 + $0x4] sm:$0xf] %vm1331_vm2, %v1490_v57  ;;  %v1640_v8 = vpop.f32.mrb[0].mxu1 }
 0x289   :  { %v1149_v2 = vadd.f32 %v1640_v8, %v2677_v53  ;;  %v1140_v9 = vpop.f32.mrb[1].mxu1 }
 0x28a   :  { %v1141_v38 = vadd.f32 %v2677_v53, %v1140_v9  ;;  %v1641_v23 = vpop.f32.mrb[2].mxu1 }
 0x28b   :  { %v1507_v29 = vpack.c.bf16 %v1149_v2, %v1149_v2  ;;  %v1152_v46 = vadd.f32 %v1641_v23, %v2677_v53  ;;  %v1143_v39 = vpop.f32.mrb[3].mxu1 }
 0x28c   :  { %v1505_v43 = vpack.c.bf16 %v1141_v38, %v1141_v38  ;;  %v1144_v63 = vadd.f32 %v2677_v53, %v1143_v39 }
 0x28d   :  { %1350 = vst.msk [vmem:[%s2846_s7 + $0x48] sm:$0xf] %vm1331_vm2, %v1507_v29  ;;  %v1508_v50 = vpack.c.bf16 %v1152_v46, %v1152_v46 }
 0x28e   :  { %1348 = vst.msk [vmem:[%s2846_s7 + $0x40] sm:$0xf] %vm1331_vm2, %v1505_v43  ;;  %v1506_v4 = vpack.c.bf16 %v1144_v63, %v1144_v63 }
 0x28f   :  { %1351 = vst.msk [vmem:[%s2846_s7 + $0x4c] sm:$0xf] %vm1331_vm2, %v1508_v50 }
 0x290   :  { %1349 = vst.msk [vmem:[%s2846_s7 + $0x44] sm:$0xf] %vm1331_vm2, %v1506_v4 }
 0x294   :  { %v1628_v19 = vpop.f32.mrb[4].mxu0 }
 0x295   :  { %v1101_v5 = vadd.f32 %v1628_v19, %v2677_v53  ;;  %v1092_v28 = vpop.f32.mrb[5].mxu0 }
 0x296   :  { %v1093_v51 = vadd.f32 %v2677_v53, %v1092_v28  ;;  %v1629_v1 = vpop.f32.mrb[6].mxu0 }
 0x297   :  { %v1495_v62 = vpack.c.bf16 %v1101_v5, %v1101_v5  ;;  %v1104_v11 = vadd.f32 %v1629_v1, %v2677_v53  ;;  %v1095_v6 = vpop.f32.mrb[7].mxu0 }
 0x298   :  { %v1493_v44 = vpack.c.bf16 %v1093_v51, %v1093_v51  ;;  %v1096_v42 = vadd.f32 %v2677_v53, %v1095_v6  ;;  %v1644_v34 = vpop.f32.mrb[4].mxu1 }
 0x299   :  { %1338 = vst.msk [vmem:[%s2846_s7 + $0x18] sm:$0xf] %vm1331_vm2, %v1495_v62  ;;  %v1496_v31 = vpack.c.bf16 %v1104_v11, %v1104_v11  ;;  %v1165_v3 = vadd.f32 %v1644_v34, %v2677_v53  ;;  %v1156_v60 = vpop.f32.mrb[5].mxu1 }
 0x29a   :  { %1336 = vst.msk [vmem:[%s2846_s7 + $0x10] sm:$0xf] %vm1331_vm2, %v1493_v44  ;;  %v1494_v21 = vpack.c.bf16 %v1096_v42, %v1096_v42  ;;  %v1157_v30 = vadd.f32 %v2677_v53, %v1156_v60  ;;  %v1645_v22 = vpop.f32.mrb[6].mxu1 }
 0x29b   :  { %1339 = vst.msk [vmem:[%s2846_s7 + $0x1c] sm:$0xf] %vm1331_vm2, %v1496_v31  ;;  %v1511_v33 = vpack.c.bf16 %v1165_v3, %v1165_v3  ;;  %v1168_v10 = vadd.f32 %v1645_v22, %v2677_v53  ;;  %v1159_v14 = vpop.f32.mrb[7].mxu1 }
 0x29c   :  { %1337 = vst.msk [vmem:[%s2846_s7 + $0x14] sm:$0xf] %vm1331_vm2, %v1494_v21  ;;  %v1509_v16 = vpack.c.bf16 %v1157_v30, %v1157_v30  ;;  %v1160_v12 = vadd.f32 %v2677_v53, %v1159_v14 }
 0x29d   :  { %1354 = vst.msk [vmem:[%s2846_s7 + $0x58] sm:$0xf] %vm1331_vm2, %v1511_v33  ;;  %v1512_v49 = vpack.c.bf16 %v1168_v10, %v1168_v10 }
 0x29e   :  { %1352 = vst.msk [vmem:[%s2846_s7 + $0x50] sm:$0xf] %vm1331_vm2, %v1509_v16  ;;  %v1510_v13 = vpack.c.bf16 %v1160_v12, %v1160_v12 }
 0x29f   :  { %1355 = vst.msk [vmem:[%s2846_s7 + $0x5c] sm:$0xf] %vm1331_vm2, %v1512_v49 }
 0x2a0   :  { %1353 = vst.msk [vmem:[%s2846_s7 + $0x54] sm:$0xf] %vm1331_vm2, %v1510_v13 }
 0x2a4   :  { %v1632_v35 = vpop.f32.mrb[8].mxu0 }
 0x2a5   :  { %v1117_v36 = vadd.f32 %v1632_v35, %v2677_v53  ;;  %v1108_v20 = vpop.f32.mrb[9].mxu0 }
 0x2a6   :  { %v1109_v26 = vadd.f32 %v2677_v53, %v1108_v20  ;;  %v1633_v47 = vpop.f32.mrb[10].mxu0 }
 0x2a7   :  { %v1499_v41 = vpack.c.bf16 %v1117_v36, %v1117_v36  ;;  %v1120_v32 = vadd.f32 %v1633_v47, %v2677_v53  ;;  %v1111_v7 = vpop.f32.mrb[11].mxu0 }
 0x2a8   :  { %v1497_v24 = vpack.c.bf16 %v1109_v26, %v1109_v26  ;;  %v1112_v40 = vadd.f32 %v2677_v53, %v1111_v7  ;;  %v1648_v15 = vpop.f32.mrb[8].mxu1 }
 0x2a9   :  { %1342 = vst.msk [vmem:[%s2846_s7 + $0x28] sm:$0xf] %vm1331_vm2, %v1499_v41  ;;  %v1500_v17 = vpack.c.bf16 %v1120_v32, %v1120_v32  ;;  %v1181_v54 = vadd.f32 %v1648_v15, %v2677_v53  ;;  %v1172_v56 = vpop.f32.mrb[9].mxu1 }
 0x2aa   :  { %1340 = vst.msk [vmem:[%s2846_s7 + $0x20] sm:$0xf] %vm1331_vm2, %v1497_v24  ;;  %v1498_v25 = vpack.c.bf16 %v1112_v40, %v1112_v40  ;;  %v1173_v58 = vadd.f32 %v2677_v53, %v1172_v56  ;;  %v1649_v61 = vpop.f32.mrb[10].mxu1 }
 0x2ab   :  { %1343 = vst.msk [vmem:[%s2846_s7 + $0x2c] sm:$0xf] %vm1331_vm2, %v1500_v17  ;;  %v1515_v52 = vpack.c.bf16 %v1181_v54, %v1181_v54  ;;  %v1184_v27 = vadd.f32 %v1649_v61, %v2677_v53  ;;  %v1175_v59 = vpop.f32.mrb[11].mxu1 }
 0x2ac   :  { %1341 = vst.msk [vmem:[%s2846_s7 + $0x24] sm:$0xf] %vm1331_vm2, %v1498_v25  ;;  %v1513_v55 = vpack.c.bf16 %v1173_v58, %v1173_v58  ;;  %v1176_v18 = vadd.f32 %v2677_v53, %v1175_v59 }
 0x2ad   :  { %1358 = vst.msk [vmem:[%s2846_s7 + $0x68] sm:$0xf] %vm1331_vm2, %v1515_v52  ;;  %v1516_v48 = vpack.c.bf16 %v1184_v27, %v1184_v27 }
 0x2ae   :  { %1356 = vst.msk [vmem:[%s2846_s7 + $0x60] sm:$0xf] %vm1331_vm2, %v1513_v55  ;;  %v1514_v0 = vpack.c.bf16 %v1176_v18, %v1176_v18 }
 0x2af   :  { %1359 = vst.msk [vmem:[%s2846_s7 + $0x6c] sm:$0xf] %vm1331_vm2, %v1516_v48 }
 0x2b0   :  { %1357 = vst.msk [vmem:[%s2846_s7 + $0x64] sm:$0xf] %vm1331_vm2, %v1514_v0 }
 0x2b4   :  { %v1636_v45 = vpop.f32.mrb[12].mxu0 }
 0x2b5   :  { %v1133_v37 = vadd.f32 %v1636_v45, %v2677_v53  ;;  %v1124_v57 = vpop.f32.mrb[13].mxu0 }
 0x2b6   :  { %v1125_v8 = vadd.f32 %v2677_v53, %v1124_v57  ;;  %v1637_v2 = vpop.f32.mrb[14].mxu0 }
 0x2b7   :  { %v1503_v9 = vpack.c.bf16 %v1133_v37, %v1133_v37  ;;  %v1136_v38 = vadd.f32 %v1637_v2, %v2677_v53  ;;  %v1127_v23 = vpop.f32.mrb[15].mxu0 }
 0x2b8   :  { %v1501_v29 = vpack.c.bf16 %v1125_v8, %v1125_v8  ;;  %v1128_v46 = vadd.f32 %v2677_v53, %v1127_v23  ;;  %v1652_v39 = vpop.f32.mrb[12].mxu1 }
 0x2b9   :  { %1346 = vst.msk [vmem:[%s2846_s7 + $0x38] sm:$0xf] %vm1331_vm2, %v1503_v9  ;;  %v1504_v43 = vpack.c.bf16 %v1136_v38, %v1136_v38  ;;  %v1197_v63 = vadd.f32 %v1652_v39, %v2677_v53  ;;  %v1188_v50 = vpop.f32.mrb[13].mxu1 }
 0x2ba   :  { %1344 = vst.msk [vmem:[%s2846_s7 + $0x30] sm:$0xf] %vm1331_vm2, %v1501_v29  ;;  %v1502_v4 = vpack.c.bf16 %v1128_v46, %v1128_v46  ;;  %v1189_v19 = vadd.f32 %v2677_v53, %v1188_v50  ;;  %v1653_v5 = vpop.f32.mrb[14].mxu1 }
 0x2bb   :  { %1347 = vst.msk [vmem:[%s2846_s7 + $0x3c] sm:$0xf] %vm1331_vm2, %v1504_v43  ;;  %v1519_v28 = vpack.c.bf16 %v1197_v63, %v1197_v63  ;;  %v1200_v51 = vadd.f32 %v1653_v5, %v2677_v53  ;;  %v1191_v1 = vpop.f32.mrb[15].mxu1 }
 0x2bc   :  { %1345 = vst.msk [vmem:[%s2846_s7 + $0x34] sm:$0xf] %vm1331_vm2, %v1502_v4  ;;  %v1517_v62 = vpack.c.bf16 %v1189_v19, %v1189_v19  ;;  %v1192_v11 = vadd.f32 %v2677_v53, %v1191_v1 }
 0x2bd   :  { %1362 = vst.msk [vmem:[%s2846_s7 + $0x78] sm:$0xf] %vm1331_vm2, %v1519_v28  ;;  %v1520_v6 = vpack.c.bf16 %v1200_v51, %v1200_v51 }
 0x2be   :  { %1360 = vst.msk [vmem:[%s2846_s7 + $0x70] sm:$0xf] %vm1331_vm2, %v1517_v62  ;;  %v1518_v44 = vpack.c.bf16 %v1192_v11, %v1192_v11 }
 0x2bf   :  { %1363 = vst.msk [vmem:[%s2846_s7 + $0x7c] sm:$0xf] %vm1331_vm2, %v1520_v6 }
 0x2c0   :  { %1361 = vst.msk [vmem:[%s2846_s7 + $0x74] sm:$0xf] %vm1331_vm2, %v1518_v44 }

// kernel: sentence_encoder_forward.6
= control target key start
LH: loop header
LB: loop body
LE: loop exit
PB: predicated region body
PF: predicated region fallthrough
CT: control target
= control target key end

     0   :  { %s2605_s21 = smov 0   ;;  %s2607_s22 = smov 0   ;;  %s3245_s0 = inlined_call_operand.vmem [shape: bf16[2,4,128,8], index: 0, kind: input, shape index: {}]   ;;  %s3246_s1 = inlined_call_operand.vmem [shape: bf16[2,4,128,8], index: 1, kind: input, shape index: {}]   ;;  %s3247_s2 = inlined_call_operand.vmem [shape: bf16[2,4,128,8], index: 2, kind: input, shape index: {}]   ;;  %s3248_s3 = inlined_call_operand.vmem [shape: f32[2,1,128], index: 3, kind: input, shape index: {}]   ;;  %s3249_s4 = inlined_call_operand.vmem [shape: bf16[4,8,32], index: 4, kind: input, shape index: {}]   ;;  %s3250_s5 = inlined_call_operand.vmem [shape: f32[1,32], index: 5, kind: input, shape index: {}]   ;;  %s3251_s6 = inlined_call_operand.vmem [shape: bf16[2,128,32], index: 6, kind: output, shape index: {}]  }
   0x1   :  { %s2609_s23 = smov 0   ;;  %s2611_s24 = smov 0  }
   0x2   :  { %s2613_s25 = smov 0  }
   0x3 LB: > { %s34_s26 = sadd.s32 1, %s2556_s23  ;;  %s42_s27 = sadd.s32 1, %s2560_s24  ;;  %s2564_s25 = sphi %s2613_s25, %s16_s25   ;;  %s2560_s24 = sphi %s2611_s24, %s3261_s24   ;;  %s2556_s23 = sphi %s2609_s23, %s3260_s23   ;;  %s2552_s22 = sphi %s2607_s22, %s3259_s22   ;;  %s2548_s21 = sphi %s2605_s21, %s3258_s21  }
   0x4   : > { %p36_p0 = scmp.ge.s32.totalorder %s34_s26, 4  ;;  %p2134_p1 = scmp.ge.s32.totalorder %s2564_s25, 1 }
   0x5   : > { %p321_p2 = scmp.lt.s32.totalorder %s2564_s25, 9 }
   0x6   : > { %s3263_s26 = smov (%p36_p0, %s34_s26), 0  ;;  %s3265_s27 = smov (!%p36_p0, %s42_s27), %s2560_s24 }
   0x7   : > { %p322_p3 = pnand %p2134_p1, %p321_p2  ;;  %p44_p4 = scmp.ge.s32.totalorder %s3265_s27, 2 }
   0x8   : > { %p400_p5 = scmp.lt.s32.totalorder (!%p322_p3), %s2552_s22, 1  ;;  %p402_p6 = scmp.lt.s32.totalorder (!%p322_p3), %s2548_s21, 3 }
   0x9   : > { %s3267_s27 = smov (%p44_p4, %s3265_s27), 0  ;;  %325 = sbr.rel (%p322_p3) target bundleno = 1173 (0x495), region = 44 }
   0xa   : > { %3252 = sst [smem:[#allocation6_spill]] %s3267_s27  ;;  %p462_p7 = scmp.eq.s32.totalorder (!%p322_p3), %s2548_s21, 0 }
  0x10   : > { %s3269_s22 = smov (!%p400_p5, %s2552_s22), 1  ;;  %vm468_vm0 = vcmask (%p462_p7), 261120   ;;  %v2566_v0 = vmov (%p462_p7), 0.0  }
  0x11   : > { %s403_s28 = scalar_select %p402_p6, %s2548_s21, 3 }
  0x12   : > { %s2136_s29 = sshll.u32 %s3269_s22, 6  ;;  %s446_s8 = scalar_lea.vmem %s3248_s3, %s3269_s22  ;;  %469 = vst.msk [vmem:[#allocation5] sm:$0xff] (%p462_p7), %vm468_vm0, %v2566_v0  ;;  %470 = vst.msk [vmem:[#allocation5 + $0x8] sm:$0xff] (%p462_p7), %vm468_vm0, %v2566_v0 }
  0x13   : > { %s2135_s9 = sshll.u32 %s403_s28, 4  ;;  %s2144_s10 = sshll.u32 %s403_s28, 2  ;;  %471 = vst.msk [vmem:[#allocation5 + $0x10] sm:$0xff] (%p462_p7), %vm468_vm0, %v2566_v0  ;;  %472 = vst.msk [vmem:[#allocation5 + $0x18] sm:$0xff] (%p462_p7), %vm468_vm0, %v2566_v0 }
  0x14   : > { %s409_s11 = sadd.s32 %s2136_s29, %s2135_s9  ;;  %s2650_s14 = scalar_lea.vmem %s3249_s4, %s2144_s10  ;;  %473 = vst.msk [vmem:[#allocation5 + $0x20] sm:$0xff] (%p462_p7), %vm468_vm0, %v2566_v0  ;;  %474 = vst.msk [vmem:[#allocation5 + $0x28] sm:$0xff] (%p462_p7), %vm468_vm0, %v2566_v0 }
  0x15   : > { %s2137_s15 = sshll.u32 %s409_s11, 2  ;;  %s2655_s18 = scalar_lea.vmem %s3251_s6, %s2136_s29  ;;  %475 = vst.msk [vmem:[#allocation5 + $0x30] sm:$0xff] (%p462_p7), %vm468_vm0, %v2566_v0  ;;  %476 = vst.msk [vmem:[#allocation5 + $0x38] sm:$0xff] (%p462_p7), %vm468_vm0, %v2566_v0 }
  0x16   : > { %s2660_s27 = scalar_lea.vmem %s3245_s0, %s2137_s15  ;;  %s2665_s28 = scalar_lea.vmem %s3246_s1, %s2137_s15  ;;  %477 = vst.msk [vmem:[#allocation5 + $0x40] sm:$0xff] (%p462_p7), %vm468_vm0, %v2566_v0  ;;  %478 = vst.msk [vmem:[#allocation5 + $0x48] sm:$0xff] (%p462_p7), %vm468_vm0, %v2566_v0 }
  0x17   : > { %s2670_s10 = scalar_lea.vmem %s3247_s2, %s2137_s15  ;;  %467 = sbr.rel (!%p462_p7) target bundleno = 30 (0x1e), region = 48  ;;  %479 = vst.msk [vmem:[#allocation5 + $0x50] sm:$0xff] (%p462_p7), %vm468_vm0, %v2566_v0  ;;  %480 = vst.msk [vmem:[#allocation5 + $0x58] sm:$0xff] (%p462_p7), %vm468_vm0, %v2566_v0 }
  0x18   : > { %481 = vst.msk [vmem:[#allocation5 + $0x60] sm:$0xff] (%p462_p7), %vm468_vm0, %v2566_v0  ;;  %482 = vst.msk [vmem:[#allocation5 + $0x68] sm:$0xff] (%p462_p7), %vm468_vm0, %v2566_v0 }
  0x19   : > { %483 = vst.msk [vmem:[#allocation5 + $0x70] sm:$0xff] (%p462_p7), %vm468_vm0, %v2566_v0  ;;  %484 = vst.msk [vmem:[#allocation5 + $0x78] sm:$0xff] (%p462_p7), %vm468_vm0, %v2566_v0 }
  0x1e PF: > { %vm521_vm1 = vcmask 64512   ;;  %v2406_v1 = vld [vmem:[%s2665_s28] sm:$0xff]   ;;  %v2407_v2 = vld [vmem:[%s2665_s28 + $0x8] sm:$0xff]   ;;  %v2408_v4 = vld [vmem:[%s2665_s28 + $0x10] sm:$0xff]   ;;  %vm488_vm2 = vcmask 7168   ;;  %v2567_v44 = vmov -inf  }
  0x1f   : > { %2351 = vmatprep.subr.msk.bf16.mxu0 %vm521_vm1, %v2406_v1  ;;  %v676_v3 = vsel %vm521_vm1, %v2406_v1, 0  ;;  %v679_v5 = vsel %vm521_vm1, %v2407_v2, 0  ;;  %v2414_v6 = vld [vmem:[%s2660_s27] sm:$0xff]   ;;  %v682_v7 = vsel %vm521_vm1, %v2408_v4, 0  ;;  %v2409_v8 = vld [vmem:[%s2665_s28 + $0x18] sm:$0xff]   ;;  %v2411_v12 = vld [vmem:[%s2665_s28 + $0x28] sm:$0xff]  }
  0x20   : > { %2270 = vmatpush3.bf16.xpose.msra.mxu0 %v676_v3  ;;  %2285 = vmatprep.mubr.msk.bf16.mxu0 %vm521_vm1, %v2414_v6  ;;  %v685_v9 = vsel %vm521_vm1, %v2409_v8, 0  ;;  %v2410_v10 = vld [vmem:[%s2665_s28 + $0x20] sm:$0xff]   ;;  %v691_v13 = vsel %vm521_vm1, %v2411_v12, 0  ;;  %v2412_v14 = vld [vmem:[%s2665_s28 + $0x30] sm:$0xff]   ;;  %v2413_v16 = vld [vmem:[%s2665_s28 + $0x38] sm:$0xff]   ;;  %491 = vst.msk [vmem:[#allocation2 + $0x10] sm:$0xff] %vm488_vm2, %v2567_v44 }
  0x21   : > { %2352 = vmatprep.subr.msk.bf16.mxu0 %vm521_vm1, %v2407_v2  ;;  %v688_v11 = vsel %vm521_vm1, %v2410_v10, 0  ;;  %v694_v15 = vsel %vm521_vm1, %v2412_v14, 0  ;;  %v697_v17 = vsel %vm521_vm1, %v2413_v16, 0  ;;  %v2415_v18 = vld [vmem:[%s2660_s27 + $0x8] sm:$0xff]   ;;  %v2416_v19 = vld [vmem:[%s2660_s27 + $0x10] sm:$0xff]   ;;  %v2417_v20 = vld [vmem:[%s2660_s27 + $0x18] sm:$0xff]  }
  0x22   : > { %v2418_v21 = vld [vmem:[%s2660_s27 + $0x20] sm:$0xff]   ;;  %v2419_v22 = vld [vmem:[%s2660_s27 + $0x28] sm:$0xff]   ;;  %v2420_v23 = vld [vmem:[%s2660_s27 + $0x30] sm:$0xff]   ;;  %489 = vst.msk [vmem:[#allocation2] sm:$0xff] %vm488_vm2, %v2567_v44  ;;  %v2568_v60 = vmov 0   ;;  %vm1697_vm3 = vcmask 1043456  }
  0x23   : > { %v2421_v24 = vld [vmem:[%s2660_s27 + $0x38] sm:$0xff]   ;;  %v2735_v26 = vld [vmem:[%s446_s8] ss:$0 sm:$0xff]  ;;  %490 = vst.msk [vmem:[#allocation2 + $0x8] sm:$0xff] %vm488_vm2, %v2567_v44  ;;  %492 = vst.msk [vmem:[#allocation2 + $0x18] sm:$0xff] %vm488_vm2, %v2567_v44  ;;  %2405 = vset.pattern.permute.xlu1 %v2568_v60  ;;  %2404 = vset.pattern.permute.xlu0 %v2568_v60  ;;  %p1831_p8 = scmp.eq.s32.totalorder %s2548_s21, 3 }
  0x24   : > { %493 = vst.msk [vmem:[#allocation2 + $0x20] sm:$0xff] %vm488_vm2, %v2567_v44  ;;  %494 = vst.msk [vmem:[#allocation2 + $0x28] sm:$0xff] %vm488_vm2, %v2567_v44  ;;  %vm1814_vm4 = vcmask 261120   ;;  %vm1939_vm5 = vcmask (%p1831_p8), 257024  }
  0x25   : > { %495 = vst.msk [vmem:[#allocation2 + $0x30] sm:$0xff] %vm488_vm2, %v2567_v44  ;;  %496 = vst.msk [vmem:[#allocation2 + $0x38] sm:$0xff] %vm488_vm2, %v2567_v44 }
  0x26   : > { %497 = vst.msk [vmem:[#allocation2 + $0x40] sm:$0xff] %vm488_vm2, %v2567_v44  ;;  %498 = vst.msk [vmem:[#allocation2 + $0x48] sm:$0xff] %vm488_vm2, %v2567_v44 }
  0x27   : > { %499 = vst.msk [vmem:[#allocation2 + $0x50] sm:$0xff] %vm488_vm2, %v2567_v44  ;;  %500 = vst.msk [vmem:[#allocation2 + $0x58] sm:$0xff] %vm488_vm2, %v2567_v44 }
  0x28   : > { %2272 = vmatpush3.bf16.xpose.msra.mxu0 %v679_v5  ;;  %501 = vst.msk [vmem:[#allocation2 + $0x60] sm:$0xff] %vm488_vm2, %v2567_v44  ;;  %502 = vst.msk [vmem:[#allocation2 + $0x68] sm:$0xff] %vm488_vm2, %v2567_v44 }
  0x29   : > { %2353 = vmatprep.subr.msk.bf16.mxu0 %vm521_vm1, %v2408_v4  ;;  %503 = vst.msk [vmem:[#allocation2 + $0x70] sm:$0xff] %vm488_vm2, %v2567_v44  ;;  %504 = vst.msk [vmem:[#allocation2 + $0x78] sm:$0xff] %vm488_vm2, %v2567_v44 }
  0x30   : > { %2274 = vmatpush3.bf16.xpose.msra.mxu0 %v682_v7 }
  0x31   : > { %2354 = vmatprep.subr.msk.bf16.mxu0 %vm521_vm1, %v2409_v8 }
  0x38   : > { %2276 = vmatpush3.bf16.xpose.msra.mxu0 %v685_v9  ;;  %v2569_v9 = vmov 0.0  }
  0x39   : > { %2355 = vmatprep.subr.msk.bf16.mxu0 %vm521_vm1, %v2410_v10  ;;  %522 = vst.msk [vmem:[#allocation4] sm:$0xff] %vm521_vm1, %v2569_v9  ;;  %523 = vst.msk [vmem:[#allocation4 + $0x8] sm:$0xff] %vm521_vm1, %v2569_v9 }
  0x3a   : > { %505 = vst.msk [vmem:[#allocation3] sm:$0xff] %vm488_vm2, %v2569_v9  ;;  %506 = vst.msk [vmem:[#allocation3 + $0x8] sm:$0xff] %vm488_vm2, %v2569_v9 }
  0x3b   : > { %507 = vst.msk [vmem:[#allocation3 + $0x10] sm:$0xff] %vm488_vm2, %v2569_v9  ;;  %508 = vst.msk [vmem:[#allocation3 + $0x18] sm:$0xff] %vm488_vm2, %v2569_v9 }
  0x3c   : > { %509 = vst.msk [vmem:[#allocation3 + $0x20] sm:$0xff] %vm488_vm2, %v2569_v9  ;;  %510 = vst.msk [vmem:[#allocation3 + $0x28] sm:$0xff] %vm488_vm2, %v2569_v9 }
  0x3d   : > { %511 = vst.msk [vmem:[#allocation3 + $0x30] sm:$0xff] %vm488_vm2, %v2569_v9  ;;  %512 = vst.msk [vmem:[#allocation3 + $0x38] sm:$0xff] %vm488_vm2, %v2569_v9 }
  0x3e   : > { %513 = vst.msk [vmem:[#allocation3 + $0x40] sm:$0xff] %vm488_vm2, %v2569_v9  ;;  %514 = vst.msk [vmem:[#allocation3 + $0x48] sm:$0xff] %vm488_vm2, %v2569_v9 }
  0x3f   : > { %515 = vst.msk [vmem:[#allocation3 + $0x50] sm:$0xff] %vm488_vm2, %v2569_v9  ;;  %516 = vst.msk [vmem:[#allocation3 + $0x58] sm:$0xff] %vm488_vm2, %v2569_v9 }
  0x40   : > { %2278 = vmatpush3.bf16.xpose.msra.mxu0 %v688_v11  ;;  %517 = vst.msk [vmem:[#allocation3 + $0x60] sm:$0xff] %vm488_vm2, %v2569_v9  ;;  %518 = vst.msk [vmem:[#allocation3 + $0x68] sm:$0xff] %vm488_vm2, %v2569_v9 }
  0x41   : > { %2356 = vmatprep.subr.msk.bf16.mxu0 %vm521_vm1, %v2411_v12  ;;  %519 = vst.msk [vmem:[#allocation3 + $0x70] sm:$0xff] %vm488_vm2, %v2569_v9  ;;  %520 = vst.msk [vmem:[#allocation3 + $0x78] sm:$0xff] %vm488_vm2, %v2569_v9 }
  0x42   : > { %524 = vst.msk [vmem:[#allocation4 + $0x10] sm:$0xff] %vm521_vm1, %v2569_v9  ;;  %525 = vst.msk [vmem:[#allocation4 + $0x18] sm:$0xff] %vm521_vm1, %v2569_v9 }
  0x43   : > { %526 = vst.msk [vmem:[#allocation4 + $0x20] sm:$0xff] %vm521_vm1, %v2569_v9  ;;  %527 = vst.msk [vmem:[#allocation4 + $0x28] sm:$0xff] %vm521_vm1, %v2569_v9 }
  0x44   : > { %528 = vst.msk [vmem:[#allocation4 + $0x30] sm:$0xff] %vm521_vm1, %v2569_v9  ;;  %529 = vst.msk [vmem:[#allocation4 + $0x38] sm:$0xff] %vm521_vm1, %v2569_v9 }
  0x45   : > { %530 = vst.msk [vmem:[#allocation4 + $0x40] sm:$0xff] %vm521_vm1, %v2569_v9  ;;  %531 = vst.msk [vmem:[#allocation4 + $0x48] sm:$0xff] %vm521_vm1, %v2569_v9 }
  0x46   : > { %532 = vst.msk [vmem:[#allocation4 + $0x50] sm:$0xff] %vm521_vm1, %v2569_v9  ;;  %533 = vst.msk [vmem:[#allocation4 + $0x58] sm:$0xff] %vm521_vm1, %v2569_v9 }
  0x47   : > { %534 = vst.msk [vmem:[#allocation4 + $0x60] sm:$0xff] %vm521_vm1, %v2569_v9  ;;  %535 = vst.msk [vmem:[#allocation4 + $0x68] sm:$0xff] %vm521_vm1, %v2569_v9 }
  0x48   : > { %2280 = vmatpush3.bf16.xpose.msra.mxu0 %v691_v13  ;;  %536 = vst.msk [vmem:[#allocation4 + $0x70] sm:$0xff] %vm521_vm1, %v2569_v9  ;;  %537 = vst.msk [vmem:[#allocation4 + $0x78] sm:$0xff] %vm521_vm1, %v2569_v9  ;;  %v2422_v13 = vld [vmem:[%s2670_s10] sm:$0xff]  }
  0x49   : > { %2357 = vmatprep.subr.msk.bf16.mxu0 %vm521_vm1, %v2412_v14  ;;  %v2423_v14 = vld [vmem:[%s2670_s10 + $0x8] sm:$0xff]   ;;  %2301 = vmatprep.subr.bf16.mxu1 %v2422_v13 }
  0x4a   : > { %2302 = vmatpush3.bf16.msra.mxu1 %v2422_v13 }
  0x4b   : > { %2303 = vmatprep.subr.bf16.mxu1 %v2423_v14 }
  0x4e   : > { %2304 = vmatpush3.bf16.msra.mxu1 %v2423_v14  ;;  %v2954_v14 = vld [vmem:[#allocation2 + $0x60] sm:$0xff] }
  0x50   : > { %2282 = vmatpush3.bf16.xpose.msra.mxu0 %v694_v15  ;;  %v2851_v15 = vld [vmem:[#allocation2 + $0x10] sm:$0xff] }
  0x51   : > { %2358 = vmatprep.subr.msk.bf16.mxu0 %vm521_vm1, %v2413_v16  ;;  %v2853_v16 = vld [vmem:[#allocation2] sm:$0xff] }
  0x58   : > { %2284 = vmatpush3.bf16.xpose.msra.mxu0 %v697_v17 }
  0x5f   : > { %2286 = vmatmul.mubr.msk.bf16.vlgmr.msra.gmra.mrb[0].mxu0 %vm521_vm1, %v2415_v18 }
  0x60   : > { %2289 = vmatprep.mubr.msk.bf16.mxu0 %vm521_vm1, %v2416_v19 }
  0x67   : > { %2290 = vmatmul.mubr.msk.bf16.gmra.mrb[4].mxu0 %vm521_vm1, %v2417_v20 }
  0x68   : > { %2293 = vmatprep.mubr.msk.bf16.mxu0 %vm521_vm1, %v2418_v21  ;;  %v2861_v21 = vld [vmem:[#allocation2 + $0x18] sm:$0xff] }
  0x6f   : > { %2294 = vmatmul.mubr.msk.bf16.gmra.mrb[8].mxu0 %vm521_vm1, %v2419_v22  ;;  %v2866_v22 = vld [vmem:[#allocation2 + $0x8] sm:$0xff] }
  0x70   : > { %2297 = vmatprep.mubr.msk.bf16.mxu0 %vm521_vm1, %v2420_v23  ;;  %v2424_v23 = vld [vmem:[%s2670_s10 + $0x10] sm:$0xff]  }
  0x71   : > { %2305 = vmatprep.subr.bf16.mxu1 %v2424_v23 }
  0x72   : > { %2306 = vmatpush3.bf16.msra.mxu1 %v2424_v23 }
  0x77   : > { %2298 = vmatmul.mubr.msk.bf16.gmra.mrb[12].mxu0 %vm521_vm1, %v2421_v24 }
 0x132   : > { %v2287_v25 = vpop.f32.mrb[0].mxu0 }
 0x133   : > { %v798_v27 = vmul.f32 0.35355338, %v2287_v25  ;;  %v733_v28 = vpop.f32.mrb[1].mxu0 }
 0x134   : > { %v796_v29 = vmul.f32 0.35355338, %v733_v28  ;;  %v2288_v30 = vpop.f32.mrb[2].mxu0  ;;  %v2881_v28 = vld [vmem:[#allocation2 + $0x20] sm:$0xff] }
 0x135   : > { %v799_v31 = vmul.f32 0.35355338, %v2288_v30  ;;  %v736_v32 = vpop.f32.mrb[3].mxu0  ;;  %v2738_v33 = vadd.f32 %v2735_v26, %v798_v27  ;;  %v2886_v30 = vld [vmem:[#allocation2 + $0x38] sm:$0xff] }
 0x136   : > { %v797_v34 = vmul.f32 0.35355338, %v736_v32  ;;  %v2741_v35 = vadd.f32 %v2735_v26, %v796_v29  ;;  %v2425_v29 = vld [vmem:[%s2670_s10 + $0x18] sm:$0xff]  }
 0x137   : > { %855 = vmax.xlane.f32.xlu1 %v2738_v33  ;;  %v2746_v36 = vadd.f32 %v2735_v26, %v799_v31  ;;  %2307 = vmatprep.subr.bf16.mxu1 %v2425_v29 }
 0x138   : > { %851 = vmax.xlane.f32.xlu0 %v2741_v35  ;;  %v2749_v38 = vadd.f32 %v2735_v26, %v797_v34  ;;  %2308 = vmatpush3.bf16.msra.mxu1 %v2425_v29 }
 0x13a   : > { %v2291_v37 = vpop.f32.mrb[4].mxu0 }
 0x13b   : > { %857 = vmax.xlane.f32.xlu1 %v2746_v36  ;;  %v749_v39 = vpop.f32.mrb[5].mxu0  ;;  %v802_v45 = vmul.f32 0.35355338, %v2291_v37 }
 0x13c   : > { %v800_v40 = vmul.f32 0.35355338, %v749_v39  ;;  %853 = vmax.xlane.f32.xlu0 %v2749_v38  ;;  %v2292_v41 = vpop.f32.mrb[6].mxu0  ;;  %v2895_v39 = vld [vmem:[#allocation2 + $0x30] sm:$0xff] }
 0x13d   : > { %v803_v42 = vmul.f32 0.35355338, %v2292_v41  ;;  %v752_v43 = vpop.f32.mrb[7].mxu0  ;;  %v2778_v50 = vadd.f32 %v2735_v26, %v802_v45  ;;  %v2900_v41 = vld [vmem:[#allocation2 + $0x28] sm:$0xff] }
 0x13e   : > { %v2770_v46 = vadd.f32 %v2735_v26, %v800_v40  ;;  %v801_v47 = vmul.f32 0.35355338, %v752_v43  ;;  %v2426_v40 = vld [vmem:[%s2670_s10 + $0x20] sm:$0xff]  }
 0x13f   : > { %v2773_v48 = vadd.f32 %v2735_v26, %v803_v42  ;;  %2309 = vmatprep.subr.bf16.mxu1 %v2426_v40 }
 0x140   : > { %859 = vmax.xlane.f32.xlu0 %v2770_v46  ;;  %v2781_v52 = vadd.f32 %v2735_v26, %v801_v47  ;;  %2310 = vmatpush3.bf16.msra.mxu1 %v2426_v40  ;;  %v2977_v40 = vld [vmem:[#allocation2 + $0x70] sm:$0xff] }
 0x141   : > { %865 = vmax.xlane.f32.xlu1 %v2773_v48 }
 0x142   : > { %v2295_v49 = vpop.f32.mrb[8].mxu0 }
 0x143   : > { %v765_v51 = vpop.f32.mrb[9].mxu0  ;;  %v806_v53 = vmul.f32 0.35355338, %v2295_v49  ;;  %v2912_v49 = vld [vmem:[#allocation2 + $0x40] sm:$0xff] }
 0x144   : > { %v804_v54 = vmul.f32 0.35355338, %v765_v51  ;;  %863 = vmax.xlane.f32.xlu0 %v2778_v50  ;;  %v2296_v55 = vpop.f32.mrb[10].mxu0  ;;  %v2427_v51 = vld [vmem:[%s2670_s10 + $0x28] sm:$0xff]  }
 0x145   : > { %v807_v56 = vmul.f32 0.35355338, %v2296_v55  ;;  %861 = vmax.xlane.f32.xlu1 %v2781_v52  ;;  %v768_v57 = vpop.f32.mrb[11].mxu0  ;;  %v2793_v62 = vadd.f32 %v2735_v26, %v806_v53  ;;  %2311 = vmatprep.subr.bf16.mxu1 %v2427_v51 }
 0x146   : > { %v805_v58 = vmul.f32 0.35355338, %v768_v57  ;;  %v2786_v59 = vadd.f32 %v2735_v26, %v804_v54  ;;  %v2920_v54 = vld [vmem:[#allocation2 + $0x58] sm:$0xff]  ;;  %2312 = vmatpush3.bf16.msra.mxu1 %v2427_v51 }
 0x147   : > { %v2789_v61 = vadd.f32 %v2735_v26, %v807_v56 }
 0x148   : > { %867 = vmax.xlane.f32.xlu0 %v2786_v59  ;;  %v2797_v63 = vadd.f32 %v2735_v26, %v805_v58 }
 0x149   : > { %873 = vmax.xlane.f32.xlu1 %v2789_v61 }
 0x14a   : > { %v2299_v0 = vpop.f32.mrb[12].mxu0 }
 0x14b   : > { %v781_v1 = vpop.f32.mrb[13].mxu0  ;;  %v810_v2 = vmul.f32 0.35355338, %v2299_v0  ;;  %v2932_v0 = vld [vmem:[#allocation2 + $0x50] sm:$0xff] }
 0x14c   : > { %v808_v3 = vmul.f32 0.35355338, %v781_v1  ;;  %v2300_v4 = vpop.f32.mrb[14].mxu0  ;;  %871 = vmax.xlane.f32.xlu0 %v2793_v62  ;;  %v2428_v1 = vld [vmem:[%s2670_s10 + $0x30] sm:$0xff]  }
 0x14d   : > { %v811_v5 = vmul.f32 0.35355338, %v2300_v4  ;;  %869 = vmax.xlane.f32.xlu1 %v2797_v63  ;;  %v784_v6 = vpop.f32.mrb[15].mxu0  ;;  %v2841_v11 = vadd.f32 %v2735_v26, %v810_v2  ;;  %2313 = vmatprep.subr.bf16.mxu1 %v2428_v1 }
 0x14e   : > { %v809_v7 = vmul.f32 0.35355338, %v784_v6  ;;  %v2802_v8 = vadd.f32 %v2735_v26, %v808_v3  ;;  %v2940_v3 = vld [vmem:[#allocation2 + $0x48] sm:$0xff]  ;;  %2314 = vmatpush3.bf16.msra.mxu1 %v2428_v1 }
 0x14f   : > { %v2837_v10 = vadd.f32 %v2735_v26, %v811_v5 }
 0x150   : > { %875 = vmax.xlane.f32.xlu0 %v2802_v8  ;;  %v2845_v12 = vadd.f32 %v2735_v26, %v809_v7 }
 0x151   : > { %881 = vmax.xlane.f32.xlu1 %v2837_v10 }
 0x154   : > { %879 = vmax.xlane.f32.xlu0 %v2841_v11 }
 0x155   : > { %877 = vmax.xlane.f32.xlu1 %v2845_v12 }
 0x1c4   : > { %v856_v17 = vpop.xlane.xlu1 %855 }
 0x1c5   : > { %v2856_v18 = vmax.f32 %v2851_v15, %v856_v17  ;;  %v852_v19 = vpop.xlane.xlu0 %851  ;;  %v2429_v17 = vld [vmem:[%s2670_s10 + $0x38] sm:$0xff]  }
 0x1c6   : > { %v2859_v20 = vmax.f32 %v2853_v16, %v852_v19  ;;  %2315 = vmatprep.subr.bf16.mxu1 %v2429_v17 }
 0x1c7   : > { %1487 = vst.msk [vmem:[#allocation2 + $0x10] sm:$0xff] %vm488_vm2, %v2856_v18  ;;  %959 = vperm.xlu1 %2405, %v2856_v18   ;;  %2316 = vmatpush3.bf16.msra.mxu1 %v2429_v17 }
 0x1c8   : > { %1485 = vst.msk [vmem:[#allocation2] sm:$0xff] %vm488_vm2, %v2859_v20  ;;  %v858_v24 = vpop.xlane.xlu1 %857  ;;  %949 = vperm.xlu0 %2404, %v2859_v20   ;;  %v899_v6 = vsub.f32 %v2853_v16, %v2859_v20  ;;  %v2962_v16 = vld [vmem:[#allocation2 + $0x78] sm:$0xff] }
 0x1c9   : > { %v2873_v25 = vmax.f32 %v2861_v21, %v858_v24  ;;  %v854_v26 = vpop.xlane.xlu0 %853 }
 0x1ca   : > { %v2876_v27 = vmax.f32 %v2866_v22, %v854_v26  ;;  %v915_v24 = vmul.f32 1.442695, %v899_v6 }
 0x1cb   : > { %1488 = vst.msk [vmem:[#allocation2 + $0x18] sm:$0xff] %vm488_vm2, %v2873_v25  ;;  %964 = vperm.xlu1 %2405, %v2873_v25   ;;  %v902_v26 = vsub.f32 %v2861_v21, %v2873_v25 }
 0x1cc   : > { %1486 = vst.msk [vmem:[#allocation2 + $0x8] sm:$0xff] %vm488_vm2, %v2876_v27  ;;  %v900_v21 = vsub.f32 %v2866_v22, %v2876_v27  ;;  %2430 = vpow2.f32 %v915_v24 }
 0x1cd   : > { %v860_v31 = vpop.xlane.xlu0 %859 }
 0x1ce   : > { %v2889_v32 = vmax.f32 %v2881_v28, %v860_v31  ;;  %v866_v34 = vpop.xlane.xlu1 %865  ;;  %v917_v6 = vmul.f32 1.442695, %v900_v21 }
 0x1cf   : > { %v2892_v37 = vmax.f32 %v2886_v30, %v866_v34  ;;  %954 = vperm.xlu1 %2405, %v2876_v27   ;;  %v901_v27 = vsub.f32 %v2851_v15, %v2856_v18 }
 0x1d0   : > { %1489 = vst.msk [vmem:[#allocation2 + $0x20] sm:$0xff] %vm488_vm2, %v2889_v32 }
 0x1d1   : > { %v906_v42 = vsub.f32 %v2886_v30, %v2892_v37  ;;  %1492 = vst.msk [vmem:[#allocation2 + $0x38] sm:$0xff] %vm488_vm2, %v2892_v37  ;;  %v864_v43 = vpop.xlane.xlu0 %863  ;;  %v919_v17 = vmul.f32 1.442695, %v901_v27 }
 0x1d2   : > { %v2907_v44 = vmax.f32 %v2895_v39, %v864_v43  ;;  %v862_v45 = vpop.xlane.xlu1 %861 }
 0x1d3   : > { %v2910_v47 = vmax.f32 %v2900_v41, %v862_v45  ;;  %v2984_v45 = vld [vmem:[#allocation2 + $0x68] sm:$0xff] }
 0x1d4   : > { %v905_v53 = vsub.f32 %v2895_v39, %v2907_v44  ;;  %1491 = vst.msk [vmem:[#allocation2 + $0x30] sm:$0xff] %vm488_vm2, %v2907_v44  ;;  %979 = vperm.xlu1 %2405, %v2907_v44  }
 0x1d5   : > { %v904_v55 = vsub.f32 %v2900_v41, %v2910_v47  ;;  %1490 = vst.msk [vmem:[#allocation2 + $0x28] sm:$0xff] %vm488_vm2, %v2910_v47  ;;  %v868_v56 = vpop.xlane.xlu0 %867 }
 0x1d6   : > { %v874_v57 = vpop.xlane.xlu1 %873  ;;  %v2927_v58 = vmax.f32 %v2912_v49, %v868_v56  ;;  %v921_v56 = vmul.f32 1.442695, %v902_v26  ;;  %v3015_v15 = vpop.eup %2430 }
 0x1d7   : > { %v2930_v60 = vmax.f32 %v2920_v54, %v874_v57 }
 0x1d8   : > { %v907_v2 = vsub.f32 %v2912_v49, %v2927_v58  ;;  %1493 = vst.msk [vmem:[#allocation2 + $0x40] sm:$0xff] %vm488_vm2, %v2927_v58  ;;  %969 = vperm.xlu1 %2405, %v2889_v32   ;;  %2432 = vpow2.f32 %v921_v56 }
 0x1d9   : > { %1496 = vst.msk [vmem:[#allocation2 + $0x58] sm:$0xff] %vm488_vm2, %v2930_v60  ;;  %v872_v5 = vpop.xlane.xlu0 %871  ;;  %2434 = vpow2.f32 %v917_v6 }
 0x1da   : > { %v870_v7 = vpop.xlane.xlu1 %869  ;;  %v2949_v9 = vmax.f32 %v2932_v0, %v872_v5  ;;  %2436 = vpow2.f32 %v919_v17 }
 0x1db   : > { %v2952_v13 = vmax.f32 %v2940_v3, %v870_v7 }
 0x1dc   : > { %v909_v19 = vsub.f32 %v2932_v0, %v2949_v9  ;;  %1495 = vst.msk [vmem:[#allocation2 + $0x50] sm:$0xff] %vm488_vm2, %v2949_v9  ;;  %974 = vperm.xlu1 %2405, %v2910_v47   ;;  %v3253_v47 = vsub.f32 %v2920_v54, %v2930_v60 }
 0x1dd   : > { %v908_v20 = vsub.f32 %v2940_v3, %v2952_v13  ;;  %1494 = vst.msk [vmem:[#allocation2 + $0x48] sm:$0xff] %vm488_vm2, %v2952_v13  ;;  %994 = vperm.xlu0 %2404, %v2952_v13   ;;  %v876_v23 = vpop.xlane.xlu0 %875 }
 0x1de   : > { %v882_v29 = vpop.xlane.xlu1 %881  ;;  %v2972_v31 = vmax.f32 %v2954_v14, %v876_v23  ;;  %v903_v23 = vsub.f32 %v2881_v28, %v2889_v32  ;;  %v937_v49 = vmul.f32 1.442695, %v3253_v47 }
 0x1df   : > { %v2975_v34 = vmax.f32 %v2962_v16, %v882_v29  ;;  %v933_v41 = vmul.f32 1.442695, %v908_v20 }
 0x1e0   : > { %v911_v43 = vsub.f32 %v2954_v14, %v2972_v31  ;;  %1497 = vst.msk [vmem:[#allocation2 + $0x60] sm:$0xff] %vm488_vm2, %v2972_v31  ;;  %984 = vperm.xlu1 %2405, %v2892_v37   ;;  %v923_v18 = vmul.f32 1.442695, %v903_v23 }
 0x1e1   : > { %1500 = vst.msk [vmem:[#allocation2 + $0x78] sm:$0xff] %vm488_vm2, %v2975_v34  ;;  %1004 = vperm.xlu0 %2404, %v2930_v60   ;;  %v880_v51 = vpop.xlane.xlu0 %879 }
 0x1e2   : > { %v878_v57 = vpop.xlane.xlu1 %877  ;;  %v2994_v1 = vmax.f32 %v2977_v40, %v880_v51  ;;  %v3019_v24 = vpop.eup %2432  ;;  %2438 = vpow2.f32 %v923_v18  ;;  %v939_v39 = vmul.f32 1.442695, %v911_v43 }
 0x1e3   : > { %v2997_v5 = vmax.f32 %v2984_v45, %v878_v57  ;;  %v3023_v26 = vpop.eup %2434 }
 0x1e4   : > { %1499 = vst.msk [vmem:[#allocation2 + $0x70] sm:$0xff] %vm488_vm2, %v2994_v1  ;;  %989 = vperm.xlu1 %2405, %v2927_v58   ;;  %v3026_v28 = vpop.eup %2436 }
 0x1e5   : > { %1498 = vst.msk [vmem:[#allocation2 + $0x68] sm:$0xff] %vm488_vm2, %v2997_v5  ;;  %1014 = vperm.xlu0 %2404, %v2997_v5  }
 0x1e8   : > { %999 = vperm.xlu1 %2405, %v2949_v9  }
 0x1e9   : > { %1024 = vperm.xlu0 %2404, %v2975_v34  }
 0x1ec   : > { %1009 = vperm.xlu1 %2405, %v2972_v31   ;;  %v3029_v32 = vpop.eup %2438  ;;  %v1075_v31 = vld [vmem:[#allocation3] sm:$0xff] }
 0x1ed   : > { %1190 = vperm.xlu0 %2404, %v3015_v15  }
 0x1f0   : > { %1019 = vperm.xlu1 %2405, %v2994_v1  }
 0x1f1   : > { %1205 = vperm.xlu0 %2404, %v3019_v24  }
 0x1f4   : > { %1195 = vperm.xlu1 %2405, %v3023_v26  }
 0x1f8   : > { %1200 = vperm.xlu1 %2405, %v3026_v28  }
 0x1fc   : > { %1210 = vperm.xlu1 %2405, %v3029_v32  }
 0x246   : > { %v960_v29 = vpop.permute.xlu1 %959 }
 0x247   : > { %v1029_v21 = vsub.f32 %v2738_v33, %v960_v29  ;;  %v950_v51 = vpop.permute.xlu0 %949 }
 0x248   : > { %v1027_v56 = vsub.f32 %v2741_v35, %v950_v51 }
 0x249   : > { %v1047_v57 = vmul.f32 1.442695, %v1029_v21 }
 0x24a   : > { %v1043_v27 = vmul.f32 1.442695, %v1027_v56  ;;  %v965_v6 = vpop.permute.xlu1 %964 }
 0x24b   : > { %2440 = vpow2.f32 %v1047_v57  ;;  %v1030_v17 = vsub.f32 %v2746_v36, %v965_v6 }
 0x24c   : > { %2442 = vpow2.f32 %v1043_v27 }
 0x24d   : > { %v1049_v23 = vmul.f32 1.442695, %v1030_v17 }
 0x24e   : > { %v955_v18 = vpop.permute.xlu1 %954 }
 0x24f   : > { %2444 = vpow2.f32 %v1049_v23  ;;  %v1028_v22 = vsub.f32 %v2749_v38, %v955_v18 }
 0x251   : > { %v1045_v25 = vmul.f32 1.442695, %v1028_v22 }
 0x253   : > { %2446 = vpow2.f32 %v1045_v25  ;;  %v980_v7 = vpop.permute.xlu1 %979 }
 0x254   : > { %v1033_v33 = vsub.f32 %v2778_v50, %v980_v7 }
 0x255   : > { %v2441_v29 = vpop.eup %2440 }
 0x256   : > { %v2443_v4 = vpop.eup %2442  ;;  %v1055_v35 = vmul.f32 1.442695, %v1033_v33  ;;  %1111 = vadd.xlane.f32.xlu0 %v2441_v29 }
 0x257   : > { %v970_v21 = vpop.permute.xlu1 %969  ;;  %1107 = vadd.xlane.f32.xlu1 %v2443_v4 }
 0x258   : > { %2448 = vpow2.f32 %v1055_v35  ;;  %v1031_v36 = vsub.f32 %v2770_v46, %v970_v21 }
 0x259   : > { %v2445_v51 = vpop.eup %2444 }
 0x25a   : > { %v1051_v56 = vmul.f32 1.442695, %v1031_v36  ;;  %v1285_v17 = vpack.c.bf16 %v2445_v51, %v2441_v29 }
 0x25b   : > { %v975_v57 = vpop.permute.xlu1 %974  ;;  %1113 = vadd.xlane.f32.xlu1 %v2445_v51 }
 0x25c   : > { %2450 = vpow2.f32 %v1051_v56  ;;  %v1032_v38 = vsub.f32 %v2781_v52, %v975_v57  ;;  %v995_v25 = vpop.permute.xlu0 %994 }
 0x25d   : > { %v2447_v22 = vpop.eup %2446  ;;  %v1036_v7 = vsub.f32 %v2797_v63, %v995_v25 }
 0x25e   : > { %v1053_v27 = vmul.f32 1.442695, %v1032_v38  ;;  %1109 = vadd.xlane.f32.xlu0 %v2447_v22  ;;  %v1284_v50 = vpack.c.bf16 %v2447_v22, %v2443_v4 }
 0x25f   : > { %v985_v6 = vpop.permute.xlu1 %984  ;;  %v1061_v35 = vmul.f32 1.442695, %v1036_v7 }
 0x260   : > { %2452 = vpow2.f32 %v1053_v27  ;;  %v1034_v23 = vsub.f32 %v2773_v48, %v985_v6  ;;  %2317 = vmatprep.mubr.bf16.mxu1 %v1284_v50  ;;  %v1005_v46 = vpop.permute.xlu0 %1004 }
 0x261   : > { %2318 = vmatmul.mubr.bf16.vlgmr.msra.gmra.mrb[0].mxu1 %v1285_v17  ;;  %v1038_v52 = vsub.f32 %v2789_v61, %v1005_v46 }
 0x262   : > { %v2449_v18 = vpop.eup %2448  ;;  %v1057_v33 = vmul.f32 1.442695, %v1034_v23 }
 0x263   : > { %v990_v21 = vpop.permute.xlu1 %989  ;;  %1119 = vadd.xlane.f32.xlu0 %v2449_v18  ;;  %v1065_v29 = vmul.f32 1.442695, %v1038_v52 }
 0x264   : > { %2454 = vpow2.f32 %v1057_v33  ;;  %v1035_v4 = vsub.f32 %v2786_v59, %v990_v21  ;;  %v1015_v36 = vpop.permute.xlu0 %1014 }
 0x265   : > { %2456 = vpow2.f32 %v1061_v35  ;;  %v1040_v48 = vsub.f32 %v2845_v12, %v1015_v36 }
 0x266   : > { %v2451_v63 = vpop.eup %2450  ;;  %v1059_v56 = vmul.f32 1.442695, %v1035_v4 }
 0x267   : > { %v1000_v51 = vpop.permute.xlu1 %999  ;;  %1115 = vadd.xlane.f32.xlu0 %v2451_v63  ;;  %v1069_v22 = vmul.f32 1.442695, %v1040_v48  ;;  %v927_v48 = vmul.f32 1.442695, %v905_v53 }
 0x268   : > { %2458 = vpow2.f32 %v1059_v56  ;;  %v1037_v57 = vsub.f32 %v2793_v62, %v1000_v51  ;;  %v1025_v38 = vpop.permute.xlu0 %1024  ;;  %v931_v51 = vmul.f32 1.442695, %v907_v2 }
 0x269   : > { %2460 = vpow2.f32 %v1065_v29  ;;  %v1042_v27 = vsub.f32 %v2837_v10, %v1025_v38  ;;  %v935_v38 = vmul.f32 1.442695, %v909_v19  ;;  %v1077_v19 = vld [vmem:[#allocation3 + $0x10] sm:$0xff] }
 0x26a   : > { %v2453_v25 = vpop.eup %2452  ;;  %v1063_v61 = vmul.f32 1.442695, %v1037_v57  ;;  %v925_v57 = vmul.f32 1.442695, %v904_v55  ;;  %v1093_v43 = vmul.f32 %v3026_v28, %v1077_v19 }
 0x26b   : > { %v1010_v59 = vpop.permute.xlu1 %1009  ;;  %v1286_v50 = vpack.c.bf16 %v2453_v25, %v2451_v63  ;;  %v1073_v17 = vmul.f32 1.442695, %v1042_v27  ;;  %v1078_v27 = vld [vmem:[#allocation3 + $0x18] sm:$0xff] }
 0x26c   : > { %2462 = vpow2.f32 %v1063_v61  ;;  %v1039_v7 = vsub.f32 %v2802_v8, %v1010_v59  ;;  %v3098_v9 = vpop.permute.xlu0 %1190 }
 0x26d   : > { %2321 = vmatprep.mubr.bf16.mxu1 %v1286_v50  ;;  %2464 = vpow2.f32 %v1069_v22  ;;  %v1094_v50 = vmul.f32 %v3019_v24, %v1078_v27  ;;  %v1089_v27 = vld [vmem:[#allocation3 + $0x70] sm:$0xff] }
 0x26e   : > { %v2455_v6 = vpop.eup %2454  ;;  %v1067_v12 = vmul.f32 1.442695, %v1039_v7  ;;  %v1076_v7 = vld [vmem:[#allocation3 + $0x8] sm:$0xff] }
 0x26f   : > { %v1020_v23 = vpop.permute.xlu1 %1019  ;;  %1121 = vadd.xlane.f32.xlu1 %v2455_v6  ;;  %v1287_v62 = vpack.c.bf16 %v2455_v6, %v2449_v18  ;;  %v2457_v33 = vpop.eup %2456 }
 0x270   : > { %2466 = vpow2.f32 %v1067_v12  ;;  %v1041_v46 = vsub.f32 %v2841_v11, %v1020_v23  ;;  %v3102_v14 = vpop.permute.xlu0 %1205 }
 0x271   : > { %2322 = vmatmul.mubr.bf16.gmra.mrb[4].mxu1 %v1287_v62  ;;  %2468 = vpow2.f32 %v1073_v17  ;;  %v1092_v17 = vmul.f32 %v3023_v26, %v1076_v7 }
 0x272   : > { %v2459_v35 = vpop.eup %2458  ;;  %v1071_v10 = vmul.f32 1.442695, %v1041_v46 }
 0x273   : > { %1117 = vadd.xlane.f32.xlu1 %v2453_v25  ;;  %v1288_v52 = vpack.c.bf16 %v2457_v33, %v2459_v35  ;;  %v2461_v8 = vpop.eup %2460  ;;  %v929_v25 = vmul.f32 1.442695, %v906_v42  ;;  %v3254_v42 = vsub.f32 %v2984_v45, %v2997_v5  ;;  %v3096_v3 = vpop.permute.xlu1 %1195  ;;  %v1091_v5 = vmul.f32 %v3015_v15, %v1075_v31  ;;  %v1081_v15 = vld [vmem:[#allocation3 + $0x30] sm:$0xff] }
 0x274   : > { %2470 = vpow2.f32 %v1071_v10 }
 0x275   : > { %2325 = vmatprep.mubr.bf16.mxu1 %v1288_v52  ;;  %2472 = vpow2.f32 %v927_v48  ;;  %v941_v53 = vmul.f32 1.442695, %v3254_v42 }
 0x276   : > { %v2463_v21 = vpop.eup %2462  ;;  %2474 = vpow2.f32 %v931_v51  ;;  %v1080_v51 = vld [vmem:[#allocation3 + $0x28] sm:$0xff] }
 0x277   : > { %1129 = vadd.xlane.f32.xlu1 %v2461_v8  ;;  %1127 = vadd.xlane.f32.xlu0 %v2463_v21  ;;  %v1289_v4 = vpack.c.bf16 %v2461_v8, %v2463_v21  ;;  %v2465_v36 = vpop.eup %2464  ;;  %2476 = vpow2.f32 %v925_v57  ;;  %v3100_v13 = vpop.permute.xlu1 %1200 }
 0x278   : > { %2478 = vpow2.f32 %v935_v38 }
 0x279   : > { %2326 = vmatmul.mubr.bf16.gmra.mrb[8].mxu1 %v1289_v4  ;;  %2480 = vpow2.f32 %v929_v25  ;;  %v1086_v25 = vld [vmem:[#allocation3 + $0x58] sm:$0xff] }
 0x27a   : > { %v2467_v18 = vpop.eup %2466  ;;  %2482 = vpow2.f32 %v939_v39  ;;  %v1085_v39 = vld [vmem:[#allocation3 + $0x50] sm:$0xff] }
 0x27b   : > { %1125 = vadd.xlane.f32.xlu1 %v2457_v33  ;;  %1123 = vadd.xlane.f32.xlu0 %v2459_v35  ;;  %v1290_v11 = vpack.c.bf16 %v2465_v36, %v2467_v18  ;;  %v2469_v63 = vpop.eup %2468  ;;  %2484 = vpow2.f32 %v933_v41  ;;  %v3104_v20 = vpop.permute.xlu1 %1210  ;;  %v1079_v35 = vld [vmem:[#allocation3 + $0x20] sm:$0xff] }
 0x27c   : > { %2486 = vpow2.f32 %v937_v49  ;;  %v1095_v26 = vmul.f32 %v3029_v32, %v1079_v35 }
 0x27d   : > { %2329 = vmatprep.mubr.bf16.mxu1 %v1290_v11  ;;  %2488 = vpow2.f32 %v941_v53  ;;  %v1084_v53 = vld [vmem:[#allocation3 + $0x48] sm:$0xff] }
 0x27e   : > { %v2471_v56 = vpop.eup %2470 }
 0x27f   : > { %1137 = vadd.xlane.f32.xlu1 %v2469_v63  ;;  %1135 = vadd.xlane.f32.xlu0 %v2471_v56  ;;  %v1291_v29 = vpack.c.bf16 %v2469_v63, %v2471_v56  ;;  %v2473_v44 = vpop.eup %2472  ;;  %v3256_v63 = vsub.f32 %v2977_v40, %v2994_v1  ;;  %v1672_v40 = vld [vmem:[%s2650_s14] sm:$0xf] }
 0x280   : > { %v3072_v30 = vpop.eup %2474  ;;  %v1097_v46 = vmul.f32 %v2473_v44, %v1081_v15  ;;  %2359 = vmatprep.subr.msk.bf16.mxu1 %vm1697_vm3, %v1672_v40  ;;  %v1699_v41 = vsel %vm1697_vm3, %v1672_v40, 0 }
 0x281   : > { %2330 = vmatmul.mubr.bf16.gmra.mrb[12].mxu1 %v1291_v29  ;;  %v3074_v37 = vpop.eup %2476  ;;  %v943_v56 = vmul.f32 1.442695, %v3256_v63  ;;  %v1175_v63 = vld [vmem:[#allocation4 + $0x18] sm:$0xff] }
 0x282   : > { %v3081_v55 = vpop.eup %2478  ;;  %2334 = vmatpush3.bf16.msra.mxu1 %v1699_v41 }
 0x283   : > { %1133 = vadd.xlane.f32.xlu1 %v2465_v36  ;;  %1131 = vadd.xlane.f32.xlu0 %v2467_v18  ;;  %v2481_v58 = vpop.eup %2480  ;;  %v1082_v36 = vld [vmem:[#allocation3 + $0x38] sm:$0xff]  ;;  %v3255_v18 = vsub.f32 %v2962_v16, %v2975_v34  ;;  %v1096_v16 = vmul.f32 %v3074_v37, %v1080_v51  ;;  %v1101_v47 = vmul.f32 %v3081_v55, %v1085_v39 }
 0x284   : > { %v3084_v54 = vpop.eup %2482  ;;  %v1098_v48 = vmul.f32 %v2481_v58, %v1082_v36  ;;  %v1271_v51 = vmul.f32 %v3102_v14, %v1175_v63  ;;  %v1178_v14 = vld [vmem:[#allocation4 + $0x30] sm:$0xff] }
 0x285   : > { %v3086_v60 = vpop.eup %2484  ;;  %v945_v11 = vmul.f32 1.442695, %v3255_v18  ;;  %v1174_v18 = vld [vmem:[#allocation4 + $0x10] sm:$0xff] }
 0x286   : > { %v3090_v0 = vpop.eup %2486 }
 0x287   : > { %v3093_v2 = vpop.eup %2488  ;;  %2490 = vpow2.f32 %v945_v11  ;;  %v1172_v11 = vld [vmem:[#allocation4] sm:$0xff] }
 0x288   : > { %2492 = vpow2.f32 %v943_v56  ;;  %v1173_v56 = vld [vmem:[#allocation4 + $0x8] sm:$0xff] }
 0x294   : > { %1220 = vperm.xlu1 %2405, %v2473_v44   ;;  %v1102_v44 = vmul.f32 %v3090_v0, %v1086_v25 }
 0x298   : > { %1230 = vperm.xlu1 %2405, %v3072_v30  }
 0x299   : > { %1215 = vperm.xlu0 %2404, %v3074_v37  }
 0x29c   : > { %1240 = vperm.xlu1 %2405, %v3081_v55  }
 0x29d   : > { %1225 = vperm.xlu0 %2404, %v2481_v58   ;;  %v1083_v58 = vld [vmem:[#allocation3 + $0x40] sm:$0xff] }
 0x2a0   : > { %1250 = vperm.xlu1 %2405, %v3084_v54  }
 0x2a1   : > { %1235 = vperm.xlu0 %2404, %v3086_v60  }
 0x2a5   : > { %1245 = vperm.xlu0 %2404, %v3090_v0  }
 0x2a9   : > { %1255 = vperm.xlu0 %2404, %v3093_v2  }
 0x2e3   : > { %v1112_v45 = vpop.xlane.xlu0 %1111 }
 0x2e4   : > { %v1141_v61 = vadd.f32 %v1112_v45, %v1093_v43  ;;  %v1108_v22 = vpop.xlane.xlu1 %1107  ;;  %v2491_v43 = vpop.eup %2490  ;;  %v1100_v45 = vmul.f32 %v3086_v60, %v1084_v53  ;;  %v1088_v60 = vld [vmem:[#allocation3 + $0x68] sm:$0xff] }
 0x2e5   : > { %v1139_v59 = vadd.f32 %v1108_v22, %v1091_v5  ;;  %v1099_v5 = vmul.f32 %v3072_v30, %v1083_v58  ;;  %v2493_v0 = vpop.eup %2492  ;;  %v1090_v22 = vld [vmem:[#allocation3 + $0x78] sm:$0xff] }
 0x2e6   : > { %1158 = vst.msk [vmem:[#allocation3 + $0x10] sm:$0xff] %vm488_vm2, %v1141_v61 }
 0x2e7   : > { %1156 = vst.msk [vmem:[#allocation3] sm:$0xff] %vm488_vm2, %v1139_v59 }
 0x2e8   : > { %v1114_v6 = vpop.xlane.xlu1 %1113 }
 0x2e9   : > { %v1142_v12 = vadd.f32 %v1114_v6, %v1094_v50  ;;  %v1106_v6 = vmul.f32 %v2491_v43, %v1090_v22  ;;  %v1182_v22 = vld [vmem:[#allocation4 + $0x50] sm:$0xff] }
 0x2eb   : > { %1159 = vst.msk [vmem:[#allocation3 + $0x18] sm:$0xff] %vm488_vm2, %v1142_v12  ;;  %v1110_v28 = vpop.xlane.xlu0 %1109  ;;  %v1105_v12 = vmul.f32 %v2493_v0, %v1089_v27 }
 0x2ec   : > { %v1140_v23 = vadd.f32 %v1110_v28, %v1092_v17 }
 0x2ed   : > { %v1522_v62 = vld [vmem:[#allocation3 + $0x10] sm:$0xff] }
 0x2ee   : > { %1157 = vst.msk [vmem:[#allocation3 + $0x8] sm:$0xff] %vm488_vm2, %v1140_v23  ;;  %1548 = vperm.xlu1 %2405, %v1522_v62   ;;  %v1520_v52 = vld [vmem:[#allocation3] sm:$0xff] }
 0x2ef   : > { %v1087_v23 = vld [vmem:[#allocation3 + $0x60] sm:$0xff] }
 0x2f0   : > { %v1120_v33 = vpop.xlane.xlu0 %1119  ;;  %v1103_v35 = vmul.f32 %v3084_v54, %v1087_v23 }
 0x2f1   : > { %v1145_v10 = vadd.f32 %v1120_v33, %v1097_v46  ;;  %v1104_v33 = vmul.f32 %v3093_v2, %v1088_v60 }
 0x2f2   : > { %1538 = vperm.xlu1 %2405, %v1520_v52   ;;  %v1523_v24 = vld [vmem:[#allocation3 + $0x18] sm:$0xff] }
 0x2f3   : > { %1162 = vst.msk [vmem:[#allocation3 + $0x30] sm:$0xff] %vm488_vm2, %v1145_v10  ;;  %1553 = vperm.xlu0 %2404, %v1523_v24  }
 0x2f4   : > { %v1116_v8 = vpop.xlane.xlu0 %1115 }
 0x2f5   : > { %v1143_v21 = vadd.f32 %v1116_v8, %v1095_v26  ;;  %v1521_v4 = vld [vmem:[#allocation3 + $0x8] sm:$0xff] }
 0x2f7   : > { %1160 = vst.msk [vmem:[#allocation3 + $0x20] sm:$0xff] %vm488_vm2, %v1143_v21  ;;  %1543 = vperm.xlu0 %2404, %v1521_v4  }
 0x2fa   : > { %v1526_v29 = vld [vmem:[#allocation3 + $0x30] sm:$0xff] }
 0x2fb   : > { %1568 = vperm.xlu1 %2405, %v1526_v29   ;;  %v1270_v29 = vmul.f32 %v3100_v13, %v1174_v18 }
 0x2fc   : > { %v1122_v32 = vpop.xlane.xlu1 %1121 }
 0x2fd   : > { %v1146_v57 = vadd.f32 %v1122_v32, %v1098_v48  ;;  %v1268_v48 = vmul.f32 %v3098_v9, %v1172_v11 }
 0x2fe   : > { %v1524_v38 = vld [vmem:[#allocation3 + $0x20] sm:$0xff] }
 0x2ff   : > { %1163 = vst.msk [vmem:[#allocation3 + $0x38] sm:$0xff] %vm488_vm2, %v1146_v57  ;;  %1558 = vperm.xlu1 %2405, %v1524_v38  }
 0x300   : > { %v1118_v34 = vpop.xlane.xlu1 %1117 }
 0x301   : > { %v1144_v1 = vadd.f32 %v1118_v34, %v1096_v16  ;;  %v1269_v16 = vmul.f32 %v3096_v3, %v1173_v56  ;;  %v1179_v3 = vld [vmem:[#allocation4 + $0x38] sm:$0xff] }
 0x303   : > { %1161 = vst.msk [vmem:[#allocation3 + $0x28] sm:$0xff] %vm488_vm2, %v1144_v1 }
 0x304   : > { %v1130_v49 = vpop.xlane.xlu1 %1129  ;;  %v1128_v42 = vpop.xlane.xlu0 %1127 }
 0x305   : > { %v1150_v37 = vadd.f32 %v1130_v49, %v1102_v44  ;;  %v1149_v19 = vadd.f32 %v1128_v42, %v1101_v47  ;;  %v1176_v44 = vld [vmem:[#allocation4 + $0x20] sm:$0xff]  ;;  %v1177_v42 = vld [vmem:[#allocation4 + $0x28] sm:$0xff] }
 0x306   : > { %v1527_v31 = vld [vmem:[#allocation3 + $0x38] sm:$0xff]  ;;  %v1272_v53 = vmul.f32 %v3104_v20, %v1176_v44 }
 0x307   : > { %1167 = vst.msk [vmem:[#allocation3 + $0x58] sm:$0xff] %vm488_vm2, %v1150_v37  ;;  %1166 = vst.msk [vmem:[#allocation3 + $0x50] sm:$0xff] %vm488_vm2, %v1149_v19  ;;  %1573 = vperm.xlu0 %2404, %v1527_v31   ;;  %v1183_v20 = vld [vmem:[#allocation4 + $0x58] sm:$0xff] }
 0x308   : > { %v1126_v61 = vpop.xlane.xlu1 %1125  ;;  %v1124_v55 = vpop.xlane.xlu0 %1123 }
 0x309   : > { %v1148_v59 = vadd.f32 %v1126_v61, %v1100_v45  ;;  %v1147_v50 = vadd.f32 %v1124_v55, %v1099_v5 }
 0x30a   : > { %v1525_v7 = vld [vmem:[#allocation3 + $0x28] sm:$0xff] }
 0x30b   : > { %1165 = vst.msk [vmem:[#allocation3 + $0x48] sm:$0xff] %vm488_vm2, %v1148_v59  ;;  %1164 = vst.msk [vmem:[#allocation3 + $0x40] sm:$0xff] %vm488_vm2, %v1147_v50  ;;  %1563 = vperm.xlu0 %2404, %v1525_v7   ;;  %v1180_v50 = vld [vmem:[#allocation4 + $0x40] sm:$0xff] }
 0x30c   : > { %v1138_v17 = vpop.xlane.xlu1 %1137  ;;  %v1136_v28 = vpop.xlane.xlu0 %1135 }
 0x30d   : > { %v1154_v30 = vadd.f32 %v1138_v17, %v1106_v6  ;;  %v1153_v15 = vadd.f32 %v1136_v28, %v1105_v12  ;;  %v1181_v12 = vld [vmem:[#allocation4 + $0x48] sm:$0xff] }
 0x30e   : > { %v1531_v62 = vld [vmem:[#allocation3 + $0x58] sm:$0xff]  ;;  %v1530_v46 = vld [vmem:[#allocation3 + $0x50] sm:$0xff] }
 0x30f   : > { %1171 = vst.msk [vmem:[#allocation3 + $0x78] sm:$0xff] %vm488_vm2, %v1154_v30  ;;  %1170 = vst.msk [vmem:[#allocation3 + $0x70] sm:$0xff] %vm488_vm2, %v1153_v15  ;;  %1593 = vperm.xlu0 %2404, %v1531_v62   ;;  %1588 = vperm.xlu1 %2405, %v1530_v46  }
 0x310   : > { %v1134_v10 = vpop.xlane.xlu1 %1133  ;;  %v1132_v52 = vpop.xlane.xlu0 %1131 }
 0x311   : > { %v1152_v24 = vadd.f32 %v1134_v10, %v1104_v33  ;;  %v1151_v26 = vadd.f32 %v1132_v52, %v1103_v35  ;;  %v1184_v52 = vld [vmem:[#allocation4 + $0x60] sm:$0xff] }
 0x312   : > { %v1529_v8 = vld [vmem:[#allocation3 + $0x48] sm:$0xff]  ;;  %v1528_v21 = vld [vmem:[#allocation3 + $0x40] sm:$0xff] }
 0x313   : > { %1169 = vst.msk [vmem:[#allocation3 + $0x68] sm:$0xff] %vm488_vm2, %v1152_v24  ;;  %1168 = vst.msk [vmem:[#allocation3 + $0x60] sm:$0xff] %vm488_vm2, %v1151_v26  ;;  %1583 = vperm.xlu0 %2404, %v1529_v8   ;;  %1578 = vperm.xlu1 %2405, %v1528_v21   ;;  %v1185_v26 = vld [vmem:[#allocation4 + $0x68] sm:$0xff] }
 0x314   : > { %v1221_v9 = vpop.permute.xlu1 %1220 }
 0x315   : > { %v1274_v49 = vmul.f32 %v1221_v9, %v1178_v14 }
 0x316   : > { %v1535_v2 = vld [vmem:[#allocation3 + $0x78] sm:$0xff]  ;;  %v1534_v54 = vld [vmem:[#allocation3 + $0x70] sm:$0xff] }
 0x317   : > { %1265 = vperm.xlu0 %2404, %v2491_v43   ;;  %1260 = vperm.xlu1 %2405, %v2493_v0  }
 0x318   : > { %v1216_v1 = vpop.permute.xlu0 %1215  ;;  %v1231_v47 = vpop.permute.xlu1 %1230 }
 0x319   : > { %v1273_v45 = vmul.f32 %v1216_v1, %v1177_v42  ;;  %v1276_v17 = vmul.f32 %v1231_v47, %v1180_v50 }
 0x31a   : > { %v1533_v4 = vld [vmem:[#allocation3 + $0x68] sm:$0xff]  ;;  %v1532_v36 = vld [vmem:[#allocation3 + $0x60] sm:$0xff] }
 0x31b   : > { %1603 = vperm.xlu0 %2404, %v1533_v4   ;;  %1598 = vperm.xlu1 %2405, %v1532_v36  }
 0x31c   : > { %v1226_v13 = vpop.permute.xlu0 %1225  ;;  %v1241_v27 = vpop.permute.xlu1 %1240 }
 0x31d   : > { %v1275_v19 = vmul.f32 %v1226_v13, %v1179_v3  ;;  %v1278_v6 = vmul.f32 %v1241_v27, %v1182_v22 }
 0x31f   : > { %1613 = vperm.xlu0 %2404, %v1535_v2   ;;  %1608 = vperm.xlu1 %2405, %v1534_v54  }
 0x320   : > { %v1236_v58 = vpop.permute.xlu0 %1235  ;;  %v1251_v24 = vpop.permute.xlu1 %1250 }
 0x321   : > { %v1277_v15 = vmul.f32 %v1236_v58, %v1181_v12  ;;  %v1280_v21 = vmul.f32 %v1251_v24, %v1184_v52 }
 0x324   : > { %v1246_v7 = vpop.permute.xlu0 %1245 }
 0x325   : > { %v1279_v60 = vmul.f32 %v1246_v7, %v1183_v20 }
 0x328   : > { %v1256_v8 = vpop.permute.xlu0 %1255 }
 0x329   : > { %v1281_v2 = vmul.f32 %v1256_v8, %v1185_v26 }
 0x334   : > { %v2319_v32 = vpop.f32.mrb[0].mxu1 }
 0x335   : > { %v1455_v57 = vadd.f32 %v2319_v32, %v1270_v29  ;;  %v1390_v38 = vpop.f32.mrb[1].mxu1 }
 0x336   : > { %v1453_v34 = vadd.f32 %v1390_v38, %v1268_v48  ;;  %v2320_v25 = vpop.f32.mrb[2].mxu1 }
 0x337   : > { %1471 = vst.msk [vmem:[#allocation4 + $0x10] sm:$0xff] %vm521_vm1, %v1455_v57  ;;  %v1456_v39 = vadd.f32 %v2320_v25, %v1271_v51  ;;  %v1393_v40 = vpop.f32.mrb[3].mxu1 }
 0x338   : > { %1469 = vst.msk [vmem:[#allocation4] sm:$0xff] %vm521_vm1, %v1453_v34  ;;  %v1454_v41 = vadd.f32 %v1393_v40, %v1269_v16 }
 0x339   : > { %1472 = vst.msk [vmem:[#allocation4 + $0x18] sm:$0xff] %vm521_vm1, %v1456_v39 }
 0x33a   : > { %1470 = vst.msk [vmem:[#allocation4 + $0x8] sm:$0xff] %vm521_vm1, %v1454_v41 }
 0x33e   : > { %v1506_v41 = vld [vmem:[#allocation4 + $0x10] sm:$0xff] }
 0x33f   : > { %v1504_v40 = vld [vmem:[#allocation4] sm:$0xff] }
 0x340   : > { %v1507_v16 = vld [vmem:[#allocation4 + $0x18] sm:$0xff] }
 0x341   : > { %v1505_v1 = vld [vmem:[#allocation4 + $0x8] sm:$0xff] }
 0x344   : > { %v2323_v37 = vpop.f32.mrb[4].mxu1 }
 0x345   : > { %v1459_v31 = vadd.f32 %v2323_v37, %v1274_v49  ;;  %v1406_v43 = vpop.f32.mrb[5].mxu1 }
 0x346   : > { %v1457_v5 = vadd.f32 %v1406_v43, %v1272_v53  ;;  %v2324_v0 = vpop.f32.mrb[6].mxu1 }
 0x347   : > { %1475 = vst.msk [vmem:[#allocation4 + $0x30] sm:$0xff] %vm521_vm1, %v1459_v31  ;;  %v1460_v61 = vadd.f32 %v2324_v0, %v1275_v19  ;;  %v1409_v55 = vpop.f32.mrb[7].mxu1  ;;  %v1186_v0 = vld [vmem:[#allocation4 + $0x70] sm:$0xff] }
 0x348   : > { %1473 = vst.msk [vmem:[#allocation4 + $0x20] sm:$0xff] %vm521_vm1, %v1457_v5  ;;  %v1458_v59 = vadd.f32 %v1409_v55, %v1273_v45  ;;  %v1187_v5 = vld [vmem:[#allocation4 + $0x78] sm:$0xff] }
 0x349   : > { %1476 = vst.msk [vmem:[#allocation4 + $0x38] sm:$0xff] %vm521_vm1, %v1460_v61 }
 0x34a   : > { %1474 = vst.msk [vmem:[#allocation4 + $0x28] sm:$0xff] %vm521_vm1, %v1458_v59 }
 0x34c   : > { %v2327_v28 = vpop.f32.mrb[8].mxu1 }
 0x34d   : > { %v1463_v23 = vadd.f32 %v2327_v28, %v1278_v6  ;;  %v1422_v30 = vpop.f32.mrb[9].mxu1 }
 0x34e   : > { %v1461_v62 = vadd.f32 %v1422_v30, %v1276_v17  ;;  %v2328_v46 = vpop.f32.mrb[10].mxu1  ;;  %v1510_v12 = vld [vmem:[#allocation4 + $0x30] sm:$0xff] }
 0x34f   : > { %1479 = vst.msk [vmem:[#allocation4 + $0x50] sm:$0xff] %vm521_vm1, %v1463_v23  ;;  %v1464_v33 = vadd.f32 %v2328_v46, %v1279_v60  ;;  %v1425_v35 = vpop.f32.mrb[11].mxu1  ;;  %v1508_v22 = vld [vmem:[#allocation4 + $0x20] sm:$0xff] }
 0x350   : > { %1477 = vst.msk [vmem:[#allocation4 + $0x40] sm:$0xff] %vm521_vm1, %v1461_v62  ;;  %v1462_v10 = vadd.f32 %v1425_v35, %v1277_v15  ;;  %v1511_v61 = vld [vmem:[#allocation4 + $0x38] sm:$0xff] }
 0x351   : > { %1480 = vst.msk [vmem:[#allocation4 + $0x58] sm:$0xff] %vm521_vm1, %v1464_v33  ;;  %v1509_v27 = vld [vmem:[#allocation4 + $0x28] sm:$0xff] }
 0x352   : > { %1478 = vst.msk [vmem:[#allocation4 + $0x48] sm:$0xff] %vm521_vm1, %v1462_v10 }
 0x354   : > { %v3158_v4 = vpop.f32.mrb[12].mxu1 }
 0x355   : > { %v1438_v36 = vpop.f32.mrb[13].mxu1 }
 0x356   : > { %v1465_v54 = vadd.f32 %v1438_v36, %v1280_v21  ;;  %v3160_v18 = vpop.f32.mrb[14].mxu1  ;;  %v1514_v26 = vld [vmem:[#allocation4 + $0x50] sm:$0xff] }
 0x357   : > { %v1441_v11 = vpop.f32.mrb[15].mxu1 }
 0x358   : > { %1481 = vst.msk [vmem:[#allocation4 + $0x60] sm:$0xff] %vm521_vm1, %v1465_v54  ;;  %v1466_v63 = vadd.f32 %v1441_v11, %v1281_v2  ;;  %v1515_v8 = vld [vmem:[#allocation4 + $0x58] sm:$0xff]  ;;  %v1512_v2 = vld [vmem:[#allocation4 + $0x40] sm:$0xff] }
 0x359   : > { %v1513_v24 = vld [vmem:[#allocation4 + $0x48] sm:$0xff] }
 0x35a   : > { %1482 = vst.msk [vmem:[#allocation4 + $0x68] sm:$0xff] %vm521_vm1, %v1466_v63 }
 0x36d   : > { %v1549_v56 = vpop.permute.xlu1 %1548 }
 0x371   : > { %v1539_v29 = vpop.permute.xlu1 %1538 }
 0x372   : > { %v1554_v48 = vpop.permute.xlu0 %1553 }
 0x373   : > { %2494 = vrcp.f32 %v1554_v48 }
 0x374   : > { %2496 = vrcp.f32 %v1539_v29 }
 0x375   : > { %2498 = vrcp.f32 %v1549_v56 }
 0x376   : > { %v1544_v32 = vpop.permute.xlu0 %1543 }
 0x377   : > { %2500 = vrcp.f32 %v1544_v32  ;;  %v1517_v32 = vld [vmem:[#allocation4 + $0x68] sm:$0xff] }
 0x37a   : > { %v1569_v34 = vpop.permute.xlu1 %1568 }
 0x37d   : > { %v2495_v51 = vpop.eup %2494 }
 0x37e   : > { %v2497_v57 = vpop.eup %2496  ;;  %v1623_v39 = vmul.f32 %v2495_v51, %v1507_v16  ;;  %v1559_v3 = vpop.permute.xlu1 %1558 }
 0x37f   : > { %v2499_v38 = vpop.eup %2498  ;;  %v1617_v9 = vmul.f32 %v2497_v57, %v1504_v40  ;;  %v1516_v57 = vld [vmem:[#allocation4 + $0x60] sm:$0xff] }
 0x380   : > { %v1621_v14 = vmul.f32 %v2499_v38, %v1506_v41 }
 0x381   : > { %v2501_v25 = vpop.eup %2500 }
 0x382   : > { %v1619_v13 = vmul.f32 %v2501_v25, %v1505_v1  ;;  %v1665_v47 = vpack.c.bf16 %v1623_v39, %v1621_v14  ;;  %v1650_v14 = vld [vmem:[#allocation5 + $0x10] sm:$0xff] }
 0x384   : > { %v1664_v44 = vpack.c.bf16 %v1619_v13, %v1617_v9 }
 0x386   : > { %v1574_v49 = vpop.permute.xlu0 %1573  ;;  %2335 = vmatprep.mubr.msk.bf16.mxu1 %vm521_vm1, %v1664_v44  ;;  %v1648_v44 = vld [vmem:[#allocation5] sm:$0xff] }
 0x387   : > { %2336 = vmatmul.mubr.msk.bf16.vlgmr.msra.gmra.mrb[16].mxu1 %vm521_vm1, %v1665_v47  ;;  %2502 = vrcp.f32 %v1574_v49 }
 0x388   : > { %2504 = vrcp.f32 %v1559_v3  ;;  %v1651_v3 = vld [vmem:[#allocation5 + $0x18] sm:$0xff] }
 0x389   : > { %2506 = vrcp.f32 %v1569_v34 }
 0x38a   : > { %v1564_v42 = vpop.permute.xlu0 %1563 }
 0x38b   : > { %2508 = vrcp.f32 %v1564_v42 }
 0x38e   : > { %v1594_v53 = vpop.permute.xlu0 %1593  ;;  %v1589_v58 = vpop.permute.xlu1 %1588 }
 0x38f   : > { %2510 = vrcp.f32 %v1594_v53  ;;  %v1649_v53 = vld [vmem:[#allocation5 + $0x8] sm:$0xff] }
 0x390   : > { %2512 = vrcp.f32 %v1589_v58 }
 0x391   : > { %v2503_v37 = vpop.eup %2502 }
 0x392   : > { %v1584_v19 = vpop.permute.xlu0 %1583  ;;  %v1579_v31 = vpop.permute.xlu1 %1578  ;;  %v1631_v59 = vmul.f32 %v2503_v37, %v1511_v61  ;;  %v1655_v61 = vld [vmem:[#allocation5 + $0x38] sm:$0xff] }
 0x393   : > { %v2505_v43 = vpop.eup %2504  ;;  %2514 = vrcp.f32 %v1584_v19 }
 0x394   : > { %v2507_v45 = vpop.eup %2506  ;;  %2516 = vrcp.f32 %v1579_v31  ;;  %v1625_v7 = vmul.f32 %v2505_v43, %v1508_v22 }
 0x395   : > { %v2509_v55 = vpop.eup %2508  ;;  %v1629_v60 = vmul.f32 %v2507_v45, %v1510_v12  ;;  %v1654_v45 = vld [vmem:[#allocation5 + $0x30] sm:$0xff] }
 0x396   : > { %v1266_v50 = vpop.permute.xlu0 %1265  ;;  %v1261_v20 = vpop.permute.xlu1 %1260  ;;  %v1627_v6 = vmul.f32 %v2509_v55, %v1509_v27  ;;  %v1653_v27 = vld [vmem:[#allocation5 + $0x28] sm:$0xff]  ;;  %v1658_v12 = vld [vmem:[#allocation5 + $0x50] sm:$0xff] }
 0x397   : > { %v1283_v17 = vmul.f32 %v1266_v50, %v1187_v5  ;;  %v1282_v28 = vmul.f32 %v1261_v20, %v1186_v0  ;;  %v1667_v62 = vpack.c.bf16 %v1631_v59, %v1629_v60  ;;  %v1652_v5 = vld [vmem:[#allocation5 + $0x20] sm:$0xff]  ;;  %v1659_v60 = vld [vmem:[#allocation5 + $0x58] sm:$0xff] }
 0x398   : > { %v1666_v23 = vpack.c.bf16 %v1627_v6, %v1625_v7 }
 0x399   : > { %v1468_v30 = vadd.f32 %v3160_v18, %v1283_v17  ;;  %v1467_v15 = vadd.f32 %v3158_v4, %v1282_v28  ;;  %v2511_v46 = vpop.eup %2510  ;;  %v1656_v17 = vld [vmem:[#allocation5 + $0x40] sm:$0xff] }
 0x39a   : > { %v1604_v33 = vpop.permute.xlu0 %1603  ;;  %2339 = vmatprep.mubr.msk.bf16.mxu1 %vm521_vm1, %v1666_v23  ;;  %v1599_v35 = vpop.permute.xlu1 %1598  ;;  %v1639_v11 = vmul.f32 %v2511_v46, %v1515_v8  ;;  %v1663_v8 = vld [vmem:[#allocation5 + $0x78] sm:$0xff] }
 0x39b   : > { %v2513_v10 = vpop.eup %2512  ;;  %1484 = vst.msk [vmem:[#allocation4 + $0x78] sm:$0xff] %vm521_vm1, %v1468_v30  ;;  %1483 = vst.msk [vmem:[#allocation4 + $0x70] sm:$0xff] %vm521_vm1, %v1467_v15  ;;  %2518 = vrcp.f32 %v1604_v33  ;;  %2340 = vmatmul.mubr.msk.bf16.gmra.mrb[20].mxu1 %vm521_vm1, %v1667_v62  ;;  %v1657_v15 = vld [vmem:[#allocation5 + $0x48] sm:$0xff] }
 0x39c   : > { %2520 = vrcp.f32 %v1599_v35  ;;  %v1637_v18 = vmul.f32 %v2513_v10, %v1514_v26 }
 0x39d   : > { %v2515_v52 = vpop.eup %2514 }
 0x39e   : > { %v2517_v21 = vpop.eup %2516  ;;  %v1614_v4 = vpop.permute.xlu0 %1613  ;;  %v1635_v54 = vmul.f32 %v2515_v52, %v1513_v24  ;;  %v1669_v29 = vpack.c.bf16 %v1639_v11, %v1637_v18  ;;  %v1662_v52 = vld [vmem:[#allocation5 + $0x70] sm:$0xff]  ;;  %v1660_v24 = vld [vmem:[#allocation5 + $0x60] sm:$0xff] }
 0x39f   : > { %v1609_v36 = vpop.permute.xlu1 %1608  ;;  %2522 = vrcp.f32 %v1614_v4  ;;  %v1633_v63 = vmul.f32 %v2517_v21, %v1512_v2 }
 0x3a0   : > { %2524 = vrcp.f32 %v1609_v36  ;;  %v1661_v36 = vld [vmem:[#allocation5 + $0x68] sm:$0xff] }
 0x3a1   : > { %v1668_v56 = vpack.c.bf16 %v1635_v54, %v1633_v63 }
 0x3a2   : > { %v1519_v39 = vld [vmem:[#allocation4 + $0x78] sm:$0xff]  ;;  %v1518_v1 = vld [vmem:[#allocation4 + $0x70] sm:$0xff] }
 0x3a3   : > { %2343 = vmatprep.mubr.msk.bf16.mxu1 %vm521_vm1, %v1668_v56 }
 0x3a4   : > { %2344 = vmatmul.mubr.msk.bf16.gmra.mrb[24].mxu1 %vm521_vm1, %v1669_v29  ;;  %v2190_v29 = vld [vmem:[%s3250_s5] ss:$0 sm:$0xff] (%p1831_p8) }
 0x3a5   : > { %v2519_v48 = vpop.eup %2518 }
 0x3a6   : > { %v2521_v51 = vpop.eup %2520  ;;  %v1643_v38 = vmul.f32 %v2519_v48, %v1517_v32 }
 0x3a7   : > { %v1641_v16 = vmul.f32 %v2521_v51, %v1516_v57 }
 0x3a9   : > { %v2523_v34 = vpop.eup %2522  ;;  %v1670_v25 = vpack.c.bf16 %v1643_v38, %v1641_v16 }
 0x3aa   : > { %v2525_v40 = vpop.eup %2524  ;;  %v1647_v41 = vmul.f32 %v2523_v34, %v1519_v39 }
 0x3ab   : > { %2347 = vmatprep.mubr.msk.bf16.mxu1 %vm521_vm1, %v1670_v25  ;;  %v1645_v9 = vmul.f32 %v2525_v40, %v1518_v1 }
 0x3ad   : > { %v1671_v13 = vpack.c.bf16 %v1647_v41, %v1645_v9 }
 0x3af   : > { %2348 = vmatmul.mubr.msk.bf16.gmra.mrb[28].mxu1 %vm521_vm1, %v1671_v13 }
 0x45a   : > { %v2337_v47 = vpop.f32.mrb[16].mxu1 }
 0x45b   : > { %v1800_v49 = vadd.f32 %v2337_v47, %v1650_v14  ;;  %v1735_v42 = vpop.f32.mrb[17].mxu1 }
 0x45c   : > { %v1798_v58 = vadd.f32 %v1735_v42, %v1648_v44  ;;  %v2338_v37 = vpop.f32.mrb[18].mxu1 }
 0x45d   : > { %1817 = vst.msk [vmem:[#allocation5 + $0x10] sm:$0xff] %vm1814_vm4, %v1800_v49  ;;  %v1801_v19 = vadd.f32 %v2338_v37, %v1651_v3  ;;  %v1738_v31 = vpop.f32.mrb[19].mxu1 }
 0x45e   : > { %1815 = vst.msk [vmem:[#allocation5] sm:$0xff] %vm1814_vm4, %v1798_v58  ;;  %v1799_v43 = vadd.f32 %v1738_v31, %v1649_v53 }
 0x45f   : > { %1818 = vst.msk [vmem:[#allocation5 + $0x18] sm:$0xff] %vm1814_vm4, %v1801_v19 }
 0x460   : > { %1816 = vst.msk [vmem:[#allocation5 + $0x8] sm:$0xff] %vm1814_vm4, %v1799_v43 }
 0x464   : > { %v1838_v57 = vld [vmem:[#allocation5 + $0x10] sm:$0xff] (%p1831_p8) }
 0x465   : > { %v1836_v56 = vld [vmem:[#allocation5] sm:$0xff] (%p1831_p8)  ;;  %v1861_v34 = vadd.f32 (%p1831_p8), %v2190_v29, %v1838_v57 }
 0x466   : > { %v1859_v32 = vadd.f32 (%p1831_p8), %v2190_v29, %v1836_v56  ;;  %v1839_v38 = vld [vmem:[#allocation5 + $0x18] sm:$0xff] (%p1831_p8) }
 0x467   : > { %v1837_v48 = vld [vmem:[#allocation5 + $0x8] sm:$0xff] (%p1831_p8)  ;;  %v1862_v25 = vadd.f32 (%p1831_p8), %v2190_v29, %v1839_v38  ;;  %v2214_v42 = vpack.c.bf16 (%p1831_p8), %v1861_v34, %v1861_v34 }
 0x468   : > { %v1860_v51 = vadd.f32 (%p1831_p8), %v2190_v29, %v1837_v48  ;;  %v2212_v9 = vpack.c.bf16 (%p1831_p8), %v1859_v32, %v1859_v32 }
 0x469   : > { %v2215_v53 = vpack.c.bf16 (%p1831_p8), %v1862_v25, %v1862_v25  ;;  %1942 = vst.msk [vmem:[%s2655_s18 + $0x8] sm:$0xf] (%p1831_p8), %vm1939_vm5, %v2214_v42 }
 0x46a   : > { %v2213_v13 = vpack.c.bf16 (%p1831_p8), %v1860_v51, %v1860_v51  ;;  %1940 = vst.msk [vmem:[%s2655_s18] sm:$0xf] (%p1831_p8), %vm1939_vm5, %v2212_v9 }
 0x46b   : > { %1943 = vst.msk [vmem:[%s2655_s18 + $0xc] sm:$0xf] (%p1831_p8), %vm1939_vm5, %v2215_v53 }
 0x46c   : > { %1941 = vst.msk [vmem:[%s2655_s18 + $0x4] sm:$0xf] (%p1831_p8), %vm1939_vm5, %v2213_v13 }
 0x46e   : > { %v2341_v0 = vpop.f32.mrb[20].mxu1 }
 0x46f   : > { %v1804_v55 = vadd.f32 %v2341_v0, %v1654_v45  ;;  %v1751_v22 = vpop.f32.mrb[21].mxu1 }
 0x470   : > { %v1802_v59 = vadd.f32 %v1751_v22, %v1652_v5  ;;  %v2342_v50 = vpop.f32.mrb[22].mxu1 }
 0x471   : > { %1821 = vst.msk [vmem:[#allocation5 + $0x30] sm:$0xff] %vm1814_vm4, %v1804_v55  ;;  %v1805_v20 = vadd.f32 %v2342_v50, %v1655_v61  ;;  %v1754_v7 = vpop.f32.mrb[23].mxu1 }
 0x472   : > { %1819 = vst.msk [vmem:[#allocation5 + $0x20] sm:$0xff] %vm1814_vm4, %v1802_v59  ;;  %v1803_v6 = vadd.f32 %v1754_v7, %v1653_v27 }
 0x473   : > { %1822 = vst.msk [vmem:[#allocation5 + $0x38] sm:$0xff] %vm1814_vm4, %v1805_v20 }
 0x474   : > { %1820 = vst.msk [vmem:[#allocation5 + $0x28] sm:$0xff] %vm1814_vm4, %v1803_v6 }
 0x477   : > { %v2345_v28 = vpop.f32.mrb[24].mxu1 }
 0x478   : > { %v1808_v23 = vadd.f32 %v2345_v28, %v1658_v12  ;;  %v1767_v30 = vpop.f32.mrb[25].mxu1  ;;  %v1842_v1 = vld [vmem:[#allocation5 + $0x30] sm:$0xff] (%p1831_p8) }
 0x479   : > { %v1806_v62 = vadd.f32 %v1767_v30, %v1656_v17  ;;  %v2346_v46 = vpop.f32.mrb[26].mxu1  ;;  %v1840_v16 = vld [vmem:[#allocation5 + $0x20] sm:$0xff] (%p1831_p8)  ;;  %v1865_v44 = vadd.f32 (%p1831_p8), %v2190_v29, %v1842_v1 }
 0x47a   : > { %1825 = vst.msk [vmem:[#allocation5 + $0x50] sm:$0xff] %vm1814_vm4, %v1808_v23  ;;  %v1809_v33 = vadd.f32 %v2346_v46, %v1659_v60  ;;  %v1770_v35 = vpop.f32.mrb[27].mxu1  ;;  %v1863_v39 = vadd.f32 (%p1831_p8), %v2190_v29, %v1840_v16  ;;  %v1843_v41 = vld [vmem:[#allocation5 + $0x38] sm:$0xff] (%p1831_p8) }
 0x47b   : > { %1823 = vst.msk [vmem:[#allocation5 + $0x40] sm:$0xff] %vm1814_vm4, %v1806_v62  ;;  %v1807_v10 = vadd.f32 %v1770_v35, %v1657_v15  ;;  %v1841_v40 = vld [vmem:[#allocation5 + $0x28] sm:$0xff] (%p1831_p8)  ;;  %v1866_v37 = vadd.f32 (%p1831_p8), %v2190_v29, %v1843_v41  ;;  %v2218_v5 = vpack.c.bf16 (%p1831_p8), %v1865_v44, %v1865_v44 }
 0x47c   : > { %1826 = vst.msk [vmem:[#allocation5 + $0x58] sm:$0xff] %vm1814_vm4, %v1809_v33  ;;  %v1864_v14 = vadd.f32 (%p1831_p8), %v2190_v29, %v1841_v40  ;;  %v2216_v58 = vpack.c.bf16 (%p1831_p8), %v1863_v39, %v1863_v39 }
 0x47d   : > { %1824 = vst.msk [vmem:[#allocation5 + $0x48] sm:$0xff] %vm1814_vm4, %v1807_v10  ;;  %v2219_v27 = vpack.c.bf16 (%p1831_p8), %v1866_v37, %v1866_v37 }
 0x47e   : > { %v2217_v45 = vpack.c.bf16 (%p1831_p8), %v1864_v14, %v1864_v14  ;;  %1944 = vst.msk [vmem:[%s2655_s18 + $0x10] sm:$0xf] (%p1831_p8), %vm1939_vm5, %v2216_v58  ;;  %1946 = vst.msk [vmem:[%s2655_s18 + $0x18] sm:$0xf] (%p1831_p8), %vm1939_vm5, %v2218_v5 }
 0x47f   : > { %1947 = vst.msk [vmem:[%s2655_s18 + $0x1c] sm:$0xf] (%p1831_p8), %vm1939_vm5, %v2219_v27 }
 0x480   : > { %1945 = vst.msk [vmem:[%s2655_s18 + $0x14] sm:$0xf] (%p1831_p8), %vm1939_vm5, %v2217_v45 }
 0x481   : > { %v1846_v49 = vld [vmem:[#allocation5 + $0x50] sm:$0xff] (%p1831_p8) }
 0x482   : > { %v2349_v26 = vpop.f32.mrb[28].mxu1  ;;  %1835 = sbr.rel (!%p1831_p8) target bundleno = 1173 (0x495), region = 60  ;;  %v1844_v47 = vld [vmem:[#allocation5 + $0x40] sm:$0xff] (%p1831_p8)  ;;  %v1869_v59 = vadd.f32 (%p1831_p8), %v2190_v29, %v1846_v49 }
 0x483   : > { %v1812_v21 = vadd.f32 %v2349_v26, %v1662_v52  ;;  %v1783_v4 = vpop.f32.mrb[29].mxu1  ;;  %v1847_v19 = vld [vmem:[#allocation5 + $0x58] sm:$0xff] (%p1831_p8)  ;;  %v1867_v0 = vadd.f32 (%p1831_p8), %v2190_v29, %v1844_v47 }
 0x484   : > { %v1810_v2 = vadd.f32 %v1783_v4, %v1660_v24  ;;  %v2350_v54 = vpop.f32.mrb[30].mxu1  ;;  %v1845_v3 = vld [vmem:[#allocation5 + $0x48] sm:$0xff] (%p1831_p8)  ;;  %v1870_v50 = vadd.f32 (%p1831_p8), %v2190_v29, %v1847_v19  ;;  %v2222_v28 = vpack.c.bf16 (%p1831_p8), %v1869_v59, %v1869_v59 }
 0x485   : > { %1829 = vst.msk [vmem:[#allocation5 + $0x70] sm:$0xff] %vm1814_vm4, %v1812_v21  ;;  %v1813_v18 = vadd.f32 %v2350_v54, %v1663_v8  ;;  %v1786_v11 = vpop.f32.mrb[31].mxu1  ;;  %v1868_v61 = vadd.f32 (%p1831_p8), %v2190_v29, %v1845_v3  ;;  %v2220_v7 = vpack.c.bf16 (%p1831_p8), %v1867_v0, %v1867_v0 }
 0x486   : > { %1827 = vst.msk [vmem:[#allocation5 + $0x60] sm:$0xff] %vm1814_vm4, %v1810_v2  ;;  %v1811_v63 = vadd.f32 %v1786_v11, %v1661_v36  ;;  %v2223_v60 = vpack.c.bf16 (%p1831_p8), %v1870_v50, %v1870_v50 }
 0x487   : > { %1830 = vst.msk [vmem:[#allocation5 + $0x78] sm:$0xff] %vm1814_vm4, %v1813_v18  ;;  %v2221_v6 = vpack.c.bf16 (%p1831_p8), %v1868_v61, %v1868_v61 }
 0x488   : > { %1828 = vst.msk [vmem:[#allocation5 + $0x68] sm:$0xff] %vm1814_vm4, %v1811_v63 }
 0x489   : > { %1948 = vst.msk [vmem:[%s2655_s18 + $0x20] sm:$0xf] %vm1939_vm5, %v2220_v7  ;;  %1949 = vst.msk [vmem:[%s2655_s18 + $0x24] sm:$0xf] %vm1939_vm5, %v2221_v6 }
 0x48a   : > { %1950 = vst.msk [vmem:[%s2655_s18 + $0x28] sm:$0xf] %vm1939_vm5, %v2222_v28  ;;  %1951 = vst.msk [vmem:[%s2655_s18 + $0x2c] sm:$0xf] %vm1939_vm5, %v2223_v60 }
 0x48c   : > { %v1850_v55 = vld [vmem:[#allocation5 + $0x70] sm:$0xff] }
 0x48d   : > { %v1848_v31 = vld [vmem:[#allocation5 + $0x60] sm:$0xff]  ;;  %v1873_v17 = vadd.f32 %v2190_v29, %v1850_v55 }
 0x48e   : > { %v1851_v22 = vld [vmem:[#allocation5 + $0x78] sm:$0xff]  ;;  %v1871_v20 = vadd.f32 %v2190_v29, %v1848_v31 }
 0x48f   : > { %v1849_v43 = vld [vmem:[#allocation5 + $0x68] sm:$0xff]  ;;  %v1874_v30 = vadd.f32 %v2190_v29, %v1851_v22  ;;  %v2226_v62 = vpack.c.bf16 %v1873_v17, %v1873_v17 }
 0x490   : > { %v1872_v12 = vadd.f32 %v2190_v29, %v1849_v43  ;;  %v2224_v23 = vpack.c.bf16 %v1871_v20, %v1871_v20 }
 0x491   : > { %v2227_v46 = vpack.c.bf16 %v1874_v30, %v1874_v30  ;;  %1954 = vst.msk [vmem:[%s2655_s18 + $0x38] sm:$0xf] %vm1939_vm5, %v2226_v62 }
 0x492   : > { %v2225_v15 = vpack.c.bf16 %v1872_v12, %v1872_v12  ;;  %1952 = vst.msk [vmem:[%s2655_s18 + $0x30] sm:$0xf] %vm1939_vm5, %v2224_v23 }
 0x493   : > { %1955 = vst.msk [vmem:[%s2655_s18 + $0x3c] sm:$0xf] %vm1939_vm5, %v2227_v46 }
 0x494   : > { %1953 = vst.msk [vmem:[%s2655_s18 + $0x34] sm:$0xf] %vm1939_vm5, %v2225_v15 }
 0x495 PF: > { %s16_s25 = sadd.s32 1, %s2564_s25   ;;  %s3257_s8 = sld [smem:[#allocation6_spill]] }
 0x496   : > { %p13_p9 = scmp.ge.s32.totalorder %s16_s25, 10   ;;  %s3258_s21 = smov %s2556_s23 }
 0x497   : > { %s3259_s22 = smov %s2560_s24  ;;  %s3260_s23 = smov %s3263_s26 }
 0x498   :  { %15 = sbr.rel (!%p13_p9) target bundleno = 3 (0x3), region = 102 }
 0x49b   : > { %s3261_s24 = smov %s3257_s8 }

// kernel: sentence_encoder_forward.7
= control target key start
LH: loop header
LB: loop body
LE: loop exit
PB: predicated region body
PF: predicated region fallthrough
CT: control target
= control target key end

     0   :  { %vm210_vm0 = vcmask 261120   ;;  %vm2403_vm1 = vcmask 257024   ;;  %vm2796_vm2 = vcmask 781312   ;;  %s5372_s0 = inlined_call_operand.vmem [shape: bf16[256,32], index: 0, kind: input, shape index: {}]   ;;  %s5373_s1 = inlined_call_operand.vmem [shape: bf16[256,32], index: 1, kind: input, shape index: {}]   ;;  %s5374_s4 = inlined_call_operand.vmem [shape: bf16[32,128], index: 4, kind: input, shape index: {}]   ;;  %s5375_s2 = inlined_call_operand.vmem [shape: f32[1,32], index: 2, kind: input, shape index: {}]   ;;  %s5376_s3 = inlined_call_operand.vmem [shape: f32[1,32], index: 3, kind: input, shape index: {}]   ;;  %s5377_s6 = inlined_call_operand.vmem [shape: bf16[128,32], index: 6, kind: input, shape index: {}]   ;;  %s5378_s5 = inlined_call_operand.vmem [shape: f32[1,128], index: 5, kind: input, shape index: {}]   ;;  %s5379_s7 = inlined_call_operand.vmem [shape: f32[1,32], index: 7, kind: input, shape index: {}]   ;;  %s5380_s10 = inlined_call_operand.vmem [shape: bf16[32,96], index: 10, kind: input, shape index: {}]   ;;  %s5381_s8 = inlined_call_operand.vmem [shape: f32[1,32], index: 8, kind: input, shape index: {}]   ;;  %s5382_s9 = inlined_call_operand.vmem [shape: f32[1,32], index: 9, kind: input, shape index: {}]   ;;  %s5383_s12 = inlined_call_operand.vmem [shape: bf16[256,32], index: 12, kind: output, shape index: {0}]   ;;  %s5384_s11 = inlined_call_operand.vmem [shape: f32[1,96], index: 11, kind: input, shape index: {}]   ;;  %s5385_s13 = inlined_call_operand.vmem [shape: bf16[256,96], index: 13, kind: output, shape index: {1}]  }
   0x1   :  { %v3017_v0 = vld [vmem:[%s5372_s0] sm:$0xff]   ;;  %v3144_v2 = vld [vmem:[%s5372_s0 + $0x8] sm:$0xff]   ;;  %v3145_v8 = vld [vmem:[%s5372_s0 + $0x10] sm:$0xff]  }
   0x2   :  { %v3081_v1 = vld [vmem:[%s5373_s1] sm:$0xff]   ;;  %v3018_v3 = vunpack.c.l.bf16 %v3017_v0  ;;  %v3022_v5 = vunpack.c.l.bf16 %v3144_v2  ;;  %v3159_v6 = vld [vmem:[%s5373_s1 + $0x8] sm:$0xff]   ;;  %v3019_v7 = vunpack.c.h.bf16 %v3017_v0  ;;  %v3160_v9 = vld [vmem:[%s5373_s1 + $0x10] sm:$0xff]   ;;  %v3023_v12 = vunpack.c.h.bf16 %v3144_v2 }
   0x3   :  { %v3082_v4 = vunpack.c.l.bf16 %v3081_v1  ;;  %v3086_v10 = vunpack.c.l.bf16 %v3159_v6  ;;  %v3083_v11 = vunpack.c.h.bf16 %v3081_v1  ;;  %v3087_v13 = vunpack.c.h.bf16 %v3159_v6  ;;  %v3146_v22 = vld [vmem:[%s5372_s0 + $0x18] sm:$0xff]   ;;  %v3147_v34 = vld [vmem:[%s5372_s0 + $0x20] sm:$0xff]   ;;  %v3148_v44 = vld [vmem:[%s5372_s0 + $0x28] sm:$0xff]  }
   0x4   :  { %v3026_v15 = vunpack.c.l.bf16 %v3145_v8  ;;  %v3090_v16 = vunpack.c.l.bf16 %v3160_v9  ;;  %v3027_v17 = vunpack.c.h.bf16 %v3145_v8  ;;  %v3091_v21 = vunpack.c.h.bf16 %v3160_v9  ;;  %v3161_v23 = vld [vmem:[%s5373_s1 + $0x18] sm:$0xff]   ;;  %v3162_v35 = vld [vmem:[%s5373_s1 + $0x20] sm:$0xff]   ;;  %v3163_v45 = vld [vmem:[%s5373_s1 + $0x28] sm:$0xff]  }
   0x5   :  { %v3684_v14 = vadd.f32 %v3082_v4, %v3018_v3  ;;  %v3686_v18 = vadd.f32 %v3086_v10, %v3022_v5  ;;  %v3688_v19 = vadd.f32 %v3083_v11, %v3019_v7  ;;  %v3690_v20 = vadd.f32 %v3087_v13, %v3023_v12  ;;  %v3149_v54 = vld [vmem:[%s5372_s0 + $0x30] sm:$0xff]   ;;  %v3150_v0 = vld [vmem:[%s5372_s0 + $0x38] sm:$0xff]   ;;  %v3151_v10 = vld [vmem:[%s5372_s0 + $0x40] sm:$0xff]  }
   0x6   :  { %v3704_v27 = vadd.f32 %v3090_v16, %v3026_v15  ;;  %v3030_v28 = vunpack.c.l.bf16 %v3146_v22  ;;  %v3094_v29 = vunpack.c.l.bf16 %v3161_v23  ;;  %v3708_v31 = vadd.f32 %v3091_v21, %v3027_v17  ;;  %v3164_v55 = vld [vmem:[%s5373_s1 + $0x30] sm:$0xff]   ;;  %v3165_v1 = vld [vmem:[%s5373_s1 + $0x38] sm:$0xff]   ;;  %v3166_v11 = vld [vmem:[%s5373_s1 + $0x40] sm:$0xff]  }
   0x7   :  { %v211_v24 = vsel %vm210_vm0, %v3684_v14, 0.0  ;;  %v217_v25 = vsel %vm210_vm0, %v3686_v18, 0.0  ;;  %v214_v26 = vsel %vm210_vm0, %v3688_v19, 0.0  ;;  %v220_v30 = vsel %vm210_vm0, %v3690_v20, 0.0 }
   0x8   :  { %212 = vadd.xlane.f32.xlu0 %v211_v24  ;;  %218 = vadd.xlane.f32.xlu1 %v217_v25  ;;  %v3031_v32 = vunpack.c.h.bf16 %v3146_v22  ;;  %v3095_v33 = vunpack.c.h.bf16 %v3161_v23  ;;  %v223_v36 = vsel %vm210_vm0, %v3704_v27, 0.0  ;;  %v3718_v37 = vadd.f32 %v3094_v29, %v3030_v28  ;;  %v3152_v24 = vld [vmem:[%s5372_s0 + $0x48] sm:$0xff]  }
   0x9   :  { %v3034_v38 = vunpack.c.l.bf16 %v3147_v34  ;;  %v3098_v39 = vunpack.c.l.bf16 %v3162_v35  ;;  %v226_v40 = vsel %vm210_vm0, %v3708_v31, 0.0  ;;  %v3035_v42 = vunpack.c.h.bf16 %v3147_v34  ;;  %v3167_v25 = vld [vmem:[%s5373_s1 + $0x48] sm:$0xff]  }
   0xa   :  { %v3722_v41 = vadd.f32 %v3095_v33, %v3031_v32  ;;  %v3099_v43 = vunpack.c.h.bf16 %v3162_v35  ;;  %v229_v46 = vsel %vm210_vm0, %v3718_v37, 0.0  ;;  %v3038_v48 = vunpack.c.l.bf16 %v3148_v44 }
   0xb   :  { %v3732_v47 = vadd.f32 %v3098_v39, %v3034_v38  ;;  %v3102_v49 = vunpack.c.l.bf16 %v3163_v45  ;;  %v3039_v52 = vunpack.c.h.bf16 %v3148_v44  ;;  %v3103_v53 = vunpack.c.h.bf16 %v3163_v45  ;;  %v3168_v38 = vld [vmem:[%s5373_s1 + $0x50] sm:$0xff]  }
   0xc   :  { %215 = vadd.xlane.f32.xlu0 %v214_v26  ;;  %221 = vadd.xlane.f32.xlu1 %v220_v30  ;;  %v232_v50 = vsel %vm210_vm0, %v3722_v41, 0.0  ;;  %v3736_v51 = vadd.f32 %v3099_v43, %v3035_v42  ;;  %v3042_v58 = vunpack.c.l.bf16 %v3149_v54  ;;  %v3106_v59 = vunpack.c.l.bf16 %v3164_v55 }
   0xd   :  { %v235_v56 = vsel %vm210_vm0, %v3732_v47, 0.0  ;;  %v3746_v57 = vadd.f32 %v3102_v49, %v3038_v48  ;;  %v3750_v61 = vadd.f32 %v3103_v53, %v3039_v52  ;;  %v3043_v62 = vunpack.c.h.bf16 %v3149_v54  ;;  %v3154_v49 = vld [vmem:[%s5372_s0 + $0x58] sm:$0xff]  }
   0xe   :  { %v238_v60 = vsel %vm210_vm0, %v3736_v51, 0.0  ;;  %v3107_v63 = vunpack.c.h.bf16 %v3164_v55  ;;  %v3760_v3 = vadd.f32 %v3106_v59, %v3042_v58  ;;  %v3046_v4 = vunpack.c.l.bf16 %v3150_v0 }
   0xf   :  { %v241_v2 = vsel %vm210_vm0, %v3746_v57, 0.0  ;;  %v3110_v5 = vunpack.c.l.bf16 %v3165_v1  ;;  %v244_v6 = vsel %vm210_vm0, %v3750_v61, 0.0  ;;  %v3047_v8 = vunpack.c.h.bf16 %v3150_v0 }
  0x10   :  { %224 = vadd.xlane.f32.xlu0 %v223_v36  ;;  %227 = vadd.xlane.f32.xlu1 %v226_v40  ;;  %v3764_v7 = vadd.f32 %v3107_v63, %v3043_v62  ;;  %v3111_v9 = vunpack.c.h.bf16 %v3165_v1  ;;  %v247_v12 = vsel %vm210_vm0, %v3760_v3, 0.0  ;;  %v3050_v15 = vunpack.c.l.bf16 %v3151_v10  ;;  %v3153_v36 = vld [vmem:[%s5372_s0 + $0x50] sm:$0xff]   ;;  %v3155_v62 = vld [vmem:[%s5372_s0 + $0x60] sm:$0xff]  }
  0x11   :  { %v3774_v13 = vadd.f32 %v3110_v5, %v3046_v4  ;;  %v3114_v16 = vunpack.c.l.bf16 %v3166_v11  ;;  %v3051_v22 = vunpack.c.h.bf16 %v3151_v10  ;;  %v3115_v23 = vunpack.c.h.bf16 %v3166_v11  ;;  %v3170_v63 = vld [vmem:[%s5373_s1 + $0x60] sm:$0xff]   ;;  %v3156_v10 = vld [vmem:[%s5372_s0 + $0x68] sm:$0xff]  }
  0x12   :  { %v250_v17 = vsel %vm210_vm0, %v3764_v7, 0.0  ;;  %v3778_v21 = vadd.f32 %v3111_v9, %v3047_v8  ;;  %v3054_v29 = vunpack.c.l.bf16 %v3152_v24  ;;  %v3118_v30 = vunpack.c.l.bf16 %v3167_v25  ;;  %v3171_v11 = vld [vmem:[%s5373_s1 + $0x68] sm:$0xff]  }
  0x13   :  { %v253_v26 = vsel %vm210_vm0, %v3774_v13, 0.0  ;;  %v3788_v28 = vadd.f32 %v3114_v16, %v3050_v15  ;;  %v3792_v33 = vadd.f32 %v3115_v23, %v3051_v22  ;;  %v3055_v34 = vunpack.c.h.bf16 %v3152_v24 }
  0x14   :  { %230 = vadd.xlane.f32.xlu0 %v229_v46  ;;  %233 = vadd.xlane.f32.xlu1 %v232_v50  ;;  %v256_v32 = vsel %vm210_vm0, %v3778_v21, 0.0  ;;  %v3119_v35 = vunpack.c.h.bf16 %v3167_v25  ;;  %v3802_v40 = vadd.f32 %v3118_v30, %v3054_v29  ;;  %v3058_v42 = vunpack.c.l.bf16 %v3153_v36  ;;  %v3169_v50 = vld [vmem:[%s5373_s1 + $0x58] sm:$0xff]   ;;  %v3172_v29 = vld [vmem:[%s5373_s1 + $0x70] sm:$0xff]  }
  0x15   :  { %v259_v39 = vsel %vm210_vm0, %v3788_v28, 0.0  ;;  %v3122_v43 = vunpack.c.l.bf16 %v3168_v38  ;;  %v262_v44 = vsel %vm210_vm0, %v3792_v33, 0.0  ;;  %v3059_v46 = vunpack.c.h.bf16 %v3153_v36 }
  0x16   :  { %v3806_v45 = vadd.f32 %v3119_v35, %v3055_v34  ;;  %v3123_v48 = vunpack.c.h.bf16 %v3168_v38  ;;  %v265_v52 = vsel %vm210_vm0, %v3802_v40, 0.0  ;;  %v3062_v54 = vunpack.c.l.bf16 %v3154_v49 }
  0x17   :  { %v3816_v53 = vadd.f32 %v3122_v43, %v3058_v42  ;;  %v3126_v55 = vunpack.c.l.bf16 %v3169_v50  ;;  %v3063_v59 = vunpack.c.h.bf16 %v3154_v49  ;;  %v3130_v4 = vunpack.c.l.bf16 %v3170_v63  ;;  %v3158_v43 = vld [vmem:[%s5372_s0 + $0x78] sm:$0xff]  }
  0x18   :  { %236 = vadd.xlane.f32.xlu0 %v235_v56  ;;  %239 = vadd.xlane.f32.xlu1 %v238_v60  ;;  %v268_v56 = vsel %vm210_vm0, %v3806_v45, 0.0  ;;  %v3820_v58 = vadd.f32 %v3123_v48, %v3059_v46  ;;  %v3127_v60 = vunpack.c.h.bf16 %v3169_v50  ;;  %v3067_v8 = vunpack.c.h.bf16 %v3155_v62 }
  0x19   :  { %v271_v0 = vsel %vm210_vm0, %v3816_v53, 0.0  ;;  %v3830_v1 = vadd.f32 %v3126_v55, %v3062_v54  ;;  %v3131_v9 = vunpack.c.h.bf16 %v3170_v63  ;;  %v3070_v16 = vunpack.c.l.bf16 %v3156_v10 }
  0x1a   :  { %v274_v5 = vsel %vm210_vm0, %v3820_v58, 0.0  ;;  %v3071_v24 = vunpack.c.h.bf16 %v3156_v10  ;;  %v3135_v25 = vunpack.c.h.bf16 %v3171_v11  ;;  %v3138_v35 = vunpack.c.l.bf16 %v3172_v29 }
  0x1b   :  { %v3848_v23 = vadd.f32 %v3131_v9, %v3067_v8  ;;  %v3139_v42 = vunpack.c.h.bf16 %v3172_v29  ;;  %v3078_v49 = vunpack.c.l.bf16 %v3158_v43  ;;  %v3079_v55 = vunpack.c.h.bf16 %v3158_v43 }
  0x1c   :  { %242 = vadd.xlane.f32.xlu0 %v241_v2  ;;  %245 = vadd.xlane.f32.xlu1 %v244_v6  ;;  %v3066_v2 = vunpack.c.l.bf16 %v3155_v62  ;;  %v3834_v6 = vadd.f32 %v3127_v60, %v3063_v59  ;;  %v3862_v38 = vadd.f32 %v3135_v25, %v3071_v24 }
  0x1d   :  { %v286_v36 = vsel %vm210_vm0, %v3848_v23, 0.0 }
  0x1e   :  { %v3844_v15 = vadd.f32 %v3130_v4, %v3066_v2  ;;  %v280_v22 = vsel %vm210_vm0, %v3834_v6, 0.0 }
  0x20   :  { %248 = vadd.xlane.f32.xlu0 %v247_v12  ;;  %251 = vadd.xlane.f32.xlu1 %v250_v17  ;;  %v277_v12 = vsel %vm210_vm0, %v3830_v1, 0.0  ;;  %v3134_v17 = vunpack.c.l.bf16 %v3171_v11  ;;  %v283_v30 = vsel %vm210_vm0, %v3844_v15, 0.0 }
  0x24   :  { %254 = vadd.xlane.f32.xlu0 %v253_v26  ;;  %257 = vadd.xlane.f32.xlu1 %v256_v32  ;;  %v3157_v26 = vld [vmem:[%s5372_s0 + $0x70] sm:$0xff]   ;;  %v3858_v32 = vadd.f32 %v3134_v17, %v3070_v16 }
  0x25   :  { %v3074_v34 = vunpack.c.l.bf16 %v3157_v26 }
  0x26   :  { %v289_v46 = vsel %vm210_vm0, %v3858_v32, 0.0 }
  0x27   :  { %v3872_v48 = vadd.f32 %v3138_v35, %v3074_v34 }
  0x28   :  { %260 = vadd.xlane.f32.xlu0 %v259_v39  ;;  %263 = vadd.xlane.f32.xlu1 %v262_v44  ;;  %v3075_v39 = vunpack.c.h.bf16 %v3157_v26  ;;  %v3173_v44 = vld [vmem:[%s5373_s1 + $0x78] sm:$0xff]  }
  0x29   :  { %v3142_v50 = vunpack.c.l.bf16 %v3173_v44  ;;  %v295_v59 = vsel %vm210_vm0, %v3872_v48, 0.0 }
  0x2a   :  { %v3876_v54 = vadd.f32 %v3139_v42, %v3075_v39 }
  0x2b   :  { %v3880_v60 = vadd.f32 %v3142_v50, %v3078_v49 }
  0x2c   :  { %266 = vadd.xlane.f32.xlu0 %v265_v52  ;;  %269 = vadd.xlane.f32.xlu1 %v268_v56  ;;  %v292_v52 = vsel %vm210_vm0, %v3862_v38, 0.0  ;;  %v3143_v56 = vunpack.c.h.bf16 %v3173_v44  ;;  %v298_v62 = vsel %vm210_vm0, %v3876_v54, 0.0 }
  0x2e   :  { %v3884_v63 = vadd.f32 %v3143_v56, %v3079_v55 }
  0x30   :  { %272 = vadd.xlane.f32.xlu0 %v271_v0  ;;  %275 = vadd.xlane.f32.xlu1 %v274_v5  ;;  %v301_v0 = vsel %vm210_vm0, %v3880_v60, 0.0  ;;  %v304_v2 = vsel %vm210_vm0, %v3884_v63, 0.0 }
  0x34   :  { %278 = vadd.xlane.f32.xlu0 %v277_v12  ;;  %281 = vadd.xlane.f32.xlu1 %v280_v22 }
  0x38   :  { %284 = vadd.xlane.f32.xlu0 %v283_v30  ;;  %287 = vadd.xlane.f32.xlu1 %v286_v36 }
  0x3c   :  { %290 = vadd.xlane.f32.xlu0 %v289_v46  ;;  %293 = vadd.xlane.f32.xlu1 %v292_v52 }
  0x40   :  { %296 = vadd.xlane.f32.xlu0 %v295_v59  ;;  %299 = vadd.xlane.f32.xlu1 %v298_v62 }
  0x44   :  { %302 = vadd.xlane.f32.xlu0 %v301_v0  ;;  %305 = vadd.xlane.f32.xlu1 %v304_v2 }
  0x95   :  { %v213_v4 = vpop.xlane.xlu0 %212  ;;  %v219_v8 = vpop.xlane.xlu1 %218 }
  0x96   :  { %v308_v5 = vmul.f32 0.03125, %v213_v4  ;;  %v310_v9 = vmul.f32 0.03125, %v219_v8 }
  0x98   :  { %v3891_v10 = vsub.f32 %v3684_v14, %v308_v5  ;;  %v3894_v11 = vsub.f32 %v3686_v18, %v310_v9 }
  0x99   :  { %v216_v12 = vpop.xlane.xlu0 %215  ;;  %v222_v17 = vpop.xlane.xlu1 %221 }
  0x9a   :  { %v309_v16 = vmul.f32 0.03125, %v216_v12  ;;  %v372_v22 = vmul.f32 %v3891_v10, %v3891_v10  ;;  %v311_v24 = vmul.f32 0.03125, %v222_v17  ;;  %v374_v25 = vmul.f32 %v3894_v11, %v3894_v11 }
  0x9c   :  { %v3901_v26 = vsub.f32 %v3688_v19, %v309_v16  ;;  %v404_v29 = vsel %vm210_vm0, %v372_v22, 0.0  ;;  %v3905_v14 = vsub.f32 %v3690_v20, %v311_v24  ;;  %v410_v35 = vsel %vm210_vm0, %v374_v25, 0.0 }
  0x9d   :  { %405 = vadd.xlane.f32.xlu0 %v404_v29  ;;  %v225_v18 = vpop.xlane.xlu0 %224  ;;  %v228_v34 = vpop.xlane.xlu1 %227 }
  0x9e   :  { %v312_v30 = vmul.f32 0.03125, %v225_v18  ;;  %v373_v36 = vmul.f32 %v3901_v26, %v3901_v26  ;;  %v313_v39 = vmul.f32 0.03125, %v228_v34  ;;  %v375_v42 = vmul.f32 %v3905_v14, %v3905_v14 }
  0xa0   :  { %v3913_v19 = vsub.f32 %v3704_v27, %v312_v30  ;;  %v407_v43 = vsel %vm210_vm0, %v373_v36, 0.0  ;;  %v3917_v20 = vsub.f32 %v3708_v31, %v313_v39  ;;  %v413_v50 = vsel %vm210_vm0, %v375_v42, 0.0 }
  0xa1   :  { %411 = vadd.xlane.f32.xlu0 %v410_v35  ;;  %408 = vadd.xlane.f32.xlu1 %v407_v43  ;;  %v231_v44 = vpop.xlane.xlu0 %230  ;;  %v234_v49 = vpop.xlane.xlu1 %233 }
  0xa2   :  { %v314_v46 = vmul.f32 0.03125, %v231_v44  ;;  %v376_v52 = vmul.f32 %v3913_v19, %v3913_v19  ;;  %v315_v55 = vmul.f32 0.03125, %v234_v49  ;;  %v377_v27 = vmul.f32 %v3917_v20, %v3917_v20 }
  0xa4   :  { %v3925_v56 = vsub.f32 %v3718_v37, %v314_v46  ;;  %v416_v31 = vsel %vm210_vm0, %v376_v52, 0.0  ;;  %v3929_v59 = vsub.f32 %v3722_v41, %v315_v55  ;;  %v419_v4 = vsel %vm210_vm0, %v377_v27, 0.0 }
  0xa5   :  { %414 = vadd.xlane.f32.xlu1 %v413_v50  ;;  %417 = vadd.xlane.f32.xlu0 %v416_v31  ;;  %v237_v62 = vpop.xlane.xlu0 %236  ;;  %v240_v2 = vpop.xlane.xlu1 %239 }
  0xa6   :  { %v316_v0 = vmul.f32 0.03125, %v237_v62  ;;  %v378_v5 = vmul.f32 %v3925_v56, %v3925_v56  ;;  %v317_v8 = vmul.f32 0.03125, %v240_v2  ;;  %v379_v37 = vmul.f32 %v3929_v59, %v3929_v59 }
  0xa8   :  { %v3937_v9 = vsub.f32 %v3732_v47, %v316_v0  ;;  %v422_v41 = vsel %vm210_vm0, %v378_v5, 0.0  ;;  %v3941_v12 = vsub.f32 %v3736_v51, %v317_v8  ;;  %v425_v24 = vsel %vm210_vm0, %v379_v37, 0.0 }
  0xa9   :  { %420 = vadd.xlane.f32.xlu1 %v419_v4  ;;  %423 = vadd.xlane.f32.xlu0 %v422_v41  ;;  %v243_v16 = vpop.xlane.xlu0 %242  ;;  %v246_v22 = vpop.xlane.xlu1 %245 }
  0xaa   :  { %v318_v17 = vmul.f32 0.03125, %v243_v16  ;;  %v380_v25 = vmul.f32 %v3937_v9, %v3937_v9  ;;  %v319_v29 = vmul.f32 0.03125, %v246_v22  ;;  %v381_v47 = vmul.f32 %v3941_v12, %v3941_v12 }
  0xac   :  { %v3949_v18 = vsub.f32 %v3746_v57, %v318_v17  ;;  %v428_v51 = vsel %vm210_vm0, %v380_v25, 0.0  ;;  %v3953_v30 = vsub.f32 %v3750_v61, %v319_v29  ;;  %v431_v39 = vsel %vm210_vm0, %v381_v47, 0.0 }
  0xad   :  { %426 = vadd.xlane.f32.xlu1 %v425_v24  ;;  %429 = vadd.xlane.f32.xlu0 %v428_v51  ;;  %v249_v34 = vpop.xlane.xlu0 %248  ;;  %v252_v36 = vpop.xlane.xlu1 %251 }
  0xae   :  { %v320_v35 = vmul.f32 0.03125, %v249_v34  ;;  %v382_v42 = vmul.f32 %v3949_v18, %v3949_v18  ;;  %v321_v43 = vmul.f32 0.03125, %v252_v36  ;;  %v383_v57 = vmul.f32 %v3953_v30, %v3953_v30 }
  0xb0   :  { %v3961_v44 = vsub.f32 %v3760_v3, %v320_v35  ;;  %v434_v61 = vsel %vm210_vm0, %v382_v42, 0.0  ;;  %v3965_v46 = vsub.f32 %v3764_v7, %v321_v43  ;;  %v437_v55 = vsel %vm210_vm0, %v383_v57, 0.0 }
  0xb1   :  { %432 = vadd.xlane.f32.xlu1 %v431_v39  ;;  %435 = vadd.xlane.f32.xlu0 %v434_v61  ;;  %v255_v49 = vpop.xlane.xlu0 %254  ;;  %v258_v52 = vpop.xlane.xlu1 %257 }
  0xb2   :  { %v322_v50 = vmul.f32 0.03125, %v255_v49  ;;  %v384_v27 = vmul.f32 %v3961_v44, %v3961_v44  ;;  %v323_v31 = vmul.f32 0.03125, %v258_v52  ;;  %v385_v3 = vmul.f32 %v3965_v46, %v3965_v46 }
  0xb4   :  { %v3973_v62 = vsub.f32 %v3774_v13, %v322_v50  ;;  %v440_v7 = vsel %vm210_vm0, %v384_v27, 0.0  ;;  %v3977_v0 = vsub.f32 %v3778_v21, %v323_v31  ;;  %v443_v8 = vsel %vm210_vm0, %v385_v3, 0.0 }
  0xb5   :  { %438 = vadd.xlane.f32.xlu1 %v437_v55  ;;  %441 = vadd.xlane.f32.xlu0 %v440_v7  ;;  %v261_v2 = vpop.xlane.xlu0 %260  ;;  %v264_v5 = vpop.xlane.xlu1 %263 }
  0xb6   :  { %v324_v4 = vmul.f32 0.03125, %v261_v2  ;;  %v386_v37 = vmul.f32 %v3973_v62, %v3973_v62  ;;  %v325_v41 = vmul.f32 0.03125, %v264_v5  ;;  %v387_v13 = vmul.f32 %v3977_v0, %v3977_v0 }
  0xb8   :  { %v3985_v16 = vsub.f32 %v3788_v28, %v324_v4  ;;  %v446_v21 = vsel %vm210_vm0, %v386_v37, 0.0  ;;  %v3989_v17 = vsub.f32 %v3792_v33, %v325_v41  ;;  %v449_v29 = vsel %vm210_vm0, %v387_v13, 0.0 }
  0xb9   :  { %444 = vadd.xlane.f32.xlu1 %v443_v8  ;;  %447 = vadd.xlane.f32.xlu0 %v446_v21  ;;  %v267_v22 = vpop.xlane.xlu0 %266  ;;  %v270_v25 = vpop.xlane.xlu1 %269 }
  0xba   :  { %v326_v24 = vmul.f32 0.03125, %v267_v22  ;;  %v388_v47 = vmul.f32 %v3985_v16, %v3985_v16  ;;  %v327_v51 = vmul.f32 0.03125, %v270_v25  ;;  %v389_v28 = vmul.f32 %v3989_v17, %v3989_v17 }
  0xbc   :  { %v3997_v34 = vsub.f32 %v3802_v40, %v326_v24  ;;  %v452_v33 = vsel %vm210_vm0, %v388_v47, 0.0  ;;  %v4001_v35 = vsub.f32 %v3806_v45, %v327_v51  ;;  %v455_v43 = vsel %vm210_vm0, %v389_v28, 0.0 }
  0xbd   :  { %450 = vadd.xlane.f32.xlu1 %v449_v29  ;;  %453 = vadd.xlane.f32.xlu0 %v452_v33  ;;  %v273_v36 = vpop.xlane.xlu0 %272  ;;  %v276_v42 = vpop.xlane.xlu1 %275  ;;  %v3359_v29 = vld [vmem:[%s5374_s4] sm:$0xff]  }
  0xbe   :  { %v328_v39 = vmul.f32 0.03125, %v273_v36  ;;  %v390_v57 = vmul.f32 %v3997_v34, %v3997_v34  ;;  %v329_v61 = vmul.f32 0.03125, %v276_v42  ;;  %v391_v40 = vmul.f32 %v4001_v35, %v4001_v35  ;;  %3234 = vmatprep.subr.bf16.mxu0 %v3359_v29  ;;  %3354 = vmatprep.subr.bf16.mxu1 %v3359_v29 }
  0xbf   :  { %3235 = vmatpush3.bf16.msra.mxu0 %v3359_v29  ;;  %3356 = vmatpush3.bf16.msra.mxu1 %v3359_v29 }
  0xc0   :  { %v4009_v49 = vsub.f32 %v3816_v53, %v328_v39  ;;  %v458_v45 = vsel %vm210_vm0, %v390_v57, 0.0  ;;  %v4013_v50 = vsub.f32 %v3820_v58, %v329_v61  ;;  %v461_v31 = vsel %vm210_vm0, %v391_v40, 0.0  ;;  %v3360_v57 = vld [vmem:[%s5374_s4 + $0x8] sm:$0xff]  }
  0xc1   :  { %456 = vadd.xlane.f32.xlu1 %v455_v43  ;;  %459 = vadd.xlane.f32.xlu0 %v458_v45  ;;  %v279_v52 = vpop.xlane.xlu0 %278  ;;  %v282_v27 = vpop.xlane.xlu1 %281 }
  0xc2   :  { %v330_v55 = vmul.f32 0.03125, %v279_v52  ;;  %v392_v3 = vmul.f32 %v4009_v49, %v4009_v49  ;;  %v331_v7 = vmul.f32 0.03125, %v282_v27  ;;  %v393_v53 = vmul.f32 %v4013_v50, %v4013_v50  ;;  %3236 = vmatprep.subr.bf16.mxu0 %v3360_v57  ;;  %3355 = vmatprep.subr.bf16.mxu1 %v3360_v57 }
  0xc3   :  { %3237 = vmatpush3.bf16.msra.mxu0 %v3360_v57  ;;  %3357 = vmatpush3.bf16.msra.mxu1 %v3360_v57 }
  0xc4   :  { %v4021_v2 = vsub.f32 %v3830_v1, %v330_v55  ;;  %v464_v58 = vsel %vm210_vm0, %v392_v3, 0.0  ;;  %v4025_v4 = vsub.f32 %v3834_v6, %v331_v7  ;;  %v467_v41 = vsel %vm210_vm0, %v393_v53, 0.0 }
  0xc5   :  { %462 = vadd.xlane.f32.xlu1 %v461_v31  ;;  %465 = vadd.xlane.f32.xlu0 %v464_v58  ;;  %v285_v5 = vpop.xlane.xlu0 %284  ;;  %v288_v37 = vpop.xlane.xlu1 %287 }
  0xc6   :  { %v332_v8 = vmul.f32 0.03125, %v285_v5  ;;  %v394_v13 = vmul.f32 %v4021_v2, %v4021_v2  ;;  %v333_v21 = vmul.f32 0.03125, %v288_v37  ;;  %v395_v1 = vmul.f32 %v4025_v4, %v4025_v4 }
  0xc8   :  { %v4033_v22 = vsub.f32 %v3844_v15, %v332_v8  ;;  %v470_v6 = vsel %vm210_vm0, %v394_v13, 0.0  ;;  %v4037_v24 = vsub.f32 %v3848_v23, %v333_v21  ;;  %v473_v28 = vsel %vm210_vm0, %v395_v1, 0.0 }
  0xc9   :  { %468 = vadd.xlane.f32.xlu1 %v467_v41  ;;  %471 = vadd.xlane.f32.xlu0 %v470_v6  ;;  %v291_v25 = vpop.xlane.xlu0 %290  ;;  %v294_v51 = vpop.xlane.xlu1 %293 }
  0xca   :  { %v334_v47 = vmul.f32 0.03125, %v291_v25  ;;  %v396_v15 = vmul.f32 %v4033_v22, %v4033_v22  ;;  %v335_v33 = vmul.f32 0.03125, %v294_v51  ;;  %v397_v36 = vmul.f32 %v4037_v24, %v4037_v24 }
  0xcc   :  { %v4048_v23 = vsub.f32 %v3858_v32, %v334_v47  ;;  %v476_v39 = vsel %vm210_vm0, %v396_v15, 0.0  ;;  %v4052_v42 = vsub.f32 %v3862_v38, %v335_v33  ;;  %v479_v45 = vsel %vm210_vm0, %v397_v36, 0.0 }
  0xcd   :  { %474 = vadd.xlane.f32.xlu1 %v473_v28  ;;  %477 = vadd.xlane.f32.xlu0 %v476_v39  ;;  %v297_v43 = vpop.xlane.xlu0 %296  ;;  %v300_v40 = vpop.xlane.xlu1 %299 }
  0xce   :  { %v336_v61 = vmul.f32 0.03125, %v297_v43  ;;  %v398_v32 = vmul.f32 %v4048_v23, %v4048_v23  ;;  %v337_v52 = vmul.f32 0.03125, %v300_v40  ;;  %v399_v55 = vmul.f32 %v4052_v42, %v4052_v42 }
  0xd0   :  { %v4063_v38 = vsub.f32 %v3872_v48, %v336_v61  ;;  %v482_v27 = vsel %vm210_vm0, %v398_v32, 0.0  ;;  %v4067_v31 = vsub.f32 %v3876_v54, %v337_v52  ;;  %v485_v58 = vsel %vm210_vm0, %v399_v55, 0.0 }
  0xd1   :  { %480 = vadd.xlane.f32.xlu1 %v479_v45  ;;  %483 = vadd.xlane.f32.xlu0 %v482_v27  ;;  %v303_v3 = vpop.xlane.xlu0 %302  ;;  %v306_v53 = vpop.xlane.xlu1 %305 }
  0xd2   :  { %v338_v7 = vmul.f32 0.03125, %v303_v3  ;;  %v400_v5 = vmul.f32 %v4063_v38, %v4063_v38  ;;  %v339_v8 = vmul.f32 0.03125, %v306_v53  ;;  %v401_v48 = vmul.f32 %v4067_v31, %v4067_v31 }
  0xd4   :  { %v4075_v37 = vsub.f32 %v3880_v60, %v338_v7  ;;  %v488_v54 = vsel %vm210_vm0, %v400_v5, 0.0  ;;  %v4079_v41 = vsub.f32 %v3884_v63, %v339_v8  ;;  %v491_v13 = vsel %vm210_vm0, %v401_v48, 0.0  ;;  %v4091_v7 = vld [vmem:[%s5375_s2] ss:$0 sm:$0xff] }
  0xd5   :  { %486 = vadd.xlane.f32.xlu1 %v485_v58  ;;  %489 = vadd.xlane.f32.xlu0 %v488_v54  ;;  %v4097_v54 = vld [vmem:[%s5376_s3] ss:$0 sm:$0xff] }
  0xd6   :  { %v402_v21 = vmul.f32 %v4075_v37, %v4075_v37  ;;  %v403_v1 = vmul.f32 %v4079_v41, %v4079_v41 }
  0xd8   :  { %v494_v6 = vsel %vm210_vm0, %v402_v21, 0.0  ;;  %v497_v60 = vsel %vm210_vm0, %v403_v1, 0.0 }
  0xd9   :  { %492 = vadd.xlane.f32.xlu1 %v491_v13  ;;  %495 = vadd.xlane.f32.xlu0 %v494_v6 }
  0xdd   :  { %498 = vadd.xlane.f32.xlu1 %v497_v60 }
 0x12a   :  { %v406_v25 = vpop.xlane.xlu0 %405 }
 0x12b   :  { %v500_v63 = vmul.f32 0.03125, %v406_v25 }
 0x12d   :  { %v532_v29 = vadd.f32 1e-05, %v500_v63 }
 0x12e   :  { %v409_v47 = vpop.xlane.xlu1 %408  ;;  %v412_v51 = vpop.xlane.xlu0 %411 }
 0x12f   :  { %3371 = vrsqrt.f32 %v532_v29  ;;  %v501_v28 = vmul.f32 0.03125, %v409_v47  ;;  %v502_v15 = vmul.f32 0.03125, %v412_v51 }
 0x131   :  { %v533_v33 = vadd.f32 1e-05, %v501_v28  ;;  %v534_v36 = vadd.f32 1e-05, %v502_v15 }
 0x132   :  { %v415_v39 = vpop.xlane.xlu1 %414  ;;  %v418_v43 = vpop.xlane.xlu0 %417 }
 0x133   :  { %3373 = vrsqrt.f32 %v533_v33  ;;  %v503_v57 = vmul.f32 0.03125, %v415_v39  ;;  %v504_v61 = vmul.f32 0.03125, %v418_v43 }
 0x134   :  { %3375 = vrsqrt.f32 %v534_v36 }
 0x135   :  { %v535_v40 = vadd.f32 1e-05, %v503_v57  ;;  %v536_v45 = vadd.f32 1e-05, %v504_v61 }
 0x136   :  { %v421_v32 = vpop.xlane.xlu1 %420  ;;  %v424_v52 = vpop.xlane.xlu0 %423 }
 0x137   :  { %3377 = vrsqrt.f32 %v535_v40  ;;  %v505_v55 = vmul.f32 0.03125, %v421_v32  ;;  %v506_v27 = vmul.f32 0.03125, %v424_v52 }
 0x138   :  { %3379 = vrsqrt.f32 %v536_v45 }
 0x139   :  { %v3372_v3 = vpop.eup %3371  ;;  %v537_v53 = vadd.f32 1e-05, %v505_v55  ;;  %v538_v58 = vadd.f32 1e-05, %v506_v27 }
 0x13a   :  { %v596_v5 = vmul.f32 %v3372_v3, %v3891_v10  ;;  %v427_v8 = vpop.xlane.xlu1 %426  ;;  %v430_v48 = vpop.xlane.xlu0 %429 }
 0x13b   :  { %3381 = vrsqrt.f32 %v537_v53  ;;  %v507_v13 = vmul.f32 0.03125, %v427_v8  ;;  %v508_v21 = vmul.f32 0.03125, %v430_v48 }
 0x13c   :  { %v634_v1 = vmul.f32 %v4091_v7, %v596_v5  ;;  %3383 = vrsqrt.f32 %v538_v58 }
 0x13d   :  { %v3374_v6 = vpop.eup %3373  ;;  %v539_v60 = vadd.f32 1e-05, %v507_v13  ;;  %v540_v25 = vadd.f32 1e-05, %v508_v21 }
 0x13e   :  { %v3376_v63 = vpop.eup %3375  ;;  %v672_v29 = vadd.f32 %v4097_v54, %v634_v1  ;;  %v597_v10 = vmul.f32 %v3374_v6, %v3901_v26  ;;  %v433_v47 = vpop.xlane.xlu1 %432 }
 0x13f   :  { %v436_v51 = vpop.xlane.xlu0 %435  ;;  %v598_v28 = vmul.f32 %v3376_v63, %v3894_v11  ;;  %3385 = vrsqrt.f32 %v539_v60  ;;  %v509_v15 = vmul.f32 0.03125, %v433_v47 }
 0x140   :  { %v510_v33 = vmul.f32 0.03125, %v436_v51  ;;  %704 = vst.msk [vmem:[#allocation2] sm:$0xff] %vm210_vm0, %v672_v29  ;;  %v635_v36 = vmul.f32 %v4091_v7, %v597_v10  ;;  %3387 = vrsqrt.f32 %v540_v25 }
 0x141   :  { %v3378_v39 = vpop.eup %3377  ;;  %v636_v43 = vmul.f32 %v4091_v7, %v598_v28  ;;  %v541_v57 = vadd.f32 1e-05, %v509_v15 }
 0x142   :  { %v542_v61 = vadd.f32 1e-05, %v510_v33  ;;  %v3380_v40 = vpop.eup %3379  ;;  %v673_v26 = vadd.f32 %v4097_v54, %v635_v36  ;;  %v599_v45 = vmul.f32 %v3378_v39, %v3905_v14  ;;  %v439_v32 = vpop.xlane.xlu1 %438 }
 0x143   :  { %v442_v11 = vpop.xlane.xlu0 %441  ;;  %v674_v52 = vadd.f32 %v4097_v54, %v636_v43  ;;  %v600_v55 = vmul.f32 %v3380_v40, %v3913_v19  ;;  %3389 = vrsqrt.f32 %v541_v57  ;;  %v511_v27 = vmul.f32 0.03125, %v439_v32 }
 0x144   :  { %705 = vst.msk [vmem:[#allocation2 + $0x8] sm:$0xff] %vm210_vm0, %v673_v26  ;;  %v637_v3 = vmul.f32 %v4091_v7, %v599_v45  ;;  %3391 = vrsqrt.f32 %v542_v61  ;;  %v512_v53 = vmul.f32 0.03125, %v442_v11 }
 0x145   :  { %v3382_v58 = vpop.eup %3381  ;;  %706 = vst.msk [vmem:[#allocation2 + $0x10] sm:$0xff] %vm210_vm0, %v674_v52  ;;  %v638_v5 = vmul.f32 %v4091_v7, %v600_v55  ;;  %v543_v14 = vadd.f32 1e-05, %v511_v27 }
 0x146   :  { %v3384_v8 = vpop.eup %3383  ;;  %v675_v48 = vadd.f32 %v4097_v54, %v637_v3  ;;  %v601_v13 = vmul.f32 %v3382_v58, %v3917_v20  ;;  %v544_v19 = vadd.f32 1e-05, %v512_v53  ;;  %v445_v21 = vpop.xlane.xlu1 %444 }
 0x147   :  { %v448_v1 = vpop.xlane.xlu0 %447  ;;  %v676_v6 = vadd.f32 %v4097_v54, %v638_v5  ;;  %v602_v60 = vmul.f32 %v3384_v8, %v3925_v56  ;;  %3393 = vrsqrt.f32 %v543_v14  ;;  %v513_v25 = vmul.f32 0.03125, %v445_v21  ;;  %v768_v61 = vld [vmem:[#allocation2] sm:$0xff] }
 0x148   :  { %707 = vst.msk [vmem:[#allocation2 + $0x18] sm:$0xff] %vm210_vm0, %v675_v48  ;;  %v639_v63 = vmul.f32 %v4091_v7, %v601_v13  ;;  %3395 = vrsqrt.f32 %v544_v19  ;;  %v514_v29 = vmul.f32 0.03125, %v448_v1 }
 0x149   :  { %v3386_v10 = vpop.eup %3385  ;;  %708 = vst.msk [vmem:[#allocation2 + $0x20] sm:$0xff] %vm210_vm0, %v676_v6  ;;  %v640_v20 = vmul.f32 %v4091_v7, %v602_v60  ;;  %v545_v47 = vadd.f32 1e-05, %v513_v25 }
 0x14a   :  { %v3388_v51 = vpop.eup %3387  ;;  %v677_v28 = vadd.f32 %v4097_v54, %v639_v63  ;;  %v603_v15 = vmul.f32 %v3386_v10, %v3929_v59  ;;  %v546_v56 = vadd.f32 1e-05, %v514_v29  ;;  %v451_v33 = vpop.xlane.xlu1 %450 }
 0x14b   :  { %v454_v36 = vpop.xlane.xlu0 %453  ;;  %v678_v39 = vadd.f32 %v4097_v54, %v640_v20  ;;  %v604_v43 = vmul.f32 %v3388_v51, %v3937_v9  ;;  %3397 = vrsqrt.f32 %v545_v47  ;;  %v515_v57 = vmul.f32 0.03125, %v451_v33  ;;  %v769_v40 = vld [vmem:[#allocation2 + $0x8] sm:$0xff] }
 0x14c   :  { %709 = vst.msk [vmem:[#allocation2 + $0x28] sm:$0xff] %vm210_vm0, %v677_v28  ;;  %v641_v26 = vmul.f32 %v4091_v7, %v603_v15  ;;  %3399 = vrsqrt.f32 %v546_v56  ;;  %v516_v45 = vmul.f32 0.03125, %v454_v36  ;;  %v800_v32 = vpack.c.bf16 %v769_v40, %v768_v61  ;;  %v770_v48 = vld [vmem:[#allocation2 + $0x10] sm:$0xff] }
 0x14d   :  { %v3390_v11 = vpop.eup %3389  ;;  %710 = vst.msk [vmem:[#allocation2 + $0x30] sm:$0xff] %vm210_vm0, %v678_v39  ;;  %v642_v59 = vmul.f32 %v4091_v7, %v604_v43  ;;  %v547_v52 = vadd.f32 1e-05, %v515_v57 }
 0x14e   :  { %v3392_v55 = vpop.eup %3391  ;;  %v679_v9 = vadd.f32 %v4097_v54, %v641_v26  ;;  %v605_v27 = vmul.f32 %v3390_v11, %v3941_v12  ;;  %v548_v3 = vadd.f32 1e-05, %v516_v45  ;;  %v457_v53 = vpop.xlane.xlu1 %456  ;;  %3238 = vmatprep.mubr.msk.bf16.mxu0 %vm210_vm0, %v800_v32 }
 0x14f   :  { %v460_v58 = vpop.xlane.xlu0 %459  ;;  %v680_v5 = vadd.f32 %v4097_v54, %v642_v59  ;;  %v606_v14 = vmul.f32 %v3392_v55, %v3949_v18  ;;  %3401 = vrsqrt.f32 %v547_v52  ;;  %v517_v8 = vmul.f32 0.03125, %v457_v53  ;;  %v771_v13 = vld [vmem:[#allocation2 + $0x18] sm:$0xff] }
 0x150   :  { %711 = vst.msk [vmem:[#allocation2 + $0x38] sm:$0xff] %vm210_vm0, %v679_v9  ;;  %v643_v19 = vmul.f32 %v4091_v7, %v605_v27  ;;  %3403 = vrsqrt.f32 %v548_v3  ;;  %v518_v21 = vmul.f32 0.03125, %v460_v58  ;;  %v801_v12 = vpack.c.bf16 %v771_v13, %v770_v48  ;;  %v772_v15 = vld [vmem:[#allocation2 + $0x20] sm:$0xff] }
 0x151   :  { %v3394_v1 = vpop.eup %3393  ;;  %712 = vst.msk [vmem:[#allocation2 + $0x40] sm:$0xff] %vm210_vm0, %v680_v5  ;;  %v644_v6 = vmul.f32 %v4091_v7, %v606_v14  ;;  %v549_v60 = vadd.f32 1e-05, %v517_v8 }
 0x152   :  { %v3396_v25 = vpop.eup %3395  ;;  %v681_v18 = vadd.f32 %v4097_v54, %v643_v19  ;;  %v607_v63 = vmul.f32 %v3394_v1, %v3953_v30  ;;  %v550_v29 = vadd.f32 1e-05, %v518_v21  ;;  %v463_v10 = vpop.xlane.xlu1 %462  ;;  %3239 = vmatmul.mubr.msk.bf16.vlgmr.msra.gmra.mrb[0].mxu0 %vm210_vm0, %v801_v12 }
 0x153   :  { %v466_v20 = vpop.xlane.xlu0 %465  ;;  %v682_v47 = vadd.f32 %v4097_v54, %v644_v6  ;;  %v608_v51 = vmul.f32 %v3396_v25, %v3961_v44  ;;  %3405 = vrsqrt.f32 %v549_v60  ;;  %v519_v28 = vmul.f32 0.03125, %v463_v10  ;;  %v773_v56 = vld [vmem:[#allocation2 + $0x28] sm:$0xff] }
 0x154   :  { %713 = vst.msk [vmem:[#allocation2 + $0x48] sm:$0xff] %vm210_vm0, %v681_v18  ;;  %v645_v33 = vmul.f32 %v4091_v7, %v607_v63  ;;  %3407 = vrsqrt.f32 %v550_v29  ;;  %v520_v36 = vmul.f32 0.03125, %v466_v20  ;;  %v802_v30 = vpack.c.bf16 %v773_v56, %v772_v15  ;;  %v774_v55 = vld [vmem:[#allocation2 + $0x30] sm:$0xff] }
 0x155   :  { %v3398_v39 = vpop.eup %3397  ;;  %714 = vst.msk [vmem:[#allocation2 + $0x50] sm:$0xff] %vm210_vm0, %v682_v47  ;;  %v646_v43 = vmul.f32 %v4091_v7, %v608_v51  ;;  %v551_v57 = vadd.f32 1e-05, %v519_v28 }
 0x156   :  { %v3400_v61 = vpop.eup %3399  ;;  %v683_v44 = vadd.f32 %v4097_v54, %v645_v33  ;;  %v609_v40 = vmul.f32 %v3398_v39, %v3965_v46  ;;  %v552_v26 = vadd.f32 1e-05, %v520_v36  ;;  %v469_v45 = vpop.xlane.xlu1 %468  ;;  %3242 = vmatprep.mubr.msk.bf16.mxu0 %vm210_vm0, %v802_v30 }
 0x157   :  { %v472_v32 = vpop.xlane.xlu0 %471  ;;  %v684_v11 = vadd.f32 %v4097_v54, %v646_v43  ;;  %v610_v59 = vmul.f32 %v3400_v61, %v3973_v62  ;;  %3409 = vrsqrt.f32 %v551_v57  ;;  %v521_v52 = vmul.f32 0.03125, %v469_v45  ;;  %v775_v9 = vld [vmem:[#allocation2 + $0x38] sm:$0xff] }
 0x158   :  { %715 = vst.msk [vmem:[#allocation2 + $0x58] sm:$0xff] %vm210_vm0, %v683_v44  ;;  %v647_v27 = vmul.f32 %v4091_v7, %v609_v40  ;;  %3411 = vrsqrt.f32 %v552_v26  ;;  %v522_v3 = vmul.f32 0.03125, %v472_v32  ;;  %v803_v46 = vpack.c.bf16 %v775_v9, %v774_v55  ;;  %v776_v6 = vld [vmem:[#allocation2 + $0x40] sm:$0xff] }
 0x159   :  { %v3402_v53 = vpop.eup %3401  ;;  %716 = vst.msk [vmem:[#allocation2 + $0x60] sm:$0xff] %vm210_vm0, %v684_v11  ;;  %v648_v58 = vmul.f32 %v4091_v7, %v610_v59  ;;  %v553_v5 = vadd.f32 1e-05, %v521_v52 }
 0x15a   :  { %v3404_v14 = vpop.eup %3403  ;;  %v685_v62 = vadd.f32 %v4097_v54, %v647_v27  ;;  %v611_v8 = vmul.f32 %v3402_v53, %v3977_v0  ;;  %v554_v48 = vadd.f32 1e-05, %v522_v3  ;;  %v475_v13 = vpop.xlane.xlu1 %474  ;;  %3243 = vmatmul.mubr.msk.bf16.gmra.mrb[4].mxu0 %vm210_vm0, %v803_v46 }
 0x15b   :  { %v478_v19 = vpop.xlane.xlu0 %477  ;;  %v686_v21 = vadd.f32 %v4097_v54, %v648_v58  ;;  %v612_v12 = vmul.f32 %v3404_v14, %v3985_v16  ;;  %3413 = vrsqrt.f32 %v553_v5  ;;  %v523_v1 = vmul.f32 0.03125, %v475_v13  ;;  %v777_v60 = vld [vmem:[#allocation2 + $0x48] sm:$0xff] }
 0x15c   :  { %717 = vst.msk [vmem:[#allocation2 + $0x68] sm:$0xff] %vm210_vm0, %v685_v62  ;;  %v649_v25 = vmul.f32 %v4091_v7, %v611_v8  ;;  %3415 = vrsqrt.f32 %v554_v48  ;;  %v524_v18 = vmul.f32 0.03125, %v478_v19  ;;  %v804_v0 = vpack.c.bf16 %v777_v60, %v776_v6  ;;  %v778_v30 = vld [vmem:[#allocation2 + $0x50] sm:$0xff] }
 0x15d   :  { %v3406_v63 = vpop.eup %3405  ;;  %718 = vst.msk [vmem:[#allocation2 + $0x70] sm:$0xff] %vm210_vm0, %v686_v21  ;;  %v650_v29 = vmul.f32 %v4091_v7, %v612_v12  ;;  %v555_v10 = vadd.f32 1e-05, %v523_v1 }
 0x15e   :  { %v3408_v20 = vpop.eup %3407  ;;  %v687_v16 = vadd.f32 %v4097_v54, %v649_v25  ;;  %v613_v47 = vmul.f32 %v3406_v63, %v3989_v17  ;;  %v556_v51 = vadd.f32 1e-05, %v524_v18  ;;  %v481_v28 = vpop.xlane.xlu1 %480  ;;  %3246 = vmatprep.mubr.msk.bf16.mxu0 %vm210_vm0, %v804_v0 }
 0x15f   :  { %v484_v15 = vpop.xlane.xlu0 %483  ;;  %v688_v56 = vadd.f32 %v4097_v54, %v650_v29  ;;  %v614_v33 = vmul.f32 %v3408_v20, %v3997_v34  ;;  %3417 = vrsqrt.f32 %v555_v10  ;;  %v525_v36 = vmul.f32 0.03125, %v481_v28  ;;  %v779_v39 = vld [vmem:[#allocation2 + $0x58] sm:$0xff] }
 0x160   :  { %719 = vst.msk [vmem:[#allocation2 + $0x78] sm:$0xff] %vm210_vm0, %v687_v16  ;;  %v651_v43 = vmul.f32 %v4091_v7, %v613_v47  ;;  %3419 = vrsqrt.f32 %v556_v51  ;;  %v526_v57 = vmul.f32 0.03125, %v484_v15  ;;  %v805_v17 = vpack.c.bf16 %v779_v39, %v778_v30  ;;  %v780_v27 = vld [vmem:[#allocation2 + $0x60] sm:$0xff] }
 0x161   :  { %v3410_v61 = vpop.eup %3409  ;;  %720 = vst.msk [vmem:[#allocation2 + $0x80] sm:$0xff] %vm210_vm0, %v688_v56  ;;  %v652_v44 = vmul.f32 %v4091_v7, %v614_v33  ;;  %v557_v40 = vadd.f32 1e-05, %v525_v36 }
 0x162   :  { %v3412_v26 = vpop.eup %3411  ;;  %v689_v34 = vadd.f32 %v4097_v54, %v651_v43  ;;  %v615_v45 = vmul.f32 %v3410_v61, %v4001_v35  ;;  %v558_v32 = vadd.f32 1e-05, %v526_v57  ;;  %v487_v11 = vpop.xlane.xlu1 %486  ;;  %3247 = vmatmul.mubr.msk.bf16.gmra.mrb[8].mxu0 %vm210_vm0, %v805_v17 }
 0x163   :  { %v490_v59 = vpop.xlane.xlu0 %489  ;;  %v690_v52 = vadd.f32 %v4097_v54, %v652_v44  ;;  %v616_v55 = vmul.f32 %v3412_v26, %v4009_v49  ;;  %3421 = vrsqrt.f32 %v557_v40  ;;  %v527_v9 = vmul.f32 0.03125, %v487_v11  ;;  %v781_v3 = vld [vmem:[#allocation2 + $0x68] sm:$0xff] }
 0x164   :  { %721 = vst.msk [vmem:[#allocation2 + $0x88] sm:$0xff] %vm210_vm0, %v689_v34  ;;  %v653_v46 = vmul.f32 %v4091_v7, %v615_v45  ;;  %3423 = vrsqrt.f32 %v558_v32  ;;  %v528_v53 = vmul.f32 0.03125, %v490_v59  ;;  %v806_v35 = vpack.c.bf16 %v781_v3, %v780_v27  ;;  %v782_v6 = vld [vmem:[#allocation2 + $0x70] sm:$0xff] }
 0x165   :  { %v3414_v58 = vpop.eup %3413  ;;  %722 = vst.msk [vmem:[#allocation2 + $0x90] sm:$0xff] %vm210_vm0, %v690_v52  ;;  %v654_v5 = vmul.f32 %v4091_v7, %v616_v55  ;;  %v559_v14 = vadd.f32 1e-05, %v527_v9 }
 0x166   :  { %v3416_v62 = vpop.eup %3415  ;;  %v691_v49 = vadd.f32 %v4097_v54, %v653_v46  ;;  %v617_v8 = vmul.f32 %v3414_v58, %v4013_v50  ;;  %v560_v48 = vadd.f32 1e-05, %v528_v53  ;;  %v493_v13 = vpop.xlane.xlu1 %492  ;;  %3250 = vmatprep.mubr.msk.bf16.mxu0 %vm210_vm0, %v806_v35 }
 0x167   :  { %v496_v19 = vpop.xlane.xlu0 %495  ;;  %v692_v21 = vadd.f32 %v4097_v54, %v654_v5  ;;  %v618_v12 = vmul.f32 %v3416_v62, %v4021_v2  ;;  %3425 = vrsqrt.f32 %v559_v14  ;;  %v529_v1 = vmul.f32 0.03125, %v493_v13  ;;  %v783_v60 = vld [vmem:[#allocation2 + $0x78] sm:$0xff] }
 0x168   :  { %723 = vst.msk [vmem:[#allocation2 + $0x98] sm:$0xff] %vm210_vm0, %v691_v49  ;;  %v655_v25 = vmul.f32 %v4091_v7, %v617_v8  ;;  %3427 = vrsqrt.f32 %v560_v48  ;;  %v530_v18 = vmul.f32 0.03125, %v496_v19  ;;  %v807_v50 = vpack.c.bf16 %v783_v60, %v782_v6  ;;  %v784_v56 = vld [vmem:[#allocation2 + $0x80] sm:$0xff] }
 0x169   :  { %v3418_v0 = vpop.eup %3417  ;;  %724 = vst.msk [vmem:[#allocation2 + $0xa0] sm:$0xff] %vm210_vm0, %v692_v21  ;;  %v656_v63 = vmul.f32 %v4091_v7, %v618_v12  ;;  %v561_v29 = vadd.f32 1e-05, %v529_v1 }
 0x16a   :  { %v3420_v10 = vpop.eup %3419  ;;  %v693_v2 = vadd.f32 %v4097_v54, %v655_v25  ;;  %v619_v20 = vmul.f32 %v3418_v0, %v4025_v4  ;;  %v562_v16 = vadd.f32 1e-05, %v530_v18  ;;  %v499_v47 = vpop.xlane.xlu1 %498  ;;  %3251 = vmatmul.mubr.msk.bf16.gmra.mrb[12].mxu0 %vm210_vm0, %v807_v50 }
 0x16b   :  { %v694_v51 = vadd.f32 %v4097_v54, %v656_v63  ;;  %v620_v28 = vmul.f32 %v3420_v10, %v4033_v22  ;;  %3429 = vrsqrt.f32 %v561_v29  ;;  %v531_v15 = vmul.f32 0.03125, %v499_v47  ;;  %v785_v33 = vld [vmem:[#allocation2 + $0x88] sm:$0xff]  ;;  %v3364_v47 = vld [vmem:[%s5377_s6 + $0x18] sm:$0xff]  }
 0x16c   :  { %725 = vst.msk [vmem:[#allocation2 + $0xa8] sm:$0xff] %vm210_vm0, %v693_v2  ;;  %v657_v36 = vmul.f32 %v4091_v7, %v619_v20  ;;  %3431 = vrsqrt.f32 %v562_v16  ;;  %v808_v30 = vpack.c.bf16 %v785_v33, %v784_v56  ;;  %v786_v40 = vld [vmem:[#allocation2 + $0x90] sm:$0xff]  ;;  %v3362_v20 = vld [vmem:[%s5377_s6 + $0x8] sm:$0xff]   ;;  %v3368_v56 = vld [vmem:[%s5377_s6 + $0x38] sm:$0xff]   ;;  %v3595_v33 = vmov 0.0  }
 0x16d   :  { %v3422_v39 = vpop.eup %3421  ;;  %726 = vst.msk [vmem:[#allocation2 + $0xb0] sm:$0xff] %vm210_vm0, %v694_v51  ;;  %v658_v4 = vmul.f32 %v4091_v7, %v620_v28  ;;  %v563_v43 = vadd.f32 1e-05, %v531_v15  ;;  %v3363_v16 = vld [vmem:[%s5377_s6 + $0x10] sm:$0xff]   ;;  %v3365_v51 = vld [vmem:[%s5377_s6 + $0x20] sm:$0xff]   ;;  %v3366_v28 = vld [vmem:[%s5377_s6 + $0x28] sm:$0xff]  }
 0x16e   :  { %v3424_v57 = vpop.eup %3423  ;;  %v695_v17 = vadd.f32 %v4097_v54, %v657_v36  ;;  %v621_v22 = vmul.f32 %v3422_v39, %v4037_v24  ;;  %3254 = vmatprep.mubr.msk.bf16.mxu1 %vm210_vm0, %v808_v30  ;;  %v3367_v15 = vld [vmem:[%s5377_s6 + $0x30] sm:$0xff]   ;;  %738 = vst.msk [vmem:[#allocation3 + $0x10] sm:$0xff] %vm210_vm0, %v3595_v33  ;;  %736 = vst.msk [vmem:[#allocation3] sm:$0xff] %vm210_vm0, %v3595_v33  ;;  %v4301_v36 = vld [vmem:[%s5378_s5] ss:$0 sm:$0xff] }
 0x16f   :  { %v696_v61 = vadd.f32 %v4097_v54, %v658_v4  ;;  %v622_v44 = vmul.f32 %v3424_v57, %v4048_v23  ;;  %3433 = vrsqrt.f32 %v563_v43  ;;  %v787_v26 = vld [vmem:[#allocation2 + $0x98] sm:$0xff]  ;;  %737 = vst.msk [vmem:[#allocation3 + $0x8] sm:$0xff] %vm210_vm0, %v3595_v33  ;;  %739 = vst.msk [vmem:[#allocation3 + $0x18] sm:$0xff] %vm210_vm0, %v3595_v33 }
 0x170   :  { %727 = vst.msk [vmem:[#allocation2 + $0xb8] sm:$0xff] %vm210_vm0, %v695_v17  ;;  %v659_v34 = vmul.f32 %v4091_v7, %v621_v22  ;;  %v809_v45 = vpack.c.bf16 %v787_v26, %v786_v40  ;;  %v788_v9 = vld [vmem:[#allocation2 + $0xa0] sm:$0xff]  ;;  %740 = vst.msk [vmem:[#allocation3 + $0x20] sm:$0xff] %vm210_vm0, %v3595_v33 }
 0x171   :  { %v3426_v32 = vpop.eup %3425  ;;  %728 = vst.msk [vmem:[#allocation2 + $0xc0] sm:$0xff] %vm210_vm0, %v696_v61  ;;  %v660_v11 = vmul.f32 %v4091_v7, %v622_v44  ;;  %741 = vst.msk [vmem:[#allocation3 + $0x28] sm:$0xff] %vm210_vm0, %v3595_v33 }
 0x172   :  { %v3428_v24 = vpop.eup %3427  ;;  %v697_v59 = vadd.f32 %v4097_v54, %v659_v34  ;;  %v623_v52 = vmul.f32 %v3426_v32, %v4052_v42  ;;  %3255 = vmatmul.mubr.msk.bf16.vlgmr.msra.gmra.mrb[0].mxu1 %vm210_vm0, %v809_v45  ;;  %742 = vst.msk [vmem:[#allocation3 + $0x30] sm:$0xff] %vm210_vm0, %v3595_v33  ;;  %743 = vst.msk [vmem:[#allocation3 + $0x38] sm:$0xff] %vm210_vm0, %v3595_v33 }
 0x173   :  { %v698_v23 = vadd.f32 %v4097_v54, %v660_v11  ;;  %v624_v55 = vmul.f32 %v3428_v24, %v4063_v38  ;;  %v789_v27 = vld [vmem:[#allocation2 + $0xa8] sm:$0xff]  ;;  %744 = vst.msk [vmem:[#allocation3 + $0x40] sm:$0xff] %vm210_vm0, %v3595_v33  ;;  %745 = vst.msk [vmem:[#allocation3 + $0x48] sm:$0xff] %vm210_vm0, %v3595_v33 }
 0x174   :  { %729 = vst.msk [vmem:[#allocation2 + $0xc8] sm:$0xff] %vm210_vm0, %v697_v59  ;;  %v661_v3 = vmul.f32 %v4091_v7, %v623_v52  ;;  %v810_v46 = vpack.c.bf16 %v789_v27, %v788_v9  ;;  %v790_v62 = vld [vmem:[#allocation2 + $0xb0] sm:$0xff]  ;;  %746 = vst.msk [vmem:[#allocation3 + $0x50] sm:$0xff] %vm210_vm0, %v3595_v33 }
 0x175   :  { %v3430_v53 = vpop.eup %3429  ;;  %730 = vst.msk [vmem:[#allocation2 + $0xd0] sm:$0xff] %vm210_vm0, %v698_v23  ;;  %v662_v35 = vmul.f32 %v4091_v7, %v624_v55  ;;  %747 = vst.msk [vmem:[#allocation3 + $0x58] sm:$0xff] %vm210_vm0, %v3595_v33 }
 0x176   :  { %v3432_v58 = vpop.eup %3431  ;;  %v699_v42 = vadd.f32 %v4097_v54, %v661_v3  ;;  %v625_v5 = vmul.f32 %v3430_v53, %v4067_v31  ;;  %3258 = vmatprep.mubr.msk.bf16.mxu1 %vm210_vm0, %v810_v46  ;;  %748 = vst.msk [vmem:[#allocation3 + $0x60] sm:$0xff] %vm210_vm0, %v3595_v33  ;;  %749 = vst.msk [vmem:[#allocation3 + $0x68] sm:$0xff] %vm210_vm0, %v3595_v33 }
 0x177   :  { %v700_v38 = vadd.f32 %v4097_v54, %v662_v35  ;;  %v626_v14 = vmul.f32 %v3432_v58, %v4075_v37  ;;  %v791_v49 = vld [vmem:[#allocation2 + $0xb8] sm:$0xff]  ;;  %750 = vst.msk [vmem:[#allocation3 + $0x70] sm:$0xff] %vm210_vm0, %v3595_v33  ;;  %751 = vst.msk [vmem:[#allocation3 + $0x78] sm:$0xff] %vm210_vm0, %v3595_v33 }
 0x178   :  { %731 = vst.msk [vmem:[#allocation2 + $0xd8] sm:$0xff] %vm210_vm0, %v699_v42  ;;  %v663_v8 = vmul.f32 %v4091_v7, %v625_v5  ;;  %v811_v48 = vpack.c.bf16 %v791_v49, %v790_v62  ;;  %v792_v12 = vld [vmem:[#allocation2 + $0xc0] sm:$0xff]  ;;  %752 = vst.msk [vmem:[#allocation3 + $0x80] sm:$0xff] %vm210_vm0, %v3595_v33 }
 0x179   :  { %v3434_v13 = vpop.eup %3433  ;;  %732 = vst.msk [vmem:[#allocation2 + $0xe0] sm:$0xff] %vm210_vm0, %v700_v38  ;;  %v664_v19 = vmul.f32 %v4091_v7, %v626_v14  ;;  %753 = vst.msk [vmem:[#allocation3 + $0x88] sm:$0xff] %vm210_vm0, %v3595_v33 }
 0x17a   :  { %v701_v31 = vadd.f32 %v4097_v54, %v663_v8  ;;  %v627_v21 = vmul.f32 %v3434_v13, %v4079_v41  ;;  %3259 = vmatmul.mubr.msk.bf16.gmra.mrb[4].mxu1 %vm210_vm0, %v811_v48  ;;  %754 = vst.msk [vmem:[#allocation3 + $0x90] sm:$0xff] %vm210_vm0, %v3595_v33  ;;  %755 = vst.msk [vmem:[#allocation3 + $0x98] sm:$0xff] %vm210_vm0, %v3595_v33 }
 0x17b   :  { %v702_v37 = vadd.f32 %v4097_v54, %v664_v19  ;;  %v793_v1 = vld [vmem:[#allocation2 + $0xc8] sm:$0xff]  ;;  %756 = vst.msk [vmem:[#allocation3 + $0xa0] sm:$0xff] %vm210_vm0, %v3595_v33  ;;  %757 = vst.msk [vmem:[#allocation3 + $0xa8] sm:$0xff] %vm210_vm0, %v3595_v33 }
 0x17c   :  { %733 = vst.msk [vmem:[#allocation2 + $0xe8] sm:$0xff] %vm210_vm0, %v701_v31  ;;  %v665_v6 = vmul.f32 %v4091_v7, %v627_v21  ;;  %v812_v60 = vpack.c.bf16 %v793_v1, %v792_v12  ;;  %v794_v18 = vld [vmem:[#allocation2 + $0xd0] sm:$0xff]  ;;  %758 = vst.msk [vmem:[#allocation3 + $0xb0] sm:$0xff] %vm210_vm0, %v3595_v33 }
 0x17d   :  { %734 = vst.msk [vmem:[#allocation2 + $0xf0] sm:$0xff] %vm210_vm0, %v702_v37  ;;  %759 = vst.msk [vmem:[#allocation3 + $0xb8] sm:$0xff] %vm210_vm0, %v3595_v33 }
 0x17e   :  { %v703_v25 = vadd.f32 %v4097_v54, %v665_v6  ;;  %3262 = vmatprep.mubr.msk.bf16.mxu1 %vm210_vm0, %v812_v60  ;;  %v3361_v54 = vld [vmem:[%s5377_s6] sm:$0xff]   ;;  %760 = vst.msk [vmem:[#allocation3 + $0xc0] sm:$0xff] %vm210_vm0, %v3595_v33  ;;  %761 = vst.msk [vmem:[#allocation3 + $0xc8] sm:$0xff] %vm210_vm0, %v3595_v33 }
 0x17f   :  { %v795_v50 = vld [vmem:[#allocation2 + $0xd8] sm:$0xff]  ;;  %3270 = vmatprep.subr.bf16.mxu1 %v3361_v54  ;;  %762 = vst.msk [vmem:[#allocation3 + $0xd0] sm:$0xff] %vm210_vm0, %v3595_v33  ;;  %763 = vst.msk [vmem:[#allocation3 + $0xd8] sm:$0xff] %vm210_vm0, %v3595_v33 }
 0x180   :  { %735 = vst.msk [vmem:[#allocation2 + $0xf8] sm:$0xff] %vm210_vm0, %v703_v25  ;;  %v813_v41 = vpack.c.bf16 %v795_v50, %v794_v18  ;;  %v796_v0 = vld [vmem:[#allocation2 + $0xe0] sm:$0xff]  ;;  %3271 = vmatpush3.bf16.msra.mxu1 %v3361_v54  ;;  %764 = vst.msk [vmem:[#allocation3 + $0xe0] sm:$0xff] %vm210_vm0, %v3595_v33 }
 0x181   :  { %3272 = vmatprep.subr.bf16.mxu1 %v3362_v20  ;;  %765 = vst.msk [vmem:[#allocation3 + $0xe8] sm:$0xff] %vm210_vm0, %v3595_v33  ;;  %766 = vst.msk [vmem:[#allocation3 + $0xf0] sm:$0xff] %vm210_vm0, %v3595_v33 }
 0x182   :  { %3263 = vmatmul.mubr.msk.bf16.gmra.mrb[8].mxu1 %vm210_vm0, %v813_v41  ;;  %767 = vst.msk [vmem:[#allocation3 + $0xf8] sm:$0xff] %vm210_vm0, %v3595_v33 }
 0x183   :  { %v797_v63 = vld [vmem:[#allocation2 + $0xe8] sm:$0xff] }
 0x184   :  { %v814_v29 = vpack.c.bf16 %v797_v63, %v796_v0  ;;  %v798_v7 = vld [vmem:[#allocation2 + $0xf0] sm:$0xff]  ;;  %3273 = vmatpush3.bf16.msra.mxu1 %v3362_v20 }
 0x185   :  { %3274 = vmatprep.subr.bf16.mxu1 %v3363_v16 }
 0x186   :  { %3266 = vmatprep.mubr.msk.bf16.mxu1 %vm210_vm0, %v814_v29 }
 0x187   :  { %v799_v10 = vld [vmem:[#allocation2 + $0xf8] sm:$0xff] }
 0x188   :  { %v815_v2 = vpack.c.bf16 %v799_v10, %v798_v7  ;;  %3275 = vmatpush3.bf16.msra.mxu1 %v3363_v16 }
 0x189   :  { %3276 = vmatprep.subr.bf16.mxu1 %v3364_v47 }
 0x18a   :  { %3267 = vmatmul.mubr.msk.bf16.gmra.mrb[12].mxu1 %vm210_vm0, %v815_v2 }
 0x18c   :  { %3277 = vmatpush3.bf16.msra.mxu1 %v3364_v47 }
 0x18d   :  { %3278 = vmatprep.subr.bf16.mxu1 %v3365_v51 }
 0x190   :  { %3279 = vmatpush3.bf16.msra.mxu1 %v3365_v51 }
 0x191   :  { %3280 = vmatprep.subr.bf16.mxu1 %v3366_v28 }
 0x194   :  { %3281 = vmatpush3.bf16.msra.mxu1 %v3366_v28 }
 0x195   :  { %3282 = vmatprep.subr.bf16.mxu1 %v3367_v15 }
 0x198   :  { %3283 = vmatpush3.bf16.msra.mxu1 %v3367_v15 }
 0x199   :  { %3284 = vmatprep.subr.bf16.mxu1 %v3368_v56 }
 0x19c   :  { %3285 = vmatpush3.bf16.msra.mxu1 %v3368_v56 }
 0x225   :  { %v3240_v30 = vpop.f32.mrb[0].mxu0 }
 0x226   :  { %v931_v39 = vadd.f32 %v3240_v30, %v4301_v36  ;;  %v922_v4 = vpop.f32.mrb[1].mxu0 }
 0x227   :  { %v4305_v43 = vadd.f32 %v4301_v36, %v922_v4  ;;  %v3241_v57 = vpop.f32.mrb[2].mxu0 }
 0x228   :  { %v1083_v17 = vmul.f32 0.044715, %v931_v39  ;;  %v4308_v22 = vadd.f32 %v3241_v57, %v4301_v36  ;;  %v925_v61 = vpop.f32.mrb[3].mxu0  ;;  %v1051_v54 = vmul.f32 0.5, %v931_v39 }
 0x229   :  { %v1081_v44 = vmul.f32 0.044715, %v4305_v43  ;;  %v4312_v40 = vadd.f32 %v4301_v36, %v925_v61  ;;  %v1049_v30 = vmul.f32 0.5, %v4305_v43 }
 0x22a   :  { %v1115_v26 = vmul.f32 %v1083_v17, %v931_v39  ;;  %v1084_v34 = vmul.f32 0.044715, %v4308_v22 }
 0x22b   :  { %v1113_v45 = vmul.f32 %v1081_v44, %v4305_v43  ;;  %v1082_v32 = vmul.f32 0.044715, %v4312_v40 }
 0x22c   :  { %v1147_v11 = vmul.f32 %v1115_v26, %v931_v39  ;;  %v1116_v24 = vmul.f32 %v1084_v34, %v4308_v22  ;;  %v1052_v26 = vmul.f32 0.5, %v4308_v22 }
 0x22d   :  { %v1145_v59 = vmul.f32 %v1113_v45, %v4305_v43  ;;  %v1114_v52 = vmul.f32 %v1082_v32, %v4312_v40  ;;  %v3244_v23 = vpop.f32.mrb[4].mxu0  ;;  %v1050_v45 = vmul.f32 0.5, %v4312_v40 }
 0x22e   :  { %v1179_v55 = vadd.f32 %v1147_v11, %v931_v39  ;;  %v1148_v9 = vmul.f32 %v1116_v24, %v4308_v22  ;;  %v4322_v27 = vadd.f32 %v3244_v23, %v4301_v36  ;;  %v938_v3 = vpop.f32.mrb[5].mxu0 }
 0x22f   :  { %v1146_v46 = vmul.f32 %v1114_v52, %v4312_v40  ;;  %v939_v53 = vadd.f32 %v4301_v36, %v938_v3  ;;  %v3245_v35 = vpop.f32.mrb[6].mxu0  ;;  %v1177_v58 = vadd.f32 %v1145_v59, %v4305_v43 }
 0x230   :  { %v1211_v42 = vmul.f32 0.7978846, %v1179_v55  ;;  %v1180_v5 = vadd.f32 %v1148_v9, %v4308_v22  ;;  %v1087_v38 = vmul.f32 0.044715, %v4322_v27  ;;  %v4330_v14 = vadd.f32 %v3245_v35, %v4301_v36  ;;  %v941_v62 = vpop.f32.mrb[7].mxu0 }
 0x231   :  { %v1085_v49 = vmul.f32 0.044715, %v939_v53  ;;  %v942_v8 = vadd.f32 %v4301_v36, %v941_v62  ;;  %v1178_v48 = vadd.f32 %v1146_v46, %v4312_v40  ;;  %v1209_v13 = vmul.f32 0.7978846, %v1177_v58 }
 0x232   :  { %3435 = vtanh.f32 %v1211_v42  ;;  %v1212_v19 = vmul.f32 0.7978846, %v1180_v5  ;;  %v1119_v31 = vmul.f32 %v1087_v38, %v4322_v27  ;;  %v1088_v21 = vmul.f32 0.044715, %v4330_v14 }
 0x233   :  { %v1117_v37 = vmul.f32 %v1085_v49, %v939_v53  ;;  %v1086_v12 = vmul.f32 0.044715, %v942_v8  ;;  %v1210_v1 = vmul.f32 0.7978846, %v1178_v48  ;;  %3437 = vtanh.f32 %v1209_v13 }
 0x234   :  { %3439 = vtanh.f32 %v1212_v19  ;;  %v1151_v6 = vmul.f32 %v1119_v31, %v4322_v27  ;;  %v1120_v60 = vmul.f32 %v1088_v21, %v4330_v14  ;;  %v4361_v59 = vmul.f32 0.5, %v939_v53 }
 0x235   :  { %v1149_v25 = vmul.f32 %v1117_v37, %v939_v53  ;;  %v1118_v18 = vmul.f32 %v1086_v12, %v942_v8  ;;  %v3248_v50 = vpop.f32.mrb[8].mxu0  ;;  %3441 = vtanh.f32 %v1210_v1  ;;  %v1054_v3 = vmul.f32 0.5, %v942_v8 }
 0x236   :  { %v1152_v41 = vmul.f32 %v1120_v60, %v4330_v14  ;;  %v954_v0 = vpop.f32.mrb[9].mxu0  ;;  %v1183_v2 = vadd.f32 %v1151_v6, %v4322_v27  ;;  %v4344_v20 = vadd.f32 %v3248_v50, %v4301_v36  ;;  %v1055_v49 = vmul.f32 0.5, %v4322_v27 }
 0x237   :  { %v1150_v63 = vmul.f32 %v1118_v18, %v942_v8  ;;  %v4340_v29 = vadd.f32 %v4301_v36, %v954_v0  ;;  %v3249_v7 = vpop.f32.mrb[10].mxu0  ;;  %v1181_v10 = vadd.f32 %v1149_v25, %v939_v53  ;;  %v1056_v37 = vmul.f32 0.5, %v4330_v14 }
 0x238   :  { %v957_v16 = vpop.f32.mrb[11].mxu0  ;;  %v1184_v47 = vadd.f32 %v1152_v41, %v4330_v14  ;;  %v4352_v33 = vadd.f32 %v3249_v7, %v4301_v36  ;;  %v1215_v4 = vmul.f32 0.7978846, %v1183_v2  ;;  %v1091_v34 = vmul.f32 0.044715, %v4344_v20 }
 0x239   :  { %v1089_v51 = vmul.f32 0.044715, %v4340_v29  ;;  %v4349_v28 = vadd.f32 %v4301_v36, %v957_v16  ;;  %v1182_v15 = vadd.f32 %v1150_v63, %v942_v8  ;;  %v1213_v56 = vmul.f32 0.7978846, %v1181_v10 }
 0x23a   :  { %v1216_v39 = vmul.f32 0.7978846, %v1184_v47  ;;  %v1092_v46 = vmul.f32 0.044715, %v4352_v33  ;;  %v1123_v53 = vmul.f32 %v1091_v34, %v4344_v20  ;;  %v4383_v27 = vmul.f32 0.5, %v4344_v20 }
 0x23b   :  { %v1121_v57 = vmul.f32 %v1089_v51, %v4340_v29  ;;  %v1090_v17 = vmul.f32 0.044715, %v4349_v28  ;;  %v1214_v61 = vmul.f32 0.7978846, %v1182_v15  ;;  %3443 = vtanh.f32 %v1213_v56 }
 0x23c   :  { %v3436_v44 = vpop.eup %3435  ;;  %3445 = vtanh.f32 %v1215_v4  ;;  %v1124_v1 = vmul.f32 %v1092_v46, %v4352_v33  ;;  %v1155_v63 = vmul.f32 %v1123_v53, %v4344_v20  ;;  %v4396_v15 = vmul.f32 0.5, %v4340_v29 }
 0x23d   :  { %v3438_v32 = vpop.eup %3437  ;;  %v1122_v11 = vmul.f32 %v1090_v17, %v4349_v28  ;;  %v3252_v43 = vpop.f32.mrb[12].mxu0  ;;  %v1275_v24 = vadd.f32 1.0, %v3436_v44  ;;  %3447 = vtanh.f32 %v1214_v61  ;;  %v1153_v23 = vmul.f32 %v1121_v57, %v4340_v29 }
 0x23e   :  { %v3440_v52 = vpop.eup %3439  ;;  %v970_v55 = vpop.f32.mrb[13].mxu0  ;;  %v1273_v9 = vadd.f32 1.0, %v3438_v32  ;;  %3449 = vtanh.f32 %v1216_v39  ;;  %v4371_v5 = vadd.f32 %v3252_v43, %v4301_v36 }
 0x23f   :  { %v3442_v22 = vpop.eup %3441  ;;  %v1154_v40 = vmul.f32 %v1122_v11, %v4349_v28  ;;  %v4367_v35 = vadd.f32 %v4301_v36, %v970_v55  ;;  %v3253_v58 = vpop.f32.mrb[14].mxu0  ;;  %v1276_v42 = vadd.f32 1.0, %v3440_v52  ;;  %v1307_v13 = vmul.f32 %v1275_v24, %v1051_v54 }
 0x240   :  { %v973_v38 = vpop.f32.mrb[15].mxu0  ;;  %v1274_v62 = vadd.f32 1.0, %v3442_v22  ;;  %v1305_v31 = vmul.f32 %v1273_v9, %v1049_v30  ;;  %v1185_v12 = vadd.f32 %v1153_v23, %v4340_v29  ;;  %v1095_v25 = vmul.f32 0.044715, %v4371_v5 }
 0x241   :  { %v1093_v8 = vmul.f32 0.044715, %v4367_v35  ;;  %v4376_v48 = vadd.f32 %v4301_v36, %v973_v38  ;;  %v1308_v19 = vmul.f32 %v1276_v42, %v1052_v26  ;;  %v1186_v60 = vadd.f32 %v1154_v40, %v4349_v28 }
 0x242   :  { %v1306_v21 = vmul.f32 %v1274_v62, %v1050_v45  ;;  %v1217_v41 = vmul.f32 0.7978846, %v1185_v12  ;;  %v4390_v7 = vadd.f32 %v3253_v58, %v4301_v36  ;;  %v1156_v30 = vmul.f32 %v1124_v1, %v4352_v33 }
 0x243   :  { %v1370_v6 = vpack.c.bf16 %v1308_v19, %v1307_v13  ;;  %v1094_v18 = vmul.f32 0.044715, %v4376_v48  ;;  %v1125_v14 = vmul.f32 %v1093_v8, %v4367_v35  ;;  %v1218_v2 = vmul.f32 0.7978846, %v1186_v60 }
 0x244   :  { %v1369_v50 = vpack.c.bf16 %v1306_v21, %v1305_v31  ;;  %3451 = vtanh.f32 %v1217_v41  ;;  %v1127_v61 = vmul.f32 %v1095_v25, %v4371_v5  ;;  %v1096_v32 = vmul.f32 0.044715, %v4390_v7 }
 0x245   :  { %v3444_v0 = vpop.eup %3443  ;;  %v3256_v10 = vpop.f32.mrb[0].mxu1  ;;  %3453 = vtanh.f32 %v1218_v2  ;;  %v1126_v44 = vmul.f32 %v1094_v18, %v4376_v48  ;;  %v1157_v45 = vmul.f32 %v1125_v14, %v4367_v35  ;;  %v1187_v55 = vadd.f32 %v1155_v63, %v4344_v20 }
 0x246   :  { %v3446_v54 = vpop.eup %3445  ;;  %v4393_v16 = vadd.f32 %v3256_v10, %v4301_v36  ;;  %v986_v47 = vpop.f32.mrb[1].mxu1  ;;  %3286 = vmatprep.mubr.bf16.mxu1 %v1369_v50  ;;  %v1277_v51 = vadd.f32 1.0, %v3444_v0  ;;  %v1188_v40 = vadd.f32 %v1156_v30, %v4352_v33  ;;  %v1128_v62 = vmul.f32 %v1096_v32, %v4390_v7 }
 0x247   :  { %v3448_v56 = vpop.eup %3447  ;;  %v4400_v4 = vadd.f32 %v4301_v36, %v986_v47  ;;  %v3257_v39 = vpop.f32.mrb[2].mxu1  ;;  %3287 = vmatmul.mubr.bf16.vlgmr.msra.gmra.mrb[16].mxu1 %v1370_v6  ;;  %v1279_v57 = vadd.f32 1.0, %v3446_v54  ;;  %v1158_v58 = vmul.f32 %v1126_v44, %v4376_v48  ;;  %v1219_v38 = vmul.f32 0.7978846, %v1187_v55 }
 0x248   :  { %v3450_v17 = vpop.eup %3449  ;;  %v4405_v26 = vadd.f32 %v3257_v39, %v4301_v36  ;;  %v989_v29 = vpop.f32.mrb[3].mxu1  ;;  %v1278_v34 = vadd.f32 1.0, %v3448_v56  ;;  %v1099_v11 = vmul.f32 0.044715, %v4393_v16  ;;  %v1309_v52 = vmul.f32 %v1277_v51, %v4361_v59 }
 0x249   :  { %v1280_v43 = vadd.f32 1.0, %v3450_v17  ;;  %v1097_v24 = vmul.f32 0.044715, %v4400_v4  ;;  %v4414_v9 = vadd.f32 %v4301_v36, %v989_v29  ;;  %v1311_v22 = vmul.f32 %v1279_v57, %v1055_v49 }
 0x24a   :  { %v1310_v23 = vmul.f32 %v1278_v34, %v1054_v3  ;;  %v1100_v42 = vmul.f32 0.044715, %v4405_v26  ;;  %v1058_v3 = vmul.f32 0.5, %v4349_v28  ;;  %v1220_v20 = vmul.f32 0.7978846, %v1188_v40 }
 0x24b   :  { %v1312_v46 = vmul.f32 %v1280_v43, %v1056_v37  ;;  %v1159_v13 = vmul.f32 %v1127_v61, %v4371_v5  ;;  %v1131_v49 = vmul.f32 %v1099_v11, %v4393_v16  ;;  %3455 = vtanh.f32 %v1219_v38 }
 0x24c   :  { %v1371_v53 = vpack.c.bf16 %v1310_v23, %v1309_v52  ;;  %v1129_v21 = vmul.f32 %v1097_v24, %v4400_v4  ;;  %v1098_v37 = vmul.f32 0.044715, %v4414_v9  ;;  %3457 = vtanh.f32 %v1220_v20 }
 0x24d   :  { %v3260_v8 = vpop.f32.mrb[4].mxu1  ;;  %v1372_v59 = vpack.c.bf16 %v1312_v46, %v1311_v22  ;;  %v1132_v6 = vmul.f32 %v1100_v42, %v4405_v26  ;;  %v1060_v25 = vmul.f32 0.5, %v4352_v33  ;;  %v1189_v18 = vadd.f32 %v1157_v45, %v4367_v35 }
 0x24e   :  { %v4424_v19 = vadd.f32 %v3260_v8, %v4301_v36  ;;  %v1002_v31 = vpop.f32.mrb[5].mxu1  ;;  %3290 = vmatprep.mubr.bf16.mxu1 %v1371_v53  ;;  %v3452_v28 = vpop.eup %3451  ;;  %v1190_v50 = vadd.f32 %v1158_v58, %v4376_v48  ;;  %v1160_v0 = vmul.f32 %v1128_v62, %v4390_v7  ;;  %v4443_v2 = vmul.f32 %v1131_v49, %v4393_v16 }
 0x24f   :  { %v4429_v12 = vadd.f32 %v4301_v36, %v1002_v31  ;;  %v3261_v1 = vpop.f32.mrb[6].mxu1  ;;  %3291 = vmatmul.mubr.bf16.gmra.mrb[20].mxu1 %v1372_v59  ;;  %v3454_v41 = vpop.eup %3453  ;;  %v1281_v10 = vadd.f32 1.0, %v3452_v28  ;;  %v1221_v47 = vmul.f32 0.7978846, %v1189_v18  ;;  %v1161_v51 = vmul.f32 %v1129_v21, %v4400_v4 }
 0x250   :  { %v1005_v60 = vpop.f32.mrb[7].mxu1  ;;  %v4437_v63 = vadd.f32 %v3261_v1, %v4301_v36  ;;  %v1103_v54 = vmul.f32 0.044715, %v4424_v19  ;;  %v1282_v33 = vadd.f32 1.0, %v3454_v41  ;;  %v1130_v56 = vmul.f32 %v1098_v37, %v4414_v9 }
 0x251   :  { %v4440_v14 = vadd.f32 %v4301_v36, %v1005_v60  ;;  %v1101_v30 = vmul.f32 0.044715, %v4429_v12  ;;  %v1222_v39 = vmul.f32 0.7978846, %v1190_v50  ;;  %v4450_v57 = vmul.f32 %v1132_v6, %v4405_v26 }
 0x252   :  { %v1313_v17 = vmul.f32 %v1281_v10, %v4396_v15  ;;  %v1314_v61 = vmul.f32 %v1282_v33, %v1058_v3  ;;  %3459 = vtanh.f32 %v1221_v47  ;;  %v1104_v44 = vmul.f32 0.044715, %v4437_v63 }
 0x253   :  { %v1102_v29 = vmul.f32 0.044715, %v4440_v14  ;;  %v4456_v45 = vmul.f32 0.5, %v4367_v35  ;;  %3461 = vtanh.f32 %v1222_v39  ;;  %v1135_v32 = vmul.f32 %v1103_v54, %v4424_v19 }
 0x254   :  { %v1373_v24 = vpack.c.bf16 %v1314_v61, %v1313_v17  ;;  %v1191_v15 = vadd.f32 %v1159_v13, %v4371_v5  ;;  %v1162_v52 = vmul.f32 %v1130_v56, %v4414_v9  ;;  %v1133_v23 = vmul.f32 %v1101_v30, %v4429_v12 }
 0x255   :  { %v3264_v34 = vpop.f32.mrb[8].mxu1  ;;  %v1062_v22 = vmul.f32 0.5, %v4376_v48  ;;  %v1192_v35 = vadd.f32 %v1160_v0, %v4390_v7  ;;  %v3456_v46 = vpop.eup %3455  ;;  %v4474_v53 = vmul.f32 0.5, %v4371_v5  ;;  %v1136_v8 = vmul.f32 %v1104_v44, %v4437_v63 }
 0x256   :  { %v4460_v11 = vadd.f32 %v3264_v34, %v4301_v36  ;;  %v1018_v43 = vpop.f32.mrb[9].mxu1  ;;  %3294 = vmatprep.mubr.bf16.mxu1 %v1373_v24  ;;  %v1223_v38 = vmul.f32 0.7978846, %v1191_v15  ;;  %v3458_v62 = vpop.eup %3457  ;;  %v1134_v48 = vmul.f32 %v1102_v29, %v4440_v14  ;;  %v1283_v59 = vadd.f32 1.0, %v3456_v46 }
 0x257   :  { %v3265_v55 = vpop.f32.mrb[10].mxu1  ;;  %v4468_v40 = vadd.f32 %v4301_v36, %v1018_v43  ;;  %v1224_v3 = vmul.f32 0.7978846, %v1192_v35  ;;  %v4479_v20 = vmul.f32 %v1135_v32, %v4424_v19  ;;  %v1284_v13 = vadd.f32 1.0, %v3458_v62 }
 0x258   :  { %v4471_v58 = vadd.f32 %v3265_v55, %v4301_v36  ;;  %v1021_v42 = vpop.f32.mrb[11].mxu1  ;;  %3463 = vtanh.f32 %v1223_v38  ;;  %v1165_v31 = vmul.f32 %v1133_v23, %v4429_v12  ;;  %v1107_v5 = vmul.f32 0.044715, %v4460_v11 }
 0x259   :  { %v4482_v49 = vadd.f32 %v4301_v36, %v1021_v42  ;;  %v1064_v21 = vmul.f32 0.5, %v4390_v7  ;;  %3465 = vtanh.f32 %v1224_v3  ;;  %v1105_v37 = vmul.f32 0.044715, %v4468_v40 }
 0x25a   :  { %v1315_v1 = vmul.f32 %v1283_v59, %v4383_v27  ;;  %v1316_v28 = vmul.f32 %v1284_v13, %v1060_v25  ;;  %v1193_v6 = vadd.f32 %v1161_v51, %v4400_v4  ;;  %v1168_v60 = vmul.f32 %v1136_v8, %v4437_v63 }
 0x25b   :  { %v1166_v18 = vmul.f32 %v1134_v48, %v4440_v14  ;;  %v1108_v50 = vmul.f32 0.044715, %v4471_v58  ;;  %v1194_v0 = vadd.f32 %v1162_v52, %v4414_v9  ;;  %v1106_v7 = vmul.f32 0.044715, %v4482_v49 }
 0x25c   :  { %v3460_v10 = vpop.eup %3459  ;;  %v1374_v54 = vpack.c.bf16 %v1316_v28, %v1315_v1  ;;  %v1225_v25 = vmul.f32 0.7978846, %v1193_v6  ;;  %v1139_v51 = vmul.f32 %v1107_v5, %v4460_v11  ;;  %v1137_v61 = vmul.f32 %v1105_v37, %v4468_v40 }
 0x25d   :  { %v3268_v41 = vpop.f32.mrb[12].mxu1  ;;  %v3462_v47 = vpop.eup %3461  ;;  %v1285_v30 = vadd.f32 1.0, %v3460_v10  ;;  %v1226_v17 = vmul.f32 0.7978846, %v1194_v0  ;;  %v1140_v32 = vmul.f32 %v1108_v50, %v4471_v58  ;;  %v1065_v24 = vmul.f32 0.5, %v4400_v4 }
 0x25e   :  { %v4496_v33 = vadd.f32 %v3268_v41, %v4301_v36  ;;  %v1034_v27 = vpop.f32.mrb[13].mxu1  ;;  %3295 = vmatmul.mubr.bf16.gmra.mrb[24].mxu1 %v1374_v54  ;;  %v1286_v44 = vadd.f32 1.0, %v3462_v47  ;;  %3467 = vtanh.f32 %v1225_v25  ;;  %v1138_v15 = vmul.f32 %v1106_v7, %v4482_v49 }
 0x25f   :  { %v4500_v56 = vadd.f32 %v4301_v36, %v1034_v27  ;;  %v3269_v39 = vpop.f32.mrb[14].mxu1  ;;  %3469 = vtanh.f32 %v1226_v17  ;;  %v1317_v23 = vmul.f32 %v1285_v30, %v4456_v45  ;;  %v1195_v42 = vadd.f32 %v4443_v2, %v4393_v16 }
 0x260   :  { %v4504_v29 = vadd.f32 %v3269_v39, %v4301_v36  ;;  %v1037_v34 = vpop.f32.mrb[15].mxu1  ;;  %v1318_v55 = vmul.f32 %v1286_v44, %v1062_v22  ;;  %v1111_v35 = vmul.f32 0.044715, %v4496_v33  ;;  %v1171_v4 = vmul.f32 %v1139_v51, %v4460_v11 }
 0x261   :  { %v4508_v43 = vadd.f32 %v4301_v36, %v1037_v34  ;;  %v1109_v52 = vmul.f32 0.044715, %v4500_v56  ;;  %v1196_v36 = vadd.f32 %v4450_v57, %v4405_v26  ;;  %v1169_v62 = vmul.f32 %v1137_v61, %v4468_v40 }
 0x262   :  { %v3464_v38 = vpop.eup %3463  ;;  %v1375_v8 = vpack.c.bf16 %v1318_v55, %v1317_v23  ;;  %v1066_v48 = vmul.f32 0.5, %v4414_v9  ;;  %v1172_v22 = vmul.f32 %v1140_v32, %v4471_v58  ;;  %v1112_v59 = vmul.f32 0.044715, %v4504_v29 }
 0x263   :  { %v1110_v46 = vmul.f32 0.044715, %v4508_v43  ;;  %v3466_v45 = vpop.eup %3465  ;;  %v1287_v3 = vadd.f32 1.0, %v3464_v38  ;;  %v1227_v13 = vmul.f32 0.7978846, %v1195_v42  ;;  %v1141_v2 = vmul.f32 %v1109_v52, %v4500_v56 }
 0x264   :  { %3298 = vmatprep.mubr.bf16.mxu1 %v1375_v8  ;;  %v1288_v5 = vadd.f32 1.0, %v3466_v45  ;;  %v1228_v37 = vmul.f32 0.7978846, %v1196_v36  ;;  %v1170_v1 = vmul.f32 %v1138_v15, %v4482_v49  ;;  %v1143_v28 = vmul.f32 %v1111_v35, %v4496_v33 }
 0x265   :  { %v1142_v57 = vmul.f32 %v1110_v46, %v4508_v43  ;;  %3471 = vtanh.f32 %v1227_v13  ;;  %v1197_v9 = vadd.f32 %v1165_v31, %v4429_v12  ;;  %v1319_v6 = vmul.f32 %v1287_v3, %v4474_v53 }
 0x266   :  { %v1320_v50 = vmul.f32 %v1288_v5, %v1064_v21  ;;  %3473 = vtanh.f32 %v1228_v37  ;;  %v1198_v41 = vadd.f32 %v1166_v18, %v4440_v14  ;;  %v1144_v0 = vmul.f32 %v1112_v59, %v4504_v29 }
 0x267   :  { %v1229_v10 = vmul.f32 0.7978846, %v1197_v9  ;;  %v1199_v54 = vadd.f32 %v4479_v20, %v4424_v19  ;;  %v1200_v7 = vadd.f32 %v1168_v60, %v4437_v63  ;;  %v1173_v25 = vmul.f32 %v1141_v2, %v4500_v56 }
 0x268   :  { %v3468_v27 = vpop.eup %3467  ;;  %v1376_v47 = vpack.c.bf16 %v1320_v50, %v1319_v6  ;;  %v1174_v31 = vmul.f32 %v1142_v57, %v4508_v43  ;;  %v1230_v51 = vmul.f32 0.7978846, %v1198_v41  ;;  %v1201_v17 = vadd.f32 %v1169_v62, %v4468_v40 }
 0x269   :  { %v3470_v53 = vpop.eup %3469  ;;  %v1289_v21 = vadd.f32 1.0, %v3468_v27  ;;  %3475 = vtanh.f32 %v1229_v10  ;;  %v1231_v30 = vmul.f32 0.7978846, %v1199_v54  ;;  %v1232_v18 = vmul.f32 0.7978846, %v1200_v7 }
 0x26a   :  { %3299 = vmatmul.mubr.bf16.gmra.mrb[28].mxu1 %v1376_v47  ;;  %v1290_v39 = vadd.f32 1.0, %v3470_v53  ;;  %3477 = vtanh.f32 %v1230_v51  ;;  %v1202_v20 = vadd.f32 %v1170_v1, %v4482_v49  ;;  %v1233_v44 = vmul.f32 0.7978846, %v1201_v17 }
 0x26b   :  { %v1321_v60 = vmul.f32 %v1289_v21, %v1065_v24  ;;  %3479 = vtanh.f32 %v1231_v30  ;;  %v1175_v32 = vmul.f32 %v1143_v28, %v4496_v33  ;;  %v1176_v15 = vmul.f32 %v1144_v0, %v4504_v29 }
 0x26c   :  { %v1322_v61 = vmul.f32 %v1290_v39, %v1066_v48  ;;  %3481 = vtanh.f32 %v1232_v18  ;;  %v1234_v34 = vmul.f32 0.7978846, %v1202_v20  ;;  %v1203_v52 = vadd.f32 %v1171_v4, %v4460_v11 }
 0x26d   :  { %v1204_v23 = vadd.f32 %v1172_v22, %v4471_v58  ;;  %3483 = vtanh.f32 %v1233_v44  ;;  %v1205_v35 = vadd.f32 %v1173_v25, %v4500_v56  ;;  %v1206_v46 = vadd.f32 %v1174_v31, %v4508_v43 }
 0x26e   :  { %v1377_v55 = vpack.c.bf16 %v1322_v61, %v1321_v60  ;;  %v1067_v42 = vmul.f32 0.5, %v4393_v16  ;;  %3485 = vtanh.f32 %v1234_v34  ;;  %v1235_v36 = vmul.f32 0.7978846, %v1203_v52 }
 0x26f   :  { %v3472_v24 = vpop.eup %3471  ;;  %v1236_v38 = vmul.f32 0.7978846, %v1204_v23  ;;  %v1068_v8 = vmul.f32 0.5, %v4405_v26  ;;  %v1237_v4 = vmul.f32 0.7978846, %v1205_v35  ;;  %v1207_v59 = vadd.f32 %v1175_v32, %v4496_v33 }
 0x270   :  { %v3474_v62 = vpop.eup %3473  ;;  %3302 = vmatprep.mubr.bf16.mxu1 %v1377_v55  ;;  %v1291_v48 = vadd.f32 1.0, %v3472_v24  ;;  %v1238_v45 = vmul.f32 0.7978846, %v1206_v46  ;;  %3487 = vtanh.f32 %v1235_v36  ;;  %v1208_v3 = vadd.f32 %v1176_v15, %v4504_v29 }
 0x271   :  { %v1292_v22 = vadd.f32 1.0, %v3474_v62  ;;  %3489 = vtanh.f32 %v1236_v38  ;;  %v1239_v5 = vmul.f32 0.7978846, %v1207_v59  ;;  %v1069_v1 = vmul.f32 0.5, %v4429_v12  ;;  %v1337_v59 = vld [vmem:[#allocation3] sm:$0xff] }
 0x272   :  { %v1323_v13 = vmul.f32 %v1291_v48, %v1067_v42  ;;  %3491 = vtanh.f32 %v1237_v4  ;;  %v1240_v57 = vmul.f32 0.7978846, %v1208_v3  ;;  %v1070_v6 = vmul.f32 0.5, %v4440_v14 }
 0x273   :  { %v3476_v2 = vpop.eup %3475  ;;  %v1324_v16 = vmul.f32 %v1292_v22, %v1068_v8  ;;  %3493 = vtanh.f32 %v1238_v45  ;;  %v1071_v0 = vmul.f32 0.5, %v4424_v19  ;;  %v1072_v27 = vmul.f32 0.5, %v4437_v63 }
 0x274   :  { %v3478_v37 = vpop.eup %3477  ;;  %v1293_v26 = vadd.f32 1.0, %v3476_v2  ;;  %3495 = vtanh.f32 %v1239_v5  ;;  %v1073_v14 = vmul.f32 0.5, %v4468_v40  ;;  %v1074_v30 = vmul.f32 0.5, %v4482_v49 }
 0x275   :  { %v3480_v28 = vpop.eup %3479  ;;  %v1378_v9 = vpack.c.bf16 %v1324_v16, %v1323_v13  ;;  %v1294_v50 = vadd.f32 1.0, %v3478_v37  ;;  %3497 = vtanh.f32 %v1240_v57  ;;  %v1075_v44 = vmul.f32 0.5, %v4460_v11  ;;  %v1340_v13 = vld [vmem:[#allocation3 + $0x18] sm:$0xff]  ;;  %v1338_v16 = vld [vmem:[#allocation3 + $0x8] sm:$0xff] }
 0x276   :  { %v3482_v41 = vpop.eup %3481  ;;  %v1295_v10 = vadd.f32 1.0, %v3480_v28  ;;  %v1325_v54 = vmul.f32 %v1293_v26, %v1069_v1  ;;  %v1076_v34 = vmul.f32 0.5, %v4471_v58  ;;  %v1077_v40 = vmul.f32 0.5, %v4500_v56  ;;  %v1343_v26 = vld [vmem:[#allocation3 + $0x30] sm:$0xff]  ;;  %v1341_v28 = vld [vmem:[#allocation3 + $0x20] sm:$0xff] }
 0x277   :  { %3303 = vmatmul.mubr.bf16.gmra.mrb[32].mxu1 %v1378_v9  ;;  %v1326_v7 = vmul.f32 %v1294_v50, %v1070_v6  ;;  %v1296_v25 = vadd.f32 1.0, %v3482_v41  ;;  %v3484_v12 = vpop.eup %3483  ;;  %v1078_v46 = vmul.f32 0.5, %v4508_v43  ;;  %v1079_v36 = vmul.f32 0.5, %v4496_v33  ;;  %v1339_v43 = vld [vmem:[#allocation3 + $0x10] sm:$0xff]  ;;  %v1344_v6 = vld [vmem:[#allocation3 + $0x38] sm:$0xff] }
 0x278   :  { %v3486_v47 = vpop.eup %3485  ;;  %v1327_v51 = vmul.f32 %v1295_v10, %v1071_v0  ;;  %v1297_v21 = vadd.f32 1.0, %v3484_v12  ;;  %v1080_v11 = vmul.f32 0.5, %v4504_v29  ;;  %v1342_v0 = vld [vmem:[#allocation3 + $0x28] sm:$0xff] }
 0x279   :  { %v1379_v31 = vpack.c.bf16 %v1326_v7, %v1325_v54  ;;  %v1328_v53 = vmul.f32 %v1296_v25, %v1072_v27  ;;  %v1298_v18 = vadd.f32 1.0, %v3486_v47  ;;  %v4570_v47 = vld [vmem:[%s5379_s7] ss:$0 sm:$0xff] }
 0x27a   :  { %v3488_v19 = vpop.eup %3487  ;;  %v1329_v20 = vmul.f32 %v1297_v21, %v1073_v14  ;;  %v3564_v21 = vld [vmem:[#allocation2 + $0x10] sm:$0xff] }
 0x27b   :  { %3306 = vmatprep.mubr.bf16.mxu1 %v1379_v31  ;;  %v1380_v39 = vpack.c.bf16 %v1328_v53, %v1327_v51  ;;  %v3490_v17 = vpop.eup %3489  ;;  %v1330_v60 = vmul.f32 %v1298_v18, %v1074_v30  ;;  %v1299_v61 = vadd.f32 1.0, %v3488_v19  ;;  %v3563_v51 = vld [vmem:[#allocation2] sm:$0xff] }
 0x27c   :  { %v3492_v63 = vpop.eup %3491  ;;  %v1300_v32 = vadd.f32 1.0, %v3490_v17 }
 0x27d   :  { %v3494_v15 = vpop.eup %3493  ;;  %v1381_v52 = vpack.c.bf16 %v1330_v60, %v1329_v20  ;;  %v1301_v23 = vadd.f32 1.0, %v3492_v63  ;;  %v1331_v55 = vmul.f32 %v1299_v61, %v1075_v44  ;;  %v3566_v20 = vld [vmem:[#allocation2 + $0x18] sm:$0xff] }
 0x27e   :  { %v3496_v49 = vpop.eup %3495  ;;  %v1332_v35 = vmul.f32 %v1300_v32, %v1076_v34  ;;  %v1302_v24 = vadd.f32 1.0, %v3494_v15 }
 0x27f   :  { %3307 = vmatmul.mubr.bf16.gmra.mrb[36].mxu1 %v1380_v39  ;;  %v3498_v42 = vpop.eup %3497  ;;  %v1303_v58 = vadd.f32 1.0, %v3496_v49  ;;  %v1333_v62 = vmul.f32 %v1301_v23, %v1077_v40  ;;  %v3565_v39 = vld [vmem:[#allocation2 + $0x8] sm:$0xff]  ;;  %v3567_v23 = vld [vmem:[#allocation2 + $0x20] sm:$0xff] }
 0x280   :  { %3310 = vmatprep.mubr.bf16.mxu1 %v1381_v52  ;;  %v1382_v38 = vpack.c.bf16 %v1332_v35, %v1331_v55  ;;  %v1334_v8 = vmul.f32 %v1302_v24, %v1078_v46  ;;  %v1304_v48 = vadd.f32 1.0, %v3498_v42  ;;  %v3568_v55 = vld [vmem:[#allocation2 + $0x30] sm:$0xff] }
 0x281   :  { %v1335_v4 = vmul.f32 %v1303_v58, %v1079_v36 }
 0x282   :  { %v1383_v56 = vpack.c.bf16 %v1334_v8, %v1333_v62  ;;  %v1336_v45 = vmul.f32 %v1304_v48, %v1080_v11  ;;  %v3569_v11 = vld [vmem:[#allocation2 + $0x28] sm:$0xff]  ;;  %v1347_v8 = vld [vmem:[#allocation3 + $0x50] sm:$0xff]  ;;  %v1345_v48 = vld [vmem:[#allocation3 + $0x40] sm:$0xff] }
 0x284   :  { %v1384_v22 = vpack.c.bf16 %v1336_v45, %v1335_v4 }
 0x287   :  { %3311 = vmatmul.mubr.bf16.gmra.mrb[40].mxu1 %v1382_v38  ;;  %v3570_v38 = vld [vmem:[#allocation2 + $0x38] sm:$0xff] }
 0x288   :  { %3314 = vmatprep.mubr.bf16.mxu1 %v1383_v56 }
 0x28f   :  { %3315 = vmatmul.mubr.bf16.gmra.mrb[44].mxu1 %v1384_v22 }
 0x31a   :  { %v3288_v3 = vpop.f32.mrb[16].mxu1 }
 0x31b   :  { %v1612_v2 = vadd.f32 %v3288_v3, %v1339_v43  ;;  %v1483_v33 = vpop.f32.mrb[17].mxu1  ;;  %v1348_v43 = vld [vmem:[#allocation3 + $0x58] sm:$0xff] }
 0x31c   :  { %v1610_v29 = vadd.f32 %v1483_v33, %v1337_v59  ;;  %v3289_v5 = vpop.f32.mrb[18].mxu1 }
 0x31d   :  { %1644 = vst.msk [vmem:[#allocation3 + $0x10] sm:$0xff] %vm210_vm0, %v1612_v2  ;;  %v1613_v57 = vadd.f32 %v3289_v5, %v1340_v13  ;;  %v1486_v37 = vpop.f32.mrb[19].mxu1  ;;  %v1346_v13 = vld [vmem:[#allocation3 + $0x48] sm:$0xff] }
 0x31e   :  { %1642 = vst.msk [vmem:[#allocation3] sm:$0xff] %vm210_vm0, %v1610_v29  ;;  %v1611_v1 = vadd.f32 %v1486_v37, %v1338_v16 }
 0x31f   :  { %1645 = vst.msk [vmem:[#allocation3 + $0x18] sm:$0xff] %vm210_vm0, %v1613_v57 }
 0x320   :  { %1643 = vst.msk [vmem:[#allocation3 + $0x8] sm:$0xff] %vm210_vm0, %v1611_v1 }
 0x322   :  { %v3292_v9 = vpop.f32.mrb[20].mxu1 }
 0x323   :  { %v1616_v50 = vadd.f32 %v3292_v9, %v1343_v26  ;;  %v1499_v41 = vpop.f32.mrb[21].mxu1 }
 0x324   :  { %v1614_v10 = vadd.f32 %v1499_v41, %v1341_v28  ;;  %v3293_v54 = vpop.f32.mrb[22].mxu1  ;;  %v1679_v7 = vld [vmem:[#allocation3 + $0x10] sm:$0xff] }
 0x325   :  { %1648 = vst.msk [vmem:[#allocation3 + $0x30] sm:$0xff] %vm210_vm0, %v1616_v50  ;;  %v1617_v27 = vadd.f32 %v3293_v54, %v1344_v6  ;;  %v1502_v25 = vpop.f32.mrb[23].mxu1  ;;  %v1677_v12 = vld [vmem:[#allocation3] sm:$0xff]  ;;  %v1711_v14 = vadd.f32 %v3564_v21, %v1679_v7  ;;  %v1351_v28 = vld [vmem:[#allocation3 + $0x70] sm:$0xff] }
 0x326   :  { %1646 = vst.msk [vmem:[#allocation3 + $0x20] sm:$0xff] %vm210_vm0, %v1614_v10  ;;  %v1615_v31 = vadd.f32 %v1502_v25, %v1342_v0  ;;  %v1709_v53 = vadd.f32 %v3563_v51, %v1677_v12  ;;  %v1680_v30 = vld [vmem:[#allocation3 + $0x18] sm:$0xff]  ;;  %v1349_v6 = vld [vmem:[#allocation3 + $0x60] sm:$0xff]  ;;  %v3572_v7 = vld [vmem:[#allocation2 + $0x50] sm:$0xff] }
 0x327   :  { %1649 = vst.msk [vmem:[#allocation3 + $0x38] sm:$0xff] %vm210_vm0, %v1617_v27  ;;  %v1678_v18 = vld [vmem:[#allocation3 + $0x8] sm:$0xff]  ;;  %v1712_v60 = vadd.f32 %v3566_v20, %v1680_v30  ;;  %v4584_v44 = vadd.f32 %v4570_v47, %v1711_v14  ;;  %v1352_v0 = vld [vmem:[#allocation3 + $0x78] sm:$0xff]  ;;  %v3571_v10 = vld [vmem:[#allocation2 + $0x40] sm:$0xff] }
 0x328   :  { %1647 = vst.msk [vmem:[#allocation3 + $0x28] sm:$0xff] %vm210_vm0, %v1615_v31  ;;  %v4576_v19 = vadd.f32 %v4570_v47, %v1709_v53  ;;  %v1710_v17 = vadd.f32 %v3565_v39, %v1678_v18  ;;  %v1350_v51 = vld [vmem:[#allocation3 + $0x68] sm:$0xff] }
 0x329   :  { %v4589_v32 = vadd.f32 %v4570_v47, %v1712_v60  ;;  %v1788_v40 = vsel %vm210_vm0, %v4584_v44, 0.0  ;;  %v3573_v18 = vld [vmem:[#allocation2 + $0x48] sm:$0xff] }
 0x32a   :  { %v1782_v61 = vsel %vm210_vm0, %v4576_v19, 0.0  ;;  %v4581_v63 = vadd.f32 %v4570_v47, %v1710_v17  ;;  %v3574_v17 = vld [vmem:[#allocation2 + $0x58] sm:$0xff] }
 0x32b   :  { %1783 = vadd.xlane.f32.xlu0 %v1782_v61  ;;  %v1791_v42 = vsel %vm210_vm0, %v4589_v32, 0.0 }
 0x32c   :  { %v1785_v34 = vsel %vm210_vm0, %v4581_v63, 0.0  ;;  %v1683_v15 = vld [vmem:[#allocation3 + $0x30] sm:$0xff] }
 0x32d   :  { %1786 = vadd.xlane.f32.xlu1 %v1785_v34  ;;  %v1681_v52 = vld [vmem:[#allocation3 + $0x20] sm:$0xff]  ;;  %v1715_v35 = vadd.f32 %v3568_v55, %v1683_v15 }
 0x32e   :  { %v1713_v49 = vadd.f32 %v3567_v23, %v1681_v52  ;;  %v1684_v46 = vld [vmem:[#allocation3 + $0x38] sm:$0xff] }
 0x32f   :  { %1789 = vadd.xlane.f32.xlu0 %v1788_v40  ;;  %v1682_v24 = vld [vmem:[#allocation3 + $0x28] sm:$0xff]  ;;  %v1716_v62 = vadd.f32 %v3570_v38, %v1684_v46  ;;  %v4604_v45 = vadd.f32 %v4570_v47, %v1715_v35 }
 0x330   :  { %v4596_v36 = vadd.f32 %v4570_v47, %v1713_v49  ;;  %v1714_v58 = vadd.f32 %v3569_v11, %v1682_v24  ;;  %v1355_v24 = vld [vmem:[#allocation3 + $0x90] sm:$0xff]  ;;  %v1353_v11 = vld [vmem:[#allocation3 + $0x80] sm:$0xff] }
 0x331   :  { %1792 = vadd.xlane.f32.xlu1 %v1791_v42  ;;  %v3296_v22 = vpop.f32.mrb[24].mxu1  ;;  %v4609_v33 = vadd.f32 %v4570_v47, %v1716_v62  ;;  %v1800_v37 = vsel %vm210_vm0, %v4604_v45, 0.0  ;;  %v3576_v62 = vld [vmem:[#allocation2 + $0x70] sm:$0xff] }
 0x332   :  { %v1794_v56 = vsel %vm210_vm0, %v4596_v36, 0.0  ;;  %v4601_v4 = vadd.f32 %v4570_v47, %v1714_v58  ;;  %v1620_v59 = vadd.f32 %v3296_v22, %v1347_v8  ;;  %v1515_v3 = vpop.f32.mrb[25].mxu1  ;;  %v3575_v58 = vld [vmem:[#allocation2 + $0x60] sm:$0xff]  ;;  %v1356_v22 = vld [vmem:[#allocation3 + $0x98] sm:$0xff] }
 0x333   :  { %1795 = vadd.xlane.f32.xlu0 %v1794_v56  ;;  %v1618_v16 = vadd.f32 %v1515_v3, %v1345_v48  ;;  %v3297_v29 = vpop.f32.mrb[26].mxu1  ;;  %v1803_v26 = vsel %vm210_vm0, %v4609_v33, 0.0 }
 0x334   :  { %v1797_v2 = vsel %vm210_vm0, %v4601_v4, 0.0  ;;  %1652 = vst.msk [vmem:[#allocation3 + $0x50] sm:$0xff] %vm210_vm0, %v1620_v59  ;;  %v1621_v5 = vadd.f32 %v3297_v29, %v1348_v43  ;;  %v1518_v57 = vpop.f32.mrb[27].mxu1 }
 0x335   :  { %1798 = vadd.xlane.f32.xlu1 %v1797_v2  ;;  %1650 = vst.msk [vmem:[#allocation3 + $0x40] sm:$0xff] %vm210_vm0, %v1618_v16  ;;  %v1619_v1 = vadd.f32 %v1518_v57, %v1346_v13  ;;  %v1354_v13 = vld [vmem:[#allocation3 + $0x88] sm:$0xff] }
 0x336   :  { %1653 = vst.msk [vmem:[#allocation3 + $0x58] sm:$0xff] %vm210_vm0, %v1621_v5  ;;  %v3577_v16 = vld [vmem:[#allocation2 + $0x68] sm:$0xff]  ;;  %v3578_v5 = vld [vmem:[#allocation2 + $0x78] sm:$0xff] }
 0x337   :  { %1801 = vadd.xlane.f32.xlu0 %v1800_v37  ;;  %1651 = vst.msk [vmem:[#allocation3 + $0x48] sm:$0xff] %vm210_vm0, %v1619_v1 }
 0x339   :  { %1804 = vadd.xlane.f32.xlu1 %v1803_v26 }
 0x33b   :  { %v1687_v9 = vld [vmem:[#allocation3 + $0x50] sm:$0xff] }
 0x33c   :  { %v1685_v50 = vld [vmem:[#allocation3 + $0x40] sm:$0xff]  ;;  %v1719_v27 = vadd.f32 %v3572_v7, %v1687_v9 }
 0x33d   :  { %v3300_v41 = vpop.f32.mrb[28].mxu1  ;;  %v1717_v54 = vadd.f32 %v3571_v10, %v1685_v50  ;;  %v1688_v25 = vld [vmem:[#allocation3 + $0x58] sm:$0xff]  ;;  %v1357_v7 = vld [vmem:[#allocation3 + $0xa0] sm:$0xff] }
 0x33e   :  { %v1624_v12 = vadd.f32 %v3300_v41, %v1351_v28  ;;  %v1531_v31 = vpop.f32.mrb[29].mxu1  ;;  %v1686_v53 = vld [vmem:[#allocation3 + $0x48] sm:$0xff]  ;;  %v1720_v20 = vadd.f32 %v3574_v17, %v1688_v25  ;;  %v4630_v40 = vadd.f32 %v4570_v47, %v1719_v27 }
 0x33f   :  { %v1622_v21 = vadd.f32 %v1531_v31, %v1349_v6  ;;  %v3301_v14 = vpop.f32.mrb[30].mxu1  ;;  %v4620_v30 = vadd.f32 %v4570_v47, %v1717_v54  ;;  %v1718_v39 = vadd.f32 %v3573_v18, %v1686_v53  ;;  %v1359_v54 = vld [vmem:[#allocation3 + $0xb0] sm:$0xff]  ;;  %v1358_v53 = vld [vmem:[#allocation3 + $0xa8] sm:$0xff] }
 0x340   :  { %1656 = vst.msk [vmem:[#allocation3 + $0x70] sm:$0xff] %vm210_vm0, %v1624_v12  ;;  %v1625_v60 = vadd.f32 %v3301_v14, %v1352_v0  ;;  %v1534_v61 = vpop.f32.mrb[31].mxu1  ;;  %v4637_v49 = vadd.f32 %v4570_v47, %v1720_v20  ;;  %v1812_v55 = vsel %vm210_vm0, %v4630_v40, 0.0  ;;  %v1360_v12 = vld [vmem:[#allocation3 + $0xb8] sm:$0xff] }
 0x341   :  { %1654 = vst.msk [vmem:[#allocation3 + $0x60] sm:$0xff] %vm210_vm0, %v1622_v21  ;;  %v1623_v34 = vadd.f32 %v1534_v61, %v1350_v51  ;;  %v1806_v15 = vsel %vm210_vm0, %v4620_v30, 0.0  ;;  %v4627_v52 = vadd.f32 %v4570_v47, %v1718_v39 }
 0x342   :  { %1657 = vst.msk [vmem:[#allocation3 + $0x78] sm:$0xff] %vm210_vm0, %v1625_v60  ;;  %1807 = vadd.xlane.f32.xlu0 %v1806_v15  ;;  %v1815_v35 = vsel %vm210_vm0, %v4637_v49, 0.0 }
 0x343   :  { %1655 = vst.msk [vmem:[#allocation3 + $0x68] sm:$0xff] %vm210_vm0, %v1623_v34  ;;  %v1809_v23 = vsel %vm210_vm0, %v4627_v52, 0.0  ;;  %v3579_v34 = vld [vmem:[#allocation2 + $0x80] sm:$0xff] }
 0x344   :  { %1810 = vadd.xlane.f32.xlu1 %v1809_v23  ;;  %v3580_v23 = vld [vmem:[#allocation2 + $0x90] sm:$0xff] }
 0x346   :  { %1813 = vadd.xlane.f32.xlu0 %v1812_v55 }
 0x347   :  { %v1691_v46 = vld [vmem:[#allocation3 + $0x70] sm:$0xff] }
 0x348   :  { %1816 = vadd.xlane.f32.xlu1 %v1815_v35  ;;  %v1689_v42 = vld [vmem:[#allocation3 + $0x60] sm:$0xff]  ;;  %v1723_v8 = vadd.f32 %v3576_v62, %v1691_v46 }
 0x349   :  { %v1721_v38 = vadd.f32 %v3575_v58, %v1689_v42  ;;  %v1692_v48 = vld [vmem:[#allocation3 + $0x78] sm:$0xff] }
 0x34a   :  { %v3304_v56 = vpop.f32.mrb[32].mxu1  ;;  %v1690_v43 = vld [vmem:[#allocation3 + $0x68] sm:$0xff]  ;;  %v1724_v57 = vadd.f32 %v3578_v5, %v1692_v48  ;;  %v4653_v50 = vadd.f32 %v4570_v47, %v1723_v8  ;;  %v1361_v8 = vld [vmem:[#allocation3 + $0xc0] sm:$0xff] }
 0x34b   :  { %v1628_v59 = vadd.f32 %v3304_v56, %v1355_v24  ;;  %v1547_v3 = vpop.f32.mrb[33].mxu1  ;;  %v4644_v2 = vadd.f32 %v4570_v47, %v1721_v38  ;;  %v1722_v29 = vadd.f32 %v3577_v16, %v1690_v43  ;;  %v1363_v24 = vld [vmem:[#allocation3 + $0xd0] sm:$0xff]  ;;  %v3582_v38 = vld [vmem:[#allocation2 + $0x98] sm:$0xff]  ;;  %v1362_v16 = vld [vmem:[#allocation3 + $0xc8] sm:$0xff] }
 0x34c   :  { %v1626_v37 = vadd.f32 %v1547_v3, %v1353_v11  ;;  %v3305_v1 = vpop.f32.mrb[34].mxu1  ;;  %v4660_v10 = vadd.f32 %v4570_v47, %v1724_v57  ;;  %v1824_v27 = vsel %vm210_vm0, %v4653_v50, 0.0  ;;  %v3581_v11 = vld [vmem:[#allocation2 + $0x88] sm:$0xff] }
 0x34d   :  { %1660 = vst.msk [vmem:[#allocation3 + $0x90] sm:$0xff] %vm210_vm0, %v1628_v59  ;;  %v1629_v26 = vadd.f32 %v3305_v1, %v1356_v22  ;;  %v1550_v28 = vpop.f32.mrb[35].mxu1  ;;  %v1818_v9 = vsel %vm210_vm0, %v4644_v2, 0.0  ;;  %v4650_v6 = vadd.f32 %v4570_v47, %v1722_v29  ;;  %v1364_v22 = vld [vmem:[#allocation3 + $0xd8] sm:$0xff] }
 0x34e   :  { %1658 = vst.msk [vmem:[#allocation3 + $0x80] sm:$0xff] %vm210_vm0, %v1626_v37  ;;  %v1627_v41 = vadd.f32 %v1550_v28, %v1354_v13  ;;  %1819 = vadd.xlane.f32.xlu0 %v1818_v9  ;;  %v1827_v21 = vsel %vm210_vm0, %v4660_v10, 0.0 }
 0x34f   :  { %1661 = vst.msk [vmem:[#allocation3 + $0x98] sm:$0xff] %vm210_vm0, %v1629_v26  ;;  %v1821_v0 = vsel %vm210_vm0, %v4650_v6, 0.0 }
 0x350   :  { %1659 = vst.msk [vmem:[#allocation3 + $0x88] sm:$0xff] %vm210_vm0, %v1627_v41  ;;  %1822 = vadd.xlane.f32.xlu1 %v1821_v0 }
 0x352   :  { %v3308_v25 = vpop.f32.mrb[36].mxu1  ;;  %1825 = vadd.xlane.f32.xlu0 %v1824_v27  ;;  %v3584_v27 = vld [vmem:[#allocation2 + $0xb0] sm:$0xff] }
 0x353   :  { %v1632_v31 = vadd.f32 %v3308_v25, %v1359_v54  ;;  %v1563_v51 = vpop.f32.mrb[37].mxu1  ;;  %v3583_v54 = vld [vmem:[#allocation2 + $0xa0] sm:$0xff] }
 0x354   :  { %v1630_v14 = vadd.f32 %v1563_v51, %v1357_v7  ;;  %v3309_v18 = vpop.f32.mrb[38].mxu1  ;;  %1828 = vadd.xlane.f32.xlu1 %v1827_v21  ;;  %v1695_v39 = vld [vmem:[#allocation3 + $0x90] sm:$0xff] }
 0x355   :  { %1664 = vst.msk [vmem:[#allocation3 + $0xb0] sm:$0xff] %vm210_vm0, %v1632_v31  ;;  %v1633_v17 = vadd.f32 %v3309_v18, %v1360_v12  ;;  %v1566_v20 = vpop.f32.mrb[39].mxu1  ;;  %v1693_v60 = vld [vmem:[#allocation3 + $0x80] sm:$0xff]  ;;  %v1727_v55 = vadd.f32 %v3580_v23, %v1695_v39  ;;  %v3586_v39 = vld [vmem:[#allocation2 + $0xb8] sm:$0xff] }
 0x356   :  { %1662 = vst.msk [vmem:[#allocation3 + $0xa0] sm:$0xff] %vm210_vm0, %v1630_v14  ;;  %v1631_v61 = vadd.f32 %v1566_v20, %v1358_v53  ;;  %v1725_v15 = vadd.f32 %v3579_v34, %v1693_v60  ;;  %v1696_v35 = vld [vmem:[#allocation3 + $0x98] sm:$0xff]  ;;  %v1367_v53 = vld [vmem:[#allocation3 + $0xf0] sm:$0xff]  ;;  %v3585_v14 = vld [vmem:[#allocation2 + $0xa8] sm:$0xff] }
 0x357   :  { %1665 = vst.msk [vmem:[#allocation3 + $0xb8] sm:$0xff] %vm210_vm0, %v1633_v17  ;;  %v1694_v46 = vld [vmem:[#allocation3 + $0x88] sm:$0xff]  ;;  %v1728_v62 = vadd.f32 %v3582_v38, %v1696_v35  ;;  %v4680_v59 = vadd.f32 %v4570_v47, %v1727_v55  ;;  %v1365_v20 = vld [vmem:[#allocation3 + $0xe0] sm:$0xff]  ;;  %v1368_v34 = vld [vmem:[#allocation3 + $0xf8] sm:$0xff] }
 0x358   :  { %1663 = vst.msk [vmem:[#allocation3 + $0xa8] sm:$0xff] %vm210_vm0, %v1631_v61  ;;  %v4672_v42 = vadd.f32 %v4570_v47, %v1725_v15  ;;  %v1726_v58 = vadd.f32 %v3581_v11, %v1694_v46  ;;  %v1366_v46 = vld [vmem:[#allocation3 + $0xe8] sm:$0xff] }
 0x359   :  { %v4685_v37 = vadd.f32 %v4570_v47, %v1728_v62  ;;  %v1836_v0 = vsel %vm210_vm0, %v4680_v59, 0.0 }
 0x35a   :  { %v3312_v48 = vpop.f32.mrb[40].mxu1  ;;  %v1830_v56 = vsel %vm210_vm0, %v4672_v42, 0.0  ;;  %v4677_v43 = vadd.f32 %v4570_v47, %v1726_v58 }
 0x35b   :  { %v1636_v3 = vadd.f32 %v3312_v48, %v1363_v24  ;;  %1831 = vadd.xlane.f32.xlu0 %v1830_v56  ;;  %v1579_v13 = vpop.f32.mrb[41].mxu1  ;;  %v1839_v51 = vsel %vm210_vm0, %v4685_v37, 0.0 }
 0x35c   :  { %v1634_v29 = vadd.f32 %v1579_v13, %v1361_v8  ;;  %v3313_v5 = vpop.f32.mrb[42].mxu1  ;;  %v1833_v57 = vsel %vm210_vm0, %v4677_v43, 0.0  ;;  %v1699_v1 = vld [vmem:[#allocation3 + $0xb0] sm:$0xff]  ;;  %v3587_v13 = vld [vmem:[#allocation2 + $0xc0] sm:$0xff] }
 0x35d   :  { %1668 = vst.msk [vmem:[#allocation3 + $0xd0] sm:$0xff] %vm210_vm0, %v1636_v3  ;;  %v1637_v26 = vadd.f32 %v3313_v5, %v1364_v22  ;;  %1834 = vadd.xlane.f32.xlu1 %v1833_v57  ;;  %v1582_v28 = vpop.f32.mrb[43].mxu1  ;;  %v1697_v9 = vld [vmem:[#allocation3 + $0xa0] sm:$0xff]  ;;  %v1731_v25 = vadd.f32 %v3584_v27, %v1699_v1 }
 0x35e   :  { %1666 = vst.msk [vmem:[#allocation3 + $0xc0] sm:$0xff] %vm210_vm0, %v1634_v29  ;;  %v1635_v41 = vadd.f32 %v1582_v28, %v1362_v16  ;;  %v1729_v7 = vadd.f32 %v3583_v54, %v1697_v9  ;;  %v1700_v12 = vld [vmem:[#allocation3 + $0xb8] sm:$0xff]  ;;  %v3588_v29 = vld [vmem:[#allocation2 + $0xd0] sm:$0xff]  ;;  %v3589_v9 = vld [vmem:[#allocation2 + $0xc8] sm:$0xff] }
 0x35f   :  { %1669 = vst.msk [vmem:[#allocation3 + $0xd8] sm:$0xff] %vm210_vm0, %v1637_v26  ;;  %1837 = vadd.xlane.f32.xlu0 %v1836_v0  ;;  %v1698_v31 = vld [vmem:[#allocation3 + $0xa8] sm:$0xff]  ;;  %v1732_v17 = vadd.f32 %v3586_v39, %v1700_v12  ;;  %v4704_v23 = vadd.f32 %v4570_v47, %v1731_v25  ;;  %v3590_v0 = vld [vmem:[#allocation2 + $0xd8] sm:$0xff] }
 0x360   :  { %1667 = vst.msk [vmem:[#allocation3 + $0xc8] sm:$0xff] %vm210_vm0, %v1635_v41  ;;  %v4696_v21 = vadd.f32 %v4570_v47, %v1729_v7  ;;  %v1730_v18 = vadd.f32 %v3585_v14, %v1698_v31 }
 0x361   :  { %1840 = vadd.xlane.f32.xlu1 %v1839_v51  ;;  %v4709_v38 = vadd.f32 %v4570_v47, %v1732_v17  ;;  %v1848_v3 = vsel %vm210_vm0, %v4704_v23, 0.0  ;;  %v3592_v17 = vld [vmem:[#allocation2 + $0xf0] sm:$0xff] }
 0x362   :  { %v3316_v60 = vpop.f32.mrb[44].mxu1  ;;  %v1842_v61 = vsel %vm210_vm0, %v4696_v21, 0.0  ;;  %v4701_v15 = vadd.f32 %v4570_v47, %v1730_v18  ;;  %v3591_v18 = vld [vmem:[#allocation2 + $0xe0] sm:$0xff] }
 0x363   :  { %v1640_v55 = vadd.f32 %v3316_v60, %v1367_v53  ;;  %1843 = vadd.xlane.f32.xlu0 %v1842_v61  ;;  %v1595_v35 = vpop.f32.mrb[45].mxu1  ;;  %v1851_v26 = vsel %vm210_vm0, %v4709_v38, 0.0 }
 0x364   :  { %v1638_v24 = vadd.f32 %v1595_v35, %v1365_v20  ;;  %v3317_v11 = vpop.f32.mrb[46].mxu1  ;;  %v1845_v58 = vsel %vm210_vm0, %v4701_v15, 0.0  ;;  %v1703_v62 = vld [vmem:[#allocation3 + $0xd0] sm:$0xff]  ;;  %v3593_v35 = vld [vmem:[#allocation2 + $0xe8] sm:$0xff] }
 0x365   :  { %1672 = vst.msk [vmem:[#allocation3 + $0xf0] sm:$0xff] %vm210_vm0, %v1640_v55  ;;  %v1641_v8 = vadd.f32 %v3317_v11, %v1368_v34  ;;  %1846 = vadd.xlane.f32.xlu1 %v1845_v58  ;;  %v1598_v48 = vpop.f32.mrb[47].mxu1  ;;  %v1701_v56 = vld [vmem:[#allocation3 + $0xc0] sm:$0xff]  ;;  %v1735_v5 = vadd.f32 %v3588_v29, %v1703_v62 }
 0x366   :  { %1670 = vst.msk [vmem:[#allocation3 + $0xe0] sm:$0xff] %vm210_vm0, %v1638_v24  ;;  %v1639_v22 = vadd.f32 %v1598_v48, %v1366_v46  ;;  %v1733_v16 = vadd.f32 %v3587_v13, %v1701_v56  ;;  %v1704_v57 = vld [vmem:[#allocation3 + $0xd8] sm:$0xff]  ;;  %v3369_v13 = vld [vmem:[%s5380_s10] sm:$0xff]  }
 0x367   :  { %1673 = vst.msk [vmem:[#allocation3 + $0xf8] sm:$0xff] %vm210_vm0, %v1641_v8  ;;  %1849 = vadd.xlane.f32.xlu0 %v1848_v3  ;;  %v1702_v1 = vld [vmem:[#allocation3 + $0xc8] sm:$0xff]  ;;  %v1736_v54 = vadd.f32 %v3590_v0, %v1704_v57  ;;  %v4728_v25 = vadd.f32 %v4570_v47, %v1735_v5  ;;  %v3594_v24 = vld [vmem:[#allocation2 + $0xf8] sm:$0xff]  ;;  %3318 = vmatprep.subr.bf16.mxu0 %v3369_v13 }
 0x368   :  { %1671 = vst.msk [vmem:[#allocation3 + $0xe8] sm:$0xff] %vm210_vm0, %v1639_v22  ;;  %v4720_v28 = vadd.f32 %v4570_v47, %v1733_v16  ;;  %v1734_v41 = vadd.f32 %v3589_v9, %v1702_v1  ;;  %3319 = vmatpush3.bf16.msra.mxu0 %v3369_v13 }
 0x369   :  { %1852 = vadd.xlane.f32.xlu1 %v1851_v26  ;;  %v4733_v31 = vadd.f32 %v4570_v47, %v1736_v54  ;;  %v1860_v14 = vsel %vm210_vm0, %v4728_v25, 0.0 }
 0x36a   :  { %v1854_v7 = vsel %vm210_vm0, %v4720_v28, 0.0  ;;  %v4725_v27 = vadd.f32 %v4570_v47, %v1734_v41 }
 0x36b   :  { %1855 = vadd.xlane.f32.xlu0 %v1854_v7  ;;  %v1863_v34 = vsel %vm210_vm0, %v4733_v31, 0.0 }
 0x36c   :  { %v1857_v12 = vsel %vm210_vm0, %v4725_v27, 0.0  ;;  %v1707_v51 = vld [vmem:[#allocation3 + $0xf0] sm:$0xff] }
 0x36d   :  { %1858 = vadd.xlane.f32.xlu1 %v1857_v12  ;;  %v1705_v53 = vld [vmem:[#allocation3 + $0xe0] sm:$0xff]  ;;  %v1739_v20 = vadd.f32 %v3592_v17, %v1707_v51 }
 0x36e   :  { %v1737_v39 = vadd.f32 %v3591_v18, %v1705_v53  ;;  %v1708_v60 = vld [vmem:[#allocation3 + $0xf8] sm:$0xff] }
 0x36f   :  { %1861 = vadd.xlane.f32.xlu0 %v1860_v14  ;;  %v1706_v61 = vld [vmem:[#allocation3 + $0xe8] sm:$0xff]  ;;  %v1740_v11 = vadd.f32 %v3594_v24, %v1708_v60  ;;  %v4748_v8 = vadd.f32 %v4570_v47, %v1739_v20 }
 0x370   :  { %v4740_v55 = vadd.f32 %v4570_v47, %v1737_v39  ;;  %v1738_v46 = vadd.f32 %v3593_v35, %v1706_v61 }
 0x371   :  { %1864 = vadd.xlane.f32.xlu1 %v1863_v34  ;;  %v4753_v56 = vadd.f32 %v4570_v47, %v1740_v11  ;;  %v1872_v22 = vsel %vm210_vm0, %v4748_v8, 0.0 }
 0x372   :  { %v1866_v58 = vsel %vm210_vm0, %v4740_v55, 0.0  ;;  %v4745_v62 = vadd.f32 %v4570_v47, %v1738_v46 }
 0x373   :  { %1867 = vadd.xlane.f32.xlu0 %v1866_v58  ;;  %v1875_v3 = vsel %vm210_vm0, %v4753_v56, 0.0 }
 0x374   :  { %v1869_v48 = vsel %vm210_vm0, %v4745_v62, 0.0 }
 0x375   :  { %1870 = vadd.xlane.f32.xlu1 %v1869_v48 }
 0x377   :  { %1873 = vadd.xlane.f32.xlu0 %v1872_v22 }
 0x379   :  { %1876 = vadd.xlane.f32.xlu1 %v1875_v3 }
 0x3b8   :  { %v1784_v16 = vpop.xlane.xlu0 %1783 }
 0x3b9   :  { %v1879_v29 = vmul.f32 0.03125, %v1784_v16 }
 0x3ba   :  { %v1787_v5 = vpop.xlane.xlu1 %1786 }
 0x3bb   :  { %v4763_v47 = vsub.f32 %v4576_v19, %v1879_v29  ;;  %v1880_v57 = vmul.f32 0.03125, %v1787_v5 }
 0x3bc   :  { %v1790_v1 = vpop.xlane.xlu0 %1789 }
 0x3bd   :  { %v4766_v26 = vsub.f32 %v4581_v63, %v1880_v57  ;;  %v1881_v9 = vmul.f32 0.03125, %v1790_v1  ;;  %v1943_v41 = vmul.f32 %v4763_v47, %v4763_v47 }
 0x3be   :  { %v1793_v0 = vpop.xlane.xlu1 %1792 }
 0x3bf   :  { %v4771_v54 = vsub.f32 %v4584_v44, %v1881_v9  ;;  %v1882_v7 = vmul.f32 0.03125, %v1793_v0  ;;  %v1975_v12 = vsel %vm210_vm0, %v1943_v41, 0.0  ;;  %v1944_v19 = vmul.f32 %v4766_v26, %v4766_v26 }
 0x3c0   :  { %v1796_v51 = vpop.xlane.xlu0 %1795  ;;  %1976 = vadd.xlane.f32.xlu0 %v1975_v12 }
 0x3c1   :  { %v4777_v53 = vsub.f32 %v4589_v32, %v1882_v7  ;;  %v1883_v63 = vmul.f32 0.03125, %v1796_v51  ;;  %v1978_v14 = vsel %vm210_vm0, %v1944_v19, 0.0  ;;  %v1945_v18 = vmul.f32 %v4771_v54, %v4771_v54 }
 0x3c2   :  { %v1799_v39 = vpop.xlane.xlu1 %1798  ;;  %1979 = vadd.xlane.f32.xlu1 %v1978_v14 }
 0x3c3   :  { %v4783_v44 = vsub.f32 %v4596_v36, %v1883_v63  ;;  %v1884_v17 = vmul.f32 0.03125, %v1799_v39  ;;  %v1981_v20 = vsel %vm210_vm0, %v1945_v18, 0.0  ;;  %v1946_v60 = vmul.f32 %v4777_v53, %v4777_v53 }
 0x3c4   :  { %v1802_v61 = vpop.xlane.xlu0 %1801  ;;  %1982 = vadd.xlane.f32.xlu0 %v1981_v20 }
 0x3c5   :  { %v4789_v32 = vsub.f32 %v4601_v4, %v1884_v17  ;;  %v1885_v34 = vmul.f32 0.03125, %v1802_v61  ;;  %v1984_v35 = vsel %vm210_vm0, %v1946_v60, 0.0  ;;  %v1947_v46 = vmul.f32 %v4783_v44, %v4783_v44 }
 0x3c6   :  { %v1805_v24 = vpop.xlane.xlu1 %1804  ;;  %1985 = vadd.xlane.f32.xlu1 %v1984_v35 }
 0x3c7   :  { %v4795_v36 = vsub.f32 %v4604_v45, %v1885_v34  ;;  %v1886_v11 = vmul.f32 0.03125, %v1805_v24  ;;  %v1987_v58 = vsel %vm210_vm0, %v1947_v46, 0.0  ;;  %v1948_v48 = vmul.f32 %v4789_v32, %v4789_v32 }
 0x3c8   :  { %1988 = vadd.xlane.f32.xlu0 %v1987_v58 }
 0x3c9   :  { %v4801_v4 = vsub.f32 %v4609_v33, %v1886_v11  ;;  %v1990_v22 = vsel %vm210_vm0, %v1948_v48, 0.0  ;;  %v1949_v3 = vmul.f32 %v4795_v36, %v4795_v36 }
 0x3ca   :  { %1991 = vadd.xlane.f32.xlu1 %v1990_v22 }
 0x3cb   :  { %v1993_v13 = vsel %vm210_vm0, %v1949_v3, 0.0  ;;  %v1950_v45 = vmul.f32 %v4801_v4, %v4801_v4 }
 0x3cc   :  { %1994 = vadd.xlane.f32.xlu0 %v1993_v13 }
 0x3cd   :  { %v1996_v16 = vsel %vm210_vm0, %v1950_v45, 0.0 }
 0x3ce   :  { %1997 = vadd.xlane.f32.xlu1 %v1996_v16 }
 0x3cf   :  { %v1808_v29 = vpop.xlane.xlu0 %1807 }
 0x3d0   :  { %v1887_v5 = vmul.f32 0.03125, %v1808_v29 }
 0x3d1   :  { %v1811_v57 = vpop.xlane.xlu1 %1810 }
 0x3d2   :  { %v4811_v33 = vsub.f32 %v4620_v30, %v1887_v5  ;;  %v1888_v1 = vmul.f32 0.03125, %v1811_v57 }
 0x3d3   :  { %v1814_v9 = vpop.xlane.xlu0 %1813 }
 0x3d4   :  { %v4814_v41 = vsub.f32 %v4627_v52, %v1888_v1  ;;  %v1889_v0 = vmul.f32 0.03125, %v1814_v9  ;;  %v1951_v7 = vmul.f32 %v4811_v33, %v4811_v33 }
 0x3d5   :  { %v1817_v12 = vpop.xlane.xlu1 %1816 }
 0x3d6   :  { %v4819_v19 = vsub.f32 %v4630_v40, %v1889_v0  ;;  %v1890_v51 = vmul.f32 0.03125, %v1817_v12  ;;  %v1999_v63 = vsel %vm210_vm0, %v1951_v7, 0.0  ;;  %v1952_v30 = vmul.f32 %v4814_v41, %v4814_v41 }
 0x3d7   :  { %2000 = vadd.xlane.f32.xlu0 %v1999_v63 }
 0x3d8   :  { %v4825_v14 = vsub.f32 %v4637_v49, %v1890_v51  ;;  %v2002_v52 = vsel %vm210_vm0, %v1952_v30, 0.0  ;;  %v1953_v18 = vmul.f32 %v4819_v19, %v4819_v19 }
 0x3d9   :  { %2003 = vadd.xlane.f32.xlu1 %v2002_v52 }
 0x3da   :  { %v2005_v39 = vsel %vm210_vm0, %v1953_v18, 0.0  ;;  %v1954_v40 = vmul.f32 %v4825_v14, %v4825_v14 }
 0x3db   :  { %v1820_v17 = vpop.xlane.xlu0 %1819  ;;  %2006 = vadd.xlane.f32.xlu0 %v2005_v39 }
 0x3dc   :  { %v1891_v20 = vmul.f32 0.03125, %v1820_v17  ;;  %v2008_v60 = vsel %vm210_vm0, %v1954_v40, 0.0 }
 0x3dd   :  { %v1823_v61 = vpop.xlane.xlu1 %1822  ;;  %2009 = vadd.xlane.f32.xlu1 %v2008_v60 }
 0x3de   :  { %v4835_v49 = vsub.f32 %v4644_v2, %v1891_v20  ;;  %v1892_v34 = vmul.f32 0.03125, %v1823_v61 }
 0x3df   :  { %v1826_v35 = vpop.xlane.xlu0 %1825 }
 0x3e0   :  { %v4838_v46 = vsub.f32 %v4650_v6, %v1892_v34  ;;  %v1893_v24 = vmul.f32 0.03125, %v1826_v35  ;;  %v1955_v11 = vmul.f32 %v4835_v49, %v4835_v49 }
 0x3e1   :  { %v1829_v58 = vpop.xlane.xlu1 %1828 }
 0x3e2   :  { %v4843_v48 = vsub.f32 %v4653_v50, %v1893_v24  ;;  %v1894_v22 = vmul.f32 0.03125, %v1829_v58  ;;  %v2011_v3 = vsel %vm210_vm0, %v1955_v11, 0.0  ;;  %v1956_v2 = vmul.f32 %v4838_v46, %v4838_v46 }
 0x3e3   :  { %2012 = vadd.xlane.f32.xlu0 %v2011_v3 }
 0x3e4   :  { %v4849_v13 = vsub.f32 %v4660_v10, %v1894_v22  ;;  %v2014_v6 = vsel %vm210_vm0, %v1956_v2, 0.0  ;;  %v1957_v45 = vmul.f32 %v4843_v48, %v4843_v48  ;;  %v3370_v10 = vld [vmem:[%s5380_s10 + $0x8] sm:$0xff]  }
 0x3e5   :  { %2015 = vadd.xlane.f32.xlu1 %v2014_v6  ;;  %3320 = vmatprep.subr.bf16.mxu0 %v3370_v10 }
 0x3e6   :  { %v2017_v16 = vsel %vm210_vm0, %v1957_v45, 0.0  ;;  %v1958_v50 = vmul.f32 %v4849_v13, %v4849_v13  ;;  %3321 = vmatpush3.bf16.msra.mxu0 %v3370_v10 }
 0x3e7   :  { %2018 = vadd.xlane.f32.xlu0 %v2017_v16 }
 0x3e8   :  { %v1832_v29 = vpop.xlane.xlu0 %1831  ;;  %v2020_v5 = vsel %vm210_vm0, %v1958_v50, 0.0 }
 0x3e9   :  { %v1895_v57 = vmul.f32 0.03125, %v1832_v29  ;;  %2021 = vadd.xlane.f32.xlu1 %v2020_v5 }
 0x3ea   :  { %v1835_v1 = vpop.xlane.xlu1 %1834 }
 0x3eb   :  { %v4862_v9 = vsub.f32 %v4672_v42, %v1895_v57  ;;  %v1896_v0 = vmul.f32 0.03125, %v1835_v1 }
 0x3ec   :  { %v1838_v7 = vpop.xlane.xlu0 %1837 }
 0x3ed   :  { %v4865_v12 = vsub.f32 %v4677_v43, %v1896_v0  ;;  %v1897_v51 = vmul.f32 0.03125, %v1838_v7  ;;  %v1959_v63 = vmul.f32 %v4862_v9, %v4862_v9 }
 0x3ee   :  { %v1841_v30 = vpop.xlane.xlu1 %1840 }
 0x3ef   :  { %v4870_v52 = vsub.f32 %v4680_v59, %v1897_v51  ;;  %v1898_v18 = vmul.f32 0.03125, %v1841_v30  ;;  %v2023_v39 = vsel %vm210_vm0, %v1959_v63, 0.0  ;;  %v1960_v42 = vmul.f32 %v4865_v12, %v4865_v12 }
 0x3f0   :  { %v1844_v40 = vpop.xlane.xlu0 %1843  ;;  %2024 = vadd.xlane.f32.xlu0 %v2023_v39 }
 0x3f1   :  { %v4876_v17 = vsub.f32 %v4685_v37, %v1898_v18  ;;  %v1899_v43 = vmul.f32 0.03125, %v1844_v40  ;;  %v2026_v20 = vsel %vm210_vm0, %v1960_v42, 0.0  ;;  %v1961_v60 = vmul.f32 %v4870_v52, %v4870_v52 }
 0x3f2   :  { %v1847_v61 = vpop.xlane.xlu1 %1846  ;;  %2027 = vadd.xlane.f32.xlu1 %v2026_v20 }
 0x3f3   :  { %v4882_v59 = vsub.f32 %v4696_v21, %v1899_v43  ;;  %v1900_v34 = vmul.f32 0.03125, %v1847_v61  ;;  %v2029_v35 = vsel %vm210_vm0, %v1961_v60, 0.0  ;;  %v1962_v24 = vmul.f32 %v4876_v17, %v4876_v17 }
 0x3f4   :  { %v1850_v11 = vpop.xlane.xlu0 %1849  ;;  %2030 = vadd.xlane.f32.xlu0 %v2029_v35 }
 0x3f5   :  { %v4888_v37 = vsub.f32 %v4701_v15, %v1900_v34  ;;  %v1901_v58 = vmul.f32 0.03125, %v1850_v11  ;;  %v2032_v22 = vsel %vm210_vm0, %v1962_v24, 0.0  ;;  %v1963_v3 = vmul.f32 %v4882_v59, %v4882_v59 }
 0x3f6   :  { %v1853_v2 = vpop.xlane.xlu1 %1852  ;;  %2033 = vadd.xlane.f32.xlu1 %v2032_v22 }
 0x3f7   :  { %v4894_v21 = vsub.f32 %v4704_v23, %v1901_v58  ;;  %v1902_v6 = vmul.f32 0.03125, %v1853_v2  ;;  %v2035_v45 = vsel %vm210_vm0, %v1963_v3, 0.0  ;;  %v1964_v16 = vmul.f32 %v4888_v37, %v4888_v37 }
 0x3f8   :  { %v1856_v50 = vpop.xlane.xlu0 %1855  ;;  %2036 = vadd.xlane.f32.xlu0 %v2035_v45 }
 0x3f9   :  { %v4900_v15 = vsub.f32 %v4709_v38, %v1902_v6  ;;  %v1903_v29 = vmul.f32 0.03125, %v1856_v50  ;;  %v2038_v5 = vsel %vm210_vm0, %v1964_v16, 0.0  ;;  %v1965_v57 = vmul.f32 %v4894_v21, %v4894_v21 }
 0x3fa   :  { %v1859_v10 = vpop.xlane.xlu1 %1858  ;;  %2039 = vadd.xlane.f32.xlu1 %v2038_v5 }
 0x3fb   :  { %v4906_v23 = vsub.f32 %v4720_v28, %v1903_v29  ;;  %v1904_v1 = vmul.f32 0.03125, %v1859_v10  ;;  %v2041_v0 = vsel %vm210_vm0, %v1965_v57, 0.0  ;;  %v1966_v7 = vmul.f32 %v4900_v15, %v4900_v15 }
 0x3fc   :  { %v1862_v51 = vpop.xlane.xlu0 %1861  ;;  %2042 = vadd.xlane.f32.xlu0 %v2041_v0 }
 0x3fd   :  { %v4912_v38 = vsub.f32 %v4725_v27, %v1904_v1  ;;  %v1905_v63 = vmul.f32 0.03125, %v1862_v51  ;;  %v2044_v30 = vsel %vm210_vm0, %v1966_v7, 0.0  ;;  %v1967_v18 = vmul.f32 %v4906_v23, %v4906_v23 }
 0x3fe   :  { %v1865_v39 = vpop.xlane.xlu1 %1864  ;;  %2045 = vadd.xlane.f32.xlu1 %v2044_v30 }
 0x3ff   :  { %v4918_v28 = vsub.f32 %v4728_v25, %v1905_v63  ;;  %v1906_v42 = vmul.f32 0.03125, %v1865_v39  ;;  %v2047_v40 = vsel %vm210_vm0, %v1967_v18, 0.0  ;;  %v1968_v43 = vmul.f32 %v4912_v38, %v4912_v38 }
 0x400   :  { %2048 = vadd.xlane.f32.xlu0 %v2047_v40  ;;  %v1868_v27 = vpop.xlane.xlu0 %1867 }
 0x401   :  { %v4924_v20 = vsub.f32 %v4733_v31, %v1906_v42  ;;  %v1907_v60 = vmul.f32 0.03125, %v1868_v27  ;;  %v2050_v61 = vsel %vm210_vm0, %v1968_v43, 0.0  ;;  %v1969_v34 = vmul.f32 %v4918_v28, %v4918_v28 }
 0x402   :  { %2051 = vadd.xlane.f32.xlu1 %v2050_v61  ;;  %v1871_v25 = vpop.xlane.xlu1 %1870 }
 0x403   :  { %v4930_v35 = vsub.f32 %v4740_v55, %v1907_v60  ;;  %v1908_v24 = vmul.f32 0.03125, %v1871_v25  ;;  %v2053_v11 = vsel %vm210_vm0, %v1969_v34, 0.0  ;;  %v1970_v58 = vmul.f32 %v4924_v20, %v4924_v20 }
 0x404   :  { %2054 = vadd.xlane.f32.xlu0 %v2053_v11  ;;  %v1874_v31 = vpop.xlane.xlu0 %1873 }
 0x405   :  { %v4936_v22 = vsub.f32 %v4745_v62, %v1908_v24  ;;  %v1909_v3 = vmul.f32 0.03125, %v1874_v31  ;;  %v2056_v2 = vsel %vm210_vm0, %v1970_v58, 0.0  ;;  %v1971_v6 = vmul.f32 %v4930_v35, %v4930_v35 }
 0x406   :  { %2057 = vadd.xlane.f32.xlu1 %v2056_v2  ;;  %v1877_v55 = vpop.xlane.xlu1 %1876 }
 0x407   :  { %v4942_v45 = vsub.f32 %v4748_v8, %v1909_v3  ;;  %v1910_v16 = vmul.f32 0.03125, %v1877_v55  ;;  %v2059_v50 = vsel %vm210_vm0, %v1971_v6, 0.0  ;;  %v1972_v29 = vmul.f32 %v4936_v22, %v4936_v22  ;;  %v4960_v6 = vld [vmem:[%s5381_s8] ss:$0 sm:$0xff] }
 0x408   :  { %2060 = vadd.xlane.f32.xlu0 %v2059_v50 }
 0x409   :  { %v4948_v62 = vsub.f32 %v4753_v56, %v1910_v16  ;;  %v2062_v5 = vsel %vm210_vm0, %v1972_v29, 0.0  ;;  %v1973_v57 = vmul.f32 %v4942_v45, %v4942_v45 }
 0x40a   :  { %2063 = vadd.xlane.f32.xlu1 %v2062_v5  ;;  %v4966_v5 = vld [vmem:[%s5382_s9] ss:$0 sm:$0xff] }
 0x40b   :  { %v2065_v10 = vsel %vm210_vm0, %v1973_v57, 0.0  ;;  %v1974_v8 = vmul.f32 %v4948_v62, %v4948_v62 }
 0x40c   :  { %2066 = vadd.xlane.f32.xlu0 %v2065_v10 }
 0x40d   :  { %v2068_v1 = vsel %vm210_vm0, %v1974_v8, 0.0 }
 0x40e   :  { %2069 = vadd.xlane.f32.xlu1 %v2068_v1 }
 0x44d   :  { %v1977_v0 = vpop.xlane.xlu0 %1976 }
 0x44e   :  { %v2071_v7 = vmul.f32 0.03125, %v1977_v0 }
 0x44f   :  { %v1980_v51 = vpop.xlane.xlu1 %1979 }
 0x450   :  { %v2103_v56 = vadd.f32 1e-05, %v2071_v7  ;;  %v2072_v63 = vmul.f32 0.03125, %v1980_v51 }
 0x451   :  { %v1983_v30 = vpop.xlane.xlu0 %1982 }
 0x452   :  { %3499 = vrsqrt.f32 %v2103_v56  ;;  %v2104_v18 = vadd.f32 1e-05, %v2072_v63  ;;  %v2073_v39 = vmul.f32 0.03125, %v1983_v30 }
 0x453   :  { %v1986_v42 = vpop.xlane.xlu1 %1985 }
 0x454   :  { %3501 = vrsqrt.f32 %v2104_v18  ;;  %v2105_v40 = vadd.f32 1e-05, %v2073_v39  ;;  %v2074_v43 = vmul.f32 0.03125, %v1986_v42 }
 0x455   :  { %v1989_v27 = vpop.xlane.xlu0 %1988 }
 0x456   :  { %3503 = vrsqrt.f32 %v2105_v40  ;;  %v2106_v60 = vadd.f32 1e-05, %v2074_v43  ;;  %v2075_v61 = vmul.f32 0.03125, %v1989_v27 }
 0x457   :  { %v1992_v34 = vpop.xlane.xlu1 %1991 }
 0x458   :  { %3505 = vrsqrt.f32 %v2106_v60  ;;  %v2107_v25 = vadd.f32 1e-05, %v2075_v61  ;;  %v2076_v24 = vmul.f32 0.03125, %v1992_v34 }
 0x459   :  { %v1995_v11 = vpop.xlane.xlu0 %1994 }
 0x45a   :  { %3507 = vrsqrt.f32 %v2107_v25  ;;  %v2108_v58 = vadd.f32 1e-05, %v2076_v24  ;;  %v2077_v31 = vmul.f32 0.03125, %v1995_v11 }
 0x45b   :  { %v1998_v3 = vpop.xlane.xlu1 %1997 }
 0x45c   :  { %v3500_v2 = vpop.eup %3499  ;;  %3509 = vrsqrt.f32 %v2108_v58  ;;  %v2109_v55 = vadd.f32 1e-05, %v2077_v31  ;;  %v2078_v16 = vmul.f32 0.03125, %v1998_v3 }
 0x45d   :  { %v2167_v50 = vmul.f32 %v3500_v2, %v4763_v47 }
 0x45e   :  { %v3502_v29 = vpop.eup %3501  ;;  %3511 = vrsqrt.f32 %v2109_v55  ;;  %v2110_v57 = vadd.f32 1e-05, %v2078_v16 }
 0x45f   :  { %v2168_v10 = vmul.f32 %v3502_v29, %v4766_v26  ;;  %v2205_v8 = vmul.f32 %v4960_v6, %v2167_v50 }
 0x460   :  { %v3504_v1 = vpop.eup %3503  ;;  %3513 = vrsqrt.f32 %v2110_v57 }
 0x461   :  { %v2169_v0 = vmul.f32 %v3504_v1, %v4771_v54  ;;  %v2206_v7 = vmul.f32 %v4960_v6, %v2168_v10  ;;  %v2243_v47 = vadd.f32 %v4966_v5, %v2205_v8 }
 0x462   :  { %v3506_v51 = vpop.eup %3505 }
 0x463   :  { %v2207_v56 = vmul.f32 %v4960_v6, %v2169_v0  ;;  %v2170_v63 = vmul.f32 %v3506_v51, %v4777_v53  ;;  %v2244_v30 = vadd.f32 %v4966_v5, %v2206_v7  ;;  %v2952_v18 = vpack.c.bf16 %v2243_v47, %v2243_v47 }
 0x464   :  { %v3508_v26 = vpop.eup %3507  ;;  %v2001_v27 = vpop.xlane.xlu0 %2000 }
 0x465   :  { %v2245_v39 = vadd.f32 %v4966_v5, %v2207_v56  ;;  %v2208_v42 = vmul.f32 %v4960_v6, %v2170_v63  ;;  %v2171_v54 = vmul.f32 %v3508_v26, %v4783_v44  ;;  %v2275_v40 = vpack.c.bf16 %v2244_v30, %v2243_v47  ;;  %2404 = vst.msk [vmem:[%s5383_s12] sm:$0xf] %vm2403_vm1, %v2952_v18 }
 0x466   :  { %v3510_v43 = vpop.eup %3509  ;;  %v2953_v60 = vpack.c.bf16 %v2244_v30, %v2244_v30  ;;  %v2079_v25 = vmul.f32 0.03125, %v2001_v27  ;;  %v2004_v11 = vpop.xlane.xlu1 %2003 }
 0x467   :  { %v2954_v53 = vpack.c.bf16 %v2245_v39, %v2245_v39  ;;  %v2246_v61 = vadd.f32 %v4966_v5, %v2208_v42  ;;  %v2172_v34 = vmul.f32 %v3510_v43, %v4789_v32  ;;  %3322 = vmatprep.mubr.msk.bf16.mxu0 %vm210_vm0, %v2275_v40  ;;  %v2209_v44 = vmul.f32 %v4960_v6, %v2171_v54 }
 0x468   :  { %v3512_v24 = vpop.eup %3511  ;;  %2405 = vst.msk [vmem:[%s5383_s12 + $0x4] sm:$0xf] %vm2403_vm1, %v2953_v60  ;;  %v2111_v31 = vadd.f32 1e-05, %v2079_v25  ;;  %v2080_v3 = vmul.f32 0.03125, %v2004_v11  ;;  %v2007_v55 = vpop.xlane.xlu0 %2006 }
 0x469   :  { %2406 = vst.msk [vmem:[%s5383_s12 + $0x8] sm:$0xf] %vm2403_vm1, %v2954_v53  ;;  %v2955_v58 = vpack.c.bf16 %v2246_v61, %v2246_v61  ;;  %v2173_v32 = vmul.f32 %v3512_v24, %v4795_v36  ;;  %v2276_v16 = vpack.c.bf16 %v2246_v61, %v2245_v39  ;;  %v2210_v50 = vmul.f32 %v4960_v6, %v2172_v34 }
 0x46a   :  { %v3514_v2 = vpop.eup %3513  ;;  %v2247_v29 = vadd.f32 %v4966_v5, %v2209_v44  ;;  %3515 = vrsqrt.f32 %v2111_v31  ;;  %v2112_v10 = vadd.f32 1e-05, %v2080_v3  ;;  %v2081_v8 = vmul.f32 0.03125, %v2007_v55  ;;  %v2010_v36 = vpop.xlane.xlu1 %2009 }
 0x46b   :  { %2407 = vst.msk [vmem:[%s5383_s12 + $0xc] sm:$0xf] %vm2403_vm1, %v2955_v58  ;;  %v2174_v57 = vmul.f32 %v3514_v2, %v4801_v4  ;;  %3323 = vmatmul.mubr.msk.bf16.vlgmr.msra.gmra.mrb[16].mxu0 %vm210_vm0, %v2276_v16  ;;  %v2248_v1 = vadd.f32 %v4966_v5, %v2210_v50  ;;  %v2211_v7 = vmul.f32 %v4960_v6, %v2173_v32  ;;  %v2082_v51 = vmul.f32 0.03125, %v2010_v36 }
 0x46c   :  { %v2956_v0 = vpack.c.bf16 %v2247_v29, %v2247_v29  ;;  %3517 = vrsqrt.f32 %v2112_v10  ;;  %v2113_v47 = vadd.f32 1e-05, %v2081_v8 }
 0x46d   :  { %v2212_v56 = vmul.f32 %v4960_v6, %v2174_v57  ;;  %v2277_v63 = vpack.c.bf16 %v2248_v1, %v2247_v29  ;;  %v2957_v30 = vpack.c.bf16 %v2248_v1, %v2248_v1  ;;  %v2249_v4 = vadd.f32 %v4966_v5, %v2211_v7 }
 0x46e   :  { %2408 = vst.msk [vmem:[%s5383_s12 + $0x10] sm:$0xf] %vm2403_vm1, %v2956_v0  ;;  %3519 = vrsqrt.f32 %v2113_v47  ;;  %v2114_v18 = vadd.f32 1e-05, %v2082_v51 }
 0x46f   :  { %v2250_v26 = vadd.f32 %v4966_v5, %v2212_v56  ;;  %2409 = vst.msk [vmem:[%s5383_s12 + $0x14] sm:$0xf] %vm2403_vm1, %v2957_v30  ;;  %3326 = vmatprep.mubr.msk.bf16.mxu0 %vm210_vm0, %v2277_v63  ;;  %v2958_v39 = vpack.c.bf16 %v2249_v4, %v2249_v4 }
 0x470   :  { %3521 = vrsqrt.f32 %v2114_v18  ;;  %v2013_v40 = vpop.xlane.xlu0 %2012 }
 0x471   :  { %v2278_v42 = vpack.c.bf16 %v2250_v26, %v2249_v4  ;;  %v2959_v54 = vpack.c.bf16 %v2250_v26, %v2250_v26  ;;  %2410 = vst.msk [vmem:[%s5383_s12 + $0x18] sm:$0xf] %vm2403_vm1, %v2958_v39  ;;  %v2083_v43 = vmul.f32 0.03125, %v2013_v40 }
 0x472   :  { %v2016_v27 = vpop.xlane.xlu1 %2015 }
 0x473   :  { %2411 = vst.msk [vmem:[%s5383_s12 + $0x1c] sm:$0xf] %vm2403_vm1, %v2959_v54  ;;  %3327 = vmatmul.mubr.msk.bf16.gmra.mrb[20].mxu0 %vm210_vm0, %v2278_v42  ;;  %v2115_v53 = vadd.f32 1e-05, %v2083_v43  ;;  %v2084_v61 = vmul.f32 0.03125, %v2016_v27 }
 0x474   :  { %v3516_v60 = vpop.eup %3515  ;;  %v2019_v25 = vpop.xlane.xlu0 %2018 }
 0x475   :  { %v2175_v34 = vmul.f32 %v3516_v60, %v4811_v33  ;;  %3523 = vrsqrt.f32 %v2115_v53  ;;  %v2116_v11 = vadd.f32 1e-05, %v2084_v61  ;;  %v2085_v44 = vmul.f32 0.03125, %v2019_v25 }
 0x476   :  { %v3518_v24 = vpop.eup %3517  ;;  %v2022_v32 = vpop.xlane.xlu1 %2021 }
 0x477   :  { %v2176_v58 = vmul.f32 %v3518_v24, %v4814_v41  ;;  %v2213_v31 = vmul.f32 %v4960_v6, %v2175_v34  ;;  %3525 = vrsqrt.f32 %v2116_v11  ;;  %v2117_v2 = vadd.f32 1e-05, %v2085_v44 }
 0x478   :  { %v3520_v3 = vpop.eup %3519  ;;  %v2086_v55 = vmul.f32 0.03125, %v2022_v32 }
 0x479   :  { %v2177_v16 = vmul.f32 %v3520_v3, %v4819_v19  ;;  %v2214_v50 = vmul.f32 %v4960_v6, %v2176_v58  ;;  %v2251_v33 = vadd.f32 %v4966_v5, %v2213_v31  ;;  %3527 = vrsqrt.f32 %v2117_v2 }
 0x47a   :  { %v3522_v29 = vpop.eup %3521  ;;  %v2118_v57 = vadd.f32 1e-05, %v2086_v55 }
 0x47b   :  { %v2178_v10 = vmul.f32 %v3522_v29, %v4825_v14  ;;  %v2252_v41 = vadd.f32 %v4966_v5, %v2214_v50  ;;  %v2960_v8 = vpack.c.bf16 %v2251_v33, %v2251_v33  ;;  %v2215_v36 = vmul.f32 %v4960_v6, %v2177_v16 }
 0x47c   :  { %3529 = vrsqrt.f32 %v2118_v57 }
 0x47d   :  { %v2279_v1 = vpack.c.bf16 %v2252_v41, %v2251_v33  ;;  %v2961_v0 = vpack.c.bf16 %v2252_v41, %v2252_v41  ;;  %2412 = vst.msk [vmem:[%s5383_s12 + $0x20] sm:$0xf] %vm2403_vm1, %v2960_v8  ;;  %v2216_v19 = vmul.f32 %v4960_v6, %v2178_v10  ;;  %v2253_v7 = vadd.f32 %v4966_v5, %v2215_v36  ;;  %v2025_v47 = vpop.xlane.xlu0 %2024 }
 0x47e   :  { %v2087_v51 = vmul.f32 0.03125, %v2025_v47 }
 0x47f   :  { %2413 = vst.msk [vmem:[%s5383_s12 + $0x24] sm:$0xf] %vm2403_vm1, %v2961_v0  ;;  %3330 = vmatprep.mubr.msk.bf16.mxu0 %vm210_vm0, %v2279_v1  ;;  %v2254_v14 = vadd.f32 %v4966_v5, %v2216_v19  ;;  %v2962_v56 = vpack.c.bf16 %v2253_v7, %v2253_v7  ;;  %v3524_v63 = vpop.eup %3523  ;;  %v2028_v30 = vpop.xlane.xlu1 %2027 }
 0x480   :  { %v2179_v4 = vmul.f32 %v3524_v63, %v4835_v49  ;;  %v2119_v18 = vadd.f32 1e-05, %v2087_v51  ;;  %v2088_v26 = vmul.f32 0.03125, %v2028_v30 }
 0x481   :  { %v2280_v39 = vpack.c.bf16 %v2254_v14, %v2253_v7  ;;  %2414 = vst.msk [vmem:[%s5383_s12 + $0x28] sm:$0xf] %vm2403_vm1, %v2962_v56  ;;  %v3526_v42 = vpop.eup %3525  ;;  %v2031_v54 = vpop.xlane.xlu0 %2030  ;;  %v2963_v40 = vpack.c.bf16 %v2254_v14, %v2254_v14 }
 0x482   :  { %v2180_v43 = vmul.f32 %v3526_v42, %v4838_v46  ;;  %3531 = vrsqrt.f32 %v2119_v18  ;;  %v2120_v27 = vadd.f32 1e-05, %v2088_v26  ;;  %v2089_v60 = vmul.f32 0.03125, %v2031_v54 }
 0x483   :  { %3331 = vmatmul.mubr.msk.bf16.gmra.mrb[24].mxu0 %vm210_vm0, %v2280_v39  ;;  %v3528_v53 = vpop.eup %3527  ;;  %v2034_v49 = vpop.xlane.xlu1 %2033  ;;  %2415 = vst.msk [vmem:[%s5383_s12 + $0x2c] sm:$0xf] %vm2403_vm1, %v2963_v40  ;;  %v2217_v61 = vmul.f32 %v4960_v6, %v2179_v4 }
 0x484   :  { %v2181_v34 = vmul.f32 %v3528_v53, %v4843_v48  ;;  %3533 = vrsqrt.f32 %v2120_v27  ;;  %v2121_v25 = vadd.f32 1e-05, %v2089_v60  ;;  %v2090_v24 = vmul.f32 0.03125, %v2034_v49 }
 0x485   :  { %v2037_v11 = vpop.xlane.xlu0 %2036  ;;  %v2218_v44 = vmul.f32 %v4960_v6, %v2180_v43  ;;  %v2255_v58 = vadd.f32 %v4966_v5, %v2217_v61 }
 0x486   :  { %v3530_v46 = vpop.eup %3529  ;;  %3535 = vrsqrt.f32 %v2121_v25  ;;  %v2122_v31 = vadd.f32 1e-05, %v2090_v24  ;;  %v2091_v3 = vmul.f32 0.03125, %v2037_v11  ;;  %v2219_v48 = vmul.f32 %v4960_v6, %v2181_v34 }
 0x487   :  { %v2182_v32 = vmul.f32 %v3530_v46, %v4849_v13  ;;  %v2040_v2 = vpop.xlane.xlu1 %2039  ;;  %v2256_v55 = vadd.f32 %v4966_v5, %v2218_v44  ;;  %v2964_v16 = vpack.c.bf16 %v2255_v58, %v2255_v58 }
 0x488   :  { %3537 = vrsqrt.f32 %v2122_v31  ;;  %v2123_v50 = vadd.f32 1e-05, %v2091_v3  ;;  %v2092_v33 = vmul.f32 0.03125, %v2040_v2  ;;  %v2257_v13 = vadd.f32 %v4966_v5, %v2219_v48 }
 0x489   :  { %v2220_v29 = vmul.f32 %v4960_v6, %v2182_v32  ;;  %v2043_v57 = vpop.xlane.xlu0 %2042  ;;  %v2281_v10 = vpack.c.bf16 %v2256_v55, %v2255_v58  ;;  %v2965_v41 = vpack.c.bf16 %v2256_v55, %v2256_v55  ;;  %2416 = vst.msk [vmem:[%s5383_s12 + $0x30] sm:$0xf] %vm2403_vm1, %v2964_v16 }
 0x48a   :  { %3539 = vrsqrt.f32 %v2123_v50  ;;  %v2124_v8 = vadd.f32 1e-05, %v2092_v33  ;;  %v2093_v36 = vmul.f32 0.03125, %v2043_v57  ;;  %v2966_v19 = vpack.c.bf16 %v2257_v13, %v2257_v13 }
 0x48b   :  { %v2258_v1 = vadd.f32 %v4966_v5, %v2220_v29  ;;  %v2046_v0 = vpop.xlane.xlu1 %2045  ;;  %2417 = vst.msk [vmem:[%s5383_s12 + $0x34] sm:$0xf] %vm2403_vm1, %v2965_v41  ;;  %3334 = vmatprep.mubr.msk.bf16.mxu0 %vm210_vm0, %v2281_v10 }
 0x48c   :  { %v3532_v7 = vpop.eup %3531  ;;  %3541 = vrsqrt.f32 %v2124_v8  ;;  %v2125_v47 = vadd.f32 1e-05, %v2093_v36  ;;  %v2094_v51 = vmul.f32 0.03125, %v2046_v0  ;;  %2418 = vst.msk [vmem:[%s5383_s12 + $0x38] sm:$0xf] %vm2403_vm1, %v2966_v19 }
 0x48d   :  { %v2282_v14 = vpack.c.bf16 %v2258_v1, %v2257_v13  ;;  %v2183_v56 = vmul.f32 %v3532_v7, %v4862_v9  ;;  %v2049_v63 = vpop.xlane.xlu0 %2048  ;;  %v2967_v30 = vpack.c.bf16 %v2258_v1, %v2258_v1 }
 0x48e   :  { %v3534_v4 = vpop.eup %3533  ;;  %3543 = vrsqrt.f32 %v2125_v47  ;;  %v2126_v18 = vadd.f32 1e-05, %v2094_v51  ;;  %v2095_v26 = vmul.f32 0.03125, %v2049_v63 }
 0x48f   :  { %3335 = vmatmul.mubr.msk.bf16.gmra.mrb[28].mxu0 %vm210_vm0, %v2282_v14  ;;  %v2184_v39 = vmul.f32 %v3534_v4, %v4865_v12  ;;  %v2052_v42 = vpop.xlane.xlu1 %2051  ;;  %2419 = vst.msk [vmem:[%s5383_s12 + $0x3c] sm:$0xf] %vm2403_vm1, %v2967_v30  ;;  %v2221_v9 = vmul.f32 %v4960_v6, %v2183_v56 }
 0x490   :  { %v3536_v54 = vpop.eup %3535  ;;  %3545 = vrsqrt.f32 %v2126_v18  ;;  %v2127_v40 = vadd.f32 1e-05, %v2095_v26  ;;  %v2096_v43 = vmul.f32 0.03125, %v2052_v42 }
 0x491   :  { %v2185_v27 = vmul.f32 %v3536_v54, %v4870_v52  ;;  %v2055_v60 = vpop.xlane.xlu0 %2054  ;;  %v2222_v53 = vmul.f32 %v4960_v6, %v2184_v39  ;;  %v2259_v49 = vadd.f32 %v4966_v5, %v2221_v9 }
 0x492   :  { %v3538_v12 = vpop.eup %3537  ;;  %3547 = vrsqrt.f32 %v2127_v40  ;;  %v2128_v61 = vadd.f32 1e-05, %v2096_v43  ;;  %v2097_v34 = vmul.f32 0.03125, %v2055_v60 }
 0x493   :  { %v2186_v25 = vmul.f32 %v3538_v12, %v4876_v17  ;;  %v2058_v24 = vpop.xlane.xlu1 %2057  ;;  %v2260_v46 = vadd.f32 %v4966_v5, %v2222_v53  ;;  %v2968_v11 = vpack.c.bf16 %v2259_v49, %v2259_v49  ;;  %v2223_v44 = vmul.f32 %v4960_v6, %v2185_v27 }
 0x494   :  { %v3540_v58 = vpop.eup %3539  ;;  %3549 = vrsqrt.f32 %v2128_v61  ;;  %v2129_v52 = vadd.f32 1e-05, %v2097_v34  ;;  %v2098_v32 = vmul.f32 0.03125, %v2058_v24 }
 0x495   :  { %v2187_v31 = vmul.f32 %v3540_v58, %v4882_v59  ;;  %v2061_v3 = vpop.xlane.xlu0 %2060  ;;  %v2283_v2 = vpack.c.bf16 %v2260_v46, %v2259_v49  ;;  %v2969_v55 = vpack.c.bf16 %v2260_v46, %v2260_v46  ;;  %2420 = vst.msk [vmem:[%s5383_s12 + $0x40] sm:$0xf] %vm2403_vm1, %v2968_v11  ;;  %v2224_v17 = vmul.f32 %v4960_v6, %v2186_v25 }
 0x496   :  { %v3542_v16 = vpop.eup %3541  ;;  %3551 = vrsqrt.f32 %v2129_v52  ;;  %v2130_v48 = vadd.f32 1e-05, %v2098_v32  ;;  %v2099_v50 = vmul.f32 0.03125, %v2061_v3  ;;  %v2261_v33 = vadd.f32 %v4966_v5, %v2223_v44 }
 0x497   :  { %v2188_v29 = vmul.f32 %v3542_v16, %v4888_v37  ;;  %2421 = vst.msk [vmem:[%s5383_s12 + $0x44] sm:$0xf] %vm2403_vm1, %v2969_v55  ;;  %3338 = vmatprep.mubr.msk.bf16.mxu0 %vm210_vm0, %v2283_v2  ;;  %v2064_v59 = vpop.xlane.xlu1 %2063  ;;  %v2262_v57 = vadd.f32 %v4966_v5, %v2224_v17  ;;  %v2225_v10 = vmul.f32 %v4960_v6, %v2187_v31 }
 0x498   :  { %v3544_v41 = vpop.eup %3543  ;;  %3553 = vrsqrt.f32 %v2130_v48  ;;  %v2131_v13 = vadd.f32 1e-05, %v2099_v50  ;;  %v2100_v8 = vmul.f32 0.03125, %v2064_v59  ;;  %v2970_v36 = vpack.c.bf16 %v2261_v33, %v2261_v33 }
 0x499   :  { %v2189_v1 = vmul.f32 %v3544_v41, %v4894_v21  ;;  %v2067_v37 = vpop.xlane.xlu0 %2066  ;;  %v2284_v0 = vpack.c.bf16 %v2262_v57, %v2261_v33  ;;  %v2971_v19 = vpack.c.bf16 %v2262_v57, %v2262_v57  ;;  %v2226_v7 = vmul.f32 %v4960_v6, %v2188_v29 }
 0x49a   :  { %v3546_v47 = vpop.eup %3545  ;;  %3555 = vrsqrt.f32 %v2131_v13  ;;  %v2132_v51 = vadd.f32 1e-05, %v2100_v8  ;;  %v2101_v14 = vmul.f32 0.03125, %v2067_v37  ;;  %2422 = vst.msk [vmem:[%s5383_s12 + $0x48] sm:$0xf] %vm2403_vm1, %v2970_v36  ;;  %v2263_v56 = vadd.f32 %v4966_v5, %v2225_v10 }
 0x49b   :  { %v2190_v63 = vmul.f32 %v3546_v47, %v4900_v15  ;;  %2423 = vst.msk [vmem:[%s5383_s12 + $0x4c] sm:$0xf] %vm2403_vm1, %v2971_v19  ;;  %3339 = vmatmul.mubr.msk.bf16.gmra.mrb[32].mxu0 %vm210_vm0, %v2284_v0  ;;  %v2070_v21 = vpop.xlane.xlu1 %2069  ;;  %v2264_v30 = vadd.f32 %v4966_v5, %v2226_v7  ;;  %v2227_v4 = vmul.f32 %v4960_v6, %v2189_v1 }
 0x49c   :  { %v3548_v18 = vpop.eup %3547  ;;  %3557 = vrsqrt.f32 %v2132_v51  ;;  %v2133_v26 = vadd.f32 1e-05, %v2101_v14  ;;  %v2102_v39 = vmul.f32 0.03125, %v2070_v21  ;;  %v2972_v42 = vpack.c.bf16 %v2263_v56, %v2263_v56 }
 0x49d   :  { %v2191_v9 = vmul.f32 %v3548_v18, %v4906_v23  ;;  %v2285_v15 = vpack.c.bf16 %v2264_v30, %v2263_v56  ;;  %v2973_v54 = vpack.c.bf16 %v2264_v30, %v2264_v30  ;;  %v2228_v40 = vmul.f32 %v4960_v6, %v2190_v63 }
 0x49e   :  { %v3550_v43 = vpop.eup %3549  ;;  %3559 = vrsqrt.f32 %v2133_v26  ;;  %v2134_v27 = vadd.f32 1e-05, %v2102_v39  ;;  %2424 = vst.msk [vmem:[%s5383_s12 + $0x50] sm:$0xf] %vm2403_vm1, %v2972_v42  ;;  %v2265_v60 = vadd.f32 %v4966_v5, %v2227_v4 }
 0x49f   :  { %v2192_v53 = vmul.f32 %v3550_v43, %v4912_v38  ;;  %2425 = vst.msk [vmem:[%s5383_s12 + $0x54] sm:$0xf] %vm2403_vm1, %v2973_v54  ;;  %3342 = vmatprep.mubr.msk.bf16.mxu0 %vm210_vm0, %v2285_v15  ;;  %v2266_v23 = vadd.f32 %v4966_v5, %v2228_v40  ;;  %v2229_v49 = vmul.f32 %v4960_v6, %v2191_v9 }
 0x4a0   :  { %v3552_v12 = vpop.eup %3551  ;;  %3561 = vrsqrt.f32 %v2134_v27  ;;  %v2974_v61 = vpack.c.bf16 %v2265_v60, %v2265_v60 }
 0x4a1   :  { %v2193_v34 = vmul.f32 %v3552_v12, %v4918_v28  ;;  %v2286_v25 = vpack.c.bf16 %v2266_v23, %v2265_v60  ;;  %v2975_v24 = vpack.c.bf16 %v2266_v23, %v2266_v23  ;;  %v2230_v38 = vmul.f32 %v4960_v6, %v2192_v53 }
 0x4a2   :  { %v3554_v46 = vpop.eup %3553  ;;  %2426 = vst.msk [vmem:[%s5383_s12 + $0x58] sm:$0xf] %vm2403_vm1, %v2974_v61  ;;  %v2267_v11 = vadd.f32 %v4966_v5, %v2229_v49 }
 0x4a3   :  { %v2194_v44 = vmul.f32 %v3554_v46, %v4924_v20  ;;  %2427 = vst.msk [vmem:[%s5383_s12 + $0x5c] sm:$0xf] %vm2403_vm1, %v2975_v24  ;;  %3343 = vmatmul.mubr.msk.bf16.gmra.mrb[36].mxu0 %vm210_vm0, %v2286_v25  ;;  %v2268_v28 = vadd.f32 %v4966_v5, %v2230_v38  ;;  %v2231_v58 = vmul.f32 %v4960_v6, %v2193_v34 }
 0x4a4   :  { %v3556_v52 = vpop.eup %3555  ;;  %v2976_v32 = vpack.c.bf16 %v2267_v11, %v2267_v11 }
 0x4a5   :  { %v2195_v31 = vmul.f32 %v3556_v52, %v4930_v35  ;;  %v2287_v3 = vpack.c.bf16 %v2268_v28, %v2267_v11  ;;  %v2977_v2 = vpack.c.bf16 %v2268_v28, %v2268_v28  ;;  %v2232_v55 = vmul.f32 %v4960_v6, %v2194_v44 }
 0x4a6   :  { %v3558_v20 = vpop.eup %3557  ;;  %2428 = vst.msk [vmem:[%s5383_s12 + $0x60] sm:$0xf] %vm2403_vm1, %v2976_v32  ;;  %v2269_v17 = vadd.f32 %v4966_v5, %v2231_v58 }
 0x4a7   :  { %v2196_v16 = vmul.f32 %v3558_v20, %v4936_v22  ;;  %2429 = vst.msk [vmem:[%s5383_s12 + $0x64] sm:$0xf] %vm2403_vm1, %v2977_v2  ;;  %3346 = vmatprep.mubr.msk.bf16.mxu0 %vm210_vm0, %v2287_v3  ;;  %v2270_v35 = vadd.f32 %v4966_v5, %v2232_v55  ;;  %v2233_v48 = vmul.f32 %v4960_v6, %v2195_v31 }
 0x4a8   :  { %v3560_v50 = vpop.eup %3559  ;;  %v2978_v33 = vpack.c.bf16 %v2269_v17, %v2269_v17 }
 0x4a9   :  { %v2197_v29 = vmul.f32 %v3560_v50, %v4942_v45  ;;  %v2288_v59 = vpack.c.bf16 %v2270_v35, %v2269_v17  ;;  %v2979_v57 = vpack.c.bf16 %v2270_v35, %v2270_v35  ;;  %v2234_v10 = vmul.f32 %v4960_v6, %v2196_v16 }
 0x4aa   :  { %v3562_v22 = vpop.eup %3561  ;;  %2430 = vst.msk [vmem:[%s5383_s12 + $0x68] sm:$0xf] %vm2403_vm1, %v2978_v33  ;;  %v2271_v41 = vadd.f32 %v4966_v5, %v2233_v48 }
 0x4ab   :  { %v2198_v13 = vmul.f32 %v3562_v22, %v4948_v62  ;;  %2431 = vst.msk [vmem:[%s5383_s12 + $0x6c] sm:$0xf] %vm2403_vm1, %v2979_v57  ;;  %3347 = vmatmul.mubr.msk.bf16.gmra.mrb[40].mxu0 %vm210_vm0, %v2288_v59  ;;  %v2272_v45 = vadd.f32 %v4966_v5, %v2234_v10  ;;  %v2235_v8 = vmul.f32 %v4960_v6, %v2197_v29 }
 0x4ac   :  { %v2980_v36 = vpack.c.bf16 %v2271_v41, %v2271_v41 }
 0x4ad   :  { %v2289_v1 = vpack.c.bf16 %v2272_v45, %v2271_v41  ;;  %v2981_v37 = vpack.c.bf16 %v2272_v45, %v2272_v45  ;;  %v2236_v0 = vmul.f32 %v4960_v6, %v2198_v13  ;;  %v2273_v19 = vadd.f32 %v4966_v5, %v2235_v8  ;;  %v5210_v6 = vld [vmem:[%s5384_s11] ss:$0 sm:$0xff] }
 0x4ae   :  { %2432 = vst.msk [vmem:[%s5383_s12 + $0x70] sm:$0xf] %vm2403_vm1, %v2980_v36 }
 0x4af   :  { %2433 = vst.msk [vmem:[%s5383_s12 + $0x74] sm:$0xf] %vm2403_vm1, %v2981_v37  ;;  %3350 = vmatprep.mubr.msk.bf16.mxu0 %vm210_vm0, %v2289_v1  ;;  %v2274_v62 = vadd.f32 %v4966_v5, %v2236_v0  ;;  %v2982_v7 = vpack.c.bf16 %v2273_v19, %v2273_v19 }
 0x4b1   :  { %v2290_v47 = vpack.c.bf16 %v2274_v62, %v2273_v19  ;;  %v2983_v51 = vpack.c.bf16 %v2274_v62, %v2274_v62  ;;  %2434 = vst.msk [vmem:[%s5383_s12 + $0x78] sm:$0xf] %vm2403_vm1, %v2982_v7 }
 0x4b3   :  { %2435 = vst.msk [vmem:[%s5383_s12 + $0x7c] sm:$0xf] %vm2403_vm1, %v2983_v51  ;;  %3351 = vmatmul.mubr.msk.bf16.gmra.mrb[44].mxu0 %vm210_vm0, %v2290_v47 }
 0x53e   :  { %v3324_v5 = vpop.f32.mrb[16].mxu0 }
 0x53f   :  { %v2550_v14 = vadd.f32 %v3324_v5, %v5210_v6  ;;  %v2541_v56 = vpop.f32.mrb[17].mxu0 }
 0x540   :  { %v2542_v63 = vadd.f32 %v5210_v6, %v2541_v56  ;;  %v3325_v21 = vpop.f32.mrb[18].mxu0 }
 0x541   :  { %v2986_v30 = vpack.c.bf16 %v2550_v14, %v2550_v14  ;;  %v2553_v4 = vadd.f32 %v3325_v21, %v5210_v6  ;;  %v2544_v18 = vpop.f32.mrb[19].mxu0 }
 0x542   :  { %v2984_v26 = vpack.c.bf16 %v2542_v63, %v2542_v63  ;;  %v2545_v39 = vadd.f32 %v5210_v6, %v2544_v18 }
 0x543   :  { %2799 = vst.msk [vmem:[%s5385_s13 + $0x8] sm:$0xf] %vm2796_vm2, %v2986_v30  ;;  %v2987_v42 = vpack.c.bf16 %v2553_v4, %v2553_v4 }
 0x544   :  { %2797 = vst.msk [vmem:[%s5385_s13] sm:$0xf] %vm2796_vm2, %v2984_v26  ;;  %v2985_v9 = vpack.c.bf16 %v2545_v39, %v2545_v39 }
 0x545   :  { %2800 = vst.msk [vmem:[%s5385_s13 + $0xc] sm:$0xf] %vm2796_vm2, %v2987_v42 }
 0x546   :  { %2798 = vst.msk [vmem:[%s5385_s13 + $0x4] sm:$0xf] %vm2796_vm2, %v2985_v9  ;;  %v3328_v15 = vpop.f32.mrb[20].mxu0 }
 0x547   :  { %v2566_v54 = vadd.f32 %v3328_v15, %v5210_v6  ;;  %v2557_v40 = vpop.f32.mrb[21].mxu0 }
 0x548   :  { %v2558_v43 = vadd.f32 %v5210_v6, %v2557_v40  ;;  %v3329_v27 = vpop.f32.mrb[22].mxu0 }
 0x549   :  { %v2990_v60 = vpack.c.bf16 %v2566_v54, %v2566_v54  ;;  %v2569_v53 = vadd.f32 %v3329_v27, %v5210_v6  ;;  %v2560_v23 = vpop.f32.mrb[23].mxu0 }
 0x54a   :  { %v2988_v49 = vpack.c.bf16 %v2558_v43, %v2558_v43  ;;  %v2561_v12 = vadd.f32 %v5210_v6, %v2560_v23 }
 0x54b   :  { %2803 = vst.msk [vmem:[%s5385_s13 + $0x18] sm:$0xf] %vm2796_vm2, %v2990_v60  ;;  %v2991_v61 = vpack.c.bf16 %v2569_v53, %v2569_v53 }
 0x54c   :  { %2801 = vst.msk [vmem:[%s5385_s13 + $0x10] sm:$0xf] %vm2796_vm2, %v2988_v49  ;;  %v2989_v34 = vpack.c.bf16 %v2561_v12, %v2561_v12 }
 0x54d   :  { %2804 = vst.msk [vmem:[%s5385_s13 + $0x1c] sm:$0xf] %vm2796_vm2, %v2991_v61 }
 0x54e   :  { %2802 = vst.msk [vmem:[%s5385_s13 + $0x14] sm:$0xf] %vm2796_vm2, %v2989_v34 }
 0x556   :  { %v3332_v25 = vpop.f32.mrb[24].mxu0 }
 0x557   :  { %v2582_v24 = vadd.f32 %v3332_v25, %v5210_v6  ;;  %v2573_v38 = vpop.f32.mrb[25].mxu0 }
 0x558   :  { %v2574_v46 = vadd.f32 %v5210_v6, %v2573_v38  ;;  %v3333_v11 = vpop.f32.mrb[26].mxu0 }
 0x559   :  { %v2994_v44 = vpack.c.bf16 %v2582_v24, %v2582_v24  ;;  %v2585_v28 = vadd.f32 %v3333_v11, %v5210_v6  ;;  %v2576_v58 = vpop.f32.mrb[27].mxu0 }
 0x55a   :  { %v2992_v52 = vpack.c.bf16 %v2574_v46, %v2574_v46  ;;  %v2577_v32 = vadd.f32 %v5210_v6, %v2576_v58 }
 0x55b   :  { %2807 = vst.msk [vmem:[%s5385_s13 + $0x28] sm:$0xf] %vm2796_vm2, %v2994_v44  ;;  %v2995_v31 = vpack.c.bf16 %v2585_v28, %v2585_v28 }
 0x55c   :  { %2805 = vst.msk [vmem:[%s5385_s13 + $0x20] sm:$0xf] %vm2796_vm2, %v2992_v52  ;;  %v2993_v3 = vpack.c.bf16 %v2577_v32, %v2577_v32 }
 0x55d   :  { %2808 = vst.msk [vmem:[%s5385_s13 + $0x2c] sm:$0xf] %vm2796_vm2, %v2995_v31 }
 0x55e   :  { %2806 = vst.msk [vmem:[%s5385_s13 + $0x24] sm:$0xf] %vm2796_vm2, %v2993_v3 }
 0x562   :  { %v3336_v2 = vpop.f32.mrb[28].mxu0 }
 0x563   :  { %v2598_v55 = vadd.f32 %v3336_v2, %v5210_v6  ;;  %v2589_v20 = vpop.f32.mrb[29].mxu0 }
 0x564   :  { %v2590_v17 = vadd.f32 %v5210_v6, %v2589_v20  ;;  %v3337_v16 = vpop.f32.mrb[30].mxu0 }
 0x565   :  { %v2998_v35 = vpack.c.bf16 %v2598_v55, %v2598_v55  ;;  %v2601_v48 = vadd.f32 %v3337_v16, %v5210_v6  ;;  %v2592_v50 = vpop.f32.mrb[31].mxu0 }
 0x566   :  { %v2996_v33 = vpack.c.bf16 %v2590_v17, %v2590_v17  ;;  %v2593_v29 = vadd.f32 %v5210_v6, %v2592_v50 }
 0x567   :  { %2811 = vst.msk [vmem:[%s5385_s13 + $0x38] sm:$0xf] %vm2796_vm2, %v2998_v35  ;;  %v2999_v59 = vpack.c.bf16 %v2601_v48, %v2601_v48 }
 0x568   :  { %2809 = vst.msk [vmem:[%s5385_s13 + $0x30] sm:$0xf] %vm2796_vm2, %v2996_v33  ;;  %v2997_v57 = vpack.c.bf16 %v2593_v29, %v2593_v29 }
 0x569   :  { %2812 = vst.msk [vmem:[%s5385_s13 + $0x3c] sm:$0xf] %vm2796_vm2, %v2999_v59 }
 0x56a   :  { %2810 = vst.msk [vmem:[%s5385_s13 + $0x34] sm:$0xf] %vm2796_vm2, %v2997_v57 }
 0x56e   :  { %v3340_v10 = vpop.f32.mrb[32].mxu0 }
 0x56f   :  { %v2614_v22 = vadd.f32 %v3340_v10, %v5210_v6  ;;  %v2605_v41 = vpop.f32.mrb[33].mxu0 }
 0x570   :  { %v2606_v13 = vadd.f32 %v5210_v6, %v2605_v41  ;;  %v3341_v45 = vpop.f32.mrb[34].mxu0 }
 0x571   :  { %v3002_v8 = vpack.c.bf16 %v2614_v22, %v2614_v22  ;;  %v2617_v36 = vadd.f32 %v3341_v45, %v5210_v6  ;;  %v2608_v1 = vpop.f32.mrb[35].mxu0 }
 0x572   :  { %v3000_v37 = vpack.c.bf16 %v2606_v13, %v2606_v13  ;;  %v2609_v0 = vadd.f32 %v5210_v6, %v2608_v1 }
 0x573   :  { %2815 = vst.msk [vmem:[%s5385_s13 + $0x48] sm:$0xf] %vm2796_vm2, %v3002_v8  ;;  %v3003_v19 = vpack.c.bf16 %v2617_v36, %v2617_v36 }
 0x574   :  { %2813 = vst.msk [vmem:[%s5385_s13 + $0x40] sm:$0xf] %vm2796_vm2, %v3000_v37  ;;  %v3001_v62 = vpack.c.bf16 %v2609_v0, %v2609_v0 }
 0x575   :  { %2816 = vst.msk [vmem:[%s5385_s13 + $0x4c] sm:$0xf] %vm2796_vm2, %v3003_v19 }
 0x576   :  { %2814 = vst.msk [vmem:[%s5385_s13 + $0x44] sm:$0xf] %vm2796_vm2, %v3001_v62  ;;  %v3344_v7 = vpop.f32.mrb[36].mxu0 }
 0x577   :  { %v2630_v47 = vadd.f32 %v3344_v7, %v5210_v6  ;;  %v2621_v51 = vpop.f32.mrb[37].mxu0 }
 0x578   :  { %v2622_v5 = vadd.f32 %v5210_v6, %v2621_v51  ;;  %v3345_v14 = vpop.f32.mrb[38].mxu0 }
 0x579   :  { %v3006_v56 = vpack.c.bf16 %v2630_v47, %v2630_v47  ;;  %v2633_v63 = vadd.f32 %v3345_v14, %v5210_v6  ;;  %v2624_v21 = vpop.f32.mrb[39].mxu0 }
 0x57a   :  { %v3004_v30 = vpack.c.bf16 %v2622_v5, %v2622_v5  ;;  %v2625_v4 = vadd.f32 %v5210_v6, %v2624_v21 }
 0x57b   :  { %2819 = vst.msk [vmem:[%s5385_s13 + $0x58] sm:$0xf] %vm2796_vm2, %v3006_v56  ;;  %v3007_v18 = vpack.c.bf16 %v2633_v63, %v2633_v63 }
 0x57c   :  { %2817 = vst.msk [vmem:[%s5385_s13 + $0x50] sm:$0xf] %vm2796_vm2, %v3004_v30  ;;  %v3005_v26 = vpack.c.bf16 %v2625_v4, %v2625_v4 }
 0x57d   :  { %2820 = vst.msk [vmem:[%s5385_s13 + $0x5c] sm:$0xf] %vm2796_vm2, %v3007_v18 }
 0x57e   :  { %2818 = vst.msk [vmem:[%s5385_s13 + $0x54] sm:$0xf] %vm2796_vm2, %v3005_v26  ;;  %v3348_v39 = vpop.f32.mrb[40].mxu0 }
 0x57f   :  { %v2646_v42 = vadd.f32 %v3348_v39, %v5210_v6  ;;  %v2637_v9 = vpop.f32.mrb[41].mxu0 }
 0x580   :  { %v2638_v15 = vadd.f32 %v5210_v6, %v2637_v9  ;;  %v3349_v54 = vpop.f32.mrb[42].mxu0 }
 0x581   :  { %v3010_v40 = vpack.c.bf16 %v2646_v42, %v2646_v42  ;;  %v2649_v43 = vadd.f32 %v3349_v54, %v5210_v6  ;;  %v2640_v27 = vpop.f32.mrb[43].mxu0 }
 0x582   :  { %v3008_v60 = vpack.c.bf16 %v2638_v15, %v2638_v15  ;;  %v2641_v53 = vadd.f32 %v5210_v6, %v2640_v27 }
 0x583   :  { %2823 = vst.msk [vmem:[%s5385_s13 + $0x68] sm:$0xf] %vm2796_vm2, %v3010_v40  ;;  %v3011_v23 = vpack.c.bf16 %v2649_v43, %v2649_v43 }
 0x584   :  { %2821 = vst.msk [vmem:[%s5385_s13 + $0x60] sm:$0xf] %vm2796_vm2, %v3008_v60  ;;  %v3009_v49 = vpack.c.bf16 %v2641_v53, %v2641_v53 }
 0x585   :  { %2824 = vst.msk [vmem:[%s5385_s13 + $0x6c] sm:$0xf] %vm2796_vm2, %v3011_v23 }
 0x586   :  { %2822 = vst.msk [vmem:[%s5385_s13 + $0x64] sm:$0xf] %vm2796_vm2, %v3009_v49  ;;  %v3352_v12 = vpop.f32.mrb[44].mxu0 }
 0x587   :  { %v2662_v61 = vadd.f32 %v3352_v12, %v5210_v6  ;;  %v2653_v34 = vpop.f32.mrb[45].mxu0 }
 0x588   :  { %v2654_v25 = vadd.f32 %v5210_v6, %v2653_v34  ;;  %v3353_v24 = vpop.f32.mrb[46].mxu0 }
 0x589   :  { %v3014_v38 = vpack.c.bf16 %v2662_v61, %v2662_v61  ;;  %v2665_v46 = vadd.f32 %v3353_v24, %v5210_v6  ;;  %v2656_v11 = vpop.f32.mrb[47].mxu0 }
 0x58a   :  { %v3012_v44 = vpack.c.bf16 %v2654_v25, %v2654_v25  ;;  %v2657_v28 = vadd.f32 %v5210_v6, %v2656_v11 }
 0x58b   :  { %2827 = vst.msk [vmem:[%s5385_s13 + $0x78] sm:$0xf] %vm2796_vm2, %v3014_v38  ;;  %v3015_v58 = vpack.c.bf16 %v2665_v46, %v2665_v46 }
 0x58c   :  { %2825 = vst.msk [vmem:[%s5385_s13 + $0x70] sm:$0xf] %vm2796_vm2, %v3012_v44  ;;  %v3013_v52 = vpack.c.bf16 %v2657_v28, %v2657_v28 }
 0x58d   :  { %2828 = vst.msk [vmem:[%s5385_s13 + $0x7c] sm:$0xf] %vm2796_vm2, %v3015_v58 }
 0x58e   :  { %2826 = vst.msk [vmem:[%s5385_s13 + $0x74] sm:$0xf] %vm2796_vm2, %v3013_v52 }

// kernel: sentence_encoder_forward.9
= control target key start
LH: loop header
LB: loop body
LE: loop exit
PB: predicated region body
PF: predicated region fallthrough
CT: control target
= control target key end

     0   :  { %vm202_vm0 = vcmask 261120   ;;  %s4481_s0 = inlined_call_operand.vmem [shape: bf16[256,32], index: 0, kind: input, shape index: {}]   ;;  %s4482_s1 = inlined_call_operand.vmem [shape: bf16[256,32], index: 1, kind: input, shape index: {}]   ;;  %s4483_s4 = inlined_call_operand.vmem [shape: bf16[32,128], index: 4, kind: input, shape index: {}]   ;;  %s4484_s6 = inlined_call_operand.vmem [shape: bf16[128,32], index: 6, kind: input, shape index: {}]   ;;  %s4485_s2 = inlined_call_operand.vmem [shape: f32[1,32], index: 2, kind: input, shape index: {}]   ;;  %s4486_s3 = inlined_call_operand.vmem [shape: f32[1,32], index: 3, kind: input, shape index: {}]   ;;  %s4487_s5 = inlined_call_operand.vmem [shape: f32[1,128], index: 5, kind: input, shape index: {}]   ;;  %s4488_s7 = inlined_call_operand.vmem [shape: f32[1,32], index: 7, kind: input, shape index: {}]   ;;  %s4489_s8 = inlined_call_operand.vmem [shape: f32[1,32], index: 8, kind: input, shape index: {}]   ;;  %s4490_s9 = inlined_call_operand.vmem [shape: f32[1,32], index: 9, kind: input, shape index: {}]   ;;  %s4491_s10 = inlined_call_operand.vmem [shape: f32[256,32], index: 10, kind: output, shape index: {}]  }
   0x1   :  { %v2336_v0 = vld [vmem:[%s4481_s0] sm:$0xff]   ;;  %v2463_v2 = vld [vmem:[%s4481_s0 + $0x8] sm:$0xff]   ;;  %v2464_v8 = vld [vmem:[%s4481_s0 + $0x10] sm:$0xff]  }
   0x2   :  { %v2400_v1 = vld [vmem:[%s4482_s1] sm:$0xff]   ;;  %v2337_v3 = vunpack.c.l.bf16 %v2336_v0  ;;  %v2341_v5 = vunpack.c.l.bf16 %v2463_v2  ;;  %v2478_v6 = vld [vmem:[%s4482_s1 + $0x8] sm:$0xff]   ;;  %v2338_v7 = vunpack.c.h.bf16 %v2336_v0  ;;  %v2479_v9 = vld [vmem:[%s4482_s1 + $0x10] sm:$0xff]   ;;  %v2342_v12 = vunpack.c.h.bf16 %v2463_v2 }
   0x3   :  { %v2401_v4 = vunpack.c.l.bf16 %v2400_v1  ;;  %v2405_v10 = vunpack.c.l.bf16 %v2478_v6  ;;  %v2402_v11 = vunpack.c.h.bf16 %v2400_v1  ;;  %v2406_v13 = vunpack.c.h.bf16 %v2478_v6  ;;  %v2465_v22 = vld [vmem:[%s4481_s0 + $0x18] sm:$0xff]   ;;  %v2466_v34 = vld [vmem:[%s4481_s0 + $0x20] sm:$0xff]   ;;  %v2467_v44 = vld [vmem:[%s4481_s0 + $0x28] sm:$0xff]  }
   0x4   :  { %v2345_v15 = vunpack.c.l.bf16 %v2464_v8  ;;  %v2409_v16 = vunpack.c.l.bf16 %v2479_v9  ;;  %v2346_v17 = vunpack.c.h.bf16 %v2464_v8  ;;  %v2410_v21 = vunpack.c.h.bf16 %v2479_v9  ;;  %v2480_v23 = vld [vmem:[%s4482_s1 + $0x18] sm:$0xff]   ;;  %v2481_v35 = vld [vmem:[%s4482_s1 + $0x20] sm:$0xff]   ;;  %v2482_v45 = vld [vmem:[%s4482_s1 + $0x28] sm:$0xff]  }
   0x5   :  { %v2944_v14 = vadd.f32 %v2401_v4, %v2337_v3  ;;  %v2946_v18 = vadd.f32 %v2405_v10, %v2341_v5  ;;  %v2948_v19 = vadd.f32 %v2402_v11, %v2338_v7  ;;  %v2950_v20 = vadd.f32 %v2406_v13, %v2342_v12  ;;  %v2468_v54 = vld [vmem:[%s4481_s0 + $0x30] sm:$0xff]   ;;  %v2469_v0 = vld [vmem:[%s4481_s0 + $0x38] sm:$0xff]   ;;  %v2470_v10 = vld [vmem:[%s4481_s0 + $0x40] sm:$0xff]  }
   0x6   :  { %v2964_v27 = vadd.f32 %v2409_v16, %v2345_v15  ;;  %v2349_v28 = vunpack.c.l.bf16 %v2465_v22  ;;  %v2413_v29 = vunpack.c.l.bf16 %v2480_v23  ;;  %v2968_v31 = vadd.f32 %v2410_v21, %v2346_v17  ;;  %v2483_v55 = vld [vmem:[%s4482_s1 + $0x30] sm:$0xff]   ;;  %v2484_v1 = vld [vmem:[%s4482_s1 + $0x38] sm:$0xff]   ;;  %v2485_v11 = vld [vmem:[%s4482_s1 + $0x40] sm:$0xff]  }
   0x7   :  { %v203_v24 = vsel %vm202_vm0, %v2944_v14, 0.0  ;;  %v209_v25 = vsel %vm202_vm0, %v2946_v18, 0.0  ;;  %v206_v26 = vsel %vm202_vm0, %v2948_v19, 0.0  ;;  %v212_v30 = vsel %vm202_vm0, %v2950_v20, 0.0 }
   0x8   :  { %204 = vadd.xlane.f32.xlu0 %v203_v24  ;;  %210 = vadd.xlane.f32.xlu1 %v209_v25  ;;  %v2350_v32 = vunpack.c.h.bf16 %v2465_v22  ;;  %v2414_v33 = vunpack.c.h.bf16 %v2480_v23  ;;  %v215_v36 = vsel %vm202_vm0, %v2964_v27, 0.0  ;;  %v2978_v37 = vadd.f32 %v2413_v29, %v2349_v28  ;;  %v2471_v24 = vld [vmem:[%s4481_s0 + $0x48] sm:$0xff]  }
   0x9   :  { %v2353_v38 = vunpack.c.l.bf16 %v2466_v34  ;;  %v2417_v39 = vunpack.c.l.bf16 %v2481_v35  ;;  %v218_v40 = vsel %vm202_vm0, %v2968_v31, 0.0  ;;  %v2354_v42 = vunpack.c.h.bf16 %v2466_v34  ;;  %v2486_v25 = vld [vmem:[%s4482_s1 + $0x48] sm:$0xff]  }
   0xa   :  { %v2982_v41 = vadd.f32 %v2414_v33, %v2350_v32  ;;  %v2418_v43 = vunpack.c.h.bf16 %v2481_v35  ;;  %v221_v46 = vsel %vm202_vm0, %v2978_v37, 0.0  ;;  %v2357_v48 = vunpack.c.l.bf16 %v2467_v44 }
   0xb   :  { %v2992_v47 = vadd.f32 %v2417_v39, %v2353_v38  ;;  %v2421_v49 = vunpack.c.l.bf16 %v2482_v45  ;;  %v2358_v52 = vunpack.c.h.bf16 %v2467_v44  ;;  %v2422_v53 = vunpack.c.h.bf16 %v2482_v45  ;;  %v2487_v38 = vld [vmem:[%s4482_s1 + $0x50] sm:$0xff]  }
   0xc   :  { %207 = vadd.xlane.f32.xlu0 %v206_v26  ;;  %213 = vadd.xlane.f32.xlu1 %v212_v30  ;;  %v224_v50 = vsel %vm202_vm0, %v2982_v41, 0.0  ;;  %v2996_v51 = vadd.f32 %v2418_v43, %v2354_v42  ;;  %v2361_v58 = vunpack.c.l.bf16 %v2468_v54  ;;  %v2425_v59 = vunpack.c.l.bf16 %v2483_v55 }
   0xd   :  { %v227_v56 = vsel %vm202_vm0, %v2992_v47, 0.0  ;;  %v3006_v57 = vadd.f32 %v2421_v49, %v2357_v48  ;;  %v3010_v61 = vadd.f32 %v2422_v53, %v2358_v52  ;;  %v2362_v62 = vunpack.c.h.bf16 %v2468_v54  ;;  %v2473_v49 = vld [vmem:[%s4481_s0 + $0x58] sm:$0xff]  }
   0xe   :  { %v230_v60 = vsel %vm202_vm0, %v2996_v51, 0.0  ;;  %v2426_v63 = vunpack.c.h.bf16 %v2483_v55  ;;  %v3020_v3 = vadd.f32 %v2425_v59, %v2361_v58  ;;  %v2365_v4 = vunpack.c.l.bf16 %v2469_v0 }
   0xf   :  { %v233_v2 = vsel %vm202_vm0, %v3006_v57, 0.0  ;;  %v2429_v5 = vunpack.c.l.bf16 %v2484_v1  ;;  %v236_v6 = vsel %vm202_vm0, %v3010_v61, 0.0  ;;  %v2366_v8 = vunpack.c.h.bf16 %v2469_v0 }
  0x10   :  { %216 = vadd.xlane.f32.xlu0 %v215_v36  ;;  %219 = vadd.xlane.f32.xlu1 %v218_v40  ;;  %v3024_v7 = vadd.f32 %v2426_v63, %v2362_v62  ;;  %v2430_v9 = vunpack.c.h.bf16 %v2484_v1  ;;  %v239_v12 = vsel %vm202_vm0, %v3020_v3, 0.0  ;;  %v2369_v15 = vunpack.c.l.bf16 %v2470_v10  ;;  %v2472_v36 = vld [vmem:[%s4481_s0 + $0x50] sm:$0xff]   ;;  %v2474_v62 = vld [vmem:[%s4481_s0 + $0x60] sm:$0xff]  }
  0x11   :  { %v3034_v13 = vadd.f32 %v2429_v5, %v2365_v4  ;;  %v2433_v16 = vunpack.c.l.bf16 %v2485_v11  ;;  %v2370_v22 = vunpack.c.h.bf16 %v2470_v10  ;;  %v2434_v23 = vunpack.c.h.bf16 %v2485_v11  ;;  %v2489_v63 = vld [vmem:[%s4482_s1 + $0x60] sm:$0xff]   ;;  %v2475_v10 = vld [vmem:[%s4481_s0 + $0x68] sm:$0xff]  }
  0x12   :  { %v242_v17 = vsel %vm202_vm0, %v3024_v7, 0.0  ;;  %v3038_v21 = vadd.f32 %v2430_v9, %v2366_v8  ;;  %v2373_v29 = vunpack.c.l.bf16 %v2471_v24  ;;  %v2437_v30 = vunpack.c.l.bf16 %v2486_v25  ;;  %v2490_v11 = vld [vmem:[%s4482_s1 + $0x68] sm:$0xff]  }
  0x13   :  { %v245_v26 = vsel %vm202_vm0, %v3034_v13, 0.0  ;;  %v3048_v28 = vadd.f32 %v2433_v16, %v2369_v15  ;;  %v3052_v33 = vadd.f32 %v2434_v23, %v2370_v22  ;;  %v2374_v34 = vunpack.c.h.bf16 %v2471_v24 }
  0x14   :  { %222 = vadd.xlane.f32.xlu0 %v221_v46  ;;  %225 = vadd.xlane.f32.xlu1 %v224_v50  ;;  %v248_v32 = vsel %vm202_vm0, %v3038_v21, 0.0  ;;  %v2438_v35 = vunpack.c.h.bf16 %v2486_v25  ;;  %v3062_v40 = vadd.f32 %v2437_v30, %v2373_v29  ;;  %v2377_v42 = vunpack.c.l.bf16 %v2472_v36  ;;  %v2488_v50 = vld [vmem:[%s4482_s1 + $0x58] sm:$0xff]   ;;  %v2491_v29 = vld [vmem:[%s4482_s1 + $0x70] sm:$0xff]  }
  0x15   :  { %v251_v39 = vsel %vm202_vm0, %v3048_v28, 0.0  ;;  %v2441_v43 = vunpack.c.l.bf16 %v2487_v38  ;;  %v254_v44 = vsel %vm202_vm0, %v3052_v33, 0.0  ;;  %v2378_v46 = vunpack.c.h.bf16 %v2472_v36 }
  0x16   :  { %v3066_v45 = vadd.f32 %v2438_v35, %v2374_v34  ;;  %v2442_v48 = vunpack.c.h.bf16 %v2487_v38  ;;  %v257_v52 = vsel %vm202_vm0, %v3062_v40, 0.0  ;;  %v2381_v54 = vunpack.c.l.bf16 %v2473_v49 }
  0x17   :  { %v3076_v53 = vadd.f32 %v2441_v43, %v2377_v42  ;;  %v2445_v55 = vunpack.c.l.bf16 %v2488_v50  ;;  %v2382_v59 = vunpack.c.h.bf16 %v2473_v49  ;;  %v2449_v4 = vunpack.c.l.bf16 %v2489_v63  ;;  %v2477_v43 = vld [vmem:[%s4481_s0 + $0x78] sm:$0xff]  }
  0x18   :  { %228 = vadd.xlane.f32.xlu0 %v227_v56  ;;  %231 = vadd.xlane.f32.xlu1 %v230_v60  ;;  %v260_v56 = vsel %vm202_vm0, %v3066_v45, 0.0  ;;  %v3080_v58 = vadd.f32 %v2442_v48, %v2378_v46  ;;  %v2446_v60 = vunpack.c.h.bf16 %v2488_v50  ;;  %v2386_v8 = vunpack.c.h.bf16 %v2474_v62 }
  0x19   :  { %v263_v0 = vsel %vm202_vm0, %v3076_v53, 0.0  ;;  %v3090_v1 = vadd.f32 %v2445_v55, %v2381_v54  ;;  %v2450_v9 = vunpack.c.h.bf16 %v2489_v63  ;;  %v2389_v16 = vunpack.c.l.bf16 %v2475_v10 }
  0x1a   :  { %v266_v5 = vsel %vm202_vm0, %v3080_v58, 0.0  ;;  %v2390_v24 = vunpack.c.h.bf16 %v2475_v10  ;;  %v2454_v25 = vunpack.c.h.bf16 %v2490_v11  ;;  %v2457_v35 = vunpack.c.l.bf16 %v2491_v29 }
  0x1b   :  { %v3108_v23 = vadd.f32 %v2450_v9, %v2386_v8  ;;  %v2458_v42 = vunpack.c.h.bf16 %v2491_v29  ;;  %v2397_v49 = vunpack.c.l.bf16 %v2477_v43  ;;  %v2398_v55 = vunpack.c.h.bf16 %v2477_v43 }
  0x1c   :  { %234 = vadd.xlane.f32.xlu0 %v233_v2  ;;  %237 = vadd.xlane.f32.xlu1 %v236_v6  ;;  %v2385_v2 = vunpack.c.l.bf16 %v2474_v62  ;;  %v3094_v6 = vadd.f32 %v2446_v60, %v2382_v59  ;;  %v3122_v38 = vadd.f32 %v2454_v25, %v2390_v24 }
  0x1d   :  { %v278_v36 = vsel %vm202_vm0, %v3108_v23, 0.0 }
  0x1e   :  { %v3104_v15 = vadd.f32 %v2449_v4, %v2385_v2  ;;  %v272_v22 = vsel %vm202_vm0, %v3094_v6, 0.0 }
  0x20   :  { %240 = vadd.xlane.f32.xlu0 %v239_v12  ;;  %243 = vadd.xlane.f32.xlu1 %v242_v17  ;;  %v269_v12 = vsel %vm202_vm0, %v3090_v1, 0.0  ;;  %v2453_v17 = vunpack.c.l.bf16 %v2490_v11  ;;  %v275_v30 = vsel %vm202_vm0, %v3104_v15, 0.0 }
  0x24   :  { %246 = vadd.xlane.f32.xlu0 %v245_v26  ;;  %249 = vadd.xlane.f32.xlu1 %v248_v32  ;;  %v2476_v26 = vld [vmem:[%s4481_s0 + $0x70] sm:$0xff]   ;;  %v3118_v32 = vadd.f32 %v2453_v17, %v2389_v16 }
  0x25   :  { %v2393_v34 = vunpack.c.l.bf16 %v2476_v26 }
  0x26   :  { %v281_v46 = vsel %vm202_vm0, %v3118_v32, 0.0 }
  0x27   :  { %v3132_v48 = vadd.f32 %v2457_v35, %v2393_v34 }
  0x28   :  { %252 = vadd.xlane.f32.xlu0 %v251_v39  ;;  %255 = vadd.xlane.f32.xlu1 %v254_v44  ;;  %v2394_v39 = vunpack.c.h.bf16 %v2476_v26  ;;  %v2492_v44 = vld [vmem:[%s4482_s1 + $0x78] sm:$0xff]  }
  0x29   :  { %v2461_v50 = vunpack.c.l.bf16 %v2492_v44  ;;  %v287_v59 = vsel %vm202_vm0, %v3132_v48, 0.0 }
  0x2a   :  { %v3136_v54 = vadd.f32 %v2458_v42, %v2394_v39 }
  0x2b   :  { %v3140_v60 = vadd.f32 %v2461_v50, %v2397_v49 }
  0x2c   :  { %258 = vadd.xlane.f32.xlu0 %v257_v52  ;;  %261 = vadd.xlane.f32.xlu1 %v260_v56  ;;  %v284_v52 = vsel %vm202_vm0, %v3122_v38, 0.0  ;;  %v2462_v56 = vunpack.c.h.bf16 %v2492_v44  ;;  %v290_v62 = vsel %vm202_vm0, %v3136_v54, 0.0 }
  0x2e   :  { %v3144_v63 = vadd.f32 %v2462_v56, %v2398_v55 }
  0x30   :  { %264 = vadd.xlane.f32.xlu0 %v263_v0  ;;  %267 = vadd.xlane.f32.xlu1 %v266_v5  ;;  %v293_v0 = vsel %vm202_vm0, %v3140_v60, 0.0  ;;  %v296_v2 = vsel %vm202_vm0, %v3144_v63, 0.0 }
  0x34   :  { %270 = vadd.xlane.f32.xlu0 %v269_v12  ;;  %273 = vadd.xlane.f32.xlu1 %v272_v22 }
  0x38   :  { %276 = vadd.xlane.f32.xlu0 %v275_v30  ;;  %279 = vadd.xlane.f32.xlu1 %v278_v36 }
  0x3c   :  { %282 = vadd.xlane.f32.xlu0 %v281_v46  ;;  %285 = vadd.xlane.f32.xlu1 %v284_v52 }
  0x40   :  { %288 = vadd.xlane.f32.xlu0 %v287_v59  ;;  %291 = vadd.xlane.f32.xlu1 %v290_v62 }
  0x44   :  { %294 = vadd.xlane.f32.xlu0 %v293_v0  ;;  %297 = vadd.xlane.f32.xlu1 %v296_v2 }
  0x95   :  { %v205_v4 = vpop.xlane.xlu0 %204  ;;  %v211_v8 = vpop.xlane.xlu1 %210 }
  0x96   :  { %v300_v5 = vmul.f32 0.03125, %v205_v4  ;;  %v302_v9 = vmul.f32 0.03125, %v211_v8 }
  0x98   :  { %v3151_v10 = vsub.f32 %v2944_v14, %v300_v5  ;;  %v3154_v11 = vsub.f32 %v2946_v18, %v302_v9 }
  0x99   :  { %v208_v12 = vpop.xlane.xlu0 %207  ;;  %v214_v17 = vpop.xlane.xlu1 %213 }
  0x9a   :  { %v301_v16 = vmul.f32 0.03125, %v208_v12  ;;  %v364_v22 = vmul.f32 %v3151_v10, %v3151_v10  ;;  %v303_v24 = vmul.f32 0.03125, %v214_v17  ;;  %v366_v25 = vmul.f32 %v3154_v11, %v3154_v11 }
  0x9c   :  { %v3161_v26 = vsub.f32 %v2948_v19, %v301_v16  ;;  %v396_v29 = vsel %vm202_vm0, %v364_v22, 0.0  ;;  %v3165_v14 = vsub.f32 %v2950_v20, %v303_v24  ;;  %v402_v35 = vsel %vm202_vm0, %v366_v25, 0.0 }
  0x9d   :  { %397 = vadd.xlane.f32.xlu0 %v396_v29  ;;  %v217_v18 = vpop.xlane.xlu0 %216  ;;  %v220_v34 = vpop.xlane.xlu1 %219 }
  0x9e   :  { %v304_v30 = vmul.f32 0.03125, %v217_v18  ;;  %v365_v36 = vmul.f32 %v3161_v26, %v3161_v26  ;;  %v305_v39 = vmul.f32 0.03125, %v220_v34  ;;  %v367_v42 = vmul.f32 %v3165_v14, %v3165_v14 }
  0xa0   :  { %v3173_v19 = vsub.f32 %v2964_v27, %v304_v30  ;;  %v399_v43 = vsel %vm202_vm0, %v365_v36, 0.0  ;;  %v3177_v20 = vsub.f32 %v2968_v31, %v305_v39  ;;  %v405_v50 = vsel %vm202_vm0, %v367_v42, 0.0 }
  0xa1   :  { %403 = vadd.xlane.f32.xlu0 %v402_v35  ;;  %400 = vadd.xlane.f32.xlu1 %v399_v43  ;;  %v223_v44 = vpop.xlane.xlu0 %222  ;;  %v226_v49 = vpop.xlane.xlu1 %225 }
  0xa2   :  { %v306_v46 = vmul.f32 0.03125, %v223_v44  ;;  %v368_v52 = vmul.f32 %v3173_v19, %v3173_v19  ;;  %v307_v55 = vmul.f32 0.03125, %v226_v49  ;;  %v369_v27 = vmul.f32 %v3177_v20, %v3177_v20 }
  0xa4   :  { %v3185_v56 = vsub.f32 %v2978_v37, %v306_v46  ;;  %v408_v31 = vsel %vm202_vm0, %v368_v52, 0.0  ;;  %v3189_v59 = vsub.f32 %v2982_v41, %v307_v55  ;;  %v411_v4 = vsel %vm202_vm0, %v369_v27, 0.0 }
  0xa5   :  { %406 = vadd.xlane.f32.xlu1 %v405_v50  ;;  %409 = vadd.xlane.f32.xlu0 %v408_v31  ;;  %v229_v62 = vpop.xlane.xlu0 %228  ;;  %v232_v2 = vpop.xlane.xlu1 %231 }
  0xa6   :  { %v308_v0 = vmul.f32 0.03125, %v229_v62  ;;  %v370_v5 = vmul.f32 %v3185_v56, %v3185_v56  ;;  %v309_v8 = vmul.f32 0.03125, %v232_v2  ;;  %v371_v37 = vmul.f32 %v3189_v59, %v3189_v59 }
  0xa8   :  { %v3197_v9 = vsub.f32 %v2992_v47, %v308_v0  ;;  %v414_v41 = vsel %vm202_vm0, %v370_v5, 0.0  ;;  %v3201_v12 = vsub.f32 %v2996_v51, %v309_v8  ;;  %v417_v24 = vsel %vm202_vm0, %v371_v37, 0.0 }
  0xa9   :  { %412 = vadd.xlane.f32.xlu1 %v411_v4  ;;  %415 = vadd.xlane.f32.xlu0 %v414_v41  ;;  %v235_v16 = vpop.xlane.xlu0 %234  ;;  %v238_v22 = vpop.xlane.xlu1 %237 }
  0xaa   :  { %v310_v17 = vmul.f32 0.03125, %v235_v16  ;;  %v372_v25 = vmul.f32 %v3197_v9, %v3197_v9  ;;  %v311_v29 = vmul.f32 0.03125, %v238_v22  ;;  %v373_v47 = vmul.f32 %v3201_v12, %v3201_v12 }
  0xac   :  { %v3209_v18 = vsub.f32 %v3006_v57, %v310_v17  ;;  %v420_v51 = vsel %vm202_vm0, %v372_v25, 0.0  ;;  %v3213_v30 = vsub.f32 %v3010_v61, %v311_v29  ;;  %v423_v39 = vsel %vm202_vm0, %v373_v47, 0.0 }
  0xad   :  { %418 = vadd.xlane.f32.xlu1 %v417_v24  ;;  %421 = vadd.xlane.f32.xlu0 %v420_v51  ;;  %v241_v34 = vpop.xlane.xlu0 %240  ;;  %v244_v36 = vpop.xlane.xlu1 %243 }
  0xae   :  { %v312_v35 = vmul.f32 0.03125, %v241_v34  ;;  %v374_v42 = vmul.f32 %v3209_v18, %v3209_v18  ;;  %v313_v43 = vmul.f32 0.03125, %v244_v36  ;;  %v375_v57 = vmul.f32 %v3213_v30, %v3213_v30 }
  0xb0   :  { %v3221_v44 = vsub.f32 %v3020_v3, %v312_v35  ;;  %v426_v61 = vsel %vm202_vm0, %v374_v42, 0.0  ;;  %v3225_v46 = vsub.f32 %v3024_v7, %v313_v43  ;;  %v429_v55 = vsel %vm202_vm0, %v375_v57, 0.0 }
  0xb1   :  { %424 = vadd.xlane.f32.xlu1 %v423_v39  ;;  %427 = vadd.xlane.f32.xlu0 %v426_v61  ;;  %v247_v49 = vpop.xlane.xlu0 %246  ;;  %v250_v52 = vpop.xlane.xlu1 %249 }
  0xb2   :  { %v314_v50 = vmul.f32 0.03125, %v247_v49  ;;  %v376_v27 = vmul.f32 %v3221_v44, %v3221_v44  ;;  %v315_v31 = vmul.f32 0.03125, %v250_v52  ;;  %v377_v3 = vmul.f32 %v3225_v46, %v3225_v46 }
  0xb4   :  { %v3233_v62 = vsub.f32 %v3034_v13, %v314_v50  ;;  %v432_v7 = vsel %vm202_vm0, %v376_v27, 0.0  ;;  %v3237_v0 = vsub.f32 %v3038_v21, %v315_v31  ;;  %v435_v8 = vsel %vm202_vm0, %v377_v3, 0.0 }
  0xb5   :  { %430 = vadd.xlane.f32.xlu1 %v429_v55  ;;  %433 = vadd.xlane.f32.xlu0 %v432_v7  ;;  %v253_v2 = vpop.xlane.xlu0 %252  ;;  %v256_v5 = vpop.xlane.xlu1 %255 }
  0xb6   :  { %v316_v4 = vmul.f32 0.03125, %v253_v2  ;;  %v378_v37 = vmul.f32 %v3233_v62, %v3233_v62  ;;  %v317_v41 = vmul.f32 0.03125, %v256_v5  ;;  %v379_v13 = vmul.f32 %v3237_v0, %v3237_v0 }
  0xb8   :  { %v3245_v16 = vsub.f32 %v3048_v28, %v316_v4  ;;  %v438_v21 = vsel %vm202_vm0, %v378_v37, 0.0  ;;  %v3249_v17 = vsub.f32 %v3052_v33, %v317_v41  ;;  %v441_v29 = vsel %vm202_vm0, %v379_v13, 0.0 }
  0xb9   :  { %436 = vadd.xlane.f32.xlu1 %v435_v8  ;;  %439 = vadd.xlane.f32.xlu0 %v438_v21  ;;  %v259_v22 = vpop.xlane.xlu0 %258  ;;  %v262_v25 = vpop.xlane.xlu1 %261 }
  0xba   :  { %v318_v24 = vmul.f32 0.03125, %v259_v22  ;;  %v380_v47 = vmul.f32 %v3245_v16, %v3245_v16  ;;  %v319_v51 = vmul.f32 0.03125, %v262_v25  ;;  %v381_v28 = vmul.f32 %v3249_v17, %v3249_v17 }
  0xbc   :  { %v3257_v34 = vsub.f32 %v3062_v40, %v318_v24  ;;  %v444_v33 = vsel %vm202_vm0, %v380_v47, 0.0  ;;  %v3261_v35 = vsub.f32 %v3066_v45, %v319_v51  ;;  %v447_v43 = vsel %vm202_vm0, %v381_v28, 0.0 }
  0xbd   :  { %442 = vadd.xlane.f32.xlu1 %v441_v29  ;;  %445 = vadd.xlane.f32.xlu0 %v444_v33  ;;  %v265_v36 = vpop.xlane.xlu0 %264  ;;  %v268_v42 = vpop.xlane.xlu1 %267  ;;  %v2636_v29 = vld [vmem:[%s4483_s4] sm:$0xff]  }
  0xbe   :  { %v320_v39 = vmul.f32 0.03125, %v265_v36  ;;  %v382_v57 = vmul.f32 %v3257_v34, %v3257_v34  ;;  %v321_v61 = vmul.f32 0.03125, %v268_v42  ;;  %v383_v40 = vmul.f32 %v3261_v35, %v3261_v35  ;;  %2535 = vmatprep.subr.bf16.mxu0 %v2636_v29 }
  0xbf   :  { %2536 = vmatpush3.bf16.msra.mxu0 %v2636_v29  ;;  %v3365_v29 = vld [vmem:[%s4484_s6 + $0x10] sm:$0xff]  }
  0xc0   :  { %v3269_v49 = vsub.f32 %v3076_v53, %v320_v39  ;;  %v450_v45 = vsel %vm202_vm0, %v382_v57, 0.0  ;;  %v3273_v50 = vsub.f32 %v3080_v58, %v321_v61  ;;  %v453_v31 = vsel %vm202_vm0, %v383_v40, 0.0  ;;  %v2637_v57 = vld [vmem:[%s4483_s4 + $0x8] sm:$0xff]  }
  0xc1   :  { %448 = vadd.xlane.f32.xlu1 %v447_v43  ;;  %451 = vadd.xlane.f32.xlu0 %v450_v45  ;;  %v271_v52 = vpop.xlane.xlu0 %270  ;;  %v274_v27 = vpop.xlane.xlu1 %273 }
  0xc2   :  { %v322_v55 = vmul.f32 0.03125, %v271_v52  ;;  %v384_v3 = vmul.f32 %v3269_v49, %v3269_v49  ;;  %v323_v7 = vmul.f32 0.03125, %v274_v27  ;;  %v385_v53 = vmul.f32 %v3273_v50, %v3273_v50  ;;  %2537 = vmatprep.subr.bf16.mxu0 %v2637_v57 }
  0xc3   :  { %2538 = vmatpush3.bf16.msra.mxu0 %v2637_v57 }
  0xc4   :  { %v3281_v2 = vsub.f32 %v3090_v1, %v322_v55  ;;  %v456_v58 = vsel %vm202_vm0, %v384_v3, 0.0  ;;  %v3285_v4 = vsub.f32 %v3094_v6, %v323_v7  ;;  %v459_v41 = vsel %vm202_vm0, %v385_v53, 0.0 }
  0xc5   :  { %454 = vadd.xlane.f32.xlu1 %v453_v31  ;;  %457 = vadd.xlane.f32.xlu0 %v456_v58  ;;  %v277_v5 = vpop.xlane.xlu0 %276  ;;  %v280_v37 = vpop.xlane.xlu1 %279 }
  0xc6   :  { %v324_v8 = vmul.f32 0.03125, %v277_v5  ;;  %v386_v13 = vmul.f32 %v3281_v2, %v3281_v2  ;;  %v325_v21 = vmul.f32 0.03125, %v280_v37  ;;  %v387_v1 = vmul.f32 %v3285_v4, %v3285_v4 }
  0xc8   :  { %v3293_v22 = vsub.f32 %v3104_v15, %v324_v8  ;;  %v462_v6 = vsel %vm202_vm0, %v386_v13, 0.0  ;;  %v3297_v24 = vsub.f32 %v3108_v23, %v325_v21  ;;  %v465_v28 = vsel %vm202_vm0, %v387_v1, 0.0 }
  0xc9   :  { %460 = vadd.xlane.f32.xlu1 %v459_v41  ;;  %463 = vadd.xlane.f32.xlu0 %v462_v6  ;;  %v283_v25 = vpop.xlane.xlu0 %282  ;;  %v286_v51 = vpop.xlane.xlu1 %285 }
  0xca   :  { %v326_v47 = vmul.f32 0.03125, %v283_v25  ;;  %v388_v15 = vmul.f32 %v3293_v22, %v3293_v22  ;;  %v327_v33 = vmul.f32 0.03125, %v286_v51  ;;  %v389_v36 = vmul.f32 %v3297_v24, %v3297_v24  ;;  %v3357_v25 = vld [vmem:[%s4484_s6 + $0x8] sm:$0xff]  }
  0xcc   :  { %v3308_v23 = vsub.f32 %v3118_v32, %v326_v47  ;;  %v468_v39 = vsel %vm202_vm0, %v388_v15, 0.0  ;;  %v3312_v42 = vsub.f32 %v3122_v38, %v327_v33  ;;  %v471_v45 = vsel %vm202_vm0, %v389_v36, 0.0  ;;  %v3372_v47 = vld [vmem:[%s4484_s6 + $0x18] sm:$0xff]  }
  0xcd   :  { %466 = vadd.xlane.f32.xlu1 %v465_v28  ;;  %469 = vadd.xlane.f32.xlu0 %v468_v39  ;;  %v289_v43 = vpop.xlane.xlu0 %288  ;;  %v292_v40 = vpop.xlane.xlu1 %291 }
  0xce   :  { %v328_v61 = vmul.f32 0.03125, %v289_v43  ;;  %v390_v32 = vmul.f32 %v3308_v23, %v3308_v23  ;;  %v329_v52 = vmul.f32 0.03125, %v292_v40  ;;  %v391_v55 = vmul.f32 %v3312_v42, %v3312_v42 }
  0xd0   :  { %v3323_v38 = vsub.f32 %v3132_v48, %v328_v61  ;;  %v474_v27 = vsel %vm202_vm0, %v390_v32, 0.0  ;;  %v3327_v31 = vsub.f32 %v3136_v54, %v329_v52  ;;  %v477_v58 = vsel %vm202_vm0, %v391_v55, 0.0 }
  0xd1   :  { %472 = vadd.xlane.f32.xlu1 %v471_v45  ;;  %475 = vadd.xlane.f32.xlu0 %v474_v27  ;;  %v295_v3 = vpop.xlane.xlu0 %294  ;;  %v298_v53 = vpop.xlane.xlu1 %297 }
  0xd2   :  { %v330_v7 = vmul.f32 0.03125, %v295_v3  ;;  %v392_v5 = vmul.f32 %v3323_v38, %v3323_v38  ;;  %v331_v8 = vmul.f32 0.03125, %v298_v53  ;;  %v393_v48 = vmul.f32 %v3327_v31, %v3327_v31 }
  0xd4   :  { %v3335_v37 = vsub.f32 %v3140_v60, %v330_v7  ;;  %v480_v54 = vsel %vm202_vm0, %v392_v5, 0.0  ;;  %v3339_v41 = vsub.f32 %v3144_v63, %v331_v8  ;;  %v483_v13 = vsel %vm202_vm0, %v393_v48, 0.0  ;;  %v3351_v63 = vld [vmem:[%s4484_s6] sm:$0xff]  }
  0xd5   :  { %478 = vadd.xlane.f32.xlu1 %v477_v58  ;;  %481 = vadd.xlane.f32.xlu0 %v480_v54  ;;  %v3380_v8 = vld [vmem:[%s4485_s2] ss:$0 sm:$0xff] }
  0xd6   :  { %v394_v21 = vmul.f32 %v3335_v37, %v3335_v37  ;;  %v395_v1 = vmul.f32 %v3339_v41, %v3339_v41  ;;  %2571 = vmatprep.subr.bf16.mxu0 %v3351_v63  ;;  %2619 = vmatprep.subr.bf16.mxu1 %v3351_v63 }
  0xd7   :  { %2627 = vmatpush3.bf16.msra.mxu1 %v3351_v63 }
  0xd8   :  { %v486_v6 = vsel %vm202_vm0, %v394_v21, 0.0  ;;  %v489_v60 = vsel %vm202_vm0, %v395_v1, 0.0  ;;  %2620 = vmatprep.subr.bf16.mxu1 %v3357_v25 }
  0xd9   :  { %484 = vadd.xlane.f32.xlu1 %v483_v13  ;;  %487 = vadd.xlane.f32.xlu0 %v486_v6  ;;  %v3386_v6 = vld [vmem:[%s4486_s3] ss:$0 sm:$0xff] }
  0xdb   :  { %2628 = vmatpush3.bf16.msra.mxu1 %v3357_v25 }
  0xdc   :  { %2621 = vmatprep.subr.bf16.mxu1 %v3365_v29 }
  0xdd   :  { %490 = vadd.xlane.f32.xlu1 %v489_v60 }
  0xdf   :  { %2629 = vmatpush3.bf16.msra.mxu1 %v3365_v29 }
  0xe0   :  { %2622 = vmatprep.subr.bf16.mxu1 %v3372_v47 }
  0xe3   :  { %2630 = vmatpush3.bf16.msra.mxu1 %v3372_v47 }
 0x12a   :  { %v398_v51 = vpop.xlane.xlu0 %397 }
 0x12b   :  { %v492_v28 = vmul.f32 0.03125, %v398_v51 }
 0x12d   :  { %v524_v15 = vadd.f32 1e-05, %v492_v28 }
 0x12e   :  { %v401_v33 = vpop.xlane.xlu1 %400  ;;  %v404_v36 = vpop.xlane.xlu0 %403 }
 0x12f   :  { %2646 = vrsqrt.f32 %v524_v15  ;;  %v493_v39 = vmul.f32 0.03125, %v401_v33  ;;  %v494_v43 = vmul.f32 0.03125, %v404_v36 }
 0x131   :  { %v525_v57 = vadd.f32 1e-05, %v493_v39  ;;  %v526_v61 = vadd.f32 1e-05, %v494_v43 }
 0x132   :  { %v407_v40 = vpop.xlane.xlu1 %406  ;;  %v410_v45 = vpop.xlane.xlu0 %409 }
 0x133   :  { %2648 = vrsqrt.f32 %v525_v57  ;;  %v495_v32 = vmul.f32 0.03125, %v407_v40  ;;  %v496_v52 = vmul.f32 0.03125, %v410_v45 }
 0x134   :  { %2650 = vrsqrt.f32 %v526_v61 }
 0x135   :  { %v527_v55 = vadd.f32 1e-05, %v495_v32  ;;  %v528_v27 = vadd.f32 1e-05, %v496_v52 }
 0x136   :  { %v413_v3 = vpop.xlane.xlu1 %412  ;;  %v416_v7 = vpop.xlane.xlu0 %415 }
 0x137   :  { %2652 = vrsqrt.f32 %v527_v55  ;;  %v497_v53 = vmul.f32 0.03125, %v413_v3  ;;  %v498_v58 = vmul.f32 0.03125, %v416_v7 }
 0x138   :  { %2654 = vrsqrt.f32 %v528_v27 }
 0x139   :  { %v2647_v5 = vpop.eup %2646  ;;  %v529_v48 = vadd.f32 1e-05, %v497_v53  ;;  %v530_v54 = vadd.f32 1e-05, %v498_v58 }
 0x13a   :  { %v588_v13 = vmul.f32 %v2647_v5, %v3151_v10  ;;  %v419_v21 = vpop.xlane.xlu1 %418  ;;  %v422_v1 = vpop.xlane.xlu0 %421 }
 0x13b   :  { %2656 = vrsqrt.f32 %v529_v48  ;;  %v499_v60 = vmul.f32 0.03125, %v419_v21  ;;  %v500_v51 = vmul.f32 0.03125, %v422_v1 }
 0x13c   :  { %v626_v28 = vmul.f32 %v3380_v8, %v588_v13  ;;  %2658 = vrsqrt.f32 %v530_v54 }
 0x13d   :  { %v2649_v15 = vpop.eup %2648  ;;  %v531_v33 = vadd.f32 1e-05, %v499_v60  ;;  %v532_v36 = vadd.f32 1e-05, %v500_v51 }
 0x13e   :  { %v2651_v39 = vpop.eup %2650  ;;  %v664_v43 = vadd.f32 %v3386_v6, %v626_v28  ;;  %v589_v10 = vmul.f32 %v2649_v15, %v3161_v26  ;;  %v425_v57 = vpop.xlane.xlu1 %424 }
 0x13f   :  { %v428_v61 = vpop.xlane.xlu0 %427  ;;  %v590_v40 = vmul.f32 %v2651_v39, %v3154_v11  ;;  %2660 = vrsqrt.f32 %v531_v33  ;;  %v501_v45 = vmul.f32 0.03125, %v425_v57 }
 0x140   :  { %v502_v32 = vmul.f32 0.03125, %v428_v61  ;;  %696 = vst.msk [vmem:[#allocation2] sm:$0xff] %vm202_vm0, %v664_v43  ;;  %v627_v52 = vmul.f32 %v3380_v8, %v589_v10  ;;  %2662 = vrsqrt.f32 %v532_v36 }
 0x141   :  { %v2653_v55 = vpop.eup %2652  ;;  %v628_v27 = vmul.f32 %v3380_v8, %v590_v40  ;;  %v533_v3 = vadd.f32 1e-05, %v501_v45 }
 0x142   :  { %v534_v7 = vadd.f32 1e-05, %v502_v32  ;;  %v2655_v53 = vpop.eup %2654  ;;  %v665_v26 = vadd.f32 %v3386_v6, %v627_v52  ;;  %v591_v58 = vmul.f32 %v2653_v55, %v3165_v14  ;;  %v431_v5 = vpop.xlane.xlu1 %430 }
 0x143   :  { %v434_v11 = vpop.xlane.xlu0 %433  ;;  %v666_v48 = vadd.f32 %v3386_v6, %v628_v27  ;;  %v592_v54 = vmul.f32 %v2655_v53, %v3173_v19  ;;  %2664 = vrsqrt.f32 %v533_v3  ;;  %v503_v13 = vmul.f32 0.03125, %v431_v5 }
 0x144   :  { %697 = vst.msk [vmem:[#allocation2 + $0x8] sm:$0xff] %vm202_vm0, %v665_v26  ;;  %v629_v21 = vmul.f32 %v3380_v8, %v591_v58  ;;  %2666 = vrsqrt.f32 %v534_v7  ;;  %v504_v1 = vmul.f32 0.03125, %v434_v11 }
 0x145   :  { %v2657_v60 = vpop.eup %2656  ;;  %698 = vst.msk [vmem:[#allocation2 + $0x10] sm:$0xff] %vm202_vm0, %v666_v48  ;;  %v630_v51 = vmul.f32 %v3380_v8, %v592_v54  ;;  %v535_v14 = vadd.f32 1e-05, %v503_v13 }
 0x146   :  { %v2659_v28 = vpop.eup %2658  ;;  %v667_v15 = vadd.f32 %v3386_v6, %v629_v21  ;;  %v593_v33 = vmul.f32 %v2657_v60, %v3177_v20  ;;  %v536_v19 = vadd.f32 1e-05, %v504_v1  ;;  %v437_v36 = vpop.xlane.xlu1 %436 }
 0x147   :  { %v440_v39 = vpop.xlane.xlu0 %439  ;;  %v668_v43 = vadd.f32 %v3386_v6, %v630_v51  ;;  %v594_v10 = vmul.f32 %v2659_v28, %v3185_v56  ;;  %2668 = vrsqrt.f32 %v535_v14  ;;  %v505_v57 = vmul.f32 0.03125, %v437_v36  ;;  %v760_v5 = vld [vmem:[#allocation2] sm:$0xff] }
 0x148   :  { %699 = vst.msk [vmem:[#allocation2 + $0x18] sm:$0xff] %vm202_vm0, %v667_v15  ;;  %v631_v61 = vmul.f32 %v3380_v8, %v593_v33  ;;  %2670 = vrsqrt.f32 %v536_v19  ;;  %v506_v40 = vmul.f32 0.03125, %v440_v39 }
 0x149   :  { %v2661_v45 = vpop.eup %2660  ;;  %700 = vst.msk [vmem:[#allocation2 + $0x20] sm:$0xff] %vm202_vm0, %v668_v43  ;;  %v632_v20 = vmul.f32 %v3380_v8, %v594_v10  ;;  %v537_v32 = vadd.f32 1e-05, %v505_v57 }
 0x14a   :  { %v2663_v52 = vpop.eup %2662  ;;  %v669_v55 = vadd.f32 %v3386_v6, %v631_v61  ;;  %v595_v27 = vmul.f32 %v2661_v45, %v3189_v59  ;;  %v538_v56 = vadd.f32 1e-05, %v506_v40  ;;  %v443_v3 = vpop.xlane.xlu1 %442 }
 0x14b   :  { %v446_v7 = vpop.xlane.xlu0 %445  ;;  %v670_v53 = vadd.f32 %v3386_v6, %v632_v20  ;;  %v596_v26 = vmul.f32 %v2663_v52, %v3197_v9  ;;  %2672 = vrsqrt.f32 %v537_v32  ;;  %v507_v58 = vmul.f32 0.03125, %v443_v3  ;;  %v761_v11 = vld [vmem:[#allocation2 + $0x8] sm:$0xff] }
 0x14c   :  { %701 = vst.msk [vmem:[#allocation2 + $0x28] sm:$0xff] %vm202_vm0, %v669_v55  ;;  %v633_v48 = vmul.f32 %v3380_v8, %v595_v27  ;;  %2674 = vrsqrt.f32 %v538_v56  ;;  %v508_v54 = vmul.f32 0.03125, %v446_v7  ;;  %v792_v13 = vpack.c.bf16 %v761_v11, %v760_v5  ;;  %v762_v39 = vld [vmem:[#allocation2 + $0x10] sm:$0xff] }
 0x14d   :  { %v2665_v21 = vpop.eup %2664  ;;  %702 = vst.msk [vmem:[#allocation2 + $0x30] sm:$0xff] %vm202_vm0, %v670_v53  ;;  %v634_v59 = vmul.f32 %v3380_v8, %v596_v26  ;;  %v539_v1 = vadd.f32 1e-05, %v507_v58 }
 0x14e   :  { %v2667_v60 = vpop.eup %2666  ;;  %v671_v9 = vadd.f32 %v3386_v6, %v633_v48  ;;  %v597_v51 = vmul.f32 %v2665_v21, %v3201_v12  ;;  %v540_v14 = vadd.f32 1e-05, %v508_v54  ;;  %v449_v28 = vpop.xlane.xlu1 %448  ;;  %2539 = vmatprep.mubr.msk.bf16.mxu0 %vm202_vm0, %v792_v13 }
 0x14f   :  { %v452_v15 = vpop.xlane.xlu0 %451  ;;  %v672_v33 = vadd.f32 %v3386_v6, %v634_v59  ;;  %v598_v19 = vmul.f32 %v2667_v60, %v3209_v18  ;;  %2676 = vrsqrt.f32 %v539_v1  ;;  %v509_v36 = vmul.f32 0.03125, %v449_v28  ;;  %v763_v43 = vld [vmem:[#allocation2 + $0x18] sm:$0xff] }
 0x150   :  { %703 = vst.msk [vmem:[#allocation2 + $0x38] sm:$0xff] %vm202_vm0, %v671_v9  ;;  %v635_v10 = vmul.f32 %v3380_v8, %v597_v51  ;;  %2678 = vrsqrt.f32 %v540_v14  ;;  %v510_v57 = vmul.f32 0.03125, %v452_v15  ;;  %v793_v12 = vpack.c.bf16 %v763_v43, %v762_v39  ;;  %v764_v53 = vld [vmem:[#allocation2 + $0x20] sm:$0xff] }
 0x151   :  { %v2669_v61 = vpop.eup %2668  ;;  %704 = vst.msk [vmem:[#allocation2 + $0x40] sm:$0xff] %vm202_vm0, %v672_v33  ;;  %v636_v40 = vmul.f32 %v3380_v8, %v598_v19  ;;  %v541_v45 = vadd.f32 1e-05, %v509_v36 }
 0x152   :  { %v2671_v20 = vpop.eup %2670  ;;  %v673_v18 = vadd.f32 %v3386_v6, %v635_v10  ;;  %v599_v32 = vmul.f32 %v2669_v61, %v3213_v30  ;;  %v542_v52 = vadd.f32 1e-05, %v510_v57  ;;  %v455_v55 = vpop.xlane.xlu1 %454  ;;  %2540 = vmatmul.mubr.msk.bf16.vlgmr.msra.gmra.mrb[0].mxu0 %vm202_vm0, %v793_v12 }
 0x153   :  { %v458_v27 = vpop.xlane.xlu0 %457  ;;  %v674_v56 = vadd.f32 %v3386_v6, %v636_v40  ;;  %v600_v3 = vmul.f32 %v2671_v20, %v3221_v44  ;;  %2680 = vrsqrt.f32 %v541_v45  ;;  %v511_v7 = vmul.f32 0.03125, %v455_v55  ;;  %v765_v26 = vld [vmem:[#allocation2 + $0x28] sm:$0xff]  ;;  %2572 = vmatpush3.bf16.msra.mxu0 %v3351_v63 }
 0x154   :  { %705 = vst.msk [vmem:[#allocation2 + $0x48] sm:$0xff] %vm202_vm0, %v673_v18  ;;  %v637_v58 = vmul.f32 %v3380_v8, %v599_v32  ;;  %2682 = vrsqrt.f32 %v542_v52  ;;  %v512_v30 = vmul.f32 0.03125, %v458_v27  ;;  %v794_v5 = vpack.c.bf16 %v765_v26, %v764_v53  ;;  %2573 = vmatprep.subr.bf16.mxu0 %v3357_v25  ;;  %v766_v14 = vld [vmem:[#allocation2 + $0x30] sm:$0xff] }
 0x155   :  { %v2673_v11 = vpop.eup %2672  ;;  %706 = vst.msk [vmem:[#allocation2 + $0x50] sm:$0xff] %vm202_vm0, %v674_v56  ;;  %v638_v44 = vmul.f32 %v3380_v8, %v600_v3  ;;  %v543_v48 = vadd.f32 1e-05, %v511_v7 }
 0x156   :  { %v2675_v54 = vpop.eup %2674  ;;  %v675_v13 = vadd.f32 %v3386_v6, %v637_v58  ;;  %v601_v63 = vmul.f32 %v2673_v11, %v3225_v46  ;;  %v544_v21 = vadd.f32 1e-05, %v512_v30  ;;  %v461_v59 = vpop.xlane.xlu1 %460  ;;  %2543 = vmatprep.mubr.msk.bf16.mxu0 %vm202_vm0, %v794_v5 }
 0x157   :  { %v464_v1 = vpop.xlane.xlu0 %463  ;;  %v676_v60 = vadd.f32 %v3386_v6, %v638_v44  ;;  %v602_v9 = vmul.f32 %v2675_v54, %v3233_v62  ;;  %2684 = vrsqrt.f32 %v543_v48  ;;  %v513_v51 = vmul.f32 0.03125, %v461_v59  ;;  %v767_v28 = vld [vmem:[#allocation2 + $0x38] sm:$0xff]  ;;  %2574 = vmatpush3.bf16.msra.mxu0 %v3357_v25 }
 0x158   :  { %707 = vst.msk [vmem:[#allocation2 + $0x58] sm:$0xff] %vm202_vm0, %v675_v13  ;;  %v639_v15 = vmul.f32 %v3380_v8, %v601_v63  ;;  %2686 = vrsqrt.f32 %v544_v21  ;;  %v514_v46 = vmul.f32 0.03125, %v464_v1  ;;  %v795_v33 = vpack.c.bf16 %v767_v28, %v766_v14  ;;  %2575 = vmatprep.subr.bf16.mxu0 %v3365_v29  ;;  %v768_v20 = vld [vmem:[#allocation2 + $0x40] sm:$0xff] }
 0x159   :  { %v2677_v19 = vpop.eup %2676  ;;  %708 = vst.msk [vmem:[#allocation2 + $0x60] sm:$0xff] %vm202_vm0, %v676_v60  ;;  %v640_v62 = vmul.f32 %v3380_v8, %v602_v9  ;;  %v545_v36 = vadd.f32 1e-05, %v513_v51 }
 0x15a   :  { %v2679_v39 = vpop.eup %2678  ;;  %v677_v43 = vadd.f32 %v3386_v6, %v639_v15  ;;  %v603_v25 = vmul.f32 %v2677_v19, %v3237_v0  ;;  %v546_v10 = vadd.f32 1e-05, %v514_v46  ;;  %v467_v57 = vpop.xlane.xlu1 %466  ;;  %2544 = vmatmul.mubr.msk.bf16.gmra.mrb[4].mxu0 %vm202_vm0, %v795_v33 }
 0x15b   :  { %v470_v12 = vpop.xlane.xlu0 %469  ;;  %v678_v61 = vadd.f32 %v3386_v6, %v640_v62  ;;  %v604_v40 = vmul.f32 %v2679_v39, %v3245_v16  ;;  %2688 = vrsqrt.f32 %v545_v36  ;;  %v515_v45 = vmul.f32 0.03125, %v467_v57  ;;  %v769_v18 = vld [vmem:[#allocation2 + $0x48] sm:$0xff]  ;;  %2576 = vmatpush3.bf16.msra.mxu0 %v3365_v29 }
 0x15c   :  { %709 = vst.msk [vmem:[#allocation2 + $0x68] sm:$0xff] %vm202_vm0, %v677_v43  ;;  %v641_v32 = vmul.f32 %v3380_v8, %v603_v25  ;;  %2690 = vrsqrt.f32 %v546_v10  ;;  %v516_v0 = vmul.f32 0.03125, %v470_v12  ;;  %v796_v52 = vpack.c.bf16 %v769_v18, %v768_v20  ;;  %2577 = vmatprep.subr.bf16.mxu0 %v3372_v47  ;;  %v770_v11 = vld [vmem:[#allocation2 + $0x50] sm:$0xff] }
 0x15d   :  { %v2681_v55 = vpop.eup %2680  ;;  %710 = vst.msk [vmem:[#allocation2 + $0x70] sm:$0xff] %vm202_vm0, %v678_v61  ;;  %v642_v16 = vmul.f32 %v3380_v8, %v604_v40  ;;  %v547_v27 = vadd.f32 1e-05, %v515_v45 }
 0x15e   :  { %v2683_v56 = vpop.eup %2682  ;;  %v679_v3 = vadd.f32 %v3386_v6, %v641_v32  ;;  %v605_v29 = vmul.f32 %v2681_v55, %v3249_v17  ;;  %v548_v7 = vadd.f32 1e-05, %v516_v0  ;;  %v473_v53 = vpop.xlane.xlu1 %472  ;;  %2547 = vmatprep.mubr.msk.bf16.mxu0 %vm202_vm0, %v796_v52 }
 0x15f   :  { %v476_v26 = vpop.xlane.xlu0 %475  ;;  %v680_v58 = vadd.f32 %v3386_v6, %v642_v16  ;;  %v606_v30 = vmul.f32 %v2683_v56, %v3257_v34  ;;  %2692 = vrsqrt.f32 %v547_v27  ;;  %v517_v5 = vmul.f32 0.03125, %v473_v53  ;;  %v771_v44 = vld [vmem:[#allocation2 + $0x58] sm:$0xff]  ;;  %2578 = vmatpush3.bf16.msra.mxu0 %v3372_v47 }
 0x160   :  { %711 = vst.msk [vmem:[#allocation2 + $0x78] sm:$0xff] %vm202_vm0, %v679_v3  ;;  %v643_v48 = vmul.f32 %v3380_v8, %v605_v29  ;;  %2694 = vrsqrt.f32 %v548_v7  ;;  %v518_v17 = vmul.f32 0.03125, %v476_v26  ;;  %v797_v54 = vpack.c.bf16 %v771_v44, %v770_v11  ;;  %v772_v15 = vld [vmem:[#allocation2 + $0x60] sm:$0xff] }
 0x161   :  { %v2685_v13 = vpop.eup %2684  ;;  %712 = vst.msk [vmem:[#allocation2 + $0x80] sm:$0xff] %vm202_vm0, %v680_v58  ;;  %v644_v63 = vmul.f32 %v3380_v8, %v606_v30  ;;  %v549_v21 = vadd.f32 1e-05, %v517_v5 }
 0x162   :  { %v2687_v34 = vpop.eup %2686  ;;  %v681_v59 = vadd.f32 %v3386_v6, %v643_v48  ;;  %v607_v1 = vmul.f32 %v2685_v13, %v3261_v35  ;;  %v550_v60 = vadd.f32 1e-05, %v518_v17  ;;  %v479_v47 = vpop.xlane.xlu1 %478  ;;  %2548 = vmatmul.mubr.msk.bf16.gmra.mrb[8].mxu0 %vm202_vm0, %v797_v54 }
 0x163   :  { %v482_v9 = vpop.xlane.xlu0 %481  ;;  %v682_v51 = vadd.f32 %v3386_v6, %v644_v63  ;;  %v608_v14 = vmul.f32 %v2687_v34, %v3269_v49  ;;  %2696 = vrsqrt.f32 %v549_v21  ;;  %v519_v28 = vmul.f32 0.03125, %v479_v47  ;;  %v773_v46 = vld [vmem:[#allocation2 + $0x68] sm:$0xff] }
 0x164   :  { %713 = vst.msk [vmem:[#allocation2 + $0x88] sm:$0xff] %vm202_vm0, %v681_v59  ;;  %v645_v33 = vmul.f32 %v3380_v8, %v607_v1  ;;  %2698 = vrsqrt.f32 %v550_v60  ;;  %v520_v19 = vmul.f32 0.03125, %v482_v9  ;;  %v798_v35 = vpack.c.bf16 %v773_v46, %v772_v15  ;;  %v774_v20 = vld [vmem:[#allocation2 + $0x70] sm:$0xff] }
 0x165   :  { %v2689_v62 = vpop.eup %2688  ;;  %714 = vst.msk [vmem:[#allocation2 + $0x90] sm:$0xff] %vm202_vm0, %v682_v51  ;;  %v646_v36 = vmul.f32 %v3380_v8, %v608_v14  ;;  %v551_v39 = vadd.f32 1e-05, %v519_v28 }
 0x166   :  { %v2691_v43 = vpop.eup %2690  ;;  %v683_v49 = vadd.f32 %v3386_v6, %v645_v33  ;;  %v609_v25 = vmul.f32 %v2689_v62, %v3273_v50  ;;  %v552_v10 = vadd.f32 1e-05, %v520_v19  ;;  %v485_v57 = vpop.xlane.xlu1 %484  ;;  %2551 = vmatprep.mubr.msk.bf16.mxu0 %vm202_vm0, %v798_v35 }
 0x167   :  { %v488_v12 = vpop.xlane.xlu0 %487  ;;  %v684_v61 = vadd.f32 %v3386_v6, %v646_v36  ;;  %v610_v40 = vmul.f32 %v2691_v43, %v3281_v2  ;;  %2700 = vrsqrt.f32 %v551_v39  ;;  %v521_v45 = vmul.f32 0.03125, %v485_v57  ;;  %v775_v18 = vld [vmem:[#allocation2 + $0x78] sm:$0xff] }
 0x168   :  { %715 = vst.msk [vmem:[#allocation2 + $0x98] sm:$0xff] %vm202_vm0, %v683_v49  ;;  %v647_v32 = vmul.f32 %v3380_v8, %v609_v25  ;;  %2702 = vrsqrt.f32 %v552_v10  ;;  %v522_v0 = vmul.f32 0.03125, %v488_v12  ;;  %v799_v50 = vpack.c.bf16 %v775_v18, %v774_v20  ;;  %v776_v58 = vld [vmem:[#allocation2 + $0x80] sm:$0xff] }
 0x169   :  { %v2693_v52 = vpop.eup %2692  ;;  %716 = vst.msk [vmem:[#allocation2 + $0xa0] sm:$0xff] %vm202_vm0, %v684_v61  ;;  %v648_v55 = vmul.f32 %v3380_v8, %v610_v40  ;;  %v553_v16 = vadd.f32 1e-05, %v521_v45 }
 0x16a   :  { %v2695_v27 = vpop.eup %2694  ;;  %v685_v2 = vadd.f32 %v3386_v6, %v647_v32  ;;  %v611_v56 = vmul.f32 %v2693_v52, %v3285_v4  ;;  %v554_v3 = vadd.f32 1e-05, %v522_v0  ;;  %v491_v29 = vpop.xlane.xlu1 %490  ;;  %2552 = vmatmul.mubr.msk.bf16.gmra.mrb[12].mxu0 %vm202_vm0, %v799_v50 }
 0x16b   :  { %v686_v7 = vadd.f32 %v3386_v6, %v648_v55  ;;  %v612_v53 = vmul.f32 %v2695_v27, %v3293_v22  ;;  %2704 = vrsqrt.f32 %v553_v16  ;;  %v523_v26 = vmul.f32 0.03125, %v491_v29  ;;  %v777_v30 = vld [vmem:[#allocation2 + $0x88] sm:$0xff]  ;;  %v2645_v29 = vld [vmem:[%s4484_s6 + $0x38] sm:$0xff]  }
 0x16c   :  { %717 = vst.msk [vmem:[#allocation2 + $0xa8] sm:$0xff] %vm202_vm0, %v685_v2  ;;  %v649_v5 = vmul.f32 %v3380_v8, %v611_v56  ;;  %2706 = vrsqrt.f32 %v554_v3  ;;  %v800_v11 = vpack.c.bf16 %v777_v30, %v776_v58  ;;  %v778_v21 = vld [vmem:[#allocation2 + $0x90] sm:$0xff]  ;;  %v2643_v56 = vld [vmem:[%s4484_s6 + $0x28] sm:$0xff]  }
 0x16d   :  { %v2697_v44 = vpop.eup %2696  ;;  %718 = vst.msk [vmem:[#allocation2 + $0xb0] sm:$0xff] %vm202_vm0, %v686_v7  ;;  %v650_v4 = vmul.f32 %v3380_v8, %v612_v53  ;;  %v555_v48 = vadd.f32 1e-05, %v523_v26  ;;  %v2644_v3 = vld [vmem:[%s4484_s6 + $0x30] sm:$0xff]   ;;  %v2870_v7 = vmov 0.0  }
 0x16e   :  { %v2699_v17 = vpop.eup %2698  ;;  %v687_v54 = vadd.f32 %v3386_v6, %v649_v5  ;;  %v613_v22 = vmul.f32 %v2697_v44, %v3297_v24  ;;  %2555 = vmatprep.mubr.msk.bf16.mxu0 %vm202_vm0, %v800_v11  ;;  %730 = vst.msk [vmem:[#allocation3 + $0x10] sm:$0xff] %vm202_vm0, %v2870_v7  ;;  %728 = vst.msk [vmem:[#allocation3] sm:$0xff] %vm202_vm0, %v2870_v7  ;;  %v3585_v53 = vld [vmem:[%s4487_s5] ss:$0 sm:$0xff] }
 0x16f   :  { %v688_v13 = vadd.f32 %v3386_v6, %v650_v4  ;;  %v614_v63 = vmul.f32 %v2699_v17, %v3308_v23  ;;  %2708 = vrsqrt.f32 %v555_v48  ;;  %v779_v34 = vld [vmem:[#allocation2 + $0x98] sm:$0xff]  ;;  %729 = vst.msk [vmem:[#allocation3 + $0x8] sm:$0xff] %vm202_vm0, %v2870_v7  ;;  %731 = vst.msk [vmem:[#allocation3 + $0x18] sm:$0xff] %vm202_vm0, %v2870_v7 }
 0x170   :  { %719 = vst.msk [vmem:[#allocation2 + $0xb8] sm:$0xff] %vm202_vm0, %v687_v54  ;;  %v651_v59 = vmul.f32 %v3380_v8, %v613_v22  ;;  %v801_v1 = vpack.c.bf16 %v779_v34, %v778_v21  ;;  %v780_v28 = vld [vmem:[#allocation2 + $0xa0] sm:$0xff]  ;;  %732 = vst.msk [vmem:[#allocation3 + $0x20] sm:$0xff] %vm202_vm0, %v2870_v7 }
 0x171   :  { %v2701_v60 = vpop.eup %2700  ;;  %720 = vst.msk [vmem:[#allocation2 + $0xc0] sm:$0xff] %vm202_vm0, %v688_v13  ;;  %v652_v47 = vmul.f32 %v3380_v8, %v614_v63  ;;  %733 = vst.msk [vmem:[#allocation3 + $0x28] sm:$0xff] %vm202_vm0, %v2870_v7 }
 0x172   :  { %v2703_v24 = vpop.eup %2702  ;;  %v689_v9 = vadd.f32 %v3386_v6, %v651_v59  ;;  %v615_v51 = vmul.f32 %v2701_v60, %v3312_v42  ;;  %2556 = vmatmul.mubr.msk.bf16.gmra.mrb[16].mxu0 %vm202_vm0, %v801_v1  ;;  %734 = vst.msk [vmem:[#allocation3 + $0x30] sm:$0xff] %vm202_vm0, %v2870_v7  ;;  %735 = vst.msk [vmem:[#allocation3 + $0x38] sm:$0xff] %vm202_vm0, %v2870_v7 }
 0x173   :  { %v690_v23 = vadd.f32 %v3386_v6, %v652_v47  ;;  %v616_v14 = vmul.f32 %v2703_v24, %v3323_v38  ;;  %v781_v15 = vld [vmem:[#allocation2 + $0xa8] sm:$0xff]  ;;  %736 = vst.msk [vmem:[#allocation3 + $0x40] sm:$0xff] %vm202_vm0, %v2870_v7  ;;  %737 = vst.msk [vmem:[#allocation3 + $0x48] sm:$0xff] %vm202_vm0, %v2870_v7 }
 0x174   :  { %721 = vst.msk [vmem:[#allocation2 + $0xc8] sm:$0xff] %vm202_vm0, %v689_v9  ;;  %v653_v46 = vmul.f32 %v3380_v8, %v615_v51  ;;  %v802_v33 = vpack.c.bf16 %v781_v15, %v780_v28  ;;  %v782_v43 = vld [vmem:[#allocation2 + $0xb0] sm:$0xff]  ;;  %738 = vst.msk [vmem:[#allocation3 + $0x50] sm:$0xff] %vm202_vm0, %v2870_v7 }
 0x175   :  { %v2705_v19 = vpop.eup %2704  ;;  %722 = vst.msk [vmem:[#allocation2 + $0xd0] sm:$0xff] %vm202_vm0, %v690_v23  ;;  %v654_v35 = vmul.f32 %v3380_v8, %v616_v14  ;;  %739 = vst.msk [vmem:[#allocation3 + $0x58] sm:$0xff] %vm202_vm0, %v2870_v7 }
 0x176   :  { %v2707_v62 = vpop.eup %2706  ;;  %v691_v42 = vadd.f32 %v3386_v6, %v653_v46  ;;  %v617_v36 = vmul.f32 %v2705_v19, %v3327_v31  ;;  %2559 = vmatprep.mubr.msk.bf16.mxu0 %vm202_vm0, %v802_v33  ;;  %740 = vst.msk [vmem:[#allocation3 + $0x60] sm:$0xff] %vm202_vm0, %v2870_v7  ;;  %741 = vst.msk [vmem:[#allocation3 + $0x68] sm:$0xff] %vm202_vm0, %v2870_v7 }
 0x177   :  { %v692_v38 = vadd.f32 %v3386_v6, %v654_v35  ;;  %v618_v39 = vmul.f32 %v2707_v62, %v3335_v37  ;;  %v783_v49 = vld [vmem:[#allocation2 + $0xb8] sm:$0xff]  ;;  %742 = vst.msk [vmem:[#allocation3 + $0x70] sm:$0xff] %vm202_vm0, %v2870_v7  ;;  %743 = vst.msk [vmem:[#allocation3 + $0x78] sm:$0xff] %vm202_vm0, %v2870_v7 }
 0x178   :  { %723 = vst.msk [vmem:[#allocation2 + $0xd8] sm:$0xff] %vm202_vm0, %v691_v42  ;;  %v655_v25 = vmul.f32 %v3380_v8, %v617_v36  ;;  %v803_v10 = vpack.c.bf16 %v783_v49, %v782_v43  ;;  %v784_v40 = vld [vmem:[#allocation2 + $0xc0] sm:$0xff]  ;;  %744 = vst.msk [vmem:[#allocation3 + $0x80] sm:$0xff] %vm202_vm0, %v2870_v7 }
 0x179   :  { %v2709_v57 = vpop.eup %2708  ;;  %724 = vst.msk [vmem:[#allocation2 + $0xe0] sm:$0xff] %vm202_vm0, %v692_v38  ;;  %v656_v12 = vmul.f32 %v3380_v8, %v618_v39  ;;  %745 = vst.msk [vmem:[#allocation3 + $0x88] sm:$0xff] %vm202_vm0, %v2870_v7 }
 0x17a   :  { %v693_v31 = vadd.f32 %v3386_v6, %v655_v25  ;;  %v619_v61 = vmul.f32 %v2709_v57, %v3339_v41  ;;  %2560 = vmatmul.mubr.msk.bf16.gmra.mrb[20].mxu0 %vm202_vm0, %v803_v10  ;;  %746 = vst.msk [vmem:[#allocation3 + $0x90] sm:$0xff] %vm202_vm0, %v2870_v7  ;;  %747 = vst.msk [vmem:[#allocation3 + $0x98] sm:$0xff] %vm202_vm0, %v2870_v7 }
 0x17b   :  { %v694_v37 = vadd.f32 %v3386_v6, %v656_v12  ;;  %v785_v45 = vld [vmem:[#allocation2 + $0xc8] sm:$0xff]  ;;  %748 = vst.msk [vmem:[#allocation3 + $0xa0] sm:$0xff] %vm202_vm0, %v2870_v7  ;;  %749 = vst.msk [vmem:[#allocation3 + $0xa8] sm:$0xff] %vm202_vm0, %v2870_v7 }
 0x17c   :  { %725 = vst.msk [vmem:[#allocation2 + $0xe8] sm:$0xff] %vm202_vm0, %v693_v31  ;;  %v657_v20 = vmul.f32 %v3380_v8, %v619_v61  ;;  %v804_v18 = vpack.c.bf16 %v785_v45, %v784_v40  ;;  %v786_v0 = vld [vmem:[#allocation2 + $0xd0] sm:$0xff]  ;;  %750 = vst.msk [vmem:[#allocation3 + $0xb0] sm:$0xff] %vm202_vm0, %v2870_v7 }
 0x17d   :  { %726 = vst.msk [vmem:[#allocation2 + $0xf0] sm:$0xff] %vm202_vm0, %v694_v37  ;;  %751 = vst.msk [vmem:[#allocation3 + $0xb8] sm:$0xff] %vm202_vm0, %v2870_v7 }
 0x17e   :  { %v695_v32 = vadd.f32 %v3386_v6, %v657_v20  ;;  %2563 = vmatprep.mubr.msk.bf16.mxu0 %vm202_vm0, %v804_v18  ;;  %v2642_v6 = vld [vmem:[%s4484_s6 + $0x20] sm:$0xff]   ;;  %752 = vst.msk [vmem:[#allocation3 + $0xc0] sm:$0xff] %vm202_vm0, %v2870_v7  ;;  %753 = vst.msk [vmem:[#allocation3 + $0xc8] sm:$0xff] %vm202_vm0, %v2870_v7 }
 0x17f   :  { %v787_v50 = vld [vmem:[#allocation2 + $0xd8] sm:$0xff]  ;;  %2579 = vmatprep.subr.bf16.mxu0 %v2642_v6  ;;  %2623 = vmatprep.subr.bf16.mxu1 %v2642_v6  ;;  %754 = vst.msk [vmem:[#allocation3 + $0xd0] sm:$0xff] %vm202_vm0, %v2870_v7  ;;  %755 = vst.msk [vmem:[#allocation3 + $0xd8] sm:$0xff] %vm202_vm0, %v2870_v7 }
 0x180   :  { %727 = vst.msk [vmem:[#allocation2 + $0xf8] sm:$0xff] %vm202_vm0, %v695_v32  ;;  %v805_v41 = vpack.c.bf16 %v787_v50, %v786_v0  ;;  %v788_v52 = vld [vmem:[#allocation2 + $0xe0] sm:$0xff]  ;;  %2580 = vmatpush3.bf16.msra.mxu0 %v2642_v6  ;;  %2631 = vmatpush3.bf16.msra.mxu1 %v2642_v6  ;;  %756 = vst.msk [vmem:[#allocation3 + $0xe0] sm:$0xff] %vm202_vm0, %v2870_v7 }
 0x181   :  { %2581 = vmatprep.subr.bf16.mxu0 %v2643_v56  ;;  %2624 = vmatprep.subr.bf16.mxu1 %v2643_v56  ;;  %757 = vst.msk [vmem:[#allocation3 + $0xe8] sm:$0xff] %vm202_vm0, %v2870_v7  ;;  %758 = vst.msk [vmem:[#allocation3 + $0xf0] sm:$0xff] %vm202_vm0, %v2870_v7 }
 0x182   :  { %2564 = vmatmul.mubr.msk.bf16.gmra.mrb[24].mxu0 %vm202_vm0, %v805_v41  ;;  %759 = vst.msk [vmem:[#allocation3 + $0xf8] sm:$0xff] %vm202_vm0, %v2870_v7 }
 0x183   :  { %v789_v55 = vld [vmem:[#allocation2 + $0xe8] sm:$0xff] }
 0x184   :  { %v806_v16 = vpack.c.bf16 %v789_v55, %v788_v52  ;;  %v790_v8 = vld [vmem:[#allocation2 + $0xf0] sm:$0xff]  ;;  %2582 = vmatpush3.bf16.msra.mxu0 %v2643_v56  ;;  %2632 = vmatpush3.bf16.msra.mxu1 %v2643_v56 }
 0x185   :  { %2583 = vmatprep.subr.bf16.mxu0 %v2644_v3  ;;  %2625 = vmatprep.subr.bf16.mxu1 %v2644_v3 }
 0x186   :  { %2567 = vmatprep.mubr.msk.bf16.mxu0 %vm202_vm0, %v806_v16 }
 0x187   :  { %v791_v27 = vld [vmem:[#allocation2 + $0xf8] sm:$0xff] }
 0x188   :  { %v807_v2 = vpack.c.bf16 %v791_v27, %v790_v8  ;;  %2584 = vmatpush3.bf16.msra.mxu0 %v2644_v3  ;;  %2633 = vmatpush3.bf16.msra.mxu1 %v2644_v3 }
 0x189   :  { %2585 = vmatprep.subr.bf16.mxu0 %v2645_v29  ;;  %2626 = vmatprep.subr.bf16.mxu1 %v2645_v29 }
 0x18a   :  { %2568 = vmatmul.mubr.msk.bf16.gmra.mrb[28].mxu0 %vm202_vm0, %v807_v2 }
 0x18c   :  { %2586 = vmatpush3.bf16.msra.mxu0 %v2645_v29  ;;  %2634 = vmatpush3.bf16.msra.mxu1 %v2645_v29 }
 0x225   :  { %v2541_v26 = vpop.f32.mrb[0].mxu0 }
 0x226   :  { %v3588_v58 = vadd.f32 %v2541_v26, %v3585_v53  ;;  %v914_v30 = vpop.f32.mrb[1].mxu0 }
 0x227   :  { %v3591_v5 = vadd.f32 %v3585_v53, %v914_v30  ;;  %v2542_v11 = vpop.f32.mrb[2].mxu0 }
 0x228   :  { %v1075_v44 = vmul.f32 0.044715, %v3588_v58  ;;  %v3595_v4 = vadd.f32 %v2542_v11, %v3585_v53  ;;  %v917_v48 = vpop.f32.mrb[3].mxu0 }
 0x229   :  { %v1073_v17 = vmul.f32 0.044715, %v3591_v5  ;;  %v3599_v54 = vadd.f32 %v3585_v53, %v917_v48 }
 0x22a   :  { %v1107_v22 = vmul.f32 %v1075_v44, %v3588_v58  ;;  %v1076_v13 = vmul.f32 0.044715, %v3595_v4 }
 0x22b   :  { %v1105_v63 = vmul.f32 %v1073_v17, %v3591_v5  ;;  %v1074_v21 = vmul.f32 0.044715, %v3599_v54  ;;  %v1043_v17 = vmul.f32 0.5, %v3588_v58 }
 0x22c   :  { %v1139_v34 = vmul.f32 %v1107_v22, %v3588_v58  ;;  %v1108_v59 = vmul.f32 %v1076_v13, %v3595_v4  ;;  %v1041_v22 = vmul.f32 0.5, %v3591_v5 }
 0x22d   :  { %v1137_v1 = vmul.f32 %v1105_v63, %v3591_v5  ;;  %v1106_v60 = vmul.f32 %v1074_v21, %v3599_v54  ;;  %v2545_v47 = vpop.f32.mrb[4].mxu0 }
 0x22e   :  { %v1171_v24 = vadd.f32 %v1139_v34, %v3588_v58  ;;  %v1140_v9 = vmul.f32 %v1108_v59, %v3595_v4  ;;  %v3612_v51 = vadd.f32 %v2545_v47, %v3585_v53  ;;  %v930_v23 = vpop.f32.mrb[5].mxu0 }
 0x22f   :  { %v1138_v14 = vmul.f32 %v1106_v60, %v3599_v54  ;;  %v3616_v28 = vadd.f32 %v3585_v53, %v930_v23  ;;  %v2546_v15 = vpop.f32.mrb[6].mxu0  ;;  %v1169_v46 = vadd.f32 %v1137_v1, %v3591_v5  ;;  %v1044_v60 = vmul.f32 0.5, %v3595_v4 }
 0x230   :  { %v1203_v33 = vmul.f32 0.7978846, %v1171_v24  ;;  %v1172_v19 = vadd.f32 %v1140_v9, %v3595_v4  ;;  %v1079_v35 = vmul.f32 0.044715, %v3612_v51  ;;  %v3622_v62 = vadd.f32 %v2546_v15, %v3585_v53  ;;  %v933_v42 = vpop.f32.mrb[7].mxu0 }
 0x231   :  { %v1077_v36 = vmul.f32 0.044715, %v3616_v28  ;;  %v3626_v38 = vadd.f32 %v3585_v53, %v933_v42  ;;  %v1170_v39 = vadd.f32 %v1138_v14, %v3599_v54  ;;  %v1201_v43 = vmul.f32 0.7978846, %v1169_v46 }
 0x232   :  { %2710 = vtanh.f32 %v1203_v33  ;;  %v1204_v49 = vmul.f32 0.7978846, %v1172_v19  ;;  %v1111_v25 = vmul.f32 %v1079_v35, %v3612_v51  ;;  %v1080_v10 = vmul.f32 0.044715, %v3622_v62 }
 0x233   :  { %v1078_v57 = vmul.f32 0.044715, %v3626_v38  ;;  %v1202_v12 = vmul.f32 0.7978846, %v1170_v39  ;;  %2712 = vtanh.f32 %v1201_v43  ;;  %v1109_v40 = vmul.f32 %v1077_v36, %v3616_v28 }
 0x234   :  { %2714 = vtanh.f32 %v1204_v49  ;;  %v1143_v31 = vmul.f32 %v1111_v25, %v3612_v51  ;;  %v1112_v61 = vmul.f32 %v1080_v10, %v3622_v62  ;;  %v1042_v4 = vmul.f32 0.5, %v3599_v54 }
 0x235   :  { %v2549_v37 = vpop.f32.mrb[8].mxu0  ;;  %2716 = vtanh.f32 %v1202_v12  ;;  %v1110_v45 = vmul.f32 %v1078_v57, %v3626_v38  ;;  %v1141_v41 = vmul.f32 %v1109_v40, %v3616_v28  ;;  %v1045_v42 = vmul.f32 0.5, %v3616_v28 }
 0x236   :  { %v1144_v20 = vmul.f32 %v1112_v61, %v3622_v62  ;;  %v946_v18 = vpop.f32.mrb[9].mxu0  ;;  %v1175_v32 = vadd.f32 %v1143_v31, %v3612_v51  ;;  %v3644_v55 = vadd.f32 %v2549_v37, %v3585_v53 }
 0x237   :  { %v3639_v0 = vadd.f32 %v3585_v53, %v946_v18  ;;  %v2550_v50 = vpop.f32.mrb[10].mxu0  ;;  %v1142_v52 = vmul.f32 %v1110_v45, %v3626_v38  ;;  %v1173_v56 = vadd.f32 %v1141_v41, %v3616_v28  ;;  %v1047_v41 = vmul.f32 0.5, %v3612_v51 }
 0x238   :  { %v949_v16 = vpop.f32.mrb[11].mxu0  ;;  %v1176_v8 = vadd.f32 %v1144_v20, %v3622_v62  ;;  %v1207_v27 = vmul.f32 0.7978846, %v1175_v32  ;;  %v3654_v29 = vadd.f32 %v2550_v50, %v3585_v53  ;;  %v1083_v63 = vmul.f32 0.044715, %v3644_v55 }
 0x239   :  { %v1081_v2 = vmul.f32 0.044715, %v3639_v0  ;;  %v3649_v6 = vadd.f32 %v3585_v53, %v949_v16  ;;  %v1174_v3 = vadd.f32 %v1142_v52, %v3626_v38  ;;  %v1205_v11 = vmul.f32 0.7978846, %v1173_v56 }
 0x23a   :  { %v1208_v7 = vmul.f32 0.7978846, %v1176_v8  ;;  %2718 = vtanh.f32 %v1207_v27  ;;  %v1084_v5 = vmul.f32 0.044715, %v3654_v29  ;;  %v1115_v36 = vmul.f32 %v1083_v63, %v3644_v55 }
 0x23b   :  { %v1113_v26 = vmul.f32 %v1081_v2, %v3639_v0  ;;  %v1082_v30 = vmul.f32 0.044715, %v3649_v6  ;;  %v1206_v44 = vmul.f32 0.7978846, %v1174_v3  ;;  %v1046_v20 = vmul.f32 0.5, %v3626_v38 }
 0x23c   :  { %v2711_v48 = vpop.eup %2710  ;;  %2720 = vtanh.f32 %v1208_v7  ;;  %v1116_v31 = vmul.f32 %v1084_v5, %v3654_v29  ;;  %v1147_v7 = vmul.f32 %v1115_v36, %v3644_v55  ;;  %v1048_v51 = vmul.f32 0.5, %v3622_v62 }
 0x23d   :  { %v2713_v13 = vpop.eup %2712  ;;  %v1114_v21 = vmul.f32 %v1082_v30, %v3649_v6  ;;  %v2553_v34 = vpop.f32.mrb[12].mxu0  ;;  %v1267_v59 = vadd.f32 1.0, %v2711_v48  ;;  %2722 = vtanh.f32 %v1205_v11  ;;  %v1145_v47 = vmul.f32 %v1113_v26, %v3639_v0 }
 0x23e   :  { %v2715_v1 = vpop.eup %2714  ;;  %v962_v24 = vpop.f32.mrb[13].mxu0  ;;  %v1265_v9 = vadd.f32 1.0, %v2713_v13  ;;  %2724 = vtanh.f32 %v1206_v44  ;;  %v3670_v33 = vadd.f32 %v2553_v34, %v3585_v53  ;;  %v1148_v26 = vmul.f32 %v1116_v31, %v3654_v29 }
 0x23f   :  { %v2717_v58 = vpop.eup %2716  ;;  %v1146_v23 = vmul.f32 %v1114_v21, %v3649_v6  ;;  %v3667_v14 = vadd.f32 %v3585_v53, %v962_v24  ;;  %v2554_v15 = vpop.f32.mrb[14].mxu0  ;;  %v1268_v46 = vadd.f32 1.0, %v2715_v1  ;;  %v1299_v43 = vmul.f32 %v1267_v59, %v1043_v17 }
 0x240   :  { %v965_v19 = vpop.f32.mrb[15].mxu0  ;;  %v1266_v35 = vadd.f32 1.0, %v2717_v58  ;;  %v1297_v10 = vmul.f32 %v1265_v9, %v1041_v22  ;;  %v1177_v12 = vadd.f32 %v1145_v47, %v3639_v0  ;;  %v1087_v40 = vmul.f32 0.044715, %v3670_v33 }
 0x241   :  { %v3676_v39 = vadd.f32 %v3585_v53, %v965_v19  ;;  %v1300_v49 = vmul.f32 %v1268_v46, %v1044_v60  ;;  %v1085_v25 = vmul.f32 0.044715, %v3667_v14  ;;  %v1178_v28 = vadd.f32 %v1146_v23, %v3649_v6 }
 0x242   :  { %v1298_v57 = vmul.f32 %v1266_v35, %v1042_v4  ;;  %v1209_v18 = vmul.f32 0.7978846, %v1177_v12  ;;  %v3686_v32 = vadd.f32 %v2554_v15, %v3585_v53  ;;  %v1119_v48 = vmul.f32 %v1087_v40, %v3670_v33 }
 0x243   :  { %v1086_v54 = vmul.f32 0.044715, %v3676_v39  ;;  %v1362_v61 = vpack.c.bf16 %v1300_v49, %v1299_v43  ;;  %v1210_v16 = vmul.f32 0.7978846, %v1178_v28  ;;  %v1117_v27 = vmul.f32 %v1085_v25, %v3667_v14 }
 0x244   :  { %v2719_v37 = vpop.eup %2718  ;;  %v1361_v45 = vpack.c.bf16 %v1298_v57, %v1297_v10  ;;  %2726 = vtanh.f32 %v1209_v18  ;;  %v1088_v63 = vmul.f32 0.044715, %v3686_v32  ;;  %v1049_v47 = vmul.f32 0.5, %v3639_v0 }
 0x245   :  { %v2557_v50 = vpop.f32.mrb[16].mxu0  ;;  %v1271_v52 = vadd.f32 1.0, %v2719_v37  ;;  %v1118_v2 = vmul.f32 %v1086_v54, %v3676_v39  ;;  %2728 = vtanh.f32 %v1210_v16  ;;  %v1149_v1 = vmul.f32 %v1117_v27, %v3667_v14 }
 0x246   :  { %v2721_v8 = vpop.eup %2720  ;;  %v3692_v56 = vadd.f32 %v2557_v50, %v3585_v53  ;;  %v978_v3 = vpop.f32.mrb[17].mxu0  ;;  %2587 = vmatprep.mubr.bf16.mxu0 %v1361_v45  ;;  %v1179_v46 = vadd.f32 %v1147_v7, %v3644_v55  ;;  %v1180_v19 = vadd.f32 %v1148_v26, %v3654_v29  ;;  %v1151_v4 = vmul.f32 %v1119_v48, %v3670_v33 }
 0x247   :  { %v2723_v38 = vpop.eup %2722  ;;  %v2558_v30 = vpop.f32.mrb[18].mxu0  ;;  %2588 = vmatmul.mubr.bf16.vlgmr.msra.gmra.mrb[32].mxu0 %v1362_v61  ;;  %v1272_v11 = vadd.f32 1.0, %v2721_v8  ;;  %v3699_v17 = vadd.f32 %v3585_v53, %v978_v3  ;;  %v1303_v34 = vmul.f32 %v1271_v52, %v1047_v41  ;;  %v1150_v60 = vmul.f32 %v1118_v2, %v3676_v39 }
 0x248   :  { %v2725_v44 = vpop.eup %2724  ;;  %v981_v22 = vpop.f32.mrb[19].mxu0  ;;  %v1269_v13 = vadd.f32 1.0, %v2723_v38  ;;  %v1091_v62 = vmul.f32 0.044715, %v3692_v56  ;;  %v3711_v15 = vadd.f32 %v2558_v30, %v3585_v53  ;;  %v1120_v35 = vmul.f32 %v1088_v63, %v3686_v32 }
 0x249   :  { %v1270_v21 = vadd.f32 1.0, %v2725_v44  ;;  %v1304_v59 = vmul.f32 %v1272_v11, %v1048_v51  ;;  %v3707_v24 = vadd.f32 %v3585_v53, %v981_v22  ;;  %v1089_v23 = vmul.f32 0.044715, %v3699_v17 }
 0x24a   :  { %v1301_v9 = vmul.f32 %v1269_v13, %v1045_v42  ;;  %v1050_v43 = vmul.f32 0.5, %v3649_v6  ;;  %v3722_v25 = vmul.f32 0.5, %v3644_v55  ;;  %v1211_v10 = vmul.f32 0.7978846, %v1179_v46 }
 0x24b   :  { %v1302_v58 = vmul.f32 %v1270_v21, %v1046_v20  ;;  %v1364_v5 = vpack.c.bf16 %v1304_v59, %v1303_v34  ;;  %v1212_v57 = vmul.f32 0.7978846, %v1180_v19  ;;  %v1123_v12 = vmul.f32 %v1091_v62, %v3692_v56 }
 0x24c   :  { %v1090_v31 = vmul.f32 0.044715, %v3707_v24  ;;  %v1181_v6 = vadd.f32 %v1149_v1, %v3667_v14  ;;  %v1121_v37 = vmul.f32 %v1089_v23, %v3699_v17  ;;  %v1092_v40 = vmul.f32 0.044715, %v3711_v15 }
 0x24d   :  { %v2561_v0 = vpop.f32.mrb[20].mxu0  ;;  %v1363_v36 = vpack.c.bf16 %v1302_v58, %v1301_v9  ;;  %2730 = vtanh.f32 %v1211_v10  ;;  %v1182_v45 = vadd.f32 %v1150_v60, %v3676_v39  ;;  %v1052_v50 = vmul.f32 0.5, %v3654_v29 }
 0x24e   :  { %v3719_v42 = vadd.f32 %v2561_v0, %v3585_v53  ;;  %v994_v49 = vpop.f32.mrb[21].mxu0  ;;  %v2727_v28 = vpop.eup %2726  ;;  %2732 = vtanh.f32 %v1212_v57  ;;  %v1152_v52 = vmul.f32 %v1120_v35, %v3686_v32  ;;  %v1213_v8 = vmul.f32 0.7978846, %v1181_v6 }
 0x24f   :  { %v3727_v54 = vadd.f32 %v3585_v53, %v994_v49  ;;  %2591 = vmatprep.mubr.bf16.mxu1 %v1363_v36  ;;  %v2562_v61 = vpop.f32.mrb[22].mxu0  ;;  %v1273_v18 = vadd.f32 1.0, %v2727_v28  ;;  %v2729_v41 = vpop.eup %2728  ;;  %v1214_v27 = vmul.f32 0.7978846, %v1182_v45  ;;  %v3740_v2 = vmul.f32 %v1123_v12, %v3692_v56 }
 0x250   :  { %2592 = vmatmul.mubr.bf16.vlgmr.msra.gmra.mrb[0].mxu1 %v1364_v5  ;;  %v997_v55 = vpop.f32.mrb[23].mxu0  ;;  %v3734_v20 = vadd.f32 %v2562_v61, %v3585_v53  ;;  %v1095_v16 = vmul.f32 0.044715, %v3719_v42  ;;  %v1122_v3 = vmul.f32 %v1090_v31, %v3707_v24  ;;  %v1274_v7 = vadd.f32 1.0, %v2729_v41 }
 0x251   :  { %v1093_v38 = vmul.f32 0.044715, %v3727_v54  ;;  %v1153_v26 = vmul.f32 %v1121_v37, %v3699_v17  ;;  %v1124_v29 = vmul.f32 %v1092_v40, %v3711_v15  ;;  %v3747_v30 = vadd.f32 %v3585_v53, %v997_v55 }
 0x252   :  { %2734 = vtanh.f32 %v1213_v8  ;;  %v1096_v51 = vmul.f32 0.044715, %v3734_v20  ;;  %v1305_v44 = vmul.f32 %v1273_v18, %v1049_v47  ;;  %v1306_v48 = vmul.f32 %v1274_v7, %v1050_v43 }
 0x253   :  { %2736 = vtanh.f32 %v1214_v27  ;;  %v1127_v22 = vmul.f32 %v1095_v16, %v3719_v42  ;;  %v1053_v21 = vmul.f32 0.5, %v3667_v14  ;;  %v1183_v34 = vadd.f32 %v1151_v4, %v3670_v33 }
 0x254   :  { %v1154_v59 = vmul.f32 %v1122_v3, %v3707_v24  ;;  %v1125_v1 = vmul.f32 %v1093_v38, %v3727_v54  ;;  %v1365_v60 = vpack.c.bf16 %v1306_v48, %v1305_v44  ;;  %v1184_v47 = vadd.f32 %v1152_v52, %v3686_v32 }
 0x255   :  { %v2565_v11 = vpop.f32.mrb[24].mxu0  ;;  %v1094_v9 = vmul.f32 0.044715, %v3747_v30  ;;  %v1215_v14 = vmul.f32 0.7978846, %v1183_v34  ;;  %v1156_v46 = vmul.f32 %v1124_v29, %v3711_v15  ;;  %v1128_v19 = vmul.f32 %v1096_v51, %v3734_v20 }
 0x256   :  { %v3752_v13 = vadd.f32 %v2565_v11, %v3585_v53  ;;  %v1010_v63 = vpop.f32.mrb[25].mxu0  ;;  %2595 = vmatprep.mubr.bf16.mxu1 %v1365_v60  ;;  %v1054_v4 = vmul.f32 0.5, %v3676_v39  ;;  %v1216_v35 = vmul.f32 0.7978846, %v1184_v47  ;;  %v3770_v36 = vmul.f32 %v1127_v22, %v3719_v42 }
 0x257   :  { %v2566_v62 = vpop.f32.mrb[26].mxu0  ;;  %v3761_v58 = vadd.f32 %v3585_v53, %v1010_v63  ;;  %v2731_v0 = vpop.eup %2730  ;;  %v3773_v43 = vmul.f32 0.5, %v3670_v33  ;;  %2738 = vtanh.f32 %v1215_v14  ;;  %v1185_v49 = vadd.f32 %v1153_v26, %v3699_v17 }
 0x258   :  { %v3764_v5 = vadd.f32 %v2566_v62, %v3585_v53  ;;  %v1013_v23 = vpop.f32.mrb[27].mxu0  ;;  %v2733_v10 = vpop.eup %2732  ;;  %v3777_v57 = vmul.f32 %v1125_v1, %v3727_v54  ;;  %v1099_v12 = vmul.f32 0.044715, %v3752_v13  ;;  %v1275_v31 = vadd.f32 1.0, %v2731_v0 }
 0x259   :  { %2740 = vtanh.f32 %v1216_v35  ;;  %v1126_v39 = vmul.f32 %v1094_v9, %v3747_v30  ;;  %v1097_v61 = vmul.f32 0.044715, %v3761_v58  ;;  %v1276_v6 = vadd.f32 1.0, %v2733_v10 }
 0x25a   :  { %v1186_v28 = vadd.f32 %v1154_v59, %v3707_v24  ;;  %v1160_v33 = vmul.f32 %v1128_v19, %v3734_v20  ;;  %v1100_v37 = vmul.f32 0.044715, %v3764_v5  ;;  %v3786_v40 = vadd.f32 %v3585_v53, %v1013_v23 }
 0x25b   :  { %v1217_v45 = vmul.f32 0.7978846, %v1185_v49  ;;  %v1307_v41 = vmul.f32 %v1275_v31, %v3722_v25  ;;  %v1308_v52 = vmul.f32 %v1276_v6, %v1052_v50  ;;  %v1131_v38 = vmul.f32 %v1099_v12, %v3752_v13 }
 0x25c   :  { %v2735_v18 = vpop.eup %2734  ;;  %v1218_v27 = vmul.f32 0.7978846, %v1186_v28  ;;  %v1129_v51 = vmul.f32 %v1097_v61, %v3761_v58  ;;  %v1098_v48 = vmul.f32 0.044715, %v3786_v40  ;;  %v1056_v22 = vmul.f32 0.5, %v3686_v32 }
 0x25d   :  { %v2569_v55 = vpop.f32.mrb[28].mxu0  ;;  %v2737_v3 = vpop.eup %2736  ;;  %v1277_v26 = vadd.f32 1.0, %v2735_v18  ;;  %2742 = vtanh.f32 %v1217_v45  ;;  %v1366_v11 = vpack.c.bf16 %v1308_v52, %v1307_v41  ;;  %v1158_v34 = vmul.f32 %v1126_v39, %v3747_v30 }
 0x25e   :  { %v3790_v16 = vadd.f32 %v2569_v55, %v3585_v53  ;;  %v1026_v8 = vpop.f32.mrb[29].mxu0  ;;  %v1278_v44 = vadd.f32 1.0, %v2737_v3  ;;  %2744 = vtanh.f32 %v1218_v27  ;;  %v1132_v59 = vmul.f32 %v1100_v37, %v3764_v5 }
 0x25f   :  { %v3794_v7 = vadd.f32 %v3585_v53, %v1026_v8  ;;  %v2570_v29 = vpop.f32.mrb[30].mxu0  ;;  %2596 = vmatmul.mubr.bf16.gmra.mrb[4].mxu1 %v1366_v11  ;;  %v1309_v1 = vmul.f32 %v1277_v26, %v1053_v21  ;;  %v1057_v47 = vmul.f32 0.5, %v3699_v17  ;;  %v1058_v9 = vmul.f32 0.5, %v3707_v24 }
 0x260   :  { %v3798_v25 = vadd.f32 %v2570_v29, %v3585_v53  ;;  %v1029_v50 = vpop.f32.mrb[31].mxu0  ;;  %v1310_v60 = vmul.f32 %v1278_v44, %v1054_v4  ;;  %v1187_v32 = vadd.f32 %v3740_v2, %v3692_v56  ;;  %v1161_v14 = vmul.f32 %v1129_v51, %v3761_v58 }
 0x261   :  { %v3803_v63 = vadd.f32 %v3585_v53, %v1029_v50  ;;  %v1101_v62 = vmul.f32 0.044715, %v3794_v7  ;;  %v2739_v23 = vpop.eup %2738  ;;  %v1163_v53 = vmul.f32 %v1131_v38, %v3752_v13  ;;  %v1188_v35 = vadd.f32 %v1156_v46, %v3711_v15 }
 0x262   :  { %v1367_v19 = vpack.c.bf16 %v1310_v60, %v1309_v1  ;;  %v1130_v21 = vmul.f32 %v1098_v48, %v3786_v40  ;;  %v1279_v4 = vadd.f32 1.0, %v2739_v23  ;;  %v1219_v17 = vmul.f32 0.7978846, %v1187_v32 }
 0x263   :  { %v2741_v0 = vpop.eup %2740  ;;  %v1102_v49 = vmul.f32 0.044715, %v3803_v63  ;;  %v1164_v24 = vmul.f32 %v1132_v59, %v3764_v5  ;;  %v1103_v10 = vmul.f32 0.044715, %v3790_v16  ;;  %v1220_v12 = vmul.f32 0.7978846, %v1188_v35 }
 0x264   :  { %2599 = vmatprep.mubr.bf16.mxu1 %v1367_v19  ;;  %v1280_v2 = vadd.f32 1.0, %v2741_v0  ;;  %v1133_v31 = vmul.f32 %v1101_v62, %v3794_v7  ;;  %v1104_v39 = vmul.f32 0.044715, %v3798_v25  ;;  %v1311_v46 = vmul.f32 %v1279_v4, %v3773_v43 }
 0x265   :  { %2746 = vtanh.f32 %v1219_v17  ;;  %v1189_v6 = vadd.f32 %v3777_v57, %v3727_v54  ;;  %v1190_v28 = vadd.f32 %v1158_v34, %v3747_v30  ;;  %v1162_v55 = vmul.f32 %v1130_v21, %v3786_v40 }
 0x266   :  { %v1312_v61 = vmul.f32 %v1280_v2, %v1056_v22  ;;  %2748 = vtanh.f32 %v1220_v12  ;;  %v1134_v45 = vmul.f32 %v1102_v49, %v3803_v63  ;;  %v1191_v18 = vadd.f32 %v3770_v36, %v3719_v42 }
 0x267   :  { %v2743_v37 = vpop.eup %2742  ;;  %v1192_v41 = vadd.f32 %v1160_v33, %v3734_v20  ;;  %v1221_v8 = vmul.f32 0.7978846, %v1189_v6  ;;  %v1222_v27 = vmul.f32 0.7978846, %v1190_v28  ;;  %v1135_v38 = vmul.f32 %v1103_v10, %v3790_v16 }
 0x268   :  { %v1368_v52 = vpack.c.bf16 %v1312_v61, %v1311_v46  ;;  %v1281_v43 = vadd.f32 1.0, %v2743_v37  ;;  %v2745_v3 = vpop.eup %2744  ;;  %v1136_v57 = vmul.f32 %v1104_v39, %v3798_v25  ;;  %v1223_v26 = vmul.f32 0.7978846, %v1191_v18 }
 0x269   :  { %v1224_v29 = vmul.f32 0.7978846, %v1192_v41  ;;  %v1165_v51 = vmul.f32 %v1133_v31, %v3794_v7  ;;  %v1282_v11 = vadd.f32 1.0, %v2745_v3  ;;  %2750 = vtanh.f32 %v1221_v8 }
 0x26a   :  { %2600 = vmatmul.mubr.bf16.gmra.mrb[8].mxu1 %v1368_v52  ;;  %v1193_v36 = vadd.f32 %v1161_v14, %v3761_v58  ;;  %v1166_v33 = vmul.f32 %v1134_v45, %v3803_v63  ;;  %v1313_v44 = vmul.f32 %v1281_v43, %v1057_v47  ;;  %2752 = vtanh.f32 %v1222_v27 }
 0x26b   :  { %v1194_v50 = vadd.f32 %v1162_v55, %v3786_v40  ;;  %v1314_v48 = vmul.f32 %v1282_v11, %v1058_v9  ;;  %2754 = vtanh.f32 %v1223_v26  ;;  %v1195_v34 = vadd.f32 %v1163_v53, %v3752_v13 }
 0x26c   :  { %v1225_v22 = vmul.f32 0.7978846, %v1193_v36  ;;  %v1167_v59 = vmul.f32 %v1135_v38, %v3790_v16  ;;  %2756 = vtanh.f32 %v1224_v29  ;;  %v1196_v60 = vadd.f32 %v1164_v24, %v3764_v5 }
 0x26d   :  { %v1226_v1 = vmul.f32 0.7978846, %v1194_v50  ;;  %v1168_v62 = vmul.f32 %v1136_v57, %v3798_v25  ;;  %v1369_v32 = vpack.c.bf16 %v1314_v48, %v1313_v44  ;;  %v1227_v23 = vmul.f32 0.7978846, %v1195_v34 }
 0x26e   :  { %2758 = vtanh.f32 %v1225_v22  ;;  %v1228_v14 = vmul.f32 0.7978846, %v1196_v60  ;;  %v1197_v9 = vadd.f32 %v1165_v51, %v3794_v7  ;;  %v1198_v19 = vadd.f32 %v1166_v33, %v3803_v63 }
 0x26f   :  { %v2747_v47 = vpop.eup %2746  ;;  %2760 = vtanh.f32 %v1226_v1  ;;  %2603 = vmatprep.mubr.bf16.mxu1 %v1369_v32  ;;  %v1059_v53 = vmul.f32 0.5, %v3692_v56  ;;  %v1060_v0 = vmul.f32 0.5, %v3711_v15  ;;  %v1199_v24 = vadd.f32 %v1167_v59, %v3790_v16 }
 0x270   :  { %v2749_v35 = vpop.eup %2748  ;;  %v1283_v21 = vadd.f32 1.0, %v2747_v47  ;;  %2762 = vtanh.f32 %v1227_v23  ;;  %v1229_v49 = vmul.f32 0.7978846, %v1197_v9  ;;  %v1230_v17 = vmul.f32 0.7978846, %v1198_v19 }
 0x271   :  { %v1284_v4 = vadd.f32 1.0, %v2749_v35  ;;  %2764 = vtanh.f32 %v1228_v14  ;;  %v1200_v10 = vadd.f32 %v1168_v62, %v3798_v25  ;;  %v1231_v39 = vmul.f32 0.7978846, %v1199_v24 }
 0x272   :  { %v1315_v2 = vmul.f32 %v1283_v21, %v1059_v53  ;;  %2766 = vtanh.f32 %v1229_v49  ;;  %v1061_v28 = vmul.f32 0.5, %v3727_v54  ;;  %v1062_v37 = vmul.f32 0.5, %v3747_v30 }
 0x273   :  { %v1316_v12 = vmul.f32 %v1284_v4, %v1060_v0  ;;  %v2751_v31 = vpop.eup %2750  ;;  %2768 = vtanh.f32 %v1230_v17  ;;  %v1232_v46 = vmul.f32 0.7978846, %v1200_v10  ;;  %v1063_v18 = vmul.f32 0.5, %v3719_v42 }
 0x274   :  { %v2753_v56 = vpop.eup %2752  ;;  %v1285_v15 = vadd.f32 1.0, %v2751_v31  ;;  %2770 = vtanh.f32 %v1231_v39  ;;  %v1064_v27 = vmul.f32 0.5, %v3734_v20  ;;  %v1065_v57 = vmul.f32 0.5, %v3761_v58  ;;  %v1330_v39 = vld [vmem:[#allocation3 + $0x8] sm:$0xff] }
 0x275   :  { %v1370_v61 = vpack.c.bf16 %v1316_v12, %v1315_v2  ;;  %v2755_v6 = vpop.eup %2754  ;;  %v1286_v55 = vadd.f32 1.0, %v2753_v56  ;;  %2772 = vtanh.f32 %v1232_v46  ;;  %v1066_v54 = vmul.f32 0.5, %v3786_v40  ;;  %v1332_v2 = vld [vmem:[#allocation3 + $0x18] sm:$0xff] }
 0x276   :  { %v2757_v45 = vpop.eup %2756  ;;  %v1287_v41 = vadd.f32 1.0, %v2755_v6  ;;  %v1317_v43 = vmul.f32 %v1285_v15, %v1061_v28  ;;  %v1067_v33 = vmul.f32 0.5, %v3752_v13  ;;  %v1068_v44 = vmul.f32 0.5, %v3764_v5  ;;  %v1335_v15 = vld [vmem:[#allocation3 + $0x30] sm:$0xff]  ;;  %v1333_v6 = vld [vmem:[#allocation3 + $0x20] sm:$0xff] }
 0x277   :  { %2604 = vmatmul.mubr.bf16.gmra.mrb[12].mxu1 %v1370_v61  ;;  %v1318_v8 = vmul.f32 %v1286_v55, %v1062_v37  ;;  %v1288_v3 = vadd.f32 1.0, %v2757_v45  ;;  %v1069_v32 = vmul.f32 0.5, %v3794_v7  ;;  %v1070_v23 = vmul.f32 0.5, %v3803_v63  ;;  %v1331_v7 = vld [vmem:[#allocation3 + $0x10] sm:$0xff]  ;;  %v1329_v63 = vld [vmem:[#allocation3] sm:$0xff]  ;;  %v1336_v37 = vld [vmem:[#allocation3 + $0x38] sm:$0xff] }
 0x278   :  { %v2759_v52 = vpop.eup %2758  ;;  %v1319_v51 = vmul.f32 %v1287_v41, %v1063_v18  ;;  %v1071_v53 = vmul.f32 0.5, %v3790_v16  ;;  %v1072_v0 = vmul.f32 0.5, %v3798_v25  ;;  %v1334_v18 = vld [vmem:[#allocation3 + $0x28] sm:$0xff] }
 0x279   :  { %v2761_v38 = vpop.eup %2760  ;;  %v1289_v30 = vadd.f32 1.0, %v2759_v52  ;;  %v1371_v29 = vpack.c.bf16 %v1318_v8, %v1317_v43  ;;  %v1320_v11 = vmul.f32 %v1288_v3, %v1064_v27  ;;  %v3865_v52 = vld [vmem:[%s4488_s7] ss:$0 sm:$0xff]  ;;  %v2838_v27 = vld [vmem:[#allocation2 + $0x10] sm:$0xff] }
 0x27a   :  { %v2763_v26 = vpop.eup %2762  ;;  %v1290_v36 = vadd.f32 1.0, %v2761_v38 }
 0x27b   :  { %v2765_v42 = vpop.eup %2764  ;;  %v1291_v50 = vadd.f32 1.0, %v2763_v26  ;;  %2607 = vmatprep.mubr.bf16.mxu1 %v1371_v29  ;;  %v1372_v20 = vpack.c.bf16 %v1320_v11, %v1319_v51  ;;  %v1321_v48 = vmul.f32 %v1289_v30, %v1065_v57  ;;  %v2839_v26 = vld [vmem:[#allocation2] sm:$0xff] }
 0x27c   :  { %v1322_v22 = vmul.f32 %v1290_v36, %v1066_v54  ;;  %v1292_v34 = vadd.f32 1.0, %v2765_v42  ;;  %v2767_v58 = vpop.eup %2766  ;;  %v2840_v36 = vld [vmem:[#allocation2 + $0x18] sm:$0xff] }
 0x27d   :  { %v2769_v59 = vpop.eup %2768  ;;  %v1323_v1 = vmul.f32 %v1291_v50, %v1067_v33  ;;  %v1293_v62 = vadd.f32 1.0, %v2767_v58 }
 0x27e   :  { %v1373_v40 = vpack.c.bf16 %v1322_v22, %v1321_v48  ;;  %v1324_v60 = vmul.f32 %v1292_v34, %v1068_v44  ;;  %v1294_v13 = vadd.f32 1.0, %v2769_v59  ;;  %v2771_v47 = vpop.eup %2770  ;;  %v2841_v44 = vld [vmem:[#allocation2 + $0x8] sm:$0xff] }
 0x27f   :  { %2608 = vmatmul.mubr.bf16.gmra.mrb[16].mxu1 %v1372_v20  ;;  %v2773_v14 = vpop.eup %2772  ;;  %v1325_v9 = vmul.f32 %v1293_v62, %v1069_v32  ;;  %v1295_v35 = vadd.f32 1.0, %v2771_v47 }
 0x280   :  { %2611 = vmatprep.mubr.bf16.mxu1 %v1373_v40  ;;  %v1374_v5 = vpack.c.bf16 %v1324_v60, %v1323_v1  ;;  %v1326_v19 = vmul.f32 %v1294_v13, %v1070_v23  ;;  %v1296_v21 = vadd.f32 1.0, %v2773_v14  ;;  %v2842_v1 = vld [vmem:[#allocation2 + $0x30] sm:$0xff]  ;;  %v2843_v13 = vld [vmem:[#allocation2 + $0x20] sm:$0xff]  ;;  %v2844_v14 = vld [vmem:[#allocation2 + $0x38] sm:$0xff] }
 0x281   :  { %v1327_v49 = vmul.f32 %v1295_v35, %v1071_v53  ;;  %v2845_v35 = vld [vmem:[#allocation2 + $0x28] sm:$0xff] }
 0x282   :  { %v1375_v4 = vpack.c.bf16 %v1326_v19, %v1325_v9  ;;  %v1328_v17 = vmul.f32 %v1296_v21, %v1072_v0 }
 0x284   :  { %v1376_v24 = vpack.c.bf16 %v1328_v17, %v1327_v49  ;;  %v1339_v49 = vld [vmem:[#allocation3 + $0x50] sm:$0xff]  ;;  %v1337_v17 = vld [vmem:[#allocation3 + $0x40] sm:$0xff] }
 0x287   :  { %2612 = vmatmul.mubr.bf16.gmra.mrb[20].mxu1 %v1374_v5 }
 0x288   :  { %2615 = vmatprep.mubr.bf16.mxu1 %v1375_v4 }
 0x28f   :  { %2616 = vmatmul.mubr.bf16.gmra.mrb[24].mxu1 %v1376_v24 }
 0x31a   :  { %v2589_v10 = vpop.f32.mrb[32].mxu0 }
 0x31b   :  { %v1604_v12 = vadd.f32 %v2589_v10, %v1331_v7  ;;  %v1475_v31 = vpop.f32.mrb[33].mxu0  ;;  %v1340_v10 = vld [vmem:[#allocation3 + $0x58] sm:$0xff] }
 0x31c   :  { %v1602_v46 = vadd.f32 %v1475_v31, %v1329_v63  ;;  %v2590_v56 = vpop.f32.mrb[34].mxu0  ;;  %v1338_v31 = vld [vmem:[#allocation3 + $0x48] sm:$0xff] }
 0x31d   :  { %1636 = vst.msk [vmem:[#allocation3 + $0x10] sm:$0xff] %vm202_vm0, %v1604_v12  ;;  %v1605_v16 = vadd.f32 %v2590_v56, %v1332_v2  ;;  %v1478_v25 = vpop.f32.mrb[35].mxu0 }
 0x31e   :  { %1634 = vst.msk [vmem:[#allocation3] sm:$0xff] %vm202_vm0, %v1602_v46  ;;  %v1603_v61 = vadd.f32 %v1478_v25, %v1330_v39 }
 0x31f   :  { %1637 = vst.msk [vmem:[#allocation3 + $0x18] sm:$0xff] %vm202_vm0, %v1605_v16 }
 0x320   :  { %1635 = vst.msk [vmem:[#allocation3 + $0x8] sm:$0xff] %vm202_vm0, %v1603_v61 }
 0x323   :  { %v2593_v28 = vpop.f32.mrb[0].mxu1 }
 0x324   :  { %v1608_v55 = vadd.f32 %v2593_v28, %v1335_v15  ;;  %v1491_v45 = vpop.f32.mrb[1].mxu1  ;;  %v1671_v41 = vld [vmem:[#allocation3 + $0x10] sm:$0xff]  ;;  %v1341_v28 = vld [vmem:[#allocation3 + $0x60] sm:$0xff] }
 0x325   :  { %v1606_v43 = vadd.f32 %v1491_v45, %v1333_v6  ;;  %v2594_v8 = vpop.f32.mrb[2].mxu1  ;;  %v1703_v3 = vadd.f32 %v2838_v27, %v1671_v41  ;;  %v1669_v38 = vld [vmem:[#allocation3] sm:$0xff]  ;;  %v1343_v6 = vld [vmem:[#allocation3 + $0x70] sm:$0xff] }
 0x326   :  { %1640 = vst.msk [vmem:[#allocation3 + $0x30] sm:$0xff] %vm202_vm0, %v1608_v55  ;;  %v1609_v57 = vadd.f32 %v2594_v8, %v1336_v37  ;;  %v1494_v54 = vpop.f32.mrb[3].mxu1  ;;  %v1672_v30 = vld [vmem:[#allocation3 + $0x18] sm:$0xff]  ;;  %v1701_v29 = vadd.f32 %v2839_v26, %v1669_v38  ;;  %v2846_v8 = vld [vmem:[#allocation2 + $0x50] sm:$0xff] }
 0x327   :  { %1638 = vst.msk [vmem:[#allocation3 + $0x20] sm:$0xff] %vm202_vm0, %v1606_v43  ;;  %v1607_v51 = vadd.f32 %v1494_v54, %v1334_v18  ;;  %v3870_v11 = vadd.f32 %v3865_v52, %v1703_v3  ;;  %v1704_v42 = vadd.f32 %v2840_v36, %v1672_v30  ;;  %v1670_v33 = vld [vmem:[#allocation3 + $0x8] sm:$0xff]  ;;  %v1344_v55 = vld [vmem:[#allocation3 + $0x78] sm:$0xff]  ;;  %v2847_v30 = vld [vmem:[#allocation2 + $0x40] sm:$0xff] }
 0x328   :  { %1641 = vst.msk [vmem:[#allocation3 + $0x38] sm:$0xff] %vm202_vm0, %v1609_v57  ;;  %v1702_v50 = vadd.f32 %v2841_v44, %v1670_v33  ;;  %v3880_v22 = vadd.f32 %v3865_v52, %v1701_v29  ;;  %v1342_v43 = vld [vmem:[#allocation3 + $0x68] sm:$0xff] }
 0x329   :  { %1639 = vst.msk [vmem:[#allocation3 + $0x28] sm:$0xff] %vm202_vm0, %v1607_v51  ;;  %v1780_v20 = vsel %vm202_vm0, %v3870_v11, 0.0  ;;  %v3877_v48 = vadd.f32 %v3865_v52, %v1704_v42  ;;  %v2848_v42 = vld [vmem:[#allocation2 + $0x58] sm:$0xff] }
 0x32a   :  { %1781 = vadd.xlane.f32.xlu0 %v1780_v20  ;;  %v3885_v58 = vadd.f32 %v3865_v52, %v1702_v50  ;;  %v1774_v59 = vsel %vm202_vm0, %v3880_v22, 0.0  ;;  %v2849_v20 = vld [vmem:[#allocation2 + $0x48] sm:$0xff] }
 0x32b   :  { %v1783_v34 = vsel %vm202_vm0, %v3877_v48, 0.0 }
 0x32c   :  { %1784 = vadd.xlane.f32.xlu1 %v1783_v34  ;;  %v1777_v32 = vsel %vm202_vm0, %v3885_v58, 0.0 }
 0x32d   :  { %v1675_v40 = vld [vmem:[#allocation3 + $0x30] sm:$0xff] }
 0x32e   :  { %1775 = vadd.xlane.f32.xlu0 %v1774_v59  ;;  %v1707_v60 = vadd.f32 %v2842_v1, %v1675_v40  ;;  %v1673_v62 = vld [vmem:[#allocation3 + $0x20] sm:$0xff] }
 0x32f   :  { %v1676_v23 = vld [vmem:[#allocation3 + $0x38] sm:$0xff]  ;;  %v1705_v47 = vadd.f32 %v2843_v13, %v1673_v62  ;;  %v1347_v13 = vld [vmem:[#allocation3 + $0x90] sm:$0xff] }
 0x330   :  { %1778 = vadd.xlane.f32.xlu1 %v1777_v32  ;;  %v3892_v5 = vadd.f32 %v3865_v52, %v1707_v60  ;;  %v1708_v9 = vadd.f32 %v2844_v14, %v1676_v23  ;;  %v1674_v19 = vld [vmem:[#allocation3 + $0x28] sm:$0xff]  ;;  %v2850_v14 = vld [vmem:[#allocation2 + $0x70] sm:$0xff] }
 0x331   :  { %v1706_v53 = vadd.f32 %v2845_v35, %v1674_v19  ;;  %v3900_v4 = vadd.f32 %v3865_v52, %v1705_v47  ;;  %v1345_v35 = vld [vmem:[#allocation3 + $0x80] sm:$0xff] }
 0x332   :  { %v1792_v0 = vsel %vm202_vm0, %v3892_v5, 0.0  ;;  %v3897_v21 = vadd.f32 %v3865_v52, %v1708_v9  ;;  %v2597_v63 = vpop.f32.mrb[4].mxu1 }
 0x333   :  { %1793 = vadd.xlane.f32.xlu0 %v1792_v0  ;;  %v3905_v7 = vadd.f32 %v3865_v52, %v1706_v53  ;;  %v1612_v2 = vadd.f32 %v2597_v63, %v1339_v49  ;;  %v1507_v12 = vpop.f32.mrb[5].mxu1  ;;  %v1786_v39 = vsel %vm202_vm0, %v3900_v4, 0.0  ;;  %v2851_v0 = vld [vmem:[#allocation2 + $0x60] sm:$0xff] }
 0x334   :  { %v1795_v24 = vsel %vm202_vm0, %v3897_v21, 0.0  ;;  %v1610_v46 = vadd.f32 %v1507_v12, %v1337_v17  ;;  %v2598_v56 = vpop.f32.mrb[6].mxu1 }
 0x335   :  { %1796 = vadd.xlane.f32.xlu1 %v1795_v24  ;;  %1644 = vst.msk [vmem:[#allocation3 + $0x50] sm:$0xff] %vm202_vm0, %v1612_v2  ;;  %v1613_v16 = vadd.f32 %v2598_v56, %v1340_v10  ;;  %v1510_v25 = vpop.f32.mrb[7].mxu1  ;;  %v1789_v61 = vsel %vm202_vm0, %v3905_v7, 0.0  ;;  %v1348_v24 = vld [vmem:[#allocation3 + $0x98] sm:$0xff]  ;;  %v2853_v56 = vld [vmem:[#allocation2 + $0x68] sm:$0xff] }
 0x336   :  { %1642 = vst.msk [vmem:[#allocation3 + $0x40] sm:$0xff] %vm202_vm0, %v1610_v46  ;;  %v1611_v15 = vadd.f32 %v1510_v25, %v1338_v31  ;;  %v2852_v10 = vld [vmem:[#allocation2 + $0x78] sm:$0xff]  ;;  %v1346_v46 = vld [vmem:[#allocation3 + $0x88] sm:$0xff] }
 0x337   :  { %1787 = vadd.xlane.f32.xlu0 %v1786_v39  ;;  %1645 = vst.msk [vmem:[#allocation3 + $0x58] sm:$0xff] %vm202_vm0, %v1613_v16 }
 0x338   :  { %1643 = vst.msk [vmem:[#allocation3 + $0x48] sm:$0xff] %vm202_vm0, %v1611_v15 }
 0x339   :  { %1790 = vadd.xlane.f32.xlu1 %v1789_v61 }
 0x33c   :  { %v1679_v45 = vld [vmem:[#allocation3 + $0x50] sm:$0xff] }
 0x33d   :  { %v2601_v37 = vpop.f32.mrb[8].mxu1  ;;  %v1711_v27 = vadd.f32 %v2846_v8, %v1679_v45  ;;  %v1677_v3 = vld [vmem:[#allocation3 + $0x40] sm:$0xff] }
 0x33e   :  { %v1616_v18 = vadd.f32 %v2601_v37, %v1343_v6  ;;  %v1523_v41 = vpop.f32.mrb[9].mxu1  ;;  %v1680_v54 = vld [vmem:[#allocation3 + $0x58] sm:$0xff]  ;;  %v1709_v26 = vadd.f32 %v2847_v30, %v1677_v3 }
 0x33f   :  { %v1614_v38 = vadd.f32 %v1523_v41, %v1341_v28  ;;  %v2602_v57 = vpop.f32.mrb[10].mxu1  ;;  %v3917_v36 = vadd.f32 %v3865_v52, %v1711_v27  ;;  %v1712_v33 = vadd.f32 %v2848_v42, %v1680_v54  ;;  %v1678_v44 = vld [vmem:[#allocation3 + $0x48] sm:$0xff]  ;;  %v1349_v27 = vld [vmem:[#allocation3 + $0xa0] sm:$0xff] }
 0x340   :  { %1648 = vst.msk [vmem:[#allocation3 + $0x70] sm:$0xff] %vm202_vm0, %v1616_v18  ;;  %v1617_v29 = vadd.f32 %v2602_v57, %v1344_v55  ;;  %v1526_v51 = vpop.f32.mrb[11].mxu1  ;;  %v1710_v34 = vadd.f32 %v2849_v20, %v1678_v44  ;;  %v3927_v1 = vadd.f32 %v3865_v52, %v1709_v26  ;;  %v1350_v26 = vld [vmem:[#allocation3 + $0xa8] sm:$0xff] }
 0x341   :  { %1646 = vst.msk [vmem:[#allocation3 + $0x60] sm:$0xff] %vm202_vm0, %v1614_v38  ;;  %v1615_v50 = vadd.f32 %v1526_v51, %v1342_v43  ;;  %v1804_v59 = vsel %vm202_vm0, %v3917_v36, 0.0  ;;  %v3924_v40 = vadd.f32 %v3865_v52, %v1712_v33  ;;  %v1351_v43 = vld [vmem:[#allocation3 + $0xb0] sm:$0xff]  ;;  %v1352_v38 = vld [vmem:[#allocation3 + $0xb8] sm:$0xff] }
 0x342   :  { %1649 = vst.msk [vmem:[#allocation3 + $0x78] sm:$0xff] %vm202_vm0, %v1617_v29  ;;  %1805 = vadd.xlane.f32.xlu0 %v1804_v59  ;;  %v3933_v62 = vadd.f32 %v3865_v52, %v1710_v34  ;;  %v1798_v32 = vsel %vm202_vm0, %v3927_v1, 0.0 }
 0x343   :  { %1647 = vst.msk [vmem:[#allocation3 + $0x68] sm:$0xff] %vm202_vm0, %v1615_v50  ;;  %v1807_v60 = vsel %vm202_vm0, %v3924_v40, 0.0  ;;  %v2854_v50 = vld [vmem:[#allocation2 + $0x90] sm:$0xff] }
 0x344   :  { %1808 = vadd.xlane.f32.xlu1 %v1807_v60  ;;  %v1801_v47 = vsel %vm202_vm0, %v3933_v62, 0.0 }
 0x346   :  { %1799 = vadd.xlane.f32.xlu0 %v1798_v32  ;;  %v2855_v32 = vld [vmem:[#allocation2 + $0x80] sm:$0xff] }
 0x347   :  { %v1683_v23 = vld [vmem:[#allocation3 + $0x70] sm:$0xff] }
 0x348   :  { %v1715_v9 = vadd.f32 %v2850_v14, %v1683_v23  ;;  %v1681_v19 = vld [vmem:[#allocation3 + $0x60] sm:$0xff]  ;;  %1802 = vadd.xlane.f32.xlu1 %v1801_v47  ;;  %v2856_v47 = vld [vmem:[#allocation2 + $0x98] sm:$0xff] }
 0x349   :  { %v1684_v53 = vld [vmem:[#allocation3 + $0x78] sm:$0xff]  ;;  %v1713_v49 = vadd.f32 %v2851_v0, %v1681_v19  ;;  %v1355_v19 = vld [vmem:[#allocation3 + $0xd0] sm:$0xff] }
 0x34a   :  { %v2605_v17 = vpop.f32.mrb[12].mxu1  ;;  %v3940_v63 = vadd.f32 %v3865_v52, %v1715_v9  ;;  %v1716_v2 = vadd.f32 %v2852_v10, %v1684_v53  ;;  %v1682_v12 = vld [vmem:[#allocation3 + $0x68] sm:$0xff] }
 0x34b   :  { %v1620_v31 = vadd.f32 %v2605_v17, %v1347_v13  ;;  %v1539_v39 = vpop.f32.mrb[13].mxu1  ;;  %v1714_v16 = vadd.f32 %v2853_v56, %v1682_v12  ;;  %v3948_v28 = vadd.f32 %v3865_v52, %v1713_v49  ;;  %v1353_v49 = vld [vmem:[#allocation3 + $0xc0] sm:$0xff] }
 0x34c   :  { %v1618_v25 = vadd.f32 %v1539_v39, %v1345_v35  ;;  %v2606_v61 = vpop.f32.mrb[14].mxu1  ;;  %v1816_v15 = vsel %vm202_vm0, %v3940_v63, 0.0  ;;  %v3945_v6 = vadd.f32 %v3865_v52, %v1716_v2  ;;  %v2857_v35 = vld [vmem:[#allocation2 + $0x88] sm:$0xff]  ;;  %v1356_v2 = vld [vmem:[#allocation3 + $0xd8] sm:$0xff] }
 0x34d   :  { %1652 = vst.msk [vmem:[#allocation3 + $0x90] sm:$0xff] %vm202_vm0, %v1620_v31  ;;  %v1621_v37 = vadd.f32 %v2606_v61, %v1348_v24  ;;  %v1542_v55 = vpop.f32.mrb[15].mxu1  ;;  %1817 = vadd.xlane.f32.xlu0 %v1816_v15  ;;  %v3955_v41 = vadd.f32 %v3865_v52, %v1714_v16  ;;  %v1810_v8 = vsel %vm202_vm0, %v3948_v28, 0.0 }
 0x34e   :  { %1650 = vst.msk [vmem:[#allocation3 + $0x80] sm:$0xff] %vm202_vm0, %v1618_v25  ;;  %v1619_v45 = vadd.f32 %v1542_v55, %v1346_v46  ;;  %v1819_v18 = vsel %vm202_vm0, %v3945_v6, 0.0  ;;  %v1354_v46 = vld [vmem:[#allocation3 + $0xc8] sm:$0xff] }
 0x34f   :  { %1653 = vst.msk [vmem:[#allocation3 + $0x98] sm:$0xff] %vm202_vm0, %v1621_v37  ;;  %1820 = vadd.xlane.f32.xlu1 %v1819_v18  ;;  %v1813_v57 = vsel %vm202_vm0, %v3955_v41, 0.0 }
 0x350   :  { %1651 = vst.msk [vmem:[#allocation3 + $0x88] sm:$0xff] %vm202_vm0, %v1619_v45  ;;  %v2858_v45 = vld [vmem:[#allocation2 + $0xb0] sm:$0xff] }
 0x351   :  { %1811 = vadd.xlane.f32.xlu0 %v1810_v8 }
 0x352   :  { %v2609_v3 = vpop.f32.mrb[16].mxu1 }
 0x353   :  { %v1624_v54 = vadd.f32 %v2609_v3, %v1351_v43  ;;  %v1555_v30 = vpop.f32.mrb[17].mxu1  ;;  %1814 = vadd.xlane.f32.xlu1 %v1813_v57  ;;  %v2859_v3 = vld [vmem:[#allocation2 + $0xa0] sm:$0xff] }
 0x354   :  { %v1622_v29 = vadd.f32 %v1555_v30, %v1349_v27  ;;  %v2610_v51 = vpop.f32.mrb[18].mxu1  ;;  %v1687_v42 = vld [vmem:[#allocation3 + $0x90] sm:$0xff]  ;;  %v2860_v30 = vld [vmem:[#allocation2 + $0xb8] sm:$0xff] }
 0x355   :  { %1656 = vst.msk [vmem:[#allocation3 + $0xb0] sm:$0xff] %vm202_vm0, %v1624_v54  ;;  %v1625_v33 = vadd.f32 %v2610_v51, %v1352_v38  ;;  %v1558_v44 = vpop.f32.mrb[19].mxu1  ;;  %v1719_v20 = vadd.f32 %v2854_v50, %v1687_v42  ;;  %v1685_v34 = vld [vmem:[#allocation3 + $0x80] sm:$0xff]  ;;  %v1359_v51 = vld [vmem:[#allocation3 + $0xf0] sm:$0xff]  ;;  %v2861_v42 = vld [vmem:[#allocation2 + $0xa8] sm:$0xff] }
 0x356   :  { %1654 = vst.msk [vmem:[#allocation3 + $0xa0] sm:$0xff] %vm202_vm0, %v1622_v29  ;;  %v1623_v59 = vadd.f32 %v1558_v44, %v1350_v26  ;;  %v1688_v60 = vld [vmem:[#allocation3 + $0x98] sm:$0xff]  ;;  %v1717_v23 = vadd.f32 %v2855_v32, %v1685_v34  ;;  %v1357_v50 = vld [vmem:[#allocation3 + $0xe0] sm:$0xff] }
 0x357   :  { %1657 = vst.msk [vmem:[#allocation3 + $0xb8] sm:$0xff] %vm202_vm0, %v1625_v33  ;;  %v3967_v13 = vadd.f32 %v3865_v52, %v1719_v20  ;;  %v1720_v14 = vadd.f32 %v2856_v47, %v1688_v60  ;;  %v1686_v9 = vld [vmem:[#allocation3 + $0x88] sm:$0xff]  ;;  %v1360_v60 = vld [vmem:[#allocation3 + $0xf8] sm:$0xff] }
 0x358   :  { %1655 = vst.msk [vmem:[#allocation3 + $0xa8] sm:$0xff] %vm202_vm0, %v1623_v59  ;;  %v1718_v53 = vadd.f32 %v2857_v35, %v1686_v9  ;;  %v3976_v24 = vadd.f32 %v3865_v52, %v1717_v23 }
 0x359   :  { %v1828_v0 = vsel %vm202_vm0, %v3967_v13, 0.0  ;;  %v3973_v17 = vadd.f32 %v3865_v52, %v1720_v14  ;;  %v1358_v14 = vld [vmem:[#allocation3 + $0xe8] sm:$0xff] }
 0x35a   :  { %v2613_v10 = vpop.f32.mrb[20].mxu1  ;;  %1829 = vadd.xlane.f32.xlu0 %v1828_v0  ;;  %v3981_v56 = vadd.f32 %v3865_v52, %v1718_v53  ;;  %v1822_v55 = vsel %vm202_vm0, %v3976_v24, 0.0 }
 0x35b   :  { %v1628_v12 = vadd.f32 %v2613_v10, %v1355_v19  ;;  %v1571_v31 = vpop.f32.mrb[21].mxu1  ;;  %v1831_v39 = vsel %vm202_vm0, %v3973_v17, 0.0 }
 0x35c   :  { %v1626_v16 = vadd.f32 %v1571_v31, %v1353_v49  ;;  %v2614_v25 = vpop.f32.mrb[22].mxu1  ;;  %1832 = vadd.xlane.f32.xlu1 %v1831_v39  ;;  %v1691_v61 = vld [vmem:[#allocation3 + $0xb0] sm:$0xff]  ;;  %v1825_v57 = vsel %vm202_vm0, %v3981_v56, 0.0 }
 0x35d   :  { %1660 = vst.msk [vmem:[#allocation3 + $0xd0] sm:$0xff] %vm202_vm0, %v1628_v12  ;;  %v1629_v15 = vadd.f32 %v2614_v25, %v1356_v2  ;;  %v1574_v37 = vpop.f32.mrb[23].mxu1  ;;  %v1723_v18 = vadd.f32 %v2858_v45, %v1691_v61  ;;  %v1689_v43 = vld [vmem:[#allocation3 + $0xa0] sm:$0xff]  ;;  %v2862_v2 = vld [vmem:[#allocation2 + $0xd0] sm:$0xff] }
 0x35e   :  { %1658 = vst.msk [vmem:[#allocation3 + $0xc0] sm:$0xff] %vm202_vm0, %v1626_v16  ;;  %v1627_v8 = vadd.f32 %v1574_v37, %v1354_v46  ;;  %1823 = vadd.xlane.f32.xlu0 %v1822_v55  ;;  %v1692_v27 = vld [vmem:[#allocation3 + $0xb8] sm:$0xff]  ;;  %v1721_v38 = vadd.f32 %v2859_v3, %v1689_v43  ;;  %v2863_v16 = vld [vmem:[#allocation2 + $0xc0] sm:$0xff] }
 0x35f   :  { %1661 = vst.msk [vmem:[#allocation3 + $0xd8] sm:$0xff] %vm202_vm0, %v1629_v15  ;;  %v3991_v54 = vadd.f32 %v3865_v52, %v1723_v18  ;;  %v1724_v26 = vadd.f32 %v2860_v30, %v1692_v27  ;;  %v1690_v29 = vld [vmem:[#allocation3 + $0xa8] sm:$0xff]  ;;  %v2864_v37 = vld [vmem:[#allocation2 + $0xd8] sm:$0xff] }
 0x360   :  { %1659 = vst.msk [vmem:[#allocation3 + $0xc8] sm:$0xff] %vm202_vm0, %v1627_v8  ;;  %1826 = vadd.xlane.f32.xlu1 %v1825_v57  ;;  %v1722_v33 = vadd.f32 %v2861_v42, %v1690_v29  ;;  %v4000_v34 = vadd.f32 %v3865_v52, %v1721_v38  ;;  %v2865_v18 = vld [vmem:[#allocation2 + $0xc8] sm:$0xff] }
 0x361   :  { %v1840_v44 = vsel %vm202_vm0, %v3991_v54, 0.0  ;;  %v3997_v20 = vadd.f32 %v3865_v52, %v1724_v26 }
 0x362   :  { %1841 = vadd.xlane.f32.xlu0 %v1840_v44  ;;  %v2617_v59 = vpop.f32.mrb[24].mxu1  ;;  %v4005_v9 = vadd.f32 %v3865_v52, %v1722_v33  ;;  %v1834_v10 = vsel %vm202_vm0, %v4000_v34, 0.0  ;;  %v2867_v33 = vld [vmem:[#allocation2 + $0xf0] sm:$0xff] }
 0x363   :  { %v1632_v32 = vadd.f32 %v2617_v59, %v1359_v51  ;;  %v1587_v23 = vpop.f32.mrb[25].mxu1  ;;  %v1843_v47 = vsel %vm202_vm0, %v3997_v20, 0.0  ;;  %v2866_v51 = vld [vmem:[#allocation2 + $0xe0] sm:$0xff] }
 0x364   :  { %v1630_v19 = vadd.f32 %v1587_v23, %v1357_v50  ;;  %1844 = vadd.xlane.f32.xlu1 %v1843_v47  ;;  %v2618_v35 = vpop.f32.mrb[26].mxu1  ;;  %v1695_v53 = vld [vmem:[#allocation3 + $0xd0] sm:$0xff]  ;;  %v1837_v61 = vsel %vm202_vm0, %v4005_v9, 0.0  ;;  %v2868_v23 = vld [vmem:[#allocation2 + $0xe8] sm:$0xff] }
 0x365   :  { %1664 = vst.msk [vmem:[#allocation3 + $0xf0] sm:$0xff] %vm202_vm0, %v1632_v32  ;;  %v1633_v0 = vadd.f32 %v2618_v35, %v1360_v60  ;;  %v1590_v49 = vpop.f32.mrb[27].mxu1  ;;  %v1727_v12 = vadd.f32 %v2862_v2, %v1695_v53  ;;  %v1693_v31 = vld [vmem:[#allocation3 + $0xc0] sm:$0xff] }
 0x366   :  { %1662 = vst.msk [vmem:[#allocation3 + $0xe0] sm:$0xff] %vm202_vm0, %v1630_v19  ;;  %v1631_v39 = vadd.f32 %v1590_v49, %v1358_v14  ;;  %1835 = vadd.xlane.f32.xlu0 %v1834_v10  ;;  %v1696_v46 = vld [vmem:[#allocation3 + $0xd8] sm:$0xff]  ;;  %v1725_v25 = vadd.f32 %v2863_v16, %v1693_v31 }
 0x367   :  { %1665 = vst.msk [vmem:[#allocation3 + $0xf8] sm:$0xff] %vm202_vm0, %v1633_v0  ;;  %v4015_v15 = vadd.f32 %v3865_v52, %v1727_v12  ;;  %v1728_v55 = vadd.f32 %v2864_v37, %v1696_v46  ;;  %v1694_v45 = vld [vmem:[#allocation3 + $0xc8] sm:$0xff]  ;;  %v2869_v14 = vld [vmem:[#allocation2 + $0xf8] sm:$0xff] }
 0x368   :  { %1663 = vst.msk [vmem:[#allocation3 + $0xe8] sm:$0xff] %vm202_vm0, %v1631_v39  ;;  %1838 = vadd.xlane.f32.xlu1 %v1837_v61  ;;  %v1726_v43 = vadd.f32 %v2865_v18, %v1694_v45  ;;  %v4024_v3 = vadd.f32 %v3865_v52, %v1725_v25 }
 0x369   :  { %v1852_v8 = vsel %vm202_vm0, %v4015_v15, 0.0  ;;  %v4021_v27 = vadd.f32 %v3865_v52, %v1728_v55 }
 0x36a   :  { %1853 = vadd.xlane.f32.xlu0 %v1852_v8  ;;  %v4029_v57 = vadd.f32 %v3865_v52, %v1726_v43  ;;  %v1846_v26 = vsel %vm202_vm0, %v4024_v3, 0.0 }
 0x36b   :  { %v1855_v38 = vsel %vm202_vm0, %v4021_v27, 0.0 }
 0x36c   :  { %1856 = vadd.xlane.f32.xlu1 %v1855_v38  ;;  %v1699_v30 = vld [vmem:[#allocation3 + $0xf0] sm:$0xff]  ;;  %v1849_v59 = vsel %vm202_vm0, %v4029_v57, 0.0 }
 0x36d   :  { %v1697_v29 = vld [vmem:[#allocation3 + $0xe0] sm:$0xff]  ;;  %v1731_v44 = vadd.f32 %v2867_v33, %v1699_v30 }
 0x36e   :  { %1847 = vadd.xlane.f32.xlu0 %v1846_v26  ;;  %v1729_v42 = vadd.f32 %v2866_v51, %v1697_v29  ;;  %v1700_v50 = vld [vmem:[#allocation3 + $0xf8] sm:$0xff] }
 0x36f   :  { %v1698_v60 = vld [vmem:[#allocation3 + $0xe8] sm:$0xff]  ;;  %v1732_v19 = vadd.f32 %v2869_v14, %v1700_v50  ;;  %v4044_v0 = vadd.f32 %v3865_v52, %v1731_v44 }
 0x370   :  { %1850 = vadd.xlane.f32.xlu1 %v1849_v59  ;;  %v4036_v32 = vadd.f32 %v3865_v52, %v1729_v42  ;;  %v1730_v47 = vadd.f32 %v2868_v23, %v1698_v60 }
 0x371   :  { %v4049_v10 = vadd.f32 %v3865_v52, %v1732_v19  ;;  %v1864_v2 = vsel %vm202_vm0, %v4044_v0, 0.0 }
 0x372   :  { %v1858_v35 = vsel %vm202_vm0, %v4036_v32, 0.0  ;;  %v4041_v53 = vadd.f32 %v3865_v52, %v1730_v47 }
 0x373   :  { %1859 = vadd.xlane.f32.xlu0 %v1858_v35  ;;  %v1867_v12 = vsel %vm202_vm0, %v4049_v10, 0.0 }
 0x374   :  { %v1861_v49 = vsel %vm202_vm0, %v4041_v53, 0.0 }
 0x375   :  { %1862 = vadd.xlane.f32.xlu1 %v1861_v49 }
 0x377   :  { %1865 = vadd.xlane.f32.xlu0 %v1864_v2 }
 0x379   :  { %1868 = vadd.xlane.f32.xlu1 %v1867_v12 }
 0x3b7   :  { %v1782_v31 = vpop.xlane.xlu0 %1781 }
 0x3b8   :  { %v1873_v39 = vmul.f32 0.03125, %v1782_v31 }
 0x3b9   :  { %v1785_v46 = vpop.xlane.xlu1 %1784 }
 0x3ba   :  { %v4056_v16 = vsub.f32 %v3870_v11, %v1873_v39  ;;  %v1874_v25 = vmul.f32 0.03125, %v1785_v46 }
 0x3bb   :  { %v1776_v61 = vpop.xlane.xlu0 %1775 }
 0x3bc   :  { %v4059_v52 = vsub.f32 %v3877_v48, %v1874_v25  ;;  %v1871_v37 = vmul.f32 0.03125, %v1776_v61  ;;  %v1937_v55 = vmul.f32 %v4056_v16, %v4056_v16 }
 0x3bd   :  { %v1779_v45 = vpop.xlane.xlu1 %1778 }
 0x3be   :  { %v4064_v18 = vsub.f32 %v3880_v22, %v1871_v37  ;;  %v1872_v43 = vmul.f32 0.03125, %v1779_v45  ;;  %v1973_v8 = vsel %vm202_vm0, %v1937_v55, 0.0  ;;  %v1938_v11 = vmul.f32 %v4059_v52, %v4059_v52 }
 0x3bf   :  { %1974 = vadd.xlane.f32.xlu0 %v1973_v8 }
 0x3c0   :  { %v4070_v38 = vsub.f32 %v3885_v58, %v1872_v43  ;;  %v1794_v48 = vpop.xlane.xlu0 %1793  ;;  %v1976_v30 = vsel %vm202_vm0, %v1938_v11, 0.0  ;;  %v1935_v26 = vmul.f32 %v4064_v18, %v4064_v18 }
 0x3c1   :  { %v1877_v29 = vmul.f32 0.03125, %v1794_v48  ;;  %1977 = vadd.xlane.f32.xlu1 %v1976_v30 }
 0x3c2   :  { %v1797_v22 = vpop.xlane.xlu1 %1796  ;;  %v1967_v51 = vsel %vm202_vm0, %v1935_v26, 0.0  ;;  %v1936_v42 = vmul.f32 %v4070_v38, %v4070_v38 }
 0x3c3   :  { %v4079_v33 = vsub.f32 %v3892_v5, %v1877_v29  ;;  %v1878_v44 = vmul.f32 0.03125, %v1797_v22  ;;  %1968 = vadd.xlane.f32.xlu0 %v1967_v51 }
 0x3c4   :  { %v1788_v58 = vpop.xlane.xlu0 %1787  ;;  %v1970_v50 = vsel %vm202_vm0, %v1936_v42, 0.0 }
 0x3c5   :  { %v4083_v59 = vsub.f32 %v3897_v21, %v1878_v44  ;;  %v1875_v60 = vmul.f32 0.03125, %v1788_v58  ;;  %1971 = vadd.xlane.f32.xlu1 %v1970_v50  ;;  %v1941_v23 = vmul.f32 %v4079_v33, %v4079_v33 }
 0x3c6   :  { %v1791_v47 = vpop.xlane.xlu1 %1790 }
 0x3c7   :  { %v4088_v14 = vsub.f32 %v3900_v4, %v1875_v60  ;;  %v1876_v19 = vmul.f32 0.03125, %v1791_v47  ;;  %v1985_v5 = vsel %vm202_vm0, %v1941_v23, 0.0  ;;  %v1942_v35 = vmul.f32 %v4083_v59, %v4083_v59 }
 0x3c8   :  { %1986 = vadd.xlane.f32.xlu0 %v1985_v5 }
 0x3c9   :  { %v4094_v49 = vsub.f32 %v3905_v7, %v1876_v19  ;;  %v1988_v21 = vsel %vm202_vm0, %v1942_v35, 0.0  ;;  %v1939_v2 = vmul.f32 %v4088_v14, %v4088_v14 }
 0x3ca   :  { %1989 = vadd.xlane.f32.xlu1 %v1988_v21 }
 0x3cb   :  { %v1979_v12 = vsel %vm202_vm0, %v1939_v2, 0.0  ;;  %v1940_v4 = vmul.f32 %v4094_v49, %v4094_v49 }
 0x3cc   :  { %1980 = vadd.xlane.f32.xlu0 %v1979_v12 }
 0x3cd   :  { %v1982_v31 = vsel %vm202_vm0, %v1940_v4, 0.0 }
 0x3ce   :  { %1983 = vadd.xlane.f32.xlu1 %v1982_v31 }
 0x3cf   :  { %v1806_v39 = vpop.xlane.xlu0 %1805 }
 0x3d0   :  { %v1881_v46 = vmul.f32 0.03125, %v1806_v39 }
 0x3d1   :  { %v1809_v25 = vpop.xlane.xlu1 %1808 }
 0x3d2   :  { %v4104_v7 = vsub.f32 %v3917_v36, %v1881_v46  ;;  %v1882_v61 = vmul.f32 0.03125, %v1809_v25 }
 0x3d3   :  { %v1800_v37 = vpop.xlane.xlu0 %1799 }
 0x3d4   :  { %v4107_v55 = vsub.f32 %v3924_v40, %v1882_v61  ;;  %v1879_v45 = vmul.f32 0.03125, %v1800_v37  ;;  %v1945_v43 = vmul.f32 %v4104_v7, %v4104_v7 }
 0x3d5   :  { %v1803_v8 = vpop.xlane.xlu1 %1802 }
 0x3d6   :  { %v4112_v11 = vsub.f32 %v3927_v1, %v1879_v45  ;;  %v1880_v48 = vmul.f32 0.03125, %v1803_v8  ;;  %v1997_v30 = vsel %vm202_vm0, %v1945_v43, 0.0  ;;  %v1946_v36 = vmul.f32 %v4107_v55, %v4107_v55 }
 0x3d7   :  { %1998 = vadd.xlane.f32.xlu0 %v1997_v30 }
 0x3d8   :  { %v4118_v26 = vsub.f32 %v3933_v62, %v1880_v48  ;;  %v2000_v40 = vsel %vm202_vm0, %v1946_v36, 0.0  ;;  %v1943_v29 = vmul.f32 %v4112_v11, %v4112_v11 }
 0x3d9   :  { %2001 = vadd.xlane.f32.xlu1 %v2000_v40 }
 0x3da   :  { %v1818_v22 = vpop.xlane.xlu0 %1817  ;;  %v1991_v1 = vsel %vm202_vm0, %v1943_v29, 0.0  ;;  %v1944_v42 = vmul.f32 %v4118_v26, %v4118_v26 }
 0x3db   :  { %v1885_v51 = vmul.f32 0.03125, %v1818_v22  ;;  %1992 = vadd.xlane.f32.xlu0 %v1991_v1 }
 0x3dc   :  { %v1821_v44 = vpop.xlane.xlu1 %1820  ;;  %v1994_v50 = vsel %vm202_vm0, %v1944_v42, 0.0 }
 0x3dd   :  { %v4127_v58 = vsub.f32 %v3940_v63, %v1885_v51  ;;  %v1886_v62 = vmul.f32 0.03125, %v1821_v44  ;;  %1995 = vadd.xlane.f32.xlu1 %v1994_v50 }
 0x3de   :  { %v1812_v60 = vpop.xlane.xlu0 %1811 }
 0x3df   :  { %v4131_v23 = vsub.f32 %v3945_v6, %v1886_v62  ;;  %v1883_v47 = vmul.f32 0.03125, %v1812_v60  ;;  %v1949_v19 = vmul.f32 %v4127_v58, %v4127_v58 }
 0x3e0   :  { %v1815_v5 = vpop.xlane.xlu1 %1814 }
 0x3e1   :  { %v4136_v35 = vsub.f32 %v3948_v28, %v1883_v47  ;;  %v1884_v21 = vmul.f32 0.03125, %v1815_v5  ;;  %v2009_v63 = vsel %vm202_vm0, %v1949_v19, 0.0  ;;  %v1950_v2 = vmul.f32 %v4131_v23, %v4131_v23 }
 0x3e2   :  { %2010 = vadd.xlane.f32.xlu0 %v2009_v63 }
 0x3e3   :  { %v4142_v12 = vsub.f32 %v3955_v41, %v1884_v21  ;;  %v2012_v6 = vsel %vm202_vm0, %v1950_v2, 0.0  ;;  %v1947_v4 = vmul.f32 %v4136_v35, %v4136_v35 }
 0x3e4   :  { %2013 = vadd.xlane.f32.xlu1 %v2012_v6 }
 0x3e5   :  { %v2003_v31 = vsel %vm202_vm0, %v1947_v4, 0.0  ;;  %v1948_v28 = vmul.f32 %v4142_v12, %v4142_v12 }
 0x3e6   :  { %2004 = vadd.xlane.f32.xlu0 %v2003_v31 }
 0x3e7   :  { %v1830_v39 = vpop.xlane.xlu0 %1829  ;;  %v2006_v46 = vsel %vm202_vm0, %v1948_v28, 0.0 }
 0x3e8   :  { %v1889_v25 = vmul.f32 0.03125, %v1830_v39  ;;  %2007 = vadd.xlane.f32.xlu1 %v2006_v46 }
 0x3e9   :  { %v1833_v61 = vpop.xlane.xlu1 %1832 }
 0x3ea   :  { %v4152_v41 = vsub.f32 %v3967_v13, %v1889_v25  ;;  %v1890_v37 = vmul.f32 0.03125, %v1833_v61 }
 0x3eb   :  { %v1824_v45 = vpop.xlane.xlu0 %1823 }
 0x3ec   :  { %v4155_v43 = vsub.f32 %v3973_v17, %v1890_v37  ;;  %v1887_v8 = vmul.f32 0.03125, %v1824_v45  ;;  %v1953_v48 = vmul.f32 %v4152_v41, %v4152_v41 }
 0x3ed   :  { %v1827_v30 = vpop.xlane.xlu1 %1826 }
 0x3ee   :  { %v4160_v36 = vsub.f32 %v3976_v24, %v1887_v8  ;;  %v1888_v40 = vmul.f32 0.03125, %v1827_v30  ;;  %v2021_v29 = vsel %vm202_vm0, %v1953_v48, 0.0  ;;  %v1954_v13 = vmul.f32 %v4155_v43, %v4155_v43 }
 0x3ef   :  { %v1842_v22 = vpop.xlane.xlu0 %1841  ;;  %2022 = vadd.xlane.f32.xlu0 %v2021_v29 }
 0x3f0   :  { %v4166_v51 = vsub.f32 %v3981_v56, %v1888_v40  ;;  %v1893_v17 = vmul.f32 0.03125, %v1842_v22  ;;  %v2024_v1 = vsel %vm202_vm0, %v1954_v13, 0.0  ;;  %v1951_v42 = vmul.f32 %v4160_v36, %v4160_v36 }
 0x3f1   :  { %v1845_v44 = vpop.xlane.xlu1 %1844  ;;  %2025 = vadd.xlane.f32.xlu1 %v2024_v1 }
 0x3f2   :  { %v4172_v24 = vsub.f32 %v3991_v54, %v1893_v17  ;;  %v1894_v62 = vmul.f32 0.03125, %v1845_v44  ;;  %v2015_v50 = vsel %vm202_vm0, %v1951_v42, 0.0  ;;  %v1952_v60 = vmul.f32 %v4166_v51, %v4166_v51 }
 0x3f3   :  { %v1836_v47 = vpop.xlane.xlu0 %1835  ;;  %2016 = vadd.xlane.f32.xlu0 %v2015_v50 }
 0x3f4   :  { %v4178_v56 = vsub.f32 %v3997_v20, %v1894_v62  ;;  %v1891_v19 = vmul.f32 0.03125, %v1836_v47  ;;  %v2018_v5 = vsel %vm202_vm0, %v1952_v60, 0.0  ;;  %v1957_v21 = vmul.f32 %v4172_v24, %v4172_v24 }
 0x3f5   :  { %v1839_v63 = vpop.xlane.xlu1 %1838  ;;  %2019 = vadd.xlane.f32.xlu1 %v2018_v5 }
 0x3f6   :  { %v4184_v54 = vsub.f32 %v4000_v34, %v1891_v19  ;;  %v1892_v2 = vmul.f32 0.03125, %v1839_v63  ;;  %v2033_v6 = vsel %vm202_vm0, %v1957_v21, 0.0  ;;  %v1958_v4 = vmul.f32 %v4178_v56, %v4178_v56 }
 0x3f7   :  { %v1854_v31 = vpop.xlane.xlu0 %1853  ;;  %2034 = vadd.xlane.f32.xlu0 %v2033_v6 }
 0x3f8   :  { %v4190_v20 = vsub.f32 %v4005_v9, %v1892_v2  ;;  %v1897_v28 = vmul.f32 0.03125, %v1854_v31  ;;  %v2036_v39 = vsel %vm202_vm0, %v1958_v4, 0.0  ;;  %v1955_v46 = vmul.f32 %v4184_v54, %v4184_v54 }
 0x3f9   :  { %v1857_v25 = vpop.xlane.xlu1 %1856  ;;  %2037 = vadd.xlane.f32.xlu1 %v2036_v39 }
 0x3fa   :  { %v4196_v34 = vsub.f32 %v4015_v15, %v1897_v28  ;;  %v1898_v61 = vmul.f32 0.03125, %v1857_v25  ;;  %v2027_v37 = vsel %vm202_vm0, %v1955_v46, 0.0  ;;  %v1956_v45 = vmul.f32 %v4190_v20, %v4190_v20 }
 0x3fb   :  { %v1848_v8 = vpop.xlane.xlu0 %1847  ;;  %2028 = vadd.xlane.f32.xlu0 %v2027_v37 }
 0x3fc   :  { %v4202_v9 = vsub.f32 %v4021_v27, %v1898_v61  ;;  %v1895_v48 = vmul.f32 0.03125, %v1848_v8  ;;  %v2030_v30 = vsel %vm202_vm0, %v1956_v45, 0.0  ;;  %v1961_v40 = vmul.f32 %v4196_v34, %v4196_v34 }
 0x3fd   :  { %v1851_v29 = vpop.xlane.xlu1 %1850  ;;  %2031 = vadd.xlane.f32.xlu1 %v2030_v30 }
 0x3fe   :  { %v4208_v15 = vsub.f32 %v4024_v3, %v1895_v48  ;;  %v1896_v13 = vmul.f32 0.03125, %v1851_v29  ;;  %v2045_v22 = vsel %vm202_vm0, %v1961_v40, 0.0  ;;  %v1962_v17 = vmul.f32 %v4202_v9, %v4202_v9 }
 0x3ff   :  { %2046 = vadd.xlane.f32.xlu0 %v2045_v22 }
 0x400   :  { %v4214_v27 = vsub.f32 %v4029_v57, %v1896_v13  ;;  %v1860_v1 = vpop.xlane.xlu0 %1859  ;;  %v2048_v42 = vsel %vm202_vm0, %v1962_v17, 0.0  ;;  %v1959_v44 = vmul.f32 %v4208_v15, %v4208_v15 }
 0x401   :  { %v1899_v62 = vmul.f32 0.03125, %v1860_v1  ;;  %2049 = vadd.xlane.f32.xlu1 %v2048_v42 }
 0x402   :  { %v1863_v3 = vpop.xlane.xlu1 %1862  ;;  %v2039_v50 = vsel %vm202_vm0, %v1959_v44, 0.0  ;;  %v1960_v60 = vmul.f32 %v4214_v27, %v4214_v27 }
 0x403   :  { %v4223_v47 = vsub.f32 %v4036_v32, %v1899_v62  ;;  %v1900_v19 = vmul.f32 0.03125, %v1863_v3  ;;  %2040 = vadd.xlane.f32.xlu0 %v2039_v50 }
 0x404   :  { %v1866_v57 = vpop.xlane.xlu0 %1865  ;;  %v2042_v5 = vsel %vm202_vm0, %v1960_v60, 0.0 }
 0x405   :  { %v4227_v21 = vsub.f32 %v4041_v53, %v1900_v19  ;;  %v1901_v63 = vmul.f32 0.03125, %v1866_v57  ;;  %2043 = vadd.xlane.f32.xlu1 %v2042_v5  ;;  %v1963_v2 = vmul.f32 %v4223_v47, %v4223_v47 }
 0x406   :  { %v1869_v6 = vpop.xlane.xlu1 %1868 }
 0x407   :  { %v4232_v4 = vsub.f32 %v4044_v0, %v1901_v63  ;;  %v1902_v31 = vmul.f32 0.03125, %v1869_v6  ;;  %v2051_v32 = vsel %vm202_vm0, %v1963_v2, 0.0  ;;  %v1964_v28 = vmul.f32 %v4227_v21, %v4227_v21  ;;  %v4250_v63 = vld [vmem:[%s4489_s8] ss:$0 sm:$0xff] }
 0x408   :  { %2052 = vadd.xlane.f32.xlu0 %v2051_v32 }
 0x409   :  { %v4238_v39 = vsub.f32 %v4049_v10, %v1902_v31  ;;  %v2054_v53 = vsel %vm202_vm0, %v1964_v28, 0.0  ;;  %v1965_v46 = vmul.f32 %v4232_v4, %v4232_v4 }
 0x40a   :  { %2055 = vadd.xlane.f32.xlu1 %v2054_v53  ;;  %v4256_v53 = vld [vmem:[%s4490_s9] ss:$0 sm:$0xff] }
 0x40b   :  { %v2057_v25 = vsel %vm202_vm0, %v1965_v46, 0.0  ;;  %v1966_v0 = vmul.f32 %v4238_v39, %v4238_v39 }
 0x40c   :  { %2058 = vadd.xlane.f32.xlu0 %v2057_v25 }
 0x40d   :  { %v2060_v61 = vsel %vm202_vm0, %v1966_v0, 0.0 }
 0x40e   :  { %2061 = vadd.xlane.f32.xlu1 %v2060_v61 }
 0x44c   :  { %v1975_v37 = vpop.xlane.xlu0 %1974 }
 0x44d   :  { %v2065_v45 = vmul.f32 0.03125, %v1975_v37 }
 0x44e   :  { %v1978_v8 = vpop.xlane.xlu1 %1977 }
 0x44f   :  { %v2097_v10 = vadd.f32 1e-05, %v2065_v45  ;;  %v2066_v48 = vmul.f32 0.03125, %v1978_v8 }
 0x450   :  { %v1969_v30 = vpop.xlane.xlu0 %1968 }
 0x451   :  { %2774 = vrsqrt.f32 %v2097_v10  ;;  %v2098_v40 = vadd.f32 1e-05, %v2066_v48  ;;  %v2063_v29 = vmul.f32 0.03125, %v1969_v30 }
 0x452   :  { %v1972_v13 = vpop.xlane.xlu1 %1971 }
 0x453   :  { %2776 = vrsqrt.f32 %v2098_v40  ;;  %v2095_v22 = vadd.f32 1e-05, %v2063_v29  ;;  %v2064_v17 = vmul.f32 0.03125, %v1972_v13 }
 0x455   :  { %2778 = vrsqrt.f32 %v2095_v22  ;;  %v2096_v1 = vadd.f32 1e-05, %v2064_v17  ;;  %v1987_v42 = vpop.xlane.xlu0 %1986 }
 0x456   :  { %v2069_v44 = vmul.f32 0.03125, %v1987_v42 }
 0x457   :  { %2780 = vrsqrt.f32 %v2096_v1  ;;  %v1990_v62 = vpop.xlane.xlu1 %1989 }
 0x458   :  { %v2101_v3 = vadd.f32 1e-05, %v2069_v44  ;;  %v2070_v50 = vmul.f32 0.03125, %v1990_v62 }
 0x459   :  { %v1981_v60 = vpop.xlane.xlu0 %1980 }
 0x45a   :  { %2782 = vrsqrt.f32 %v2101_v3  ;;  %v2102_v19 = vadd.f32 1e-05, %v2070_v50  ;;  %v2067_v57 = vmul.f32 0.03125, %v1981_v60 }
 0x45b   :  { %v2775_v5 = vpop.eup %2774  ;;  %v1984_v2 = vpop.xlane.xlu1 %1983 }
 0x45c   :  { %v2161_v6 = vmul.f32 %v2775_v5, %v4056_v16  ;;  %2784 = vrsqrt.f32 %v2102_v19  ;;  %v2099_v31 = vadd.f32 1e-05, %v2067_v57  ;;  %v2068_v32 = vmul.f32 0.03125, %v1984_v2 }
 0x45d   :  { %v2777_v28 = vpop.eup %2776 }
 0x45e   :  { %v2199_v46 = vmul.f32 %v4250_v63, %v2161_v6  ;;  %v2162_v25 = vmul.f32 %v2777_v28, %v4059_v52  ;;  %2786 = vrsqrt.f32 %v2099_v31  ;;  %v2100_v0 = vadd.f32 1e-05, %v2068_v32 }
 0x45f   :  { %v2779_v61 = vpop.eup %2778 }
 0x460   :  { %v2237_v37 = vadd.f32 %v4256_v53, %v2199_v46  ;;  %v2200_v16 = vmul.f32 %v4250_v63, %v2162_v25  ;;  %v2159_v45 = vmul.f32 %v2779_v61, %v4064_v18  ;;  %2788 = vrsqrt.f32 %v2100_v0 }
 0x461   :  { %v2781_v8 = vpop.eup %2780 }
 0x462   :  { %2269 = vst.msk [vmem:[%s4491_s10 + $0x10] sm:$0xff] %vm202_vm0, %v2237_v37  ;;  %v2238_v10 = vadd.f32 %v4256_v53, %v2200_v16  ;;  %v2197_v52 = vmul.f32 %v4250_v63, %v2159_v45  ;;  %v2160_v48 = vmul.f32 %v2781_v8, %v4070_v38 }
 0x464   :  { %v2783_v30 = vpop.eup %2782  ;;  %2270 = vst.msk [vmem:[%s4491_s10 + $0x18] sm:$0xff] %vm202_vm0, %v2238_v10  ;;  %v2235_v18 = vadd.f32 %v4256_v53, %v2197_v52  ;;  %v2198_v40 = vmul.f32 %v4250_v63, %v2160_v48  ;;  %v1999_v1 = vpop.xlane.xlu0 %1998 }
 0x465   :  { %v2165_v29 = vmul.f32 %v2783_v30, %v4079_v33  ;;  %v2073_v33 = vmul.f32 0.03125, %v1999_v1 }
 0x466   :  { %v2785_v13 = vpop.eup %2784  ;;  %2267 = vst.msk [vmem:[%s4491_s10] sm:$0xff] %vm202_vm0, %v2235_v18  ;;  %v2236_v38 = vadd.f32 %v4256_v53, %v2198_v40  ;;  %v2002_v50 = vpop.xlane.xlu1 %2001 }
 0x467   :  { %v2203_v22 = vmul.f32 %v4250_v63, %v2165_v29  ;;  %v2166_v17 = vmul.f32 %v2785_v13, %v4083_v59  ;;  %v2105_v19 = vadd.f32 1e-05, %v2073_v33  ;;  %v2074_v57 = vmul.f32 0.03125, %v2002_v50 }
 0x468   :  { %v2787_v42 = vpop.eup %2786  ;;  %2268 = vst.msk [vmem:[%s4491_s10 + $0x8] sm:$0xff] %vm202_vm0, %v2236_v38  ;;  %v1993_v6 = vpop.xlane.xlu0 %1992 }
 0x469   :  { %v2241_v44 = vadd.f32 %v4256_v53, %v2203_v22  ;;  %v2204_v62 = vmul.f32 %v4250_v63, %v2166_v17  ;;  %v2163_v3 = vmul.f32 %v2787_v42, %v4088_v14  ;;  %2790 = vrsqrt.f32 %v2105_v19 }
 0x46a   :  { %v2789_v60 = vpop.eup %2788  ;;  %v2106_v31 = vadd.f32 1e-05, %v2074_v57  ;;  %v2071_v32 = vmul.f32 0.03125, %v1993_v6  ;;  %v1996_v46 = vpop.xlane.xlu1 %1995 }
 0x46b   :  { %2273 = vst.msk [vmem:[%s4491_s10 + $0x30] sm:$0xff] %vm202_vm0, %v2241_v44  ;;  %v2242_v59 = vadd.f32 %v4256_v53, %v2204_v62  ;;  %v2201_v5 = vmul.f32 %v4250_v63, %v2163_v3  ;;  %v2164_v2 = vmul.f32 %v2789_v60, %v4094_v49  ;;  %v2072_v0 = vmul.f32 0.03125, %v1996_v46 }
 0x46c   :  { %2792 = vrsqrt.f32 %v2106_v31  ;;  %v2103_v25 = vadd.f32 1e-05, %v2071_v32 }
 0x46d   :  { %2274 = vst.msk [vmem:[%s4491_s10 + $0x38] sm:$0xff] %vm202_vm0, %v2242_v59  ;;  %v2239_v14 = vadd.f32 %v4256_v53, %v2201_v5  ;;  %v2202_v28 = vmul.f32 %v4250_v63, %v2164_v2  ;;  %v2104_v61 = vadd.f32 1e-05, %v2072_v0 }
 0x46e   :  { %2794 = vrsqrt.f32 %v2103_v25 }
 0x46f   :  { %2271 = vst.msk [vmem:[%s4491_s10 + $0x20] sm:$0xff] %vm202_vm0, %v2239_v14  ;;  %v2240_v49 = vadd.f32 %v4256_v53, %v2202_v28  ;;  %v2011_v37 = vpop.xlane.xlu0 %2010  ;;  %2796 = vrsqrt.f32 %v2104_v61 }
 0x470   :  { %v2077_v16 = vmul.f32 0.03125, %v2011_v37 }
 0x471   :  { %2272 = vst.msk [vmem:[%s4491_s10 + $0x28] sm:$0xff] %vm202_vm0, %v2240_v49  ;;  %v2014_v45 = vpop.xlane.xlu1 %2013 }
 0x472   :  { %v2109_v8 = vadd.f32 1e-05, %v2077_v16  ;;  %v2078_v10 = vmul.f32 0.03125, %v2014_v45 }
 0x473   :  { %v2005_v52 = vpop.xlane.xlu0 %2004  ;;  %v2791_v48 = vpop.eup %2790 }
 0x474   :  { %2798 = vrsqrt.f32 %v2109_v8  ;;  %v2110_v30 = vadd.f32 1e-05, %v2078_v10  ;;  %v2075_v18 = vmul.f32 0.03125, %v2005_v52  ;;  %v2169_v40 = vmul.f32 %v2791_v48, %v4104_v7 }
 0x475   :  { %v2008_v29 = vpop.xlane.xlu1 %2007 }
 0x476   :  { %v2793_v13 = vpop.eup %2792  ;;  %2800 = vrsqrt.f32 %v2110_v30  ;;  %v2107_v38 = vadd.f32 1e-05, %v2075_v18  ;;  %v2076_v22 = vmul.f32 0.03125, %v2008_v29  ;;  %v2207_v17 = vmul.f32 %v4250_v63, %v2169_v40 }
 0x477   :  { %v2170_v1 = vmul.f32 %v2793_v13, %v4107_v55 }
 0x478   :  { %v2795_v42 = vpop.eup %2794  ;;  %2802 = vrsqrt.f32 %v2107_v38  ;;  %v2108_v33 = vadd.f32 1e-05, %v2076_v22  ;;  %v2245_v44 = vadd.f32 %v4256_v53, %v2207_v17 }
 0x479   :  { %v2208_v62 = vmul.f32 %v4250_v63, %v2170_v1  ;;  %v2167_v3 = vmul.f32 %v2795_v42, %v4112_v11  ;;  %v2797_v50 = vpop.eup %2796 }
 0x47a   :  { %2804 = vrsqrt.f32 %v2108_v33  ;;  %2277 = vst.msk [vmem:[%s4491_s10 + $0x50] sm:$0xff] %vm202_vm0, %v2245_v44  ;;  %v2168_v60 = vmul.f32 %v2797_v50, %v4118_v26 }
 0x47b   :  { %v2246_v7 = vadd.f32 %v4256_v53, %v2208_v62  ;;  %v2205_v55 = vmul.f32 %v4250_v63, %v2167_v3 }
 0x47c   :  { %v2023_v19 = vpop.xlane.xlu0 %2022  ;;  %v2206_v57 = vmul.f32 %v4250_v63, %v2168_v60 }
 0x47d   :  { %2278 = vst.msk [vmem:[%s4491_s10 + $0x58] sm:$0xff] %vm202_vm0, %v2246_v7  ;;  %v2243_v11 = vadd.f32 %v4256_v53, %v2205_v55  ;;  %v2081_v59 = vmul.f32 0.03125, %v2023_v19 }
 0x47e   :  { %v2799_v5 = vpop.eup %2798  ;;  %v2026_v2 = vpop.xlane.xlu1 %2025  ;;  %v2244_v26 = vadd.f32 %v4256_v53, %v2206_v57 }
 0x47f   :  { %2275 = vst.msk [vmem:[%s4491_s10 + $0x40] sm:$0xff] %vm202_vm0, %v2243_v11  ;;  %v2173_v6 = vmul.f32 %v2799_v5, %v4127_v58  ;;  %v2113_v31 = vadd.f32 1e-05, %v2081_v59  ;;  %v2082_v32 = vmul.f32 0.03125, %v2026_v2 }
 0x480   :  { %v2801_v14 = vpop.eup %2800  ;;  %v2017_v28 = vpop.xlane.xlu0 %2016  ;;  %2276 = vst.msk [vmem:[%s4491_s10 + $0x48] sm:$0xff] %vm202_vm0, %v2244_v26 }
 0x481   :  { %v2211_v46 = vmul.f32 %v4250_v63, %v2173_v6  ;;  %v2174_v25 = vmul.f32 %v2801_v14, %v4131_v23  ;;  %2806 = vrsqrt.f32 %v2113_v31  ;;  %v2114_v0 = vadd.f32 1e-05, %v2082_v32 }
 0x482   :  { %v2803_v49 = vpop.eup %2802  ;;  %v2079_v61 = vmul.f32 0.03125, %v2017_v28  ;;  %v2020_v37 = vpop.xlane.xlu1 %2019 }
 0x483   :  { %v2249_v58 = vadd.f32 %v4256_v53, %v2211_v46  ;;  %v2212_v16 = vmul.f32 %v4250_v63, %v2174_v25  ;;  %v2171_v45 = vmul.f32 %v2803_v49, %v4136_v35  ;;  %2808 = vrsqrt.f32 %v2114_v0 }
 0x484   :  { %v2805_v8 = vpop.eup %2804  ;;  %v2111_v10 = vadd.f32 1e-05, %v2079_v61  ;;  %v2080_v52 = vmul.f32 0.03125, %v2020_v37  ;;  %v2035_v48 = vpop.xlane.xlu0 %2034 }
 0x485   :  { %2281 = vst.msk [vmem:[%s4491_s10 + $0x70] sm:$0xff] %vm202_vm0, %v2249_v58  ;;  %v2250_v23 = vadd.f32 %v4256_v53, %v2212_v16  ;;  %v2209_v30 = vmul.f32 %v4250_v63, %v2171_v45  ;;  %v2172_v18 = vmul.f32 %v2805_v8, %v4142_v12  ;;  %v2085_v40 = vmul.f32 0.03125, %v2035_v48 }
 0x486   :  { %2810 = vrsqrt.f32 %v2111_v10  ;;  %v2112_v29 = vadd.f32 1e-05, %v2080_v52  ;;  %v2038_v35 = vpop.xlane.xlu1 %2037 }
 0x487   :  { %2282 = vst.msk [vmem:[%s4491_s10 + $0x78] sm:$0xff] %vm202_vm0, %v2250_v23  ;;  %v2247_v13 = vadd.f32 %v4256_v53, %v2209_v30  ;;  %v2210_v38 = vmul.f32 %v4250_v63, %v2172_v18  ;;  %v2117_v22 = vadd.f32 1e-05, %v2085_v40  ;;  %v2086_v17 = vmul.f32 0.03125, %v2038_v35 }
 0x488   :  { %2812 = vrsqrt.f32 %v2112_v29  ;;  %v2029_v1 = vpop.xlane.xlu0 %2028 }
 0x489   :  { %2279 = vst.msk [vmem:[%s4491_s10 + $0x60] sm:$0xff] %vm202_vm0, %v2247_v13  ;;  %v2248_v12 = vadd.f32 %v4256_v53, %v2210_v38  ;;  %2814 = vrsqrt.f32 %v2117_v22  ;;  %v2118_v42 = vadd.f32 1e-05, %v2086_v17  ;;  %v2083_v33 = vmul.f32 0.03125, %v2029_v1 }
 0x48a   :  { %v2032_v44 = vpop.xlane.xlu1 %2031 }
 0x48b   :  { %v2807_v62 = vpop.eup %2806  ;;  %2280 = vst.msk [vmem:[%s4491_s10 + $0x68] sm:$0xff] %vm202_vm0, %v2248_v12  ;;  %2816 = vrsqrt.f32 %v2118_v42  ;;  %v2115_v3 = vadd.f32 1e-05, %v2083_v33  ;;  %v2084_v50 = vmul.f32 0.03125, %v2032_v44 }
 0x48c   :  { %v2177_v7 = vmul.f32 %v2807_v62, %v4152_v41  ;;  %v2047_v55 = vpop.xlane.xlu0 %2046 }
 0x48d   :  { %v2809_v60 = vpop.eup %2808  ;;  %2818 = vrsqrt.f32 %v2115_v3  ;;  %v2116_v19 = vadd.f32 1e-05, %v2084_v50  ;;  %v2089_v11 = vmul.f32 0.03125, %v2047_v55 }
 0x48e   :  { %v2215_v57 = vmul.f32 %v4250_v63, %v2177_v7  ;;  %v2178_v59 = vmul.f32 %v2809_v60, %v4155_v43  ;;  %v2050_v5 = vpop.xlane.xlu1 %2049 }
 0x48f   :  { %2820 = vrsqrt.f32 %v2116_v19  ;;  %v2121_v2 = vadd.f32 1e-05, %v2089_v11  ;;  %v2090_v26 = vmul.f32 0.03125, %v2050_v5 }
 0x490   :  { %v2811_v6 = vpop.eup %2810  ;;  %v2253_v31 = vadd.f32 %v4256_v53, %v2215_v57  ;;  %v2216_v32 = vmul.f32 %v4250_v63, %v2178_v59  ;;  %v2041_v14 = vpop.xlane.xlu0 %2040 }
 0x491   :  { %v2175_v41 = vmul.f32 %v2811_v6, %v4160_v36  ;;  %2822 = vrsqrt.f32 %v2121_v2  ;;  %v2122_v28 = vadd.f32 1e-05, %v2090_v26  ;;  %v2087_v46 = vmul.f32 0.03125, %v2041_v14 }
 0x492   :  { %v2813_v25 = vpop.eup %2812  ;;  %2285 = vst.msk [vmem:[%s4491_s10 + $0x90] sm:$0xff] %vm202_vm0, %v2253_v31  ;;  %v2254_v43 = vadd.f32 %v4256_v53, %v2216_v32  ;;  %v2044_v0 = vpop.xlane.xlu1 %2043 }
 0x493   :  { %v2815_v49 = vpop.eup %2814  ;;  %v2213_v61 = vmul.f32 %v4250_v63, %v2175_v41  ;;  %v2176_v37 = vmul.f32 %v2813_v25, %v4166_v51  ;;  %2824 = vrsqrt.f32 %v2122_v28  ;;  %v2119_v58 = vadd.f32 1e-05, %v2087_v46 }
 0x494   :  { %2286 = vst.msk [vmem:[%s4491_s10 + $0x98] sm:$0xff] %vm202_vm0, %v2254_v43  ;;  %v2181_v36 = vmul.f32 %v2815_v49, %v4172_v24  ;;  %v2088_v16 = vmul.f32 0.03125, %v2044_v0 }
 0x495   :  { %v2817_v45 = vpop.eup %2816  ;;  %v2251_v8 = vadd.f32 %v4256_v53, %v2213_v61  ;;  %v2214_v10 = vmul.f32 %v4250_v63, %v2176_v37  ;;  %2826 = vrsqrt.f32 %v2119_v58  ;;  %v2053_v52 = vpop.xlane.xlu0 %2052 }
 0x496   :  { %v2219_v48 = vmul.f32 %v4250_v63, %v2181_v36  ;;  %v2182_v51 = vmul.f32 %v2817_v45, %v4178_v56  ;;  %v2120_v23 = vadd.f32 1e-05, %v2088_v16  ;;  %v2091_v30 = vmul.f32 0.03125, %v2053_v52 }
 0x497   :  { %v2819_v18 = vpop.eup %2818  ;;  %2283 = vst.msk [vmem:[%s4491_s10 + $0x80] sm:$0xff] %vm202_vm0, %v2251_v8  ;;  %v2252_v24 = vadd.f32 %v4256_v53, %v2214_v10  ;;  %v2056_v40 = vpop.xlane.xlu1 %2055 }
 0x498   :  { %v2257_v29 = vadd.f32 %v4256_v53, %v2219_v48  ;;  %v2220_v35 = vmul.f32 %v4250_v63, %v2182_v51  ;;  %v2179_v13 = vmul.f32 %v2819_v18, %v4184_v54  ;;  %2828 = vrsqrt.f32 %v2120_v23 }
 0x499   :  { %v2821_v38 = vpop.eup %2820  ;;  %2284 = vst.msk [vmem:[%s4491_s10 + $0x88] sm:$0xff] %vm202_vm0, %v2252_v24  ;;  %v2123_v56 = vadd.f32 1e-05, %v2091_v30  ;;  %v2092_v22 = vmul.f32 0.03125, %v2056_v40  ;;  %v2059_v17 = vpop.xlane.xlu0 %2058 }
 0x49a   :  { %2289 = vst.msk [vmem:[%s4491_s10 + $0xb0] sm:$0xff] %vm202_vm0, %v2257_v29  ;;  %v2258_v1 = vadd.f32 %v4256_v53, %v2220_v35  ;;  %v2217_v12 = vmul.f32 %v4250_v63, %v2179_v13  ;;  %v2180_v54 = vmul.f32 %v2821_v38, %v4190_v20  ;;  %v2093_v42 = vmul.f32 0.03125, %v2059_v17 }
 0x49b   :  { %v2823_v33 = vpop.eup %2822  ;;  %2830 = vrsqrt.f32 %v2123_v56  ;;  %v2124_v44 = vadd.f32 1e-05, %v2092_v22  ;;  %v2062_v62 = vpop.xlane.xlu1 %2061 }
 0x49c   :  { %2290 = vst.msk [vmem:[%s4491_s10 + $0xb8] sm:$0xff] %vm202_vm0, %v2258_v1  ;;  %v2255_v3 = vadd.f32 %v4256_v53, %v2217_v12  ;;  %v2218_v50 = vmul.f32 %v4250_v63, %v2180_v54  ;;  %v2185_v7 = vmul.f32 %v2823_v33, %v4196_v34  ;;  %v2125_v55 = vadd.f32 1e-05, %v2093_v42 }
 0x49d   :  { %v2825_v60 = vpop.eup %2824  ;;  %2832 = vrsqrt.f32 %v2124_v44  ;;  %v2094_v20 = vmul.f32 0.03125, %v2062_v62 }
 0x49e   :  { %2287 = vst.msk [vmem:[%s4491_s10 + $0xa0] sm:$0xff] %vm202_vm0, %v2255_v3  ;;  %v2256_v19 = vadd.f32 %v4256_v53, %v2218_v50  ;;  %v2223_v11 = vmul.f32 %v4250_v63, %v2185_v7  ;;  %v2186_v57 = vmul.f32 %v2825_v60, %v4202_v9  ;;  %2834 = vrsqrt.f32 %v2125_v55 }
 0x49f   :  { %v2827_v59 = vpop.eup %2826  ;;  %v2126_v5 = vadd.f32 1e-05, %v2094_v20 }
 0x4a0   :  { %2288 = vst.msk [vmem:[%s4491_s10 + $0xa8] sm:$0xff] %vm202_vm0, %v2256_v19  ;;  %v2261_v34 = vadd.f32 %v4256_v53, %v2223_v11  ;;  %v2224_v2 = vmul.f32 %v4250_v63, %v2186_v57  ;;  %v2183_v26 = vmul.f32 %v2827_v59, %v4208_v15 }
 0x4a1   :  { %2836 = vrsqrt.f32 %v2126_v5 }
 0x4a2   :  { %v2829_v6 = vpop.eup %2828  ;;  %2293 = vst.msk [vmem:[%s4491_s10 + $0xd0] sm:$0xff] %vm202_vm0, %v2261_v34  ;;  %v2262_v9 = vadd.f32 %v4256_v53, %v2224_v2  ;;  %v2221_v31 = vmul.f32 %v4250_v63, %v2183_v26 }
 0x4a3   :  { %v2184_v32 = vmul.f32 %v2829_v6, %v4214_v27 }
 0x4a4   :  { %2294 = vst.msk [vmem:[%s4491_s10 + $0xd8] sm:$0xff] %vm202_vm0, %v2262_v9  ;;  %v2259_v15 = vadd.f32 %v4256_v53, %v2221_v31 }
 0x4a5   :  { %v2831_v14 = vpop.eup %2830  ;;  %v2222_v41 = vmul.f32 %v4250_v63, %v2184_v32 }
 0x4a6   :  { %2291 = vst.msk [vmem:[%s4491_s10 + $0xc0] sm:$0xff] %vm202_vm0, %v2259_v15  ;;  %v2187_v28 = vmul.f32 %v2831_v14, %v4223_v47 }
 0x4a7   :  { %v2833_v46 = vpop.eup %2832  ;;  %v2260_v27 = vadd.f32 %v4256_v53, %v2222_v41 }
 0x4a8   :  { %v2835_v25 = vpop.eup %2834  ;;  %v2225_v43 = vmul.f32 %v4250_v63, %v2187_v28  ;;  %v2188_v0 = vmul.f32 %v2833_v46, %v4227_v21 }
 0x4a9   :  { %2292 = vst.msk [vmem:[%s4491_s10 + $0xc8] sm:$0xff] %vm202_vm0, %v2260_v27  ;;  %v2189_v49 = vmul.f32 %v2835_v25, %v4232_v4 }
 0x4aa   :  { %v2263_v61 = vadd.f32 %v4256_v53, %v2225_v43  ;;  %v2226_v37 = vmul.f32 %v4250_v63, %v2188_v0 }
 0x4ab   :  { %v2837_v47 = vpop.eup %2836  ;;  %v2227_v58 = vmul.f32 %v4250_v63, %v2189_v49 }
 0x4ac   :  { %2295 = vst.msk [vmem:[%s4491_s10 + $0xe0] sm:$0xff] %vm202_vm0, %v2263_v61  ;;  %v2264_v21 = vadd.f32 %v4256_v53, %v2226_v37  ;;  %v2190_v36 = vmul.f32 %v2837_v47, %v4238_v39 }
 0x4ad   :  { %v2265_v16 = vadd.f32 %v4256_v53, %v2227_v58 }
 0x4ae   :  { %2296 = vst.msk [vmem:[%s4491_s10 + $0xe8] sm:$0xff] %vm202_vm0, %v2264_v21  ;;  %v2228_v4 = vmul.f32 %v4250_v63, %v2190_v36 }
 0x4af   :  { %2297 = vst.msk [vmem:[%s4491_s10 + $0xf0] sm:$0xff] %vm202_vm0, %v2265_v16 }
 0x4b0   :  { %v2266_v45 = vadd.f32 %v4256_v53, %v2228_v4 }
 0x4b2   :  { %2298 = vst.msk [vmem:[%s4491_s10 + $0xf8] sm:$0xff] %vm202_vm0, %v2266_v45 }

</bundles_post_ra>
